<compile_context>
chip_gen: v7x
topology: tpu7x:2x2x1
jax: 0.10.0
libtpu: 0.0.40
codegen_flags: <defaults>
</compile_context>

<pallas_src>
import functools

import jax
import jax.numpy as jnp
from jax.experimental import pallas as pl
from jax.experimental.pallas import tpu as pltpu


def _lstm_mlp_kernel(x_ref, wih_ref, whh_ref, b_ref,
                     w1_hbm, b1_ref, w2_hbm, b2_ref,
                     out_ref, xp_scr, w1_scr, w2_scr, dma_sem,
                     *, seq_len, batch, hidden, input_size):
    """LSTM recurrence over time (keep last hidden state) then
    Linear(H,1024) -> ReLU -> Linear(1024, O_pad)."""
    T, B, H, I = seq_len, batch, hidden, input_size

    # ---- Start MLP-head weight DMAs now; not needed until after the
    # recurrence, so the ~0.75 MB transfer hides behind the T-step loop.
    cp_w1 = pltpu.make_async_copy(w1_hbm, w1_scr, dma_sem.at[0])
    cp_w2 = pltpu.make_async_copy(w2_hbm, w2_scr, dma_sem.at[1])
    cp_w1.start()
    cp_w2.start()

    # ---- Hoisted input projection for ALL timesteps, time-major (T, B, 4H).
    # K = input_size is tiny, so do it as I rank-1 broadcast-MACs on the VPU
    # instead of an MXU matmul (avoids MXU fill/drain at ~3% utilization).
    x = x_ref[...].astype(jnp.float32)                       # (T, B, I)
    acc = jnp.zeros((T, B, 4 * H), jnp.float32) + b_ref[...]  # bias broadcast
    for i in range(I):
        acc = acc + x[:, :, i:i + 1] * wih_ref[i:i + 1, :]    # (T,B,1)*(1,4H)
    xp_scr[...] = acc                                          # (T, B, 4H) f32

    h = jnp.zeros((B, H), jnp.float32)
    c = jnp.zeros((B, H), jnp.float32)

    # ---- Recurrence: fully unrolled static loop, h/c live in vregs.
    # Gate column order is [i, f, o, g]: one sigmoid block, one tanh block.
    # TODO(synk): for long sequences switch to lax.fori_loop(..., unroll=4..8).
    for t in range(T):
        xp_t = xp_scr[t]                                      # (B, 4H) static, tile-aligned
        gates = xp_t + jnp.dot(h.astype(whh_ref.dtype), whh_ref[...],
                               preferred_element_type=jnp.float32)
        # sigmoid(x) = 0.5 * (tanh(x/2) + 1)  -> single EUP op, no VPU divide.
        sig = 0.5 * (jnp.tanh(0.5 * gates[:, :3 * H]) + 1.0)  # i, f, o
        g_g = jnp.tanh(gates[:, 3 * H:])                      # g
        i_g = sig[:, 0 * H:1 * H]
        f_g = sig[:, 1 * H:2 * H]
        o_g = sig[:, 2 * H:3 * H]
        c = f_g * c + i_g * g_g
        h = o_g * jnp.tanh(c)

    # ---- MLP head on the last hidden state (weights arrive via async DMA).
    cp_w1.wait()
    cp_w2.wait()
    hid = (jnp.dot(h.astype(w1_scr.dtype), w1_scr[...],
                   preferred_element_type=jnp.float32) + b1_ref[...])
    hid = jnp.maximum(hid, 0.0)                               # ReLU
    out = (jnp.dot(hid.astype(w2_scr.dtype), w2_scr[...],
                   preferred_element_type=jnp.float32) + b2_ref[...])
    out_ref[...] = out.astype(out_ref.dtype)                  # lane-dense (B, O_pad)


@functools.partial(jax.jit, static_argnames=("hidden_size",))
def base_lstm_forward(seq, params, hidden_size=256):
    """seq: (B, T, I) batch-first, like the PyTorch module."""
    B, T, I = seq.shape
    H = hidden_size
    O = params["b2"].shape[-1]
    O_pad = ((O + 127) // 128) * 128                          # lane-dense output slab
    N1 = params["w1"].shape[-1]                               # MLP hidden width (1024)

    cdt = jnp.bfloat16   # MXU operand dtype; accumulation stays f32.

    # batch_first (B,T,I) -> time-major (T,B,I): tiny transpose, effectively free.
    x_tm = jnp.transpose(seq, (1, 0, 2)).astype(jnp.float32)

    # Reorder gate columns [i, f, g, o] -> [i, f, o, g] once, host/XLA-side.
    def reorder(w):
        return jnp.concatenate(
            [w[..., 0 * H:1 * H], w[..., 1 * H:2 * H],
             w[..., 3 * H:4 * H], w[..., 2 * H:3 * H]], axis=-1)

    w_ih = reorder(params["w_ih"]).astype(jnp.float32)        # VPU projection -> f32
    w_hh = reorder(params["w_hh"]).astype(cdt)
    bias = reorder(params["bias"]).astype(jnp.float32)
    w1 = params["w1"].astype(cdt)
    b1 = params["b1"].astype(jnp.float32)
    # Pad tiny output dim up to 128 lanes -> unmasked stores in-kernel.
    w2 = jnp.pad(params["w2"], ((0, 0), (0, O_pad - O))).astype(cdt)
    b2 = jnp.pad(params["b2"], ((0, 0), (0, O_pad - O))).astype(jnp.float32)

    kernel = functools.partial(_lstm_mlp_kernel,
                               seq_len=T, batch=B, hidden=H, input_size=I)

    flops = (2 * T * B * I * 4 * H            # hoisted input projection (VPU)
             + T * 2 * B * H * 4 * H          # recurrence (h @ W_hh per step)
             + 2 * B * H * N1                 # MLP layer 1
             + 2 * B * N1 * O_pad)            # MLP layer 2
    transcendentals = T * B * 5 * H           # 4 tanh-block gates + tanh(c) per (b, t)
    bytes_accessed = (x_tm.size * 4 + w_ih.size * 4 + w_hh.size * 2
                      + bias.size * 4 + w1.size * 2 + b1.size * 4
                      + w2.size * 2 + b2.size * 4 + B * O_pad * 4)

    vmem = pl.BlockSpec(memory_space=pltpu.MemorySpace.VMEM)
    hbm = pl.BlockSpec(memory_space=pl.ANY)   # manual-DMA inputs (w1, w2)

    out = pl.pallas_call(
        kernel,
        out_shape=jax.ShapeDtypeStruct((B, O_pad), jnp.float32),
        in_specs=[vmem, vmem, vmem, vmem, hbm, vmem, hbm, vmem],
        out_specs=vmem,
        scratch_shapes=[
            pltpu.VMEM((T, B, 4 * H), jnp.float32),   # time-major x-projection
            pltpu.VMEM((H, N1), cdt),                 # w1 landing buffer
            pltpu.VMEM((N1, O_pad), cdt),             # w2 landing buffer
            pltpu.SemaphoreType.DMA((2,)),
        ],
        compiler_params=pltpu.CompilerParams(
            vmem_limit_bytes=32 * 1024 * 1024),
        cost_estimate=pl.CostEstimate(
            flops=flops, transcendentals=transcendentals,
            bytes_accessed=bytes_accessed),
    )(x_tm, w_ih, w_hh, bias, w1, b1, w2, b2)

    return out[:, :O]


def init_params(key, input_size=4, hidden_size=256, output_size=4):
    """Deterministic synthetic parameters (shapes match nn.LSTM / nn.Linear)."""
    ks = jax.random.split(key, 8)
    s_lstm = 1.0 / jnp.sqrt(hidden_size)
    s_l1 = 1.0 / jnp.sqrt(hidden_size)
    s_l2 = 1.0 / jnp.sqrt(1024)
    u = lambda k, shape, s: jax.random.uniform(k, shape, jnp.float32, -s, s)
    # Stored transposed relative to PyTorch (so kernel does x @ W), gate order [i,f,g,o].
    w_ih = u(ks[0], (input_size, 4 * hidden_size), s_lstm)
    w_hh = u(ks[1], (hidden_size, 4 * hidden_size), s_lstm)
    b_ih = u(ks[2], (1, 4 * hidden_size), s_lstm)
    b_hh = u(ks[3], (1, 4 * hidden_size), s_lstm)
    w1 = u(ks[4], (hidden_size, 1024), s_l1)
    b1 = u(ks[5], (1, 1024), s_l1)
    w2 = u(ks[6], (1024, output_size), s_l2)
    b2 = u(ks[7], (1, output_size), s_l2)
    return {
        "w_ih": w_ih, "w_hh": w_hh, "bias": b_ih + b_hh,
        "w1": w1, "b1": b1, "w2": w2, "b2": b2,
    }


def reference_forward(seq, params, hidden_size=256):
    """Pure-JAX f32 reference replicating torch semantics (gate order i,f,g,o)."""
    B, T, I = seq.shape
    H = hidden_size
    h = jnp.zeros((B, H), jnp.float32)
    c = jnp.zeros((B, H), jnp.float32)
    for t in range(T):
        g = seq[:, t, :] @ params["w_ih"] + h @ params["w_hh"] + params["bias"]
        i_g = jax.nn.sigmoid(g[:, :H])
        f_g = jax.nn.sigmoid(g[:, H:2 * H])
        g_g = jnp.tanh(g[:, 2 * H:3 * H])
        o_g = jax.nn.sigmoid(g[:, 3 * H:])
        c = f_g * c + i_g * g_g
        h = o_g * jnp.tanh(c)
    hid = jnp.maximum(h @ params["w1"] + params["b1"], 0.0)
    return hid @ params["w2"] + params["b2"]


if __name__ == "__main__":
    B, T, I, H, O = 2, 8, 4, 256, 4
    key = jax.random.PRNGKey(0)
    k_x, k_p = jax.random.split(key)
    seq = jax.random.normal(k_x, (B, T, I), jnp.float32)
    params = init_params(k_p, input_size=I, hidden_size=H, output_size=O)

    out = base_lstm_forward(seq, params, hidden_size=H)
    out = jax.block_until_ready(out)

    ref = reference_forward(seq, params, hidden_size=H)
    assert out.shape == (B, O)
    # bf16 recurrent/MXU operands (f32 accumulation) -> loosened tolerance vs f32 ref.
    assert jnp.allclose(out, ref, atol=2e-2, rtol=2e-2), "mismatch vs reference"

    print("KERNEL_OK")
</pallas_src>

<mosaic_0001>
module attributes {stable_mosaic.version = 11 : i64} {
  func.func @_lstm_mlp_kernel(%arg0: memref<8x2x4xf32, #tpu.memory_space<vmem>>, %arg1: memref<4x1024xf32, #tpu.memory_space<vmem>>, %arg2: memref<256x1024xbf16, #tpu.memory_space<vmem>>, %arg3: memref<1x1024xf32, #tpu.memory_space<vmem>>, %arg4: memref<256x1024xbf16, #tpu.memory_space<any>>, %arg5: memref<1x1024xf32, #tpu.memory_space<vmem>>, %arg6: memref<1024x128xbf16, #tpu.memory_space<any>>, %arg7: memref<1x128xf32, #tpu.memory_space<vmem>>, %arg8: memref<2x128xf32, #tpu.memory_space<vmem>>, %arg9: memref<8x2x1024xf32, #tpu.memory_space<vmem>>, %arg10: memref<256x1024xbf16, #tpu.memory_space<vmem>>, %arg11: memref<1024x128xbf16, #tpu.memory_space<vmem>>, %arg12: memref<2x!tpu.dma_semaphore, #tpu.memory_space<semaphore_mem>>) attributes {dimension_semantics = [], scalar_prefetch = 0 : i64, scratch_operands = 4 : i64, tpu.core_type = #tpu.core_type<tc>} {
    %c0_i32 = arith.constant 0 : i32
    %0 = tpu.memref_slice %arg12[%c0_i32] : memref<2x!tpu.dma_semaphore, #tpu.memory_space<semaphore_mem>> -> memref<1x!tpu.dma_semaphore, #tpu.memory_space<semaphore_mem>>
    %1 = tpu.memref_squeeze %0 : memref<1x!tpu.dma_semaphore, #tpu.memory_space<semaphore_mem>> -> memref<!tpu.dma_semaphore, #tpu.memory_space<semaphore_mem>>
    tpu.enqueue_dma source(%arg4 : memref<256x1024xbf16, #tpu.memory_space<any>>) target(%arg10 : memref<256x1024xbf16, #tpu.memory_space<vmem>>) target_semaphore(%1 : memref<!tpu.dma_semaphore, #tpu.memory_space<semaphore_mem>>)
    %c1_i32 = arith.constant 1 : i32
    %2 = tpu.memref_slice %arg12[%c1_i32] : memref<2x!tpu.dma_semaphore, #tpu.memory_space<semaphore_mem>> -> memref<1x!tpu.dma_semaphore, #tpu.memory_space<semaphore_mem>>
    %3 = tpu.memref_squeeze %2 : memref<1x!tpu.dma_semaphore, #tpu.memory_space<semaphore_mem>> -> memref<!tpu.dma_semaphore, #tpu.memory_space<semaphore_mem>>
    tpu.enqueue_dma source(%arg6 : memref<1024x128xbf16, #tpu.memory_space<any>>) target(%arg11 : memref<1024x128xbf16, #tpu.memory_space<vmem>>) target_semaphore(%3 : memref<!tpu.dma_semaphore, #tpu.memory_space<semaphore_mem>>)
    %c0 = arith.constant 0 : index
    %c0_0 = arith.constant 0 : index
    %c0_1 = arith.constant 0 : index
    %4 = vector.load %arg0[%c0, %c0_0, %c0_1] : memref<8x2x4xf32, #tpu.memory_space<vmem>>, vector<8x2x4xf32>
    %cst = arith.constant 0.000000e+00 : f32
    %5 = vector.broadcast %cst : f32 to vector<8x2x1024xf32>
    %c0_2 = arith.constant 0 : index
    %c0_3 = arith.constant 0 : index
    %6 = vector.load %arg3[%c0_2, %c0_3] : memref<1x1024xf32, #tpu.memory_space<vmem>>, vector<1x1024xf32>
    %7 = vector.shape_cast %6 : vector<1x1024xf32> to vector<1x1x1024xf32>
    %8 = vector.broadcast %7 : vector<1x1x1024xf32> to vector<8x2x1024xf32>
    %9 = arith.addf %5, %8 : vector<8x2x1024xf32>
    %10 = vector.extract_strided_slice %4 {offsets = [0, 0, 0], sizes = [8, 2, 1], strides = [1, 1, 1]} : vector<8x2x4xf32> to vector<8x2x1xf32>
    %c0_4 = arith.constant 0 : index
    %c0_5 = arith.constant 0 : index
    %11 = vector.load %arg1[%c0_4, %c0_5] : memref<4x1024xf32, #tpu.memory_space<vmem>>, vector<1x1024xf32>
    %12 = vector.shape_cast %11 : vector<1x1024xf32> to vector<1x1x1024xf32>
    %13 = vector.broadcast %10 : vector<8x2x1xf32> to vector<8x2x1024xf32>
    %14 = vector.broadcast %12 : vector<1x1x1024xf32> to vector<8x2x1024xf32>
    %15 = arith.mulf %13, %14 : vector<8x2x1024xf32>
    %16 = arith.addf %9, %15 : vector<8x2x1024xf32>
    %17 = vector.extract_strided_slice %4 {offsets = [0, 0, 1], sizes = [8, 2, 1], strides = [1, 1, 1]} : vector<8x2x4xf32> to vector<8x2x1xf32>
    %c1 = arith.constant 1 : index
    %c0_6 = arith.constant 0 : index
    %18 = vector.load %arg1[%c1, %c0_6] : memref<4x1024xf32, #tpu.memory_space<vmem>>, vector<1x1024xf32>
    %19 = vector.shape_cast %18 : vector<1x1024xf32> to vector<1x1x1024xf32>
    %20 = vector.broadcast %17 : vector<8x2x1xf32> to vector<8x2x1024xf32>
    %21 = vector.broadcast %19 : vector<1x1x1024xf32> to vector<8x2x1024xf32>
    %22 = arith.mulf %20, %21 : vector<8x2x1024xf32>
    %23 = arith.addf %16, %22 : vector<8x2x1024xf32>
    %24 = vector.extract_strided_slice %4 {offsets = [0, 0, 2], sizes = [8, 2, 1], strides = [1, 1, 1]} : vector<8x2x4xf32> to vector<8x2x1xf32>
    %c2 = arith.constant 2 : index
    %c0_7 = arith.constant 0 : index
    %25 = vector.load %arg1[%c2, %c0_7] : memref<4x1024xf32, #tpu.memory_space<vmem>>, vector<1x1024xf32>
    %26 = vector.shape_cast %25 : vector<1x1024xf32> to vector<1x1x1024xf32>
    %27 = vector.broadcast %24 : vector<8x2x1xf32> to vector<8x2x1024xf32>
    %28 = vector.broadcast %26 : vector<1x1x1024xf32> to vector<8x2x1024xf32>
    %29 = arith.mulf %27, %28 : vector<8x2x1024xf32>
    %30 = arith.addf %23, %29 : vector<8x2x1024xf32>
    %31 = vector.extract_strided_slice %4 {offsets = [0, 0, 3], sizes = [8, 2, 1], strides = [1, 1, 1]} : vector<8x2x4xf32> to vector<8x2x1xf32>
    %c3 = arith.constant 3 : index
    %c0_8 = arith.constant 0 : index
    %32 = vector.load %arg1[%c3, %c0_8] : memref<4x1024xf32, #tpu.memory_space<vmem>>, vector<1x1024xf32>
    %33 = vector.shape_cast %32 : vector<1x1024xf32> to vector<1x1x1024xf32>
    %34 = vector.broadcast %31 : vector<8x2x1xf32> to vector<8x2x1024xf32>
    %35 = vector.broadcast %33 : vector<1x1x1024xf32> to vector<8x2x1024xf32>
    %36 = arith.mulf %34, %35 : vector<8x2x1024xf32>
    %37 = arith.addf %30, %36 : vector<8x2x1024xf32>
    %c0_9 = arith.constant 0 : index
    %c0_10 = arith.constant 0 : index
    %c0_11 = arith.constant 0 : index
    %38 = vector.load %arg9[%c0_9, %c0_10, %c0_11] : memref<8x2x1024xf32, #tpu.memory_space<vmem>>, vector<8x2x1024xf32>
    tpu.vector_store %arg9[%c0_9, %c0_10, %c0_11], %37 {strides = array<i32>} : memref<8x2x1024xf32, #tpu.memory_space<vmem>>, vector<8x2x1024xf32>,
    %cst_12 = arith.constant 0.000000e+00 : f32
    %39 = vector.broadcast %cst_12 : f32 to vector<2x256xf32>
    %cst_13 = arith.constant 0.000000e+00 : f32
    %40 = vector.broadcast %cst_13 : f32 to vector<2x256xf32>
    %c0_14 = arith.constant 0 : index
    %c0_15 = arith.constant 0 : index
    %c0_16 = arith.constant 0 : index
    %41 = vector.load %arg9[%c0_14, %c0_15, %c0_16] : memref<8x2x1024xf32, #tpu.memory_space<vmem>>, vector<1x2x1024xf32>
    %42 = vector.shape_cast %41 : vector<1x2x1024xf32> to vector<2x1024xf32>
    %43 = arith.truncf %39 : vector<2x256xf32> to vector<2x256xbf16>
    %c0_17 = arith.constant 0 : index
    %c0_18 = arith.constant 0 : index
    %44 = vector.load %arg2[%c0_17, %c0_18] : memref<256x1024xbf16, #tpu.memory_space<vmem>>, vector<256x1024xbf16>
    %cst_19 = arith.constant dense<0.000000e+00> : vector<2x1024xf32>
    %45 = tpu.matmul %43, %44, %cst_19 {dimension_numbers = #tpu.dot_dimension_numbers<[1], [0], [0], [1], [0, 0, 1, 1], [], []>} : vector<2x256xbf16>, vector<256x1024xbf16>, vector<2x1024xf32> -> vector<2x1024xf32>
    %46 = arith.addf %42, %45 : vector<2x1024xf32>
    %47 = vector.extract_strided_slice %46 {offsets = [0, 0], sizes = [2, 768], strides = [1, 1]} : vector<2x1024xf32> to vector<2x768xf32>
    %cst_20 = arith.constant 5.000000e-01 : f32
    %48 = vector.broadcast %cst_20 : f32 to vector<2x768xf32>
    %49 = arith.mulf %48, %47 : vector<2x768xf32>
    %50 = math.tanh %49 : vector<2x768xf32>
    %cst_21 = arith.constant 1.000000e+00 : f32
    %51 = vector.broadcast %cst_21 : f32 to vector<2x768xf32>
    %52 = arith.addf %50, %51 : vector<2x768xf32>
    %cst_22 = arith.constant 5.000000e-01 : f32
    %53 = vector.broadcast %cst_22 : f32 to vector<2x768xf32>
    %54 = arith.mulf %53, %52 : vector<2x768xf32>
    %55 = vector.extract_strided_slice %46 {offsets = [0, 768], sizes = [2, 256], strides = [1, 1]} : vector<2x1024xf32> to vector<2x256xf32>
    %56 = math.tanh %55 : vector<2x256xf32>
    %57 = vector.extract_strided_slice %54 {offsets = [0, 0], sizes = [2, 256], strides = [1, 1]} : vector<2x768xf32> to vector<2x256xf32>
    %58 = vector.extract_strided_slice %54 {offsets = [0, 256], sizes = [2, 256], strides = [1, 1]} : vector<2x768xf32> to vector<2x256xf32>
    %59 = vector.extract_strided_slice %54 {offsets = [0, 512], sizes = [2, 256], strides = [1, 1]} : vector<2x768xf32> to vector<2x256xf32>
    %60 = arith.mulf %58, %40 : vector<2x256xf32>
    %61 = arith.mulf %57, %56 : vector<2x256xf32>
    %62 = arith.addf %60, %61 : vector<2x256xf32>
    %63 = math.tanh %62 : vector<2x256xf32>
    %64 = arith.mulf %59, %63 : vector<2x256xf32>
    %c1_23 = arith.constant 1 : index
    %c0_24 = arith.constant 0 : index
    %c0_25 = arith.constant 0 : index
    %65 = vector.load %arg9[%c1_23, %c0_24, %c0_25] : memref<8x2x1024xf32, #tpu.memory_space<vmem>>, vector<1x2x1024xf32>
    %66 = vector.shape_cast %65 : vector<1x2x1024xf32> to vector<2x1024xf32>
    %67 = arith.truncf %64 : vector<2x256xf32> to vector<2x256xbf16>
    %c0_26 = arith.constant 0 : index
    %c0_27 = arith.constant 0 : index
    %68 = vector.load %arg2[%c0_26, %c0_27] : memref<256x1024xbf16, #tpu.memory_space<vmem>>, vector<256x1024xbf16>
    %cst_28 = arith.constant dense<0.000000e+00> : vector<2x1024xf32>
    %69 = tpu.matmul %67, %68, %cst_28 {dimension_numbers = #tpu.dot_dimension_numbers<[1], [0], [0], [1], [0, 0, 1, 1], [], []>} : vector<2x256xbf16>, vector<256x1024xbf16>, vector<2x1024xf32> -> vector<2x1024xf32>
    %70 = arith.addf %66, %69 : vector<2x1024xf32>
    %71 = vector.extract_strided_slice %70 {offsets = [0, 0], sizes = [2, 768], strides = [1, 1]} : vector<2x1024xf32> to vector<2x768xf32>
    %cst_29 = arith.constant 5.000000e-01 : f32
    %72 = vector.broadcast %cst_29 : f32 to vector<2x768xf32>
    %73 = arith.mulf %72, %71 : vector<2x768xf32>
    %74 = math.tanh %73 : vector<2x768xf32>
    %cst_30 = arith.constant 1.000000e+00 : f32
    %75 = vector.broadcast %cst_30 : f32 to vector<2x768xf32>
    %76 = arith.addf %74, %75 : vector<2x768xf32>
    %cst_31 = arith.constant 5.000000e-01 : f32
    %77 = vector.broadcast %cst_31 : f32 to vector<2x768xf32>
    %78 = arith.mulf %77, %76 : vector<2x768xf32>
    %79 = vector.extract_strided_slice %70 {offsets = [0, 768], sizes = [2, 256], strides = [1, 1]} : vector<2x1024xf32> to vector<2x256xf32>
    %80 = math.tanh %79 : vector<2x256xf32>
    %81 = vector.extract_strided_slice %78 {offsets = [0, 0], sizes = [2, 256], strides = [1, 1]} : vector<2x768xf32> to vector<2x256xf32>
    %82 = vector.extract_strided_slice %78 {offsets = [0, 256], sizes = [2, 256], strides = [1, 1]} : vector<2x768xf32> to vector<2x256xf32>
    %83 = vector.extract_strided_slice %78 {offsets = [0, 512], sizes = [2, 256], strides = [1, 1]} : vector<2x768xf32> to vector<2x256xf32>
    %84 = arith.mulf %82, %62 : vector<2x256xf32>
    %85 = arith.mulf %81, %80 : vector<2x256xf32>
    %86 = arith.addf %84, %85 : vector<2x256xf32>
    %87 = math.tanh %86 : vector<2x256xf32>
    %88 = arith.mulf %83, %87 : vector<2x256xf32>
    %c2_32 = arith.constant 2 : index
    %c0_33 = arith.constant 0 : index
    %c0_34 = arith.constant 0 : index
    %89 = vector.load %arg9[%c2_32, %c0_33, %c0_34] : memref<8x2x1024xf32, #tpu.memory_space<vmem>>, vector<1x2x1024xf32>
    %90 = vector.shape_cast %89 : vector<1x2x1024xf32> to vector<2x1024xf32>
    %91 = arith.truncf %88 : vector<2x256xf32> to vector<2x256xbf16>
    %c0_35 = arith.constant 0 : index
    %c0_36 = arith.constant 0 : index
    %92 = vector.load %arg2[%c0_35, %c0_36] : memref<256x1024xbf16, #tpu.memory_space<vmem>>, vector<256x1024xbf16>
    %cst_37 = arith.constant dense<0.000000e+00> : vector<2x1024xf32>
    %93 = tpu.matmul %91, %92, %cst_37 {dimension_numbers = #tpu.dot_dimension_numbers<[1], [0], [0], [1], [0, 0, 1, 1], [], []>} : vector<2x256xbf16>, vector<256x1024xbf16>, vector<2x1024xf32> -> vector<2x1024xf32>
    %94 = arith.addf %90, %93 : vector<2x1024xf32>
    %95 = vector.extract_strided_slice %94 {offsets = [0, 0], sizes = [2, 768], strides = [1, 1]} : vector<2x1024xf32> to vector<2x768xf32>
    %cst_38 = arith.constant 5.000000e-01 : f32
    %96 = vector.broadcast %cst_38 : f32 to vector<2x768xf32>
    %97 = arith.mulf %96, %95 : vector<2x768xf32>
    %98 = math.tanh %97 : vector<2x768xf32>
    %cst_39 = arith.constant 1.000000e+00 : f32
    %99 = vector.broadcast %cst_39 : f32 to vector<2x768xf32>
    %100 = arith.addf %98, %99 : vector<2x768xf32>
    %cst_40 = arith.constant 5.000000e-01 : f32
    %101 = vector.broadcast %cst_40 : f32 to vector<2x768xf32>
    %102 = arith.mulf %101, %100 : vector<2x768xf32>
    %103 = vector.extract_strided_slice %94 {offsets = [0, 768], sizes = [2, 256], strides = [1, 1]} : vector<2x1024xf32> to vector<2x256xf32>
    %104 = math.tanh %103 : vector<2x256xf32>
    %105 = vector.extract_strided_slice %102 {offsets = [0, 0], sizes = [2, 256], strides = [1, 1]} : vector<2x768xf32> to vector<2x256xf32>
    %106 = vector.extract_strided_slice %102 {offsets = [0, 256], sizes = [2, 256], strides = [1, 1]} : vector<2x768xf32> to vector<2x256xf32>
    %107 = vector.extract_strided_slice %102 {offsets = [0, 512], sizes = [2, 256], strides = [1, 1]} : vector<2x768xf32> to vector<2x256xf32>
    %108 = arith.mulf %106, %86 : vector<2x256xf32>
    %109 = arith.mulf %105, %104 : vector<2x256xf32>
    %110 = arith.addf %108, %109 : vector<2x256xf32>
    %111 = math.tanh %110 : vector<2x256xf32>
    %112 = arith.mulf %107, %111 : vector<2x256xf32>
    %c3_41 = arith.constant 3 : index
    %c0_42 = arith.constant 0 : index
    %c0_43 = arith.constant 0 : index
    %113 = vector.load %arg9[%c3_41, %c0_42, %c0_43] : memref<8x2x1024xf32, #tpu.memory_space<vmem>>, vector<1x2x1024xf32>
    %114 = vector.shape_cast %113 : vector<1x2x1024xf32> to vector<2x1024xf32>
    %115 = arith.truncf %112 : vector<2x256xf32> to vector<2x256xbf16>
    %c0_44 = arith.constant 0 : index
    %c0_45 = arith.constant 0 : index
    %116 = vector.load %arg2[%c0_44, %c0_45] : memref<256x1024xbf16, #tpu.memory_space<vmem>>, vector<256x1024xbf16>
    %cst_46 = arith.constant dense<0.000000e+00> : vector<2x1024xf32>
    %117 = tpu.matmul %115, %116, %cst_46 {dimension_numbers = #tpu.dot_dimension_numbers<[1], [0], [0], [1], [0, 0, 1, 1], [], []>} : vector<2x256xbf16>, vector<256x1024xbf16>, vector<2x1024xf32> -> vector<2x1024xf32>
    %118 = arith.addf %114, %117 : vector<2x1024xf32>
    %119 = vector.extract_strided_slice %118 {offsets = [0, 0], sizes = [2, 768], strides = [1, 1]} : vector<2x1024xf32> to vector<2x768xf32>
    %cst_47 = arith.constant 5.000000e-01 : f32
    %120 = vector.broadcast %cst_47 : f32 to vector<2x768xf32>
    %121 = arith.mulf %120, %119 : vector<2x768xf32>
    %122 = math.tanh %121 : vector<2x768xf32>
    %cst_48 = arith.constant 1.000000e+00 : f32
    %123 = vector.broadcast %cst_48 : f32 to vector<2x768xf32>
    %124 = arith.addf %122, %123 : vector<2x768xf32>
    %cst_49 = arith.constant 5.000000e-01 : f32
    %125 = vector.broadcast %cst_49 : f32 to vector<2x768xf32>
    %126 = arith.mulf %125, %124 : vector<2x768xf32>
    %127 = vector.extract_strided_slice %118 {offsets = [0, 768], sizes = [2, 256], strides = [1, 1]} : vector<2x1024xf32> to vector<2x256xf32>
    %128 = math.tanh %127 : vector<2x256xf32>
    %129 = vector.extract_strided_slice %126 {offsets = [0, 0], sizes = [2, 256], strides = [1, 1]} : vector<2x768xf32> to vector<2x256xf32>
    %130 = vector.extract_strided_slice %126 {offsets = [0, 256], sizes = [2, 256], strides = [1, 1]} : vector<2x768xf32> to vector<2x256xf32>
    %131 = vector.extract_strided_slice %126 {offsets = [0, 512], sizes = [2, 256], strides = [1, 1]} : vector<2x768xf32> to vector<2x256xf32>
    %132 = arith.mulf %130, %110 : vector<2x256xf32>
    %133 = arith.mulf %129, %128 : vector<2x256xf32>
    %134 = arith.addf %132, %133 : vector<2x256xf32>
    %135 = math.tanh %134 : vector<2x256xf32>
    %136 = arith.mulf %131, %135 : vector<2x256xf32>
    %c4 = arith.constant 4 : index
    %c0_50 = arith.constant 0 : index
    %c0_51 = arith.constant 0 : index
    %137 = vector.load %arg9[%c4, %c0_50, %c0_51] : memref<8x2x1024xf32, #tpu.memory_space<vmem>>, vector<1x2x1024xf32>
    %138 = vector.shape_cast %137 : vector<1x2x1024xf32> to vector<2x1024xf32>
    %139 = arith.truncf %136 : vector<2x256xf32> to vector<2x256xbf16>
    %c0_52 = arith.constant 0 : index
    %c0_53 = arith.constant 0 : index
    %140 = vector.load %arg2[%c0_52, %c0_53] : memref<256x1024xbf16, #tpu.memory_space<vmem>>, vector<256x1024xbf16>
    %cst_54 = arith.constant dense<0.000000e+00> : vector<2x1024xf32>
    %141 = tpu.matmul %139, %140, %cst_54 {dimension_numbers = #tpu.dot_dimension_numbers<[1], [0], [0], [1], [0, 0, 1, 1], [], []>} : vector<2x256xbf16>, vector<256x1024xbf16>, vector<2x1024xf32> -> vector<2x1024xf32>
    %142 = arith.addf %138, %141 : vector<2x1024xf32>
    %143 = vector.extract_strided_slice %142 {offsets = [0, 0], sizes = [2, 768], strides = [1, 1]} : vector<2x1024xf32> to vector<2x768xf32>
    %cst_55 = arith.constant 5.000000e-01 : f32
    %144 = vector.broadcast %cst_55 : f32 to vector<2x768xf32>
    %145 = arith.mulf %144, %143 : vector<2x768xf32>
    %146 = math.tanh %145 : vector<2x768xf32>
    %cst_56 = arith.constant 1.000000e+00 : f32
    %147 = vector.broadcast %cst_56 : f32 to vector<2x768xf32>
    %148 = arith.addf %146, %147 : vector<2x768xf32>
    %cst_57 = arith.constant 5.000000e-01 : f32
    %149 = vector.broadcast %cst_57 : f32 to vector<2x768xf32>
    %150 = arith.mulf %149, %148 : vector<2x768xf32>
    %151 = vector.extract_strided_slice %142 {offsets = [0, 768], sizes = [2, 256], strides = [1, 1]} : vector<2x1024xf32> to vector<2x256xf32>
    %152 = math.tanh %151 : vector<2x256xf32>
    %153 = vector.extract_strided_slice %150 {offsets = [0, 0], sizes = [2, 256], strides = [1, 1]} : vector<2x768xf32> to vector<2x256xf32>
    %154 = vector.extract_strided_slice %150 {offsets = [0, 256], sizes = [2, 256], strides = [1, 1]} : vector<2x768xf32> to vector<2x256xf32>
    %155 = vector.extract_strided_slice %150 {offsets = [0, 512], sizes = [2, 256], strides = [1, 1]} : vector<2x768xf32> to vector<2x256xf32>
    %156 = arith.mulf %154, %134 : vector<2x256xf32>
    %157 = arith.mulf %153, %152 : vector<2x256xf32>
    %158 = arith.addf %156, %157 : vector<2x256xf32>
    %159 = math.tanh %158 : vector<2x256xf32>
    %160 = arith.mulf %155, %159 : vector<2x256xf32>
    %c5 = arith.constant 5 : index
    %c0_58 = arith.constant 0 : index
    %c0_59 = arith.constant 0 : index
    %161 = vector.load %arg9[%c5, %c0_58, %c0_59] : memref<8x2x1024xf32, #tpu.memory_space<vmem>>, vector<1x2x1024xf32>
    %162 = vector.shape_cast %161 : vector<1x2x1024xf32> to vector<2x1024xf32>
    %163 = arith.truncf %160 : vector<2x256xf32> to vector<2x256xbf16>
    %c0_60 = arith.constant 0 : index
    %c0_61 = arith.constant 0 : index
    %164 = vector.load %arg2[%c0_60, %c0_61] : memref<256x1024xbf16, #tpu.memory_space<vmem>>, vector<256x1024xbf16>
    %cst_62 = arith.constant dense<0.000000e+00> : vector<2x1024xf32>
    %165 = tpu.matmul %163, %164, %cst_62 {dimension_numbers = #tpu.dot_dimension_numbers<[1], [0], [0], [1], [0, 0, 1, 1], [], []>} : vector<2x256xbf16>, vector<256x1024xbf16>, vector<2x1024xf32> -> vector<2x1024xf32>
    %166 = arith.addf %162, %165 : vector<2x1024xf32>
    %167 = vector.extract_strided_slice %166 {offsets = [0, 0], sizes = [2, 768], strides = [1, 1]} : vector<2x1024xf32> to vector<2x768xf32>
    %cst_63 = arith.constant 5.000000e-01 : f32
    %168 = vector.broadcast %cst_63 : f32 to vector<2x768xf32>
    %169 = arith.mulf %168, %167 : vector<2x768xf32>
    %170 = math.tanh %169 : vector<2x768xf32>
    %cst_64 = arith.constant 1.000000e+00 : f32
    %171 = vector.broadcast %cst_64 : f32 to vector<2x768xf32>
    %172 = arith.addf %170, %171 : vector<2x768xf32>
    %cst_65 = arith.constant 5.000000e-01 : f32
    %173 = vector.broadcast %cst_65 : f32 to vector<2x768xf32>
    %174 = arith.mulf %173, %172 : vector<2x768xf32>
    %175 = vector.extract_strided_slice %166 {offsets = [0, 768], sizes = [2, 256], strides = [1, 1]} : vector<2x1024xf32> to vector<2x256xf32>
    %176 = math.tanh %175 : vector<2x256xf32>
    %177 = vector.extract_strided_slice %174 {offsets = [0, 0], sizes = [2, 256], strides = [1, 1]} : vector<2x768xf32> to vector<2x256xf32>
    %178 = vector.extract_strided_slice %174 {offsets = [0, 256], sizes = [2, 256], strides = [1, 1]} : vector<2x768xf32> to vector<2x256xf32>
    %179 = vector.extract_strided_slice %174 {offsets = [0, 512], sizes = [2, 256], strides = [1, 1]} : vector<2x768xf32> to vector<2x256xf32>
    %180 = arith.mulf %178, %158 : vector<2x256xf32>
    %181 = arith.mulf %177, %176 : vector<2x256xf32>
    %182 = arith.addf %180, %181 : vector<2x256xf32>
    %183 = math.tanh %182 : vector<2x256xf32>
    %184 = arith.mulf %179, %183 : vector<2x256xf32>
    %c6 = arith.constant 6 : index
    %c0_66 = arith.constant 0 : index
    %c0_67 = arith.constant 0 : index
    %185 = vector.load %arg9[%c6, %c0_66, %c0_67] : memref<8x2x1024xf32, #tpu.memory_space<vmem>>, vector<1x2x1024xf32>
    %186 = vector.shape_cast %185 : vector<1x2x1024xf32> to vector<2x1024xf32>
    %187 = arith.truncf %184 : vector<2x256xf32> to vector<2x256xbf16>
    %c0_68 = arith.constant 0 : index
    %c0_69 = arith.constant 0 : index
    %188 = vector.load %arg2[%c0_68, %c0_69] : memref<256x1024xbf16, #tpu.memory_space<vmem>>, vector<256x1024xbf16>
    %cst_70 = arith.constant dense<0.000000e+00> : vector<2x1024xf32>
    %189 = tpu.matmul %187, %188, %cst_70 {dimension_numbers = #tpu.dot_dimension_numbers<[1], [0], [0], [1], [0, 0, 1, 1], [], []>} : vector<2x256xbf16>, vector<256x1024xbf16>, vector<2x1024xf32> -> vector<2x1024xf32>
    %190 = arith.addf %186, %189 : vector<2x1024xf32>
    %191 = vector.extract_strided_slice %190 {offsets = [0, 0], sizes = [2, 768], strides = [1, 1]} : vector<2x1024xf32> to vector<2x768xf32>
    %cst_71 = arith.constant 5.000000e-01 : f32
    %192 = vector.broadcast %cst_71 : f32 to vector<2x768xf32>
    %193 = arith.mulf %192, %191 : vector<2x768xf32>
    %194 = math.tanh %193 : vector<2x768xf32>
    %cst_72 = arith.constant 1.000000e+00 : f32
    %195 = vector.broadcast %cst_72 : f32 to vector<2x768xf32>
    %196 = arith.addf %194, %195 : vector<2x768xf32>
    %cst_73 = arith.constant 5.000000e-01 : f32
    %197 = vector.broadcast %cst_73 : f32 to vector<2x768xf32>
    %198 = arith.mulf %197, %196 : vector<2x768xf32>
    %199 = vector.extract_strided_slice %190 {offsets = [0, 768], sizes = [2, 256], strides = [1, 1]} : vector<2x1024xf32> to vector<2x256xf32>
    %200 = math.tanh %199 : vector<2x256xf32>
    %201 = vector.extract_strided_slice %198 {offsets = [0, 0], sizes = [2, 256], strides = [1, 1]} : vector<2x768xf32> to vector<2x256xf32>
    %202 = vector.extract_strided_slice %198 {offsets = [0, 256], sizes = [2, 256], strides = [1, 1]} : vector<2x768xf32> to vector<2x256xf32>
    %203 = vector.extract_strided_slice %198 {offsets = [0, 512], sizes = [2, 256], strides = [1, 1]} : vector<2x768xf32> to vector<2x256xf32>
    %204 = arith.mulf %202, %182 : vector<2x256xf32>
    %205 = arith.mulf %201, %200 : vector<2x256xf32>
    %206 = arith.addf %204, %205 : vector<2x256xf32>
    %207 = math.tanh %206 : vector<2x256xf32>
    %208 = arith.mulf %203, %207 : vector<2x256xf32>
    %c7 = arith.constant 7 : index
    %c0_74 = arith.constant 0 : index
    %c0_75 = arith.constant 0 : index
    %209 = vector.load %arg9[%c7, %c0_74, %c0_75] : memref<8x2x1024xf32, #tpu.memory_space<vmem>>, vector<1x2x1024xf32>
    %210 = vector.shape_cast %209 : vector<1x2x1024xf32> to vector<2x1024xf32>
    %211 = arith.truncf %208 : vector<2x256xf32> to vector<2x256xbf16>
    %c0_76 = arith.constant 0 : index
    %c0_77 = arith.constant 0 : index
    %212 = vector.load %arg2[%c0_76, %c0_77] : memref<256x1024xbf16, #tpu.memory_space<vmem>>, vector<256x1024xbf16>
    %cst_78 = arith.constant dense<0.000000e+00> : vector<2x1024xf32>
    %213 = tpu.matmul %211, %212, %cst_78 {dimension_numbers = #tpu.dot_dimension_numbers<[1], [0], [0], [1], [0, 0, 1, 1], [], []>} : vector<2x256xbf16>, vector<256x1024xbf16>, vector<2x1024xf32> -> vector<2x1024xf32>
    %214 = arith.addf %210, %213 : vector<2x1024xf32>
    %215 = vector.extract_strided_slice %214 {offsets = [0, 0], sizes = [2, 768], strides = [1, 1]} : vector<2x1024xf32> to vector<2x768xf32>
    %cst_79 = arith.constant 5.000000e-01 : f32
    %216 = vector.broadcast %cst_79 : f32 to vector<2x768xf32>
    %217 = arith.mulf %216, %215 : vector<2x768xf32>
    %218 = math.tanh %217 : vector<2x768xf32>
    %cst_80 = arith.constant 1.000000e+00 : f32
    %219 = vector.broadcast %cst_80 : f32 to vector<2x768xf32>
    %220 = arith.addf %218, %219 : vector<2x768xf32>
    %cst_81 = arith.constant 5.000000e-01 : f32
    %221 = vector.broadcast %cst_81 : f32 to vector<2x768xf32>
    %222 = arith.mulf %221, %220 : vector<2x768xf32>
    %223 = vector.extract_strided_slice %214 {offsets = [0, 768], sizes = [2, 256], strides = [1, 1]} : vector<2x1024xf32> to vector<2x256xf32>
    %224 = math.tanh %223 : vector<2x256xf32>
    %225 = vector.extract_strided_slice %222 {offsets = [0, 0], sizes = [2, 256], strides = [1, 1]} : vector<2x768xf32> to vector<2x256xf32>
    %226 = vector.extract_strided_slice %222 {offsets = [0, 256], sizes = [2, 256], strides = [1, 1]} : vector<2x768xf32> to vector<2x256xf32>
    %227 = vector.extract_strided_slice %222 {offsets = [0, 512], sizes = [2, 256], strides = [1, 1]} : vector<2x768xf32> to vector<2x256xf32>
    %228 = arith.mulf %226, %206 : vector<2x256xf32>
    %229 = arith.mulf %225, %224 : vector<2x256xf32>
    %230 = arith.addf %228, %229 : vector<2x256xf32>
    %231 = math.tanh %230 : vector<2x256xf32>
    %232 = arith.mulf %227, %231 : vector<2x256xf32>
    %c0_i32_82 = arith.constant 0 : i32
    %233 = tpu.memref_slice %arg12[%c0_i32_82] : memref<2x!tpu.dma_semaphore, #tpu.memory_space<semaphore_mem>> -> memref<1x!tpu.dma_semaphore, #tpu.memory_space<semaphore_mem>>
    %234 = tpu.memref_squeeze %233 : memref<1x!tpu.dma_semaphore, #tpu.memory_space<semaphore_mem>> -> memref<!tpu.dma_semaphore, #tpu.memory_space<semaphore_mem>>
    tpu.wait_dma2 semaphore(%234 : memref<!tpu.dma_semaphore, #tpu.memory_space<semaphore_mem>>) src(%arg4 : memref<256x1024xbf16, #tpu.memory_space<any>>) dst(%arg10 : memref<256x1024xbf16, #tpu.memory_space<vmem>>)
    %c1_i32_83 = arith.constant 1 : i32
    %235 = tpu.memref_slice %arg12[%c1_i32_83] : memref<2x!tpu.dma_semaphore, #tpu.memory_space<semaphore_mem>> -> memref<1x!tpu.dma_semaphore, #tpu.memory_space<semaphore_mem>>
    %236 = tpu.memref_squeeze %235 : memref<1x!tpu.dma_semaphore, #tpu.memory_space<semaphore_mem>> -> memref<!tpu.dma_semaphore, #tpu.memory_space<semaphore_mem>>
    tpu.wait_dma2 semaphore(%236 : memref<!tpu.dma_semaphore, #tpu.memory_space<semaphore_mem>>) src(%arg6 : memref<1024x128xbf16, #tpu.memory_space<any>>) dst(%arg11 : memref<1024x128xbf16, #tpu.memory_space<vmem>>)
    %237 = arith.truncf %232 : vector<2x256xf32> to vector<2x256xbf16>
    %c0_84 = arith.constant 0 : index
    %c0_85 = arith.constant 0 : index
    %238 = vector.load %arg10[%c0_84, %c0_85] : memref<256x1024xbf16, #tpu.memory_space<vmem>>, vector<256x1024xbf16>
    %cst_86 = arith.constant dense<0.000000e+00> : vector<2x1024xf32>
    %239 = tpu.matmul %237, %238, %cst_86 {dimension_numbers = #tpu.dot_dimension_numbers<[1], [0], [0], [1], [0, 0, 1, 1], [], []>} : vector<2x256xbf16>, vector<256x1024xbf16>, vector<2x1024xf32> -> vector<2x1024xf32>
    %c0_87 = arith.constant 0 : index
    %c0_88 = arith.constant 0 : index
    %240 = vector.load %arg5[%c0_87, %c0_88] : memref<1x1024xf32, #tpu.memory_space<vmem>>, vector<1x1024xf32>
    %241 = vector.broadcast %240 : vector<1x1024xf32> to vector<2x1024xf32>
    %242 = arith.addf %239, %241 : vector<2x1024xf32>
    %cst_89 = arith.constant 0.000000e+00 : f32
    %243 = vector.broadcast %cst_89 : f32 to vector<2x1024xf32>
    %244 = arith.maximumf %242, %243 : vector<2x1024xf32>
    %245 = arith.truncf %244 : vector<2x1024xf32> to vector<2x1024xbf16>
    %c0_90 = arith.constant 0 : index
    %c0_91 = arith.constant 0 : index
    %246 = vector.load %arg11[%c0_90, %c0_91] : memref<1024x128xbf16, #tpu.memory_space<vmem>>, vector<1024x128xbf16>
    %cst_92 = arith.constant dense<0.000000e+00> : vector<2x128xf32>
    %247 = tpu.matmul %245, %246, %cst_92 {dimension_numbers = #tpu.dot_dimension_numbers<[1], [0], [0], [1], [0, 0, 1, 1], [], []>} : vector<2x1024xbf16>, vector<1024x128xbf16>, vector<2x128xf32> -> vector<2x128xf32>
    %c0_93 = arith.constant 0 : index
    %c0_94 = arith.constant 0 : index
    %248 = vector.load %arg7[%c0_93, %c0_94] : memref<1x128xf32, #tpu.memory_space<vmem>>, vector<1x128xf32>
    %249 = vector.broadcast %248 : vector<1x128xf32> to vector<2x128xf32>
    %250 = arith.addf %247, %249 : vector<2x128xf32>
    %c0_95 = arith.constant 0 : index
    %c0_96 = arith.constant 0 : index
    %251 = vector.load %arg8[%c0_95, %c0_96] : memref<2x128xf32, #tpu.memory_space<vmem>>, vector<2x128xf32>
    tpu.vector_store %arg8[%c0_95, %c0_96], %250 {strides = array<i32>} : memref<2x128xf32, #tpu.memory_space<vmem>>, vector<2x128xf32>,
    return
  }
}

</mosaic_0001>

<bundles_post_ra>
// kernel: base_lstm_forward.1
= control target key start
LH: loop header
LB: loop body
LE: loop exit
PB: predicated region body
PF: predicated region fallthrough
CT: control target
= control target key end

     0   :  { %13 = vsyncpa [#allocation7], 0  ;;  %s9934_s0 = inlined_call_operand.vmem [shape: f32[8,2,4], index: 0, kind: input, shape index: {}]   ;;  %s9935_s1 = inlined_call_operand.vmem [shape: f32[4,1024], index: 1, kind: input, shape index: {}]   ;;  %s9936_s2 = inlined_call_operand.vmem [shape: bf16[256,1024], index: 2, kind: input, shape index: {}]   ;;  %s9937_s3 = inlined_call_operand.vmem [shape: f32[1,1024], index: 3, kind: input, shape index: {}]   ;;  %s9938_s4 = inlined_call_operand.vmem [shape: bf16[256,1024], index: 4, kind: input, shape index: {}]   ;;  %s9939_s5 = inlined_call_operand.vmem [shape: f32[1,1024], index: 5, kind: input, shape index: {}]   ;;  %s9940_s6 = inlined_call_operand.vmem [shape: bf16[1024,128], index: 6, kind: input, shape index: {}]   ;;  %s9941_s7 = inlined_call_operand.vmem [shape: f32[1,128], index: 7, kind: input, shape index: {}]   ;;  %s9942_s8 = inlined_call_operand.hbm [shape: f32[2,128], index: 8, kind: output, shape index: {}]  }
   0x1   :  { %v44_v0 = vld [vmem:[%s9938_s4] sm:$0xf]  ;;  %v48_v2 = vld [vmem:[%s9938_s4 + $0x4] sm:$0xf]  ;;  %v52_v4 = vld [vmem:[%s9938_s4 + $0x8] sm:$0xf] }
   0x2   :  { %v46_v1 = vld [vmem:[%s9938_s4 + $0x20] sm:$0xf]  ;;  %45 = vst [vmem:[#allocation3] sm:$0xf] %v44_v0  ;;  %v50_v3 = vld [vmem:[%s9938_s4 + $0x24] sm:$0xf] }
   0x3   :  { %47 = vst [vmem:[#allocation3 + $0x4] sm:$0xf] %v46_v1  ;;  %49 = vst [vmem:[#allocation3 + $0x8] sm:$0xf] %v48_v2  ;;  %v54_v5 = vld [vmem:[%s9938_s4 + $0x28] sm:$0xf] }
   0x4   :  { %51 = vst [vmem:[#allocation3 + $0xc] sm:$0xf] %v50_v3  ;;  %53 = vst [vmem:[#allocation3 + $0x10] sm:$0xf] %v52_v4  ;;  %v56_v6 = vld [vmem:[%s9938_s4 + $0xc] sm:$0xf] }
   0x5   :  { %v58_v7 = vld [vmem:[%s9938_s4 + $0x2c] sm:$0xf]  ;;  %55 = vst [vmem:[#allocation3 + $0x14] sm:$0xf] %v54_v5  ;;  %57 = vst [vmem:[#allocation3 + $0x18] sm:$0xf] %v56_v6 }
   0x6   :  { %59 = vst [vmem:[#allocation3 + $0x1c] sm:$0xf] %v58_v7  ;;  %v60_v8 = vld [vmem:[%s9938_s4 + $0x10] sm:$0xf]  ;;  %v64_v10 = vld [vmem:[%s9938_s4 + $0x14] sm:$0xf] }
   0x7   :  { %v62_v9 = vld [vmem:[%s9938_s4 + $0x30] sm:$0xf]  ;;  %61 = vst [vmem:[#allocation3 + $0x20] sm:$0xf] %v60_v8  ;;  %65 = vst [vmem:[#allocation3 + $0x28] sm:$0xf] %v64_v10 }
   0x8   :  { %63 = vst [vmem:[#allocation3 + $0x24] sm:$0xf] %v62_v9  ;;  %v66_v11 = vld [vmem:[%s9938_s4 + $0x34] sm:$0xf]  ;;  %v68_v12 = vld [vmem:[%s9938_s4 + $0x18] sm:$0xf] }
   0x9   :  { %v70_v13 = vld [vmem:[%s9938_s4 + $0x38] sm:$0xf]  ;;  %67 = vst [vmem:[#allocation3 + $0x2c] sm:$0xf] %v66_v11  ;;  %69 = vst [vmem:[#allocation3 + $0x30] sm:$0xf] %v68_v12 }
   0xa   :  { %71 = vst [vmem:[#allocation3 + $0x34] sm:$0xf] %v70_v13  ;;  %v72_v14 = vld [vmem:[%s9938_s4 + $0x1c] sm:$0xf]  ;;  %v78_v16 = vld [vmem:[%s9938_s4 + $0x60] sm:$0xf] }
   0xb   :  { %v74_v15 = vld [vmem:[%s9938_s4 + $0x3c] sm:$0xff]   ;;  %73 = vst [vmem:[#allocation3 + $0x38] sm:$0xf] %v72_v14  ;;  %79 = vst [vmem:[#allocation3 + $0x44] sm:$0xf] %v78_v16 }
   0xc   :  { %75 = vst [vmem:[#allocation3 + $0x3c] sm:$0xff] %v74_v15   ;;  %v80_v17 = vld [vmem:[%s9938_s4 + $0x44] sm:$0xf]  ;;  %v84_v19 = vld [vmem:[%s9938_s4 + $0x48] sm:$0xf]  ;;  %v106_v30 = vld [vmem:[%s9938_s4 + $0x7c] sm:$0xff]  }
   0xd   :  { %v82_v18 = vld [vmem:[%s9938_s4 + $0x64] sm:$0xf]  ;;  %81 = vst [vmem:[#allocation3 + $0x48] sm:$0xf] %v80_v17  ;;  %85 = vst [vmem:[#allocation3 + $0x50] sm:$0xf] %v84_v19 }
   0xe   :  { %83 = vst [vmem:[#allocation3 + $0x4c] sm:$0xf] %v82_v18  ;;  %v86_v20 = vld [vmem:[%s9938_s4 + $0x68] sm:$0xf]  ;;  %v88_v21 = vld [vmem:[%s9938_s4 + $0x4c] sm:$0xf] }
   0xf   :  { %v90_v22 = vld [vmem:[%s9938_s4 + $0x6c] sm:$0xf]  ;;  %87 = vst [vmem:[#allocation3 + $0x54] sm:$0xf] %v86_v20  ;;  %89 = vst [vmem:[#allocation3 + $0x58] sm:$0xf] %v88_v21 }
  0x10   :  { %91 = vst [vmem:[#allocation3 + $0x5c] sm:$0xf] %v90_v22  ;;  %v92_v23 = vld [vmem:[%s9938_s4 + $0x50] sm:$0xf]  ;;  %v96_v25 = vld [vmem:[%s9938_s4 + $0x54] sm:$0xf] }
  0x11   :  { %v94_v24 = vld [vmem:[%s9938_s4 + $0x70] sm:$0xf]  ;;  %93 = vst [vmem:[#allocation3 + $0x60] sm:$0xf] %v92_v23  ;;  %97 = vst [vmem:[#allocation3 + $0x68] sm:$0xf] %v96_v25 }
  0x12   :  { %95 = vst [vmem:[#allocation3 + $0x64] sm:$0xf] %v94_v24  ;;  %v98_v26 = vld [vmem:[%s9938_s4 + $0x74] sm:$0xf]  ;;  %v100_v27 = vld [vmem:[%s9938_s4 + $0x58] sm:$0xf] }
  0x13   :  { %v102_v28 = vld [vmem:[%s9938_s4 + $0x78] sm:$0xf]  ;;  %99 = vst [vmem:[#allocation3 + $0x6c] sm:$0xf] %v98_v26  ;;  %101 = vst [vmem:[#allocation3 + $0x70] sm:$0xf] %v100_v27 }
  0x14   :  { %103 = vst [vmem:[#allocation3 + $0x74] sm:$0xf] %v102_v28  ;;  %v104_v29 = vld [vmem:[%s9938_s4 + $0x5c] sm:$0xf]  ;;  %v110_v31 = vld [vmem:[%s9938_s4 + $0xa0] sm:$0xf] }
  0x15   :  { %105 = vst [vmem:[#allocation3 + $0x78] sm:$0xf] %v104_v29  ;;  %107 = vst [vmem:[#allocation3 + $0x7c] sm:$0xff] %v106_v30   ;;  %v112_v32 = vld [vmem:[%s9938_s4 + $0x84] sm:$0xf]  ;;  %v138_v45 = vld [vmem:[%s9938_s4 + $0xbc] sm:$0xff]  }
  0x16   :  { %111 = vst [vmem:[#allocation3 + $0x84] sm:$0xf] %v110_v31  ;;  %v114_v33 = vld [vmem:[%s9938_s4 + $0xa4] sm:$0xf]  ;;  %v116_v34 = vld [vmem:[%s9938_s4 + $0x88] sm:$0xf] }
  0x17   :  { %113 = vst [vmem:[#allocation3 + $0x88] sm:$0xf] %v112_v32  ;;  %115 = vst [vmem:[#allocation3 + $0x8c] sm:$0xf] %v114_v33  ;;  %v118_v35 = vld [vmem:[%s9938_s4 + $0xa8] sm:$0xf] }
  0x18   :  { %117 = vst [vmem:[#allocation3 + $0x90] sm:$0xf] %v116_v34  ;;  %v120_v36 = vld [vmem:[%s9938_s4 + $0x8c] sm:$0xf]  ;;  %119 = vst [vmem:[#allocation3 + $0x94] sm:$0xf] %v118_v35 }
  0x19   :  { %v122_v37 = vld [vmem:[%s9938_s4 + $0xac] sm:$0xf]  ;;  %121 = vst [vmem:[#allocation3 + $0x98] sm:$0xf] %v120_v36  ;;  %v124_v38 = vld [vmem:[%s9938_s4 + $0x90] sm:$0xf] }
  0x1a   :  { %123 = vst [vmem:[#allocation3 + $0x9c] sm:$0xf] %v122_v37  ;;  %v126_v39 = vld [vmem:[%s9938_s4 + $0xb0] sm:$0xf]  ;;  %v128_v40 = vld [vmem:[%s9938_s4 + $0x94] sm:$0xf] }
  0x1b   :  { %125 = vst [vmem:[#allocation3 + $0xa0] sm:$0xf] %v124_v38  ;;  %127 = vst [vmem:[#allocation3 + $0xa4] sm:$0xf] %v126_v39  ;;  %v130_v41 = vld [vmem:[%s9938_s4 + $0xb4] sm:$0xf] }
  0x1c   :  { %129 = vst [vmem:[#allocation3 + $0xa8] sm:$0xf] %v128_v40  ;;  %v132_v42 = vld [vmem:[%s9938_s4 + $0x98] sm:$0xf]  ;;  %131 = vst [vmem:[#allocation3 + $0xac] sm:$0xf] %v130_v41 }
  0x1d   :  { %v134_v43 = vld [vmem:[%s9938_s4 + $0xb8] sm:$0xf]  ;;  %133 = vst [vmem:[#allocation3 + $0xb0] sm:$0xf] %v132_v42  ;;  %v136_v44 = vld [vmem:[%s9938_s4 + $0x9c] sm:$0xf] }
  0x1e   :  { %135 = vst [vmem:[#allocation3 + $0xb4] sm:$0xf] %v134_v43  ;;  %v142_v46 = vld [vmem:[%s9938_s4 + $0xe0] sm:$0xf]  ;;  %137 = vst [vmem:[#allocation3 + $0xb8] sm:$0xf] %v136_v44 }
  0x1f   :  { %139 = vst [vmem:[#allocation3 + $0xbc] sm:$0xff] %v138_v45   ;;  %143 = vst [vmem:[#allocation3 + $0xc4] sm:$0xf] %v142_v46  ;;  %v144_v47 = vld [vmem:[%s9938_s4 + $0xc4] sm:$0xf]  ;;  %v170_v60 = vld [vmem:[%s9938_s4 + $0xfc] sm:$0xff]  }
  0x20   :  { %v146_v48 = vld [vmem:[%s9938_s4 + $0xe4] sm:$0xf]  ;;  %v148_v49 = vld [vmem:[%s9938_s4 + $0xc8] sm:$0xf]  ;;  %145 = vst [vmem:[#allocation3 + $0xc8] sm:$0xf] %v144_v47 }
  0x21   :  { %147 = vst [vmem:[#allocation3 + $0xcc] sm:$0xf] %v146_v48  ;;  %149 = vst [vmem:[#allocation3 + $0xd0] sm:$0xf] %v148_v49  ;;  %v150_v50 = vld [vmem:[%s9938_s4 + $0xe8] sm:$0xf] }
  0x22   :  { %v152_v51 = vld [vmem:[%s9938_s4 + $0xcc] sm:$0xf]  ;;  %151 = vst [vmem:[#allocation3 + $0xd4] sm:$0xf] %v150_v50  ;;  %v156_v53 = vld [vmem:[%s9938_s4 + $0xd0] sm:$0xf] }
  0x23   :  { %v154_v52 = vld [vmem:[%s9938_s4 + $0xec] sm:$0xf]  ;;  %153 = vst [vmem:[#allocation3 + $0xd8] sm:$0xf] %v152_v51  ;;  %v158_v54 = vld [vmem:[%s9938_s4 + $0xf0] sm:$0xf] }
  0x24   :  { %155 = vst [vmem:[#allocation3 + $0xdc] sm:$0xf] %v154_v52  ;;  %v160_v55 = vld [vmem:[%s9938_s4 + $0xd4] sm:$0xf]  ;;  %157 = vst [vmem:[#allocation3 + $0xe0] sm:$0xf] %v156_v53 }
  0x25   :  { %159 = vst [vmem:[#allocation3 + $0xe4] sm:$0xf] %v158_v54  ;;  %161 = vst [vmem:[#allocation3 + $0xe8] sm:$0xf] %v160_v55  ;;  %v162_v56 = vld [vmem:[%s9938_s4 + $0xf4] sm:$0xf] }
  0x26   :  { %v164_v57 = vld [vmem:[%s9938_s4 + $0xd8] sm:$0xf]  ;;  %163 = vst [vmem:[#allocation3 + $0xec] sm:$0xf] %v162_v56  ;;  %v168_v59 = vld [vmem:[%s9938_s4 + $0xdc] sm:$0xf] }
  0x27   :  { %v166_v58 = vld [vmem:[%s9938_s4 + $0xf8] sm:$0xf]  ;;  %165 = vst [vmem:[#allocation3 + $0xf0] sm:$0xf] %v164_v57  ;;  %v174_v61 = vld [vmem:[%s9938_s4 + $0x120] sm:$0xf] }
  0x28   :  { %167 = vst [vmem:[#allocation3 + $0xf4] sm:$0xf] %v166_v58  ;;  %169 = vst [vmem:[#allocation3 + $0xf8] sm:$0xf] %v168_v59  ;;  %v176_v62 = vld [vmem:[%s9938_s4 + $0x104] sm:$0xf] }
  0x29   :  { %171 = vst [vmem:[#allocation3 + $0xfc] sm:$0xff] %v170_v60   ;;  %175 = vst [vmem:[#allocation3 + $0x104] sm:$0xf] %v174_v61  ;;  %v178_v63 = vld [vmem:[%s9938_s4 + $0x124] sm:$0xf]  ;;  %v202_v11 = vld [vmem:[%s9938_s4 + $0x13c] sm:$0xff]  }
  0x2a   :  { %v180_v0 = vld [vmem:[%s9938_s4 + $0x108] sm:$0xf]  ;;  %177 = vst [vmem:[#allocation3 + $0x108] sm:$0xf] %v176_v62  ;;  %179 = vst [vmem:[#allocation3 + $0x10c] sm:$0xf] %v178_v63 }
  0x2b   :  { %181 = vst [vmem:[#allocation3 + $0x110] sm:$0xf] %v180_v0  ;;  %v182_v1 = vld [vmem:[%s9938_s4 + $0x128] sm:$0xf]  ;;  %v184_v2 = vld [vmem:[%s9938_s4 + $0x10c] sm:$0xf] }
  0x2c   :  { %v186_v3 = vld [vmem:[%s9938_s4 + $0x12c] sm:$0xf]  ;;  %183 = vst [vmem:[#allocation3 + $0x114] sm:$0xf] %v182_v1  ;;  %185 = vst [vmem:[#allocation3 + $0x118] sm:$0xf] %v184_v2 }
  0x2d   :  { %187 = vst [vmem:[#allocation3 + $0x11c] sm:$0xf] %v186_v3  ;;  %v188_v4 = vld [vmem:[%s9938_s4 + $0x110] sm:$0xf]  ;;  %v192_v6 = vld [vmem:[%s9938_s4 + $0x114] sm:$0xf] }
  0x2e   :  { %v190_v5 = vld [vmem:[%s9938_s4 + $0x130] sm:$0xf]  ;;  %189 = vst [vmem:[#allocation3 + $0x120] sm:$0xf] %v188_v4  ;;  %193 = vst [vmem:[#allocation3 + $0x128] sm:$0xf] %v192_v6 }
  0x2f   :  { %191 = vst [vmem:[#allocation3 + $0x124] sm:$0xf] %v190_v5  ;;  %v194_v7 = vld [vmem:[%s9938_s4 + $0x134] sm:$0xf]  ;;  %v196_v8 = vld [vmem:[%s9938_s4 + $0x118] sm:$0xf] }
  0x30   :  { %v198_v9 = vld [vmem:[%s9938_s4 + $0x138] sm:$0xf]  ;;  %195 = vst [vmem:[#allocation3 + $0x12c] sm:$0xf] %v194_v7  ;;  %197 = vst [vmem:[#allocation3 + $0x130] sm:$0xf] %v196_v8 }
  0x31   :  { %199 = vst [vmem:[#allocation3 + $0x134] sm:$0xf] %v198_v9  ;;  %v200_v10 = vld [vmem:[%s9938_s4 + $0x11c] sm:$0xf]  ;;  %v206_v12 = vld [vmem:[%s9938_s4 + $0x160] sm:$0xf] }
  0x32   :  { %201 = vst [vmem:[#allocation3 + $0x138] sm:$0xf] %v200_v10  ;;  %203 = vst [vmem:[#allocation3 + $0x13c] sm:$0xff] %v202_v11   ;;  %v208_v13 = vld [vmem:[%s9938_s4 + $0x144] sm:$0xf]  ;;  %v234_v26 = vld [vmem:[%s9938_s4 + $0x17c] sm:$0xff]  }
  0x33   :  { %207 = vst [vmem:[#allocation3 + $0x144] sm:$0xf] %v206_v12  ;;  %v210_v14 = vld [vmem:[%s9938_s4 + $0x164] sm:$0xf]  ;;  %v212_v15 = vld [vmem:[%s9938_s4 + $0x148] sm:$0xf] }
  0x34   :  { %209 = vst [vmem:[#allocation3 + $0x148] sm:$0xf] %v208_v13  ;;  %211 = vst [vmem:[#allocation3 + $0x14c] sm:$0xf] %v210_v14  ;;  %v214_v16 = vld [vmem:[%s9938_s4 + $0x168] sm:$0xf] }
  0x35   :  { %213 = vst [vmem:[#allocation3 + $0x150] sm:$0xf] %v212_v15  ;;  %v216_v17 = vld [vmem:[%s9938_s4 + $0x14c] sm:$0xf]  ;;  %215 = vst [vmem:[#allocation3 + $0x154] sm:$0xf] %v214_v16 }
  0x36   :  { %v218_v18 = vld [vmem:[%s9938_s4 + $0x16c] sm:$0xf]  ;;  %217 = vst [vmem:[#allocation3 + $0x158] sm:$0xf] %v216_v17  ;;  %v220_v19 = vld [vmem:[%s9938_s4 + $0x150] sm:$0xf] }
  0x37   :  { %219 = vst [vmem:[#allocation3 + $0x15c] sm:$0xf] %v218_v18  ;;  %v222_v20 = vld [vmem:[%s9938_s4 + $0x170] sm:$0xf]  ;;  %v224_v21 = vld [vmem:[%s9938_s4 + $0x154] sm:$0xf] }
  0x38   :  { %221 = vst [vmem:[#allocation3 + $0x160] sm:$0xf] %v220_v19  ;;  %223 = vst [vmem:[#allocation3 + $0x164] sm:$0xf] %v222_v20  ;;  %v226_v22 = vld [vmem:[%s9938_s4 + $0x174] sm:$0xf] }
  0x39   :  { %225 = vst [vmem:[#allocation3 + $0x168] sm:$0xf] %v224_v21  ;;  %v228_v23 = vld [vmem:[%s9938_s4 + $0x158] sm:$0xf]  ;;  %227 = vst [vmem:[#allocation3 + $0x16c] sm:$0xf] %v226_v22 }
  0x3a   :  { %v230_v24 = vld [vmem:[%s9938_s4 + $0x178] sm:$0xf]  ;;  %229 = vst [vmem:[#allocation3 + $0x170] sm:$0xf] %v228_v23  ;;  %v232_v25 = vld [vmem:[%s9938_s4 + $0x15c] sm:$0xf] }
  0x3b   :  { %231 = vst [vmem:[#allocation3 + $0x174] sm:$0xf] %v230_v24  ;;  %v238_v27 = vld [vmem:[%s9938_s4 + $0x1a0] sm:$0xf]  ;;  %233 = vst [vmem:[#allocation3 + $0x178] sm:$0xf] %v232_v25 }
  0x3c   :  { %235 = vst [vmem:[#allocation3 + $0x17c] sm:$0xff] %v234_v26   ;;  %239 = vst [vmem:[#allocation3 + $0x184] sm:$0xf] %v238_v27  ;;  %v240_v28 = vld [vmem:[%s9938_s4 + $0x184] sm:$0xf]  ;;  %v266_v41 = vld [vmem:[%s9938_s4 + $0x1bc] sm:$0xff]  }
  0x3d   :  { %v242_v29 = vld [vmem:[%s9938_s4 + $0x1a4] sm:$0xf]  ;;  %v244_v30 = vld [vmem:[%s9938_s4 + $0x188] sm:$0xf]  ;;  %241 = vst [vmem:[#allocation3 + $0x188] sm:$0xf] %v240_v28 }
  0x3e   :  { %243 = vst [vmem:[#allocation3 + $0x18c] sm:$0xf] %v242_v29  ;;  %245 = vst [vmem:[#allocation3 + $0x190] sm:$0xf] %v244_v30  ;;  %v246_v31 = vld [vmem:[%s9938_s4 + $0x1a8] sm:$0xf] }
  0x3f   :  { %v248_v32 = vld [vmem:[%s9938_s4 + $0x18c] sm:$0xf]  ;;  %247 = vst [vmem:[#allocation3 + $0x194] sm:$0xf] %v246_v31  ;;  %v252_v34 = vld [vmem:[%s9938_s4 + $0x190] sm:$0xf] }
  0x40   :  { %v250_v33 = vld [vmem:[%s9938_s4 + $0x1ac] sm:$0xf]  ;;  %249 = vst [vmem:[#allocation3 + $0x198] sm:$0xf] %v248_v32  ;;  %v254_v35 = vld [vmem:[%s9938_s4 + $0x1b0] sm:$0xf] }
  0x41   :  { %251 = vst [vmem:[#allocation3 + $0x19c] sm:$0xf] %v250_v33  ;;  %v256_v36 = vld [vmem:[%s9938_s4 + $0x194] sm:$0xf]  ;;  %253 = vst [vmem:[#allocation3 + $0x1a0] sm:$0xf] %v252_v34 }
  0x42   :  { %255 = vst [vmem:[#allocation3 + $0x1a4] sm:$0xf] %v254_v35  ;;  %257 = vst [vmem:[#allocation3 + $0x1a8] sm:$0xf] %v256_v36  ;;  %v258_v37 = vld [vmem:[%s9938_s4 + $0x1b4] sm:$0xf] }
  0x43   :  { %v260_v38 = vld [vmem:[%s9938_s4 + $0x198] sm:$0xf]  ;;  %259 = vst [vmem:[#allocation3 + $0x1ac] sm:$0xf] %v258_v37  ;;  %v264_v40 = vld [vmem:[%s9938_s4 + $0x19c] sm:$0xf] }
  0x44   :  { %v262_v39 = vld [vmem:[%s9938_s4 + $0x1b8] sm:$0xf]  ;;  %261 = vst [vmem:[#allocation3 + $0x1b0] sm:$0xf] %v260_v38  ;;  %v270_v42 = vld [vmem:[%s9938_s4 + $0x1e0] sm:$0xf] }
  0x45   :  { %263 = vst [vmem:[#allocation3 + $0x1b4] sm:$0xf] %v262_v39  ;;  %265 = vst [vmem:[#allocation3 + $0x1b8] sm:$0xf] %v264_v40  ;;  %v272_v43 = vld [vmem:[%s9938_s4 + $0x1c4] sm:$0xf] }
  0x46   :  { %267 = vst [vmem:[#allocation3 + $0x1bc] sm:$0xff] %v266_v41   ;;  %271 = vst [vmem:[#allocation3 + $0x1c4] sm:$0xf] %v270_v42  ;;  %v274_v44 = vld [vmem:[%s9938_s4 + $0x1e4] sm:$0xf]  ;;  %v298_v56 = vld [vmem:[%s9938_s4 + $0x1fc] sm:$0xff]  }
  0x47   :  { %v276_v45 = vld [vmem:[%s9938_s4 + $0x1c8] sm:$0xf]  ;;  %273 = vst [vmem:[#allocation3 + $0x1c8] sm:$0xf] %v272_v43  ;;  %275 = vst [vmem:[#allocation3 + $0x1cc] sm:$0xf] %v274_v44 }
  0x48   :  { %277 = vst [vmem:[#allocation3 + $0x1d0] sm:$0xf] %v276_v45  ;;  %v278_v46 = vld [vmem:[%s9938_s4 + $0x1e8] sm:$0xf]  ;;  %v280_v47 = vld [vmem:[%s9938_s4 + $0x1cc] sm:$0xf] }
  0x49   :  { %v282_v48 = vld [vmem:[%s9938_s4 + $0x1ec] sm:$0xf]  ;;  %279 = vst [vmem:[#allocation3 + $0x1d4] sm:$0xf] %v278_v46  ;;  %281 = vst [vmem:[#allocation3 + $0x1d8] sm:$0xf] %v280_v47 }
  0x4a   :  { %283 = vst [vmem:[#allocation3 + $0x1dc] sm:$0xf] %v282_v48  ;;  %v284_v49 = vld [vmem:[%s9938_s4 + $0x1d0] sm:$0xf]  ;;  %v288_v51 = vld [vmem:[%s9938_s4 + $0x1d4] sm:$0xf] }
  0x4b   :  { %v286_v50 = vld [vmem:[%s9938_s4 + $0x1f0] sm:$0xf]  ;;  %285 = vst [vmem:[#allocation3 + $0x1e0] sm:$0xf] %v284_v49  ;;  %289 = vst [vmem:[#allocation3 + $0x1e8] sm:$0xf] %v288_v51 }
  0x4c   :  { %287 = vst [vmem:[#allocation3 + $0x1e4] sm:$0xf] %v286_v50  ;;  %v290_v52 = vld [vmem:[%s9938_s4 + $0x1f4] sm:$0xf]  ;;  %v292_v53 = vld [vmem:[%s9938_s4 + $0x1d8] sm:$0xf] }
  0x4d   :  { %v294_v54 = vld [vmem:[%s9938_s4 + $0x1f8] sm:$0xf]  ;;  %291 = vst [vmem:[#allocation3 + $0x1ec] sm:$0xf] %v290_v52  ;;  %293 = vst [vmem:[#allocation3 + $0x1f0] sm:$0xf] %v292_v53 }
  0x4e   :  { %295 = vst [vmem:[#allocation3 + $0x1f4] sm:$0xf] %v294_v54  ;;  %v296_v55 = vld [vmem:[%s9938_s4 + $0x1dc] sm:$0xf]  ;;  %v302_v57 = vld [vmem:[%s9938_s4 + $0x220] sm:$0xf] }
  0x4f   :  { %297 = vst [vmem:[#allocation3 + $0x1f8] sm:$0xf] %v296_v55  ;;  %299 = vst [vmem:[#allocation3 + $0x1fc] sm:$0xff] %v298_v56   ;;  %v304_v58 = vld [vmem:[%s9938_s4 + $0x204] sm:$0xf]  ;;  %v330_v7 = vld [vmem:[%s9938_s4 + $0x23c] sm:$0xff]  }
  0x50   :  { %303 = vst [vmem:[#allocation3 + $0x204] sm:$0xf] %v302_v57  ;;  %v306_v59 = vld [vmem:[%s9938_s4 + $0x224] sm:$0xf]  ;;  %v308_v60 = vld [vmem:[%s9938_s4 + $0x208] sm:$0xf] }
  0x51   :  { %305 = vst [vmem:[#allocation3 + $0x208] sm:$0xf] %v304_v58  ;;  %307 = vst [vmem:[#allocation3 + $0x20c] sm:$0xf] %v306_v59  ;;  %v310_v61 = vld [vmem:[%s9938_s4 + $0x228] sm:$0xf] }
  0x52   :  { %309 = vst [vmem:[#allocation3 + $0x210] sm:$0xf] %v308_v60  ;;  %v312_v62 = vld [vmem:[%s9938_s4 + $0x20c] sm:$0xf]  ;;  %311 = vst [vmem:[#allocation3 + $0x214] sm:$0xf] %v310_v61 }
  0x53   :  { %v314_v63 = vld [vmem:[%s9938_s4 + $0x22c] sm:$0xf]  ;;  %313 = vst [vmem:[#allocation3 + $0x218] sm:$0xf] %v312_v62  ;;  %v316_v0 = vld [vmem:[%s9938_s4 + $0x210] sm:$0xf] }
  0x54   :  { %315 = vst [vmem:[#allocation3 + $0x21c] sm:$0xf] %v314_v63  ;;  %v318_v1 = vld [vmem:[%s9938_s4 + $0x230] sm:$0xf]  ;;  %v320_v2 = vld [vmem:[%s9938_s4 + $0x214] sm:$0xf] }
  0x55   :  { %317 = vst [vmem:[#allocation3 + $0x220] sm:$0xf] %v316_v0  ;;  %319 = vst [vmem:[#allocation3 + $0x224] sm:$0xf] %v318_v1  ;;  %v322_v3 = vld [vmem:[%s9938_s4 + $0x234] sm:$0xf] }
  0x56   :  { %321 = vst [vmem:[#allocation3 + $0x228] sm:$0xf] %v320_v2  ;;  %v324_v4 = vld [vmem:[%s9938_s4 + $0x218] sm:$0xf]  ;;  %323 = vst [vmem:[#allocation3 + $0x22c] sm:$0xf] %v322_v3 }
  0x57   :  { %v326_v5 = vld [vmem:[%s9938_s4 + $0x238] sm:$0xf]  ;;  %325 = vst [vmem:[#allocation3 + $0x230] sm:$0xf] %v324_v4  ;;  %v328_v6 = vld [vmem:[%s9938_s4 + $0x21c] sm:$0xf] }
  0x58   :  { %327 = vst [vmem:[#allocation3 + $0x234] sm:$0xf] %v326_v5  ;;  %v334_v8 = vld [vmem:[%s9938_s4 + $0x260] sm:$0xf]  ;;  %329 = vst [vmem:[#allocation3 + $0x238] sm:$0xf] %v328_v6 }
  0x59   :  { %331 = vst [vmem:[#allocation3 + $0x23c] sm:$0xff] %v330_v7   ;;  %335 = vst [vmem:[#allocation3 + $0x244] sm:$0xf] %v334_v8  ;;  %v336_v9 = vld [vmem:[%s9938_s4 + $0x244] sm:$0xf]  ;;  %v362_v22 = vld [vmem:[%s9938_s4 + $0x27c] sm:$0xff]  }
  0x5a   :  { %v338_v10 = vld [vmem:[%s9938_s4 + $0x264] sm:$0xf]  ;;  %v340_v11 = vld [vmem:[%s9938_s4 + $0x248] sm:$0xf]  ;;  %337 = vst [vmem:[#allocation3 + $0x248] sm:$0xf] %v336_v9 }
  0x5b   :  { %339 = vst [vmem:[#allocation3 + $0x24c] sm:$0xf] %v338_v10  ;;  %341 = vst [vmem:[#allocation3 + $0x250] sm:$0xf] %v340_v11  ;;  %v342_v12 = vld [vmem:[%s9938_s4 + $0x268] sm:$0xf] }
  0x5c   :  { %v344_v13 = vld [vmem:[%s9938_s4 + $0x24c] sm:$0xf]  ;;  %343 = vst [vmem:[#allocation3 + $0x254] sm:$0xf] %v342_v12  ;;  %v348_v15 = vld [vmem:[%s9938_s4 + $0x250] sm:$0xf] }
  0x5d   :  { %v346_v14 = vld [vmem:[%s9938_s4 + $0x26c] sm:$0xf]  ;;  %345 = vst [vmem:[#allocation3 + $0x258] sm:$0xf] %v344_v13  ;;  %v350_v16 = vld [vmem:[%s9938_s4 + $0x270] sm:$0xf] }
  0x5e   :  { %347 = vst [vmem:[#allocation3 + $0x25c] sm:$0xf] %v346_v14  ;;  %v352_v17 = vld [vmem:[%s9938_s4 + $0x254] sm:$0xf]  ;;  %349 = vst [vmem:[#allocation3 + $0x260] sm:$0xf] %v348_v15 }
  0x5f   :  { %351 = vst [vmem:[#allocation3 + $0x264] sm:$0xf] %v350_v16  ;;  %353 = vst [vmem:[#allocation3 + $0x268] sm:$0xf] %v352_v17  ;;  %v354_v18 = vld [vmem:[%s9938_s4 + $0x274] sm:$0xf] }
  0x60   :  { %v356_v19 = vld [vmem:[%s9938_s4 + $0x258] sm:$0xf]  ;;  %355 = vst [vmem:[#allocation3 + $0x26c] sm:$0xf] %v354_v18  ;;  %v360_v21 = vld [vmem:[%s9938_s4 + $0x25c] sm:$0xf] }
  0x61   :  { %v358_v20 = vld [vmem:[%s9938_s4 + $0x278] sm:$0xf]  ;;  %357 = vst [vmem:[#allocation3 + $0x270] sm:$0xf] %v356_v19  ;;  %v366_v23 = vld [vmem:[%s9938_s4 + $0x2a0] sm:$0xf] }
  0x62   :  { %359 = vst [vmem:[#allocation3 + $0x274] sm:$0xf] %v358_v20  ;;  %361 = vst [vmem:[#allocation3 + $0x278] sm:$0xf] %v360_v21  ;;  %v368_v24 = vld [vmem:[%s9938_s4 + $0x284] sm:$0xf] }
  0x63   :  { %363 = vst [vmem:[#allocation3 + $0x27c] sm:$0xff] %v362_v22   ;;  %367 = vst [vmem:[#allocation3 + $0x284] sm:$0xf] %v366_v23  ;;  %v370_v25 = vld [vmem:[%s9938_s4 + $0x2a4] sm:$0xf]  ;;  %v394_v37 = vld [vmem:[%s9938_s4 + $0x2bc] sm:$0xff]  }
  0x64   :  { %v372_v26 = vld [vmem:[%s9938_s4 + $0x288] sm:$0xf]  ;;  %369 = vst [vmem:[#allocation3 + $0x288] sm:$0xf] %v368_v24  ;;  %371 = vst [vmem:[#allocation3 + $0x28c] sm:$0xf] %v370_v25 }
  0x65   :  { %373 = vst [vmem:[#allocation3 + $0x290] sm:$0xf] %v372_v26  ;;  %v374_v27 = vld [vmem:[%s9938_s4 + $0x2a8] sm:$0xf]  ;;  %v376_v28 = vld [vmem:[%s9938_s4 + $0x28c] sm:$0xf] }
  0x66   :  { %v378_v29 = vld [vmem:[%s9938_s4 + $0x2ac] sm:$0xf]  ;;  %375 = vst [vmem:[#allocation3 + $0x294] sm:$0xf] %v374_v27  ;;  %377 = vst [vmem:[#allocation3 + $0x298] sm:$0xf] %v376_v28 }
  0x67   :  { %379 = vst [vmem:[#allocation3 + $0x29c] sm:$0xf] %v378_v29  ;;  %v380_v30 = vld [vmem:[%s9938_s4 + $0x290] sm:$0xf]  ;;  %v384_v32 = vld [vmem:[%s9938_s4 + $0x294] sm:$0xf] }
  0x68   :  { %v382_v31 = vld [vmem:[%s9938_s4 + $0x2b0] sm:$0xf]  ;;  %381 = vst [vmem:[#allocation3 + $0x2a0] sm:$0xf] %v380_v30  ;;  %385 = vst [vmem:[#allocation3 + $0x2a8] sm:$0xf] %v384_v32 }
  0x69   :  { %383 = vst [vmem:[#allocation3 + $0x2a4] sm:$0xf] %v382_v31  ;;  %v386_v33 = vld [vmem:[%s9938_s4 + $0x2b4] sm:$0xf]  ;;  %v388_v34 = vld [vmem:[%s9938_s4 + $0x298] sm:$0xf] }
  0x6a   :  { %v390_v35 = vld [vmem:[%s9938_s4 + $0x2b8] sm:$0xf]  ;;  %387 = vst [vmem:[#allocation3 + $0x2ac] sm:$0xf] %v386_v33  ;;  %389 = vst [vmem:[#allocation3 + $0x2b0] sm:$0xf] %v388_v34 }
  0x6b   :  { %391 = vst [vmem:[#allocation3 + $0x2b4] sm:$0xf] %v390_v35  ;;  %v392_v36 = vld [vmem:[%s9938_s4 + $0x29c] sm:$0xf]  ;;  %v398_v38 = vld [vmem:[%s9938_s4 + $0x2e0] sm:$0xf] }
  0x6c   :  { %393 = vst [vmem:[#allocation3 + $0x2b8] sm:$0xf] %v392_v36  ;;  %395 = vst [vmem:[#allocation3 + $0x2bc] sm:$0xff] %v394_v37   ;;  %v400_v39 = vld [vmem:[%s9938_s4 + $0x2c4] sm:$0xf]  ;;  %v426_v52 = vld [vmem:[%s9938_s4 + $0x2fc] sm:$0xff]  }
  0x6d   :  { %399 = vst [vmem:[#allocation3 + $0x2c4] sm:$0xf] %v398_v38  ;;  %v402_v40 = vld [vmem:[%s9938_s4 + $0x2e4] sm:$0xf]  ;;  %v404_v41 = vld [vmem:[%s9938_s4 + $0x2c8] sm:$0xf] }
  0x6e   :  { %401 = vst [vmem:[#allocation3 + $0x2c8] sm:$0xf] %v400_v39  ;;  %403 = vst [vmem:[#allocation3 + $0x2cc] sm:$0xf] %v402_v40  ;;  %v406_v42 = vld [vmem:[%s9938_s4 + $0x2e8] sm:$0xf] }
  0x6f   :  { %405 = vst [vmem:[#allocation3 + $0x2d0] sm:$0xf] %v404_v41  ;;  %v408_v43 = vld [vmem:[%s9938_s4 + $0x2cc] sm:$0xf]  ;;  %407 = vst [vmem:[#allocation3 + $0x2d4] sm:$0xf] %v406_v42 }
  0x70   :  { %v410_v44 = vld [vmem:[%s9938_s4 + $0x2ec] sm:$0xf]  ;;  %409 = vst [vmem:[#allocation3 + $0x2d8] sm:$0xf] %v408_v43  ;;  %v412_v45 = vld [vmem:[%s9938_s4 + $0x2d0] sm:$0xf] }
  0x71   :  { %411 = vst [vmem:[#allocation3 + $0x2dc] sm:$0xf] %v410_v44  ;;  %v414_v46 = vld [vmem:[%s9938_s4 + $0x2f0] sm:$0xf]  ;;  %v416_v47 = vld [vmem:[%s9938_s4 + $0x2d4] sm:$0xf] }
  0x72   :  { %413 = vst [vmem:[#allocation3 + $0x2e0] sm:$0xf] %v412_v45  ;;  %415 = vst [vmem:[#allocation3 + $0x2e4] sm:$0xf] %v414_v46  ;;  %v418_v48 = vld [vmem:[%s9938_s4 + $0x2f4] sm:$0xf] }
  0x73   :  { %417 = vst [vmem:[#allocation3 + $0x2e8] sm:$0xf] %v416_v47  ;;  %v420_v49 = vld [vmem:[%s9938_s4 + $0x2d8] sm:$0xf]  ;;  %419 = vst [vmem:[#allocation3 + $0x2ec] sm:$0xf] %v418_v48 }
  0x74   :  { %v422_v50 = vld [vmem:[%s9938_s4 + $0x2f8] sm:$0xf]  ;;  %421 = vst [vmem:[#allocation3 + $0x2f0] sm:$0xf] %v420_v49  ;;  %v424_v51 = vld [vmem:[%s9938_s4 + $0x2dc] sm:$0xf] }
  0x75   :  { %423 = vst [vmem:[#allocation3 + $0x2f4] sm:$0xf] %v422_v50  ;;  %v430_v53 = vld [vmem:[%s9938_s4 + $0x320] sm:$0xf]  ;;  %425 = vst [vmem:[#allocation3 + $0x2f8] sm:$0xf] %v424_v51 }
  0x76   :  { %427 = vst [vmem:[#allocation3 + $0x2fc] sm:$0xff] %v426_v52   ;;  %431 = vst [vmem:[#allocation3 + $0x304] sm:$0xf] %v430_v53  ;;  %v432_v54 = vld [vmem:[%s9938_s4 + $0x304] sm:$0xf]  ;;  %v458_v3 = vld [vmem:[%s9938_s4 + $0x33c] sm:$0xff]  }
  0x77   :  { %v434_v55 = vld [vmem:[%s9938_s4 + $0x324] sm:$0xf]  ;;  %v436_v56 = vld [vmem:[%s9938_s4 + $0x308] sm:$0xf]  ;;  %433 = vst [vmem:[#allocation3 + $0x308] sm:$0xf] %v432_v54 }
  0x78   :  { %435 = vst [vmem:[#allocation3 + $0x30c] sm:$0xf] %v434_v55  ;;  %437 = vst [vmem:[#allocation3 + $0x310] sm:$0xf] %v436_v56  ;;  %v438_v57 = vld [vmem:[%s9938_s4 + $0x328] sm:$0xf] }
  0x79   :  { %v440_v58 = vld [vmem:[%s9938_s4 + $0x30c] sm:$0xf]  ;;  %439 = vst [vmem:[#allocation3 + $0x314] sm:$0xf] %v438_v57  ;;  %v444_v60 = vld [vmem:[%s9938_s4 + $0x310] sm:$0xf] }
  0x7a   :  { %v442_v59 = vld [vmem:[%s9938_s4 + $0x32c] sm:$0xf]  ;;  %441 = vst [vmem:[#allocation3 + $0x318] sm:$0xf] %v440_v58  ;;  %v446_v61 = vld [vmem:[%s9938_s4 + $0x330] sm:$0xf] }
  0x7b   :  { %443 = vst [vmem:[#allocation3 + $0x31c] sm:$0xf] %v442_v59  ;;  %v448_v62 = vld [vmem:[%s9938_s4 + $0x314] sm:$0xf]  ;;  %445 = vst [vmem:[#allocation3 + $0x320] sm:$0xf] %v444_v60 }
  0x7c   :  { %447 = vst [vmem:[#allocation3 + $0x324] sm:$0xf] %v446_v61  ;;  %449 = vst [vmem:[#allocation3 + $0x328] sm:$0xf] %v448_v62  ;;  %v450_v63 = vld [vmem:[%s9938_s4 + $0x334] sm:$0xf] }
  0x7d   :  { %v452_v0 = vld [vmem:[%s9938_s4 + $0x318] sm:$0xf]  ;;  %451 = vst [vmem:[#allocation3 + $0x32c] sm:$0xf] %v450_v63  ;;  %v456_v2 = vld [vmem:[%s9938_s4 + $0x31c] sm:$0xf] }
  0x7e   :  { %v454_v1 = vld [vmem:[%s9938_s4 + $0x338] sm:$0xf]  ;;  %453 = vst [vmem:[#allocation3 + $0x330] sm:$0xf] %v452_v0  ;;  %v462_v4 = vld [vmem:[%s9938_s4 + $0x360] sm:$0xf] }
  0x7f   :  { %455 = vst [vmem:[#allocation3 + $0x334] sm:$0xf] %v454_v1  ;;  %457 = vst [vmem:[#allocation3 + $0x338] sm:$0xf] %v456_v2  ;;  %v464_v5 = vld [vmem:[%s9938_s4 + $0x344] sm:$0xf] }
  0x80   :  { %459 = vst [vmem:[#allocation3 + $0x33c] sm:$0xff] %v458_v3   ;;  %463 = vst [vmem:[#allocation3 + $0x344] sm:$0xf] %v462_v4  ;;  %v466_v6 = vld [vmem:[%s9938_s4 + $0x364] sm:$0xf]  ;;  %v490_v18 = vld [vmem:[%s9938_s4 + $0x37c] sm:$0xff]  }
  0x81   :  { %v468_v7 = vld [vmem:[%s9938_s4 + $0x348] sm:$0xf]  ;;  %465 = vst [vmem:[#allocation3 + $0x348] sm:$0xf] %v464_v5  ;;  %467 = vst [vmem:[#allocation3 + $0x34c] sm:$0xf] %v466_v6 }
  0x82   :  { %469 = vst [vmem:[#allocation3 + $0x350] sm:$0xf] %v468_v7  ;;  %v470_v8 = vld [vmem:[%s9938_s4 + $0x368] sm:$0xf]  ;;  %v472_v9 = vld [vmem:[%s9938_s4 + $0x34c] sm:$0xf] }
  0x83   :  { %v474_v10 = vld [vmem:[%s9938_s4 + $0x36c] sm:$0xf]  ;;  %471 = vst [vmem:[#allocation3 + $0x354] sm:$0xf] %v470_v8  ;;  %473 = vst [vmem:[#allocation3 + $0x358] sm:$0xf] %v472_v9 }
  0x84   :  { %475 = vst [vmem:[#allocation3 + $0x35c] sm:$0xf] %v474_v10  ;;  %v476_v11 = vld [vmem:[%s9938_s4 + $0x350] sm:$0xf]  ;;  %v480_v13 = vld [vmem:[%s9938_s4 + $0x354] sm:$0xf] }
  0x85   :  { %v478_v12 = vld [vmem:[%s9938_s4 + $0x370] sm:$0xf]  ;;  %477 = vst [vmem:[#allocation3 + $0x360] sm:$0xf] %v476_v11  ;;  %481 = vst [vmem:[#allocation3 + $0x368] sm:$0xf] %v480_v13 }
  0x86   :  { %479 = vst [vmem:[#allocation3 + $0x364] sm:$0xf] %v478_v12  ;;  %v482_v14 = vld [vmem:[%s9938_s4 + $0x374] sm:$0xf]  ;;  %v484_v15 = vld [vmem:[%s9938_s4 + $0x358] sm:$0xf] }
  0x87   :  { %v486_v16 = vld [vmem:[%s9938_s4 + $0x378] sm:$0xf]  ;;  %483 = vst [vmem:[#allocation3 + $0x36c] sm:$0xf] %v482_v14  ;;  %485 = vst [vmem:[#allocation3 + $0x370] sm:$0xf] %v484_v15 }
  0x88   :  { %487 = vst [vmem:[#allocation3 + $0x374] sm:$0xf] %v486_v16  ;;  %v488_v17 = vld [vmem:[%s9938_s4 + $0x35c] sm:$0xf]  ;;  %v494_v19 = vld [vmem:[%s9938_s4 + $0x3a0] sm:$0xf] }
  0x89   :  { %489 = vst [vmem:[#allocation3 + $0x378] sm:$0xf] %v488_v17  ;;  %491 = vst [vmem:[#allocation3 + $0x37c] sm:$0xff] %v490_v18   ;;  %v496_v20 = vld [vmem:[%s9938_s4 + $0x384] sm:$0xf]  ;;  %v522_v33 = vld [vmem:[%s9938_s4 + $0x3bc] sm:$0xff]  }
  0x8a   :  { %495 = vst [vmem:[#allocation3 + $0x384] sm:$0xf] %v494_v19  ;;  %v498_v21 = vld [vmem:[%s9938_s4 + $0x3a4] sm:$0xf]  ;;  %v500_v22 = vld [vmem:[%s9938_s4 + $0x388] sm:$0xf] }
  0x8b   :  { %497 = vst [vmem:[#allocation3 + $0x388] sm:$0xf] %v496_v20  ;;  %499 = vst [vmem:[#allocation3 + $0x38c] sm:$0xf] %v498_v21  ;;  %v502_v23 = vld [vmem:[%s9938_s4 + $0x3a8] sm:$0xf] }
  0x8c   :  { %501 = vst [vmem:[#allocation3 + $0x390] sm:$0xf] %v500_v22  ;;  %v504_v24 = vld [vmem:[%s9938_s4 + $0x38c] sm:$0xf]  ;;  %503 = vst [vmem:[#allocation3 + $0x394] sm:$0xf] %v502_v23 }
  0x8d   :  { %v506_v25 = vld [vmem:[%s9938_s4 + $0x3ac] sm:$0xf]  ;;  %505 = vst [vmem:[#allocation3 + $0x398] sm:$0xf] %v504_v24  ;;  %v508_v26 = vld [vmem:[%s9938_s4 + $0x390] sm:$0xf] }
  0x8e   :  { %507 = vst [vmem:[#allocation3 + $0x39c] sm:$0xf] %v506_v25  ;;  %v510_v27 = vld [vmem:[%s9938_s4 + $0x3b0] sm:$0xf]  ;;  %v512_v28 = vld [vmem:[%s9938_s4 + $0x394] sm:$0xf] }
  0x8f   :  { %509 = vst [vmem:[#allocation3 + $0x3a0] sm:$0xf] %v508_v26  ;;  %511 = vst [vmem:[#allocation3 + $0x3a4] sm:$0xf] %v510_v27  ;;  %v514_v29 = vld [vmem:[%s9938_s4 + $0x3b4] sm:$0xf] }
  0x90   :  { %513 = vst [vmem:[#allocation3 + $0x3a8] sm:$0xf] %v512_v28  ;;  %v516_v30 = vld [vmem:[%s9938_s4 + $0x398] sm:$0xf]  ;;  %515 = vst [vmem:[#allocation3 + $0x3ac] sm:$0xf] %v514_v29 }
  0x91   :  { %v518_v31 = vld [vmem:[%s9938_s4 + $0x3b8] sm:$0xf]  ;;  %517 = vst [vmem:[#allocation3 + $0x3b0] sm:$0xf] %v516_v30  ;;  %v520_v32 = vld [vmem:[%s9938_s4 + $0x39c] sm:$0xf] }
  0x92   :  { %519 = vst [vmem:[#allocation3 + $0x3b4] sm:$0xf] %v518_v31  ;;  %v526_v34 = vld [vmem:[%s9938_s4 + $0x3e0] sm:$0xf]  ;;  %521 = vst [vmem:[#allocation3 + $0x3b8] sm:$0xf] %v520_v32 }
  0x93   :  { %523 = vst [vmem:[#allocation3 + $0x3bc] sm:$0xff] %v522_v33   ;;  %527 = vst [vmem:[#allocation3 + $0x3c4] sm:$0xf] %v526_v34  ;;  %v528_v35 = vld [vmem:[%s9938_s4 + $0x3c4] sm:$0xf] }
  0x94   :  { %v530_v36 = vld [vmem:[%s9938_s4 + $0x3e4] sm:$0xf]  ;;  %v532_v37 = vld [vmem:[%s9938_s4 + $0x3c8] sm:$0xf]  ;;  %529 = vst [vmem:[#allocation3 + $0x3c8] sm:$0xf] %v528_v35 }
  0x95   :  { %531 = vst [vmem:[#allocation3 + $0x3cc] sm:$0xf] %v530_v36  ;;  %533 = vst [vmem:[#allocation3 + $0x3d0] sm:$0xf] %v532_v37  ;;  %v534_v38 = vld [vmem:[%s9938_s4 + $0x3e8] sm:$0xf] }
  0x96   :  { %v536_v39 = vld [vmem:[%s9938_s4 + $0x3cc] sm:$0xf]  ;;  %535 = vst [vmem:[#allocation3 + $0x3d4] sm:$0xf] %v534_v38  ;;  %v540_v41 = vld [vmem:[%s9938_s4 + $0x3d0] sm:$0xf] }
  0x97   :  { %v538_v40 = vld [vmem:[%s9938_s4 + $0x3ec] sm:$0xf]  ;;  %537 = vst [vmem:[#allocation3 + $0x3d8] sm:$0xf] %v536_v39  ;;  %v542_v42 = vld [vmem:[%s9938_s4 + $0x3f0] sm:$0xf] }
  0x98   :  { %539 = vst [vmem:[#allocation3 + $0x3dc] sm:$0xf] %v538_v40  ;;  %v544_v43 = vld [vmem:[%s9938_s4 + $0x3d4] sm:$0xf]  ;;  %541 = vst [vmem:[#allocation3 + $0x3e0] sm:$0xf] %v540_v41 }
  0x99   :  { %543 = vst [vmem:[#allocation3 + $0x3e4] sm:$0xf] %v542_v42  ;;  %545 = vst [vmem:[#allocation3 + $0x3e8] sm:$0xf] %v544_v43  ;;  %v546_v44 = vld [vmem:[%s9938_s4 + $0x3f4] sm:$0xf] }
  0x9a   :  { %v548_v45 = vld [vmem:[%s9938_s4 + $0x3d8] sm:$0xf]  ;;  %547 = vst [vmem:[#allocation3 + $0x3ec] sm:$0xf] %v546_v44  ;;  %v552_v47 = vld [vmem:[%s9938_s4 + $0x3dc] sm:$0xf] }
  0x9b   :  { %v550_v46 = vld [vmem:[%s9938_s4 + $0x3f8] sm:$0xf]  ;;  %549 = vst [vmem:[#allocation3 + $0x3f0] sm:$0xf] %v548_v45  ;;  %v554_v48 = vld [vmem:[%s9938_s4 + $0x3fc] sm:$0xf] }
  0x9c   :  { %551 = vst [vmem:[#allocation3 + $0x3f4] sm:$0xf] %v550_v46  ;;  %553 = vst [vmem:[#allocation3 + $0x3f8] sm:$0xf] %v552_v47 }
  0x9d   :  { %555 = vst [vmem:[#allocation3 + $0x3fc] sm:$0xf] %v554_v48 }
  0x9e   :  { %1098 = vsyncadd [#allocation5], 16384  ;;  %v7015_v49 = vld [vmem:[%s9940_s6] sm:$0xff]  ;;  %v7020_v50 = vld [vmem:[%s9940_s6 + $0x8] sm:$0xff] }
  0x9f   :  { %10300 = vst [vmem:[#allocation13_spill] sm:$0xff] %v7015_v49  ;;  %10301 = vst [vmem:[#allocation14_spill] sm:$0xff] %v7020_v50  ;;  %v7025_v51 = vld [vmem:[%s9940_s6 + $0x10] sm:$0xff]  ;;  %v7030_v52 = vld [vmem:[%s9940_s6 + $0x18] sm:$0xff] }
  0xa0   :  { %10302 = vst [vmem:[#allocation15_spill] sm:$0xff] %v7025_v51  ;;  %10303 = vst [vmem:[#allocation16_spill] sm:$0xff] %v7030_v52  ;;  %v7035_v53 = vld [vmem:[%s9940_s6 + $0x20] sm:$0xff]  ;;  %v7040_v54 = vld [vmem:[%s9940_s6 + $0x28] sm:$0xff] }
  0xa1   :  { %10304 = vst [vmem:[#allocation17_spill] sm:$0xff] %v7035_v53  ;;  %10305 = vst [vmem:[#allocation18_spill] sm:$0xff] %v7040_v54  ;;  %v7045_v55 = vld [vmem:[%s9940_s6 + $0x30] sm:$0xff]  ;;  %v7050_v56 = vld [vmem:[%s9940_s6 + $0x38] sm:$0xff] }
  0xa2   :  { %10306 = vst [vmem:[#allocation19_spill] sm:$0xff] %v7045_v55  ;;  %10307 = vst [vmem:[#allocation20_spill] sm:$0xff] %v7050_v56  ;;  %v7055_v57 = vld [vmem:[%s9940_s6 + $0x40] sm:$0xff]  ;;  %v7060_v58 = vld [vmem:[%s9940_s6 + $0x48] sm:$0xff] }
  0xa3   :  { %10308 = vst [vmem:[#allocation21_spill] sm:$0xff] %v7055_v57  ;;  %10309 = vst [vmem:[#allocation22_spill] sm:$0xff] %v7060_v58  ;;  %v7065_v59 = vld [vmem:[%s9940_s6 + $0x50] sm:$0xff]  ;;  %v7070_v60 = vld [vmem:[%s9940_s6 + $0x58] sm:$0xff] }
  0xa4   :  { %10310 = vst [vmem:[#allocation23_spill] sm:$0xff] %v7065_v59  ;;  %10311 = vst [vmem:[#allocation24_spill] sm:$0xff] %v7070_v60  ;;  %v7075_v61 = vld [vmem:[%s9940_s6 + $0x60] sm:$0xff]  ;;  %v7080_v62 = vld [vmem:[%s9940_s6 + $0x68] sm:$0xff] }
  0xa5   :  { %10312 = vst [vmem:[#allocation25_spill] sm:$0xff] %v7075_v61  ;;  %10313 = vst [vmem:[#allocation26_spill] sm:$0xff] %v7080_v62  ;;  %v7085_v63 = vld [vmem:[%s9940_s6 + $0x70] sm:$0xff]  ;;  %v7090_v0 = vld [vmem:[%s9940_s6 + $0x78] sm:$0xff] }
  0xa6   :  { %10314 = vst [vmem:[#allocation27_spill] sm:$0xff] %v7085_v63  ;;  %10315 = vst [vmem:[#allocation28_spill] sm:$0xff] %v7090_v0  ;;  %v7095_v1 = vld [vmem:[%s9940_s6 + $0x80] sm:$0xff]  ;;  %v7100_v2 = vld [vmem:[%s9940_s6 + $0x88] sm:$0xff] }
  0xa7   :  { %10316 = vst [vmem:[#allocation29_spill] sm:$0xff] %v7095_v1  ;;  %10317 = vst [vmem:[#allocation30_spill] sm:$0xff] %v7100_v2  ;;  %v7105_v3 = vld [vmem:[%s9940_s6 + $0x90] sm:$0xff]  ;;  %v7110_v4 = vld [vmem:[%s9940_s6 + $0x98] sm:$0xff] }
  0xa8   :  { %10318 = vst [vmem:[#allocation31_spill] sm:$0xff] %v7105_v3  ;;  %10319 = vst [vmem:[#allocation32_spill] sm:$0xff] %v7110_v4  ;;  %v7115_v5 = vld [vmem:[%s9940_s6 + $0xa0] sm:$0xff]  ;;  %v7120_v6 = vld [vmem:[%s9940_s6 + $0xa8] sm:$0xff] }
  0xa9   :  { %10320 = vst [vmem:[#allocation33_spill] sm:$0xff] %v7115_v5  ;;  %10321 = vst [vmem:[#allocation34_spill] sm:$0xff] %v7120_v6  ;;  %v7125_v7 = vld [vmem:[%s9940_s6 + $0xb0] sm:$0xff]  ;;  %v7130_v8 = vld [vmem:[%s9940_s6 + $0xb8] sm:$0xff] }
  0xaa   :  { %10322 = vst [vmem:[#allocation35_spill] sm:$0xff] %v7125_v7  ;;  %10323 = vst [vmem:[#allocation36_spill] sm:$0xff] %v7130_v8  ;;  %v7135_v9 = vld [vmem:[%s9940_s6 + $0xc0] sm:$0xff]  ;;  %v7140_v10 = vld [vmem:[%s9940_s6 + $0xc8] sm:$0xff] }
  0xab   :  { %10324 = vst [vmem:[#allocation37_spill] sm:$0xff] %v7135_v9  ;;  %10325 = vst [vmem:[#allocation38_spill] sm:$0xff] %v7140_v10  ;;  %v7145_v11 = vld [vmem:[%s9940_s6 + $0xd0] sm:$0xff]  ;;  %v7150_v12 = vld [vmem:[%s9940_s6 + $0xd8] sm:$0xff] }
  0xac   :  { %10326 = vst [vmem:[#allocation39_spill] sm:$0xff] %v7145_v11  ;;  %10327 = vst [vmem:[#allocation40_spill] sm:$0xff] %v7150_v12  ;;  %v7155_v13 = vld [vmem:[%s9940_s6 + $0xe0] sm:$0xff]  ;;  %v7160_v14 = vld [vmem:[%s9940_s6 + $0xe8] sm:$0xff] }
  0xad   :  { %10328 = vst [vmem:[#allocation41_spill] sm:$0xff] %v7155_v13  ;;  %10329 = vst [vmem:[#allocation42_spill] sm:$0xff] %v7160_v14  ;;  %v7165_v15 = vld [vmem:[%s9940_s6 + $0xf0] sm:$0xff]  ;;  %v7170_v16 = vld [vmem:[%s9940_s6 + $0xf8] sm:$0xff] }
  0xae   :  { %10330 = vst [vmem:[#allocation43_spill] sm:$0xff] %v7165_v15  ;;  %10331 = vst [vmem:[#allocation44_spill] sm:$0xff] %v7170_v16  ;;  %v7175_v17 = vld [vmem:[%s9940_s6 + $0x100] sm:$0xff]  ;;  %v7180_v18 = vld [vmem:[%s9940_s6 + $0x108] sm:$0xff] }
  0xaf   :  { %10332 = vst [vmem:[#allocation45_spill] sm:$0xff] %v7175_v17  ;;  %10333 = vst [vmem:[#allocation46_spill] sm:$0xff] %v7180_v18  ;;  %v7185_v19 = vld [vmem:[%s9940_s6 + $0x110] sm:$0xff]  ;;  %v7190_v20 = vld [vmem:[%s9940_s6 + $0x118] sm:$0xff] }
  0xb0   :  { %10334 = vst [vmem:[#allocation47_spill] sm:$0xff] %v7185_v19  ;;  %10335 = vst [vmem:[#allocation48_spill] sm:$0xff] %v7190_v20  ;;  %v7195_v21 = vld [vmem:[%s9940_s6 + $0x120] sm:$0xff]  ;;  %v7200_v22 = vld [vmem:[%s9940_s6 + $0x128] sm:$0xff] }
  0xb1   :  { %10336 = vst [vmem:[#allocation49_spill] sm:$0xff] %v7195_v21  ;;  %10337 = vst [vmem:[#allocation50_spill] sm:$0xff] %v7200_v22  ;;  %v7205_v23 = vld [vmem:[%s9940_s6 + $0x130] sm:$0xff]  ;;  %v7210_v24 = vld [vmem:[%s9940_s6 + $0x138] sm:$0xff] }
  0xb2   :  { %10338 = vst [vmem:[#allocation51_spill] sm:$0xff] %v7205_v23  ;;  %10339 = vst [vmem:[#allocation52_spill] sm:$0xff] %v7210_v24  ;;  %v7215_v25 = vld [vmem:[%s9940_s6 + $0x140] sm:$0xff]  ;;  %v7220_v26 = vld [vmem:[%s9940_s6 + $0x148] sm:$0xff] }
  0xb3   :  { %10340 = vst [vmem:[#allocation53_spill] sm:$0xff] %v7215_v25  ;;  %10341 = vst [vmem:[#allocation54_spill] sm:$0xff] %v7220_v26  ;;  %v7225_v27 = vld [vmem:[%s9940_s6 + $0x150] sm:$0xff]  ;;  %v7230_v28 = vld [vmem:[%s9940_s6 + $0x158] sm:$0xff] }
  0xb4   :  { %10342 = vst [vmem:[#allocation55_spill] sm:$0xff] %v7225_v27  ;;  %10343 = vst [vmem:[#allocation56_spill] sm:$0xff] %v7230_v28  ;;  %v7235_v29 = vld [vmem:[%s9940_s6 + $0x160] sm:$0xff]  ;;  %v7240_v30 = vld [vmem:[%s9940_s6 + $0x168] sm:$0xff] }
  0xb5   :  { %10344 = vst [vmem:[#allocation57_spill] sm:$0xff] %v7235_v29  ;;  %10345 = vst [vmem:[#allocation58_spill] sm:$0xff] %v7240_v30  ;;  %v7245_v31 = vld [vmem:[%s9940_s6 + $0x170] sm:$0xff]  ;;  %v7250_v32 = vld [vmem:[%s9940_s6 + $0x178] sm:$0xff] }
  0xb6   :  { %10346 = vst [vmem:[#allocation59_spill] sm:$0xff] %v7245_v31  ;;  %10347 = vst [vmem:[#allocation60_spill] sm:$0xff] %v7250_v32  ;;  %v7255_v33 = vld [vmem:[%s9940_s6 + $0x180] sm:$0xff]  ;;  %v7260_v34 = vld [vmem:[%s9940_s6 + $0x188] sm:$0xff] }
  0xb7   :  { %10348 = vst [vmem:[#allocation61_spill] sm:$0xff] %v7255_v33  ;;  %10349 = vst [vmem:[#allocation62_spill] sm:$0xff] %v7260_v34  ;;  %v7265_v35 = vld [vmem:[%s9940_s6 + $0x190] sm:$0xff]  ;;  %v7270_v36 = vld [vmem:[%s9940_s6 + $0x198] sm:$0xff] }
  0xb8   :  { %10350 = vst [vmem:[#allocation63_spill] sm:$0xff] %v7265_v35  ;;  %10351 = vst [vmem:[#allocation64_spill] sm:$0xff] %v7270_v36  ;;  %v7275_v37 = vld [vmem:[%s9940_s6 + $0x1a0] sm:$0xff]  ;;  %v7280_v38 = vld [vmem:[%s9940_s6 + $0x1a8] sm:$0xff] }
  0xb9   :  { %10352 = vst [vmem:[#allocation65_spill] sm:$0xff] %v7275_v37  ;;  %10353 = vst [vmem:[#allocation66_spill] sm:$0xff] %v7280_v38  ;;  %v7285_v39 = vld [vmem:[%s9940_s6 + $0x1b0] sm:$0xff]  ;;  %v7290_v40 = vld [vmem:[%s9940_s6 + $0x1b8] sm:$0xff] }
  0xba   :  { %10354 = vst [vmem:[#allocation67_spill] sm:$0xff] %v7285_v39  ;;  %10355 = vst [vmem:[#allocation68_spill] sm:$0xff] %v7290_v40  ;;  %v7295_v41 = vld [vmem:[%s9940_s6 + $0x1c0] sm:$0xff]  ;;  %v7300_v42 = vld [vmem:[%s9940_s6 + $0x1c8] sm:$0xff] }
  0xbb   :  { %10356 = vst [vmem:[#allocation69_spill] sm:$0xff] %v7295_v41  ;;  %10357 = vst [vmem:[#allocation70_spill] sm:$0xff] %v7300_v42  ;;  %v7305_v43 = vld [vmem:[%s9940_s6 + $0x1d0] sm:$0xff]  ;;  %v7310_v44 = vld [vmem:[%s9940_s6 + $0x1d8] sm:$0xff] }
  0xbc   :  { %10358 = vst [vmem:[#allocation71_spill] sm:$0xff] %v7305_v43  ;;  %10359 = vst [vmem:[#allocation72_spill] sm:$0xff] %v7310_v44  ;;  %v7315_v45 = vld [vmem:[%s9940_s6 + $0x1e0] sm:$0xff]  ;;  %v7320_v46 = vld [vmem:[%s9940_s6 + $0x1e8] sm:$0xff] }
  0xbd   :  { %10360 = vst [vmem:[#allocation73_spill] sm:$0xff] %v7315_v45  ;;  %10361 = vst [vmem:[#allocation74_spill] sm:$0xff] %v7320_v46  ;;  %v7325_v47 = vld [vmem:[%s9940_s6 + $0x1f0] sm:$0xff]  ;;  %v7330_v48 = vld [vmem:[%s9940_s6 + $0x1f8] sm:$0xff] }
  0xbe   :  { %10362 = vst [vmem:[#allocation75_spill] sm:$0xff] %v7325_v47  ;;  %10363 = vst [vmem:[#allocation76_spill] sm:$0xff] %v7330_v48 }
  0xbf   :  { %1267 = vsyncadd [#allocation5 + $0x1], 8192  ;;  %v2515_v40 = vld [vmem:[%s9936_s2] sm:$0xff]  ;;  %v2516_v39 = vld [vmem:[%s9936_s2 + $0x8] sm:$0xff]  ;;  %v9943_v31 = vmov 0   ;;  %v9945_v44 = vmov 2  }
  0xc0   :  { %v2519_v24 = vld [vmem:[%s9936_s2 + $0x20] sm:$0xff]  ;;  %v2520_v23 = vld [vmem:[%s9936_s2 + $0x28] sm:$0xff]  ;;  %3315 = vmatprep.mubr.bf16.mxu0 %v9943_v31  ;;  %3356 = vmatprep.mubr.bf16.mxu1 %v9943_v31  ;;  %v9947_v1 = vmov 1  }
  0xc1   :  { %v7338_v32 = vcombine.high %v2515_v40, %v2519_v24  ;;  %v7346_v48 = vcombine.low %v2515_v40, %v2519_v24  ;;  %v2523_v47 = vld [vmem:[%s9936_s2 + $0x40] sm:$0xff]  ;;  %v7353_v38 = vcombine.high %v2516_v39, %v2520_v23  ;;  %v7355_v22 = vcombine.low %v2516_v39, %v2520_v23  ;;  %v2524_v24 = vld [vmem:[%s9936_s2 + $0x48] sm:$0xff]  ;;  %6115 = vset.pattern.permute.xlu0 %v9943_v31 }
  0xc2   :  { %v2527_v46 = vld [vmem:[%s9936_s2 + $0x60] sm:$0xff]  ;;  %v2528_v40 = vld [vmem:[%s9936_s2 + $0x68] sm:$0xff]  ;;  %6117 = vset.pattern.permute.xlu1 %v9945_v44 }
  0xc3   :  { %10364 = vst [vmem:[#allocation77_spill] sm:$0xff] %v7338_v32  ;;  %10365 = vst [vmem:[#allocation78_spill] sm:$0xff] %v7346_v48  ;;  %3283 = vmatprep.subr.bf16.mxu0 %v7338_v32  ;;  %v7368_v30 = vcombine.high %v2523_v47, %v2527_v46  ;;  %v7370_v23 = vcombine.high %v2524_v24, %v2528_v40  ;;  %v2531_v39 = vld [vmem:[%s9936_s2 + $0x80] sm:$0xff]  ;;  %v2532_v21 = vld [vmem:[%s9936_s2 + $0x88] sm:$0xff]  ;;  %3324 = vmatprep.subr.bf16.mxu1 %v7353_v38 }
  0xc4   :  { %10366 = vst [vmem:[#allocation79_spill] sm:$0xff] %v7353_v38  ;;  %10367 = vst [vmem:[#allocation80_spill] sm:$0xff] %v7355_v22  ;;  %v2535_v37 = vld [vmem:[%s9936_s2 + $0xa0] sm:$0xff]  ;;  %3284 = vmatpush1.bf16.msra.mxu0 %v7346_v48  ;;  %v7383_v31 = vcombine.low %v2523_v47, %v2527_v46  ;;  %v2536_v45 = vld [vmem:[%s9936_s2 + $0xa8] sm:$0xff]  ;;  %3325 = vmatpush1.bf16.msra.mxu1 %v7355_v22  ;;  %v7390_v29 = vcombine.low %v2524_v24, %v2528_v40 }
  0xc5   :  { %10368 = vst [vmem:[#allocation81_spill] sm:$0xff] %v7368_v30  ;;  %10369 = vst [vmem:[#allocation82_spill] sm:$0xff] %v7370_v23  ;;  %3285 = vmatprep.subr.bf16.mxu0 %v7368_v30  ;;  %v7392_v36 = vcombine.high %v2531_v39, %v2535_v37  ;;  %3326 = vmatprep.subr.bf16.mxu1 %v7370_v23  ;;  %v7395_v20 = vcombine.high %v2532_v21, %v2536_v45  ;;  %v2539_v46 = vld [vmem:[%s9936_s2 + $0xc0] sm:$0xff]  ;;  %v2540_v24 = vld [vmem:[%s9936_s2 + $0xc8] sm:$0xff] }
  0xc6   :  { %10370 = vst [vmem:[#allocation83_spill] sm:$0xff] %v7383_v31  ;;  %10371 = vst [vmem:[#allocation84_spill] sm:$0xff] %v7390_v29  ;;  %v2543_v47 = vld [vmem:[%s9936_s2 + $0xe0] sm:$0xff]  ;;  %v2544_v40 = vld [vmem:[%s9936_s2 + $0xe8] sm:$0xff]  ;;  %v7411_v28 = vcombine.low %v2531_v39, %v2535_v37  ;;  %v7415_v35 = vcombine.low %v2532_v21, %v2536_v45 }
  0xc7   :  { %10372 = vst [vmem:[#allocation85_spill] sm:$0xff] %v7392_v36  ;;  %10373 = vst [vmem:[#allocation86_spill] sm:$0xff] %v7395_v20  ;;  %v7417_v19 = vcombine.high %v2539_v46, %v2543_v47  ;;  %v7420_v44 = vcombine.high %v2540_v24, %v2544_v40  ;;  %v2547_v43 = vld [vmem:[%s9936_s2 + $0x100] sm:$0xff]  ;;  %v2548_v39 = vld [vmem:[%s9936_s2 + $0x108] sm:$0xff]  ;;  %v7435_v45 = vcombine.low %v2539_v46, %v2543_v47 }
  0xc8   :  { %3286 = vmatpush1.bf16.msra.mxu0 %v7383_v31  ;;  %10374 = vst [vmem:[#allocation87_spill] sm:$0xff] %v7411_v28  ;;  %3327 = vmatpush1.bf16.msra.mxu1 %v7390_v29  ;;  %10375 = vst [vmem:[#allocation88_spill] sm:$0xff] %v7415_v35  ;;  %v2551_v37 = vld [vmem:[%s9936_s2 + $0x120] sm:$0xff]  ;;  %v2552_v21 = vld [vmem:[%s9936_s2 + $0x128] sm:$0xff]  ;;  %v7439_v27 = vcombine.low %v2540_v24, %v2544_v40 }
  0xc9   :  { %3287 = vmatprep.subr.bf16.mxu0 %v7392_v36  ;;  %10376 = vst [vmem:[#allocation89_spill] sm:$0xff] %v7417_v19  ;;  %3328 = vmatprep.subr.bf16.mxu1 %v7395_v20  ;;  %10377 = vst [vmem:[#allocation90_spill] sm:$0xff] %v7420_v44  ;;  %v7441_v34 = vcombine.high %v2547_v43, %v2551_v37  ;;  %v7444_v18 = vcombine.high %v2548_v39, %v2552_v21  ;;  %v2555_v42 = vld [vmem:[%s9936_s2 + $0x140] sm:$0xff]  ;;  %v2556_v47 = vld [vmem:[%s9936_s2 + $0x148] sm:$0xff] }
  0xca   :  { %10378 = vst [vmem:[#allocation91_spill] sm:$0xff] %v7435_v45  ;;  %10379 = vst [vmem:[#allocation92_spill] sm:$0xff] %v7439_v27  ;;  %v2559_v46 = vld [vmem:[%s9936_s2 + $0x160] sm:$0xff]  ;;  %v2560_v24 = vld [vmem:[%s9936_s2 + $0x168] sm:$0xff]  ;;  %v7459_v40 = vcombine.low %v2547_v43, %v2551_v37  ;;  %v7463_v26 = vcombine.low %v2548_v39, %v2552_v21 }
  0xcb   :  { %10380 = vst [vmem:[#allocation93_spill] sm:$0xff] %v7441_v34  ;;  %10381 = vst [vmem:[#allocation94_spill] sm:$0xff] %v7444_v18  ;;  %v7465_v33 = vcombine.high %v2555_v42, %v2559_v46  ;;  %v7468_v17 = vcombine.high %v2556_v47, %v2560_v24  ;;  %v2563_v41 = vld [vmem:[%s9936_s2 + $0x180] sm:$0xff]  ;;  %v2564_v37 = vld [vmem:[%s9936_s2 + $0x188] sm:$0xff]  ;;  %v7483_v21 = vcombine.low %v2555_v42, %v2559_v46 }
  0xcc   :  { %3288 = vmatpush1.bf16.msra.mxu0 %v7411_v28  ;;  %3329 = vmatpush1.bf16.msra.mxu1 %v7415_v35  ;;  %10382 = vst [vmem:[#allocation95_spill] sm:$0xff] %v7459_v40  ;;  %10383 = vst [vmem:[#allocation96_spill] sm:$0xff] %v7463_v26  ;;  %v2567_v43 = vld [vmem:[%s9936_s2 + $0x1a0] sm:$0xff]  ;;  %v2568_v39 = vld [vmem:[%s9936_s2 + $0x1a8] sm:$0xff]  ;;  %v7487_v25 = vcombine.low %v2556_v47, %v2560_v24 }
  0xcd   :  { %3289 = vmatprep.subr.bf16.mxu0 %v7417_v19  ;;  %3330 = vmatprep.subr.bf16.mxu1 %v7420_v44  ;;  %10384 = vst [vmem:[#allocation97_spill] sm:$0xff] %v7465_v33  ;;  %10385 = vst [vmem:[#allocation98_spill] sm:$0xff] %v7468_v17  ;;  %v7489_v8 = vcombine.high %v2563_v41, %v2567_v43  ;;  %v7492_v56 = vcombine.high %v2564_v37, %v2568_v39  ;;  %v2571_v16 = vld [vmem:[%s9936_s2 + $0x1c0] sm:$0xff]  ;;  %v2572_v46 = vld [vmem:[%s9936_s2 + $0x1c8] sm:$0xff] }
  0xce   :  { %10386 = vst [vmem:[#allocation99_spill] sm:$0xff] %v7483_v21  ;;  %10387 = vst [vmem:[#allocation100_spill] sm:$0xff] %v7487_v25  ;;  %v2575_v42 = vld [vmem:[%s9936_s2 + $0x1e0] sm:$0xff]  ;;  %v2576_v47 = vld [vmem:[%s9936_s2 + $0x1e8] sm:$0xff]  ;;  %v7507_v24 = vcombine.low %v2563_v41, %v2567_v43  ;;  %v7511_v0 = vcombine.low %v2564_v37, %v2568_v39 }
  0xcf   :  { %10388 = vst [vmem:[#allocation101_spill] sm:$0xff] %v7489_v8  ;;  %10389 = vst [vmem:[#allocation102_spill] sm:$0xff] %v7492_v56  ;;  %v7513_v7 = vcombine.high %v2571_v16, %v2575_v42  ;;  %v7516_v55 = vcombine.high %v2572_v46, %v2576_v47  ;;  %v2579_v15 = vld [vmem:[%s9936_s2 + $0x200] sm:$0xff]  ;;  %v2580_v43 = vld [vmem:[%s9936_s2 + $0x208] sm:$0xff]  ;;  %v7531_v39 = vcombine.low %v2571_v16, %v2575_v42 }
  0xd0   :  { %3290 = vmatpush1.bf16.msra.mxu0 %v7435_v45  ;;  %3331 = vmatpush1.bf16.msra.mxu1 %v7439_v27  ;;  %10390 = vst [vmem:[#allocation103_spill] sm:$0xff] %v7507_v24  ;;  %10391 = vst [vmem:[#allocation104_spill] sm:$0xff] %v7511_v0  ;;  %v2583_v41 = vld [vmem:[%s9936_s2 + $0x220] sm:$0xff]  ;;  %v2584_v37 = vld [vmem:[%s9936_s2 + $0x228] sm:$0xff]  ;;  %v7535_v63 = vcombine.low %v2572_v46, %v2576_v47 }
  0xd1   :  { %3291 = vmatprep.subr.bf16.mxu0 %v7441_v34  ;;  %3332 = vmatprep.subr.bf16.mxu1 %v7444_v18  ;;  %10392 = vst [vmem:[#allocation105_spill] sm:$0xff] %v7513_v7  ;;  %10393 = vst [vmem:[#allocation106_spill] sm:$0xff] %v7516_v55  ;;  %v7537_v6 = vcombine.high %v2579_v15, %v2583_v41  ;;  %v7540_v54 = vcombine.high %v2580_v43, %v2584_v37  ;;  %v2587_v14 = vld [vmem:[%s9936_s2 + $0x240] sm:$0xff]  ;;  %v2588_v42 = vld [vmem:[%s9936_s2 + $0x248] sm:$0xff] }
  0xd2   :  { %10394 = vst [vmem:[#allocation107_spill] sm:$0xff] %v7531_v39  ;;  %10395 = vst [vmem:[#allocation108_spill] sm:$0xff] %v7535_v63  ;;  %v2591_v16 = vld [vmem:[%s9936_s2 + $0x260] sm:$0xff]  ;;  %v2592_v46 = vld [vmem:[%s9936_s2 + $0x268] sm:$0xff]  ;;  %v7555_v47 = vcombine.low %v2579_v15, %v2583_v41  ;;  %v7559_v62 = vcombine.low %v2580_v43, %v2584_v37 }
  0xd3   :  { %10396 = vst [vmem:[#allocation109_spill] sm:$0xff] %v7537_v6  ;;  %10397 = vst [vmem:[#allocation110_spill] sm:$0xff] %v7540_v54  ;;  %v7561_v5 = vcombine.high %v2587_v14, %v2591_v16  ;;  %v7564_v53 = vcombine.high %v2588_v42, %v2592_v46  ;;  %v2595_v13 = vld [vmem:[%s9936_s2 + $0x280] sm:$0xff]  ;;  %v2596_v41 = vld [vmem:[%s9936_s2 + $0x288] sm:$0xff]  ;;  %v7579_v37 = vcombine.low %v2587_v14, %v2591_v16 }
  0xd4   :  { %3292 = vmatpush1.bf16.msra.mxu0 %v7459_v40  ;;  %3333 = vmatpush1.bf16.msra.mxu1 %v7463_v26  ;;  %10398 = vst [vmem:[#allocation111_spill] sm:$0xff] %v7555_v47  ;;  %10399 = vst [vmem:[#allocation112_spill] sm:$0xff] %v7559_v62  ;;  %v2599_v15 = vld [vmem:[%s9936_s2 + $0x2a0] sm:$0xff]  ;;  %v2600_v43 = vld [vmem:[%s9936_s2 + $0x2a8] sm:$0xff]  ;;  %v7583_v61 = vcombine.low %v2588_v42, %v2592_v46 }
  0xd5   :  { %3293 = vmatprep.subr.bf16.mxu0 %v7465_v33  ;;  %3334 = vmatprep.subr.bf16.mxu1 %v7468_v17  ;;  %10400 = vst [vmem:[#allocation113_spill] sm:$0xff] %v7561_v5  ;;  %10401 = vst [vmem:[#allocation114_spill] sm:$0xff] %v7564_v53  ;;  %v7585_v4 = vcombine.high %v2595_v13, %v2599_v15  ;;  %v7588_v52 = vcombine.high %v2596_v41, %v2600_v43  ;;  %v2603_v12 = vld [vmem:[%s9936_s2 + $0x2c0] sm:$0xff]  ;;  %v2604_v16 = vld [vmem:[%s9936_s2 + $0x2c8] sm:$0xff] }
  0xd6   :  { %10402 = vst [vmem:[#allocation115_spill] sm:$0xff] %v7579_v37  ;;  %10403 = vst [vmem:[#allocation116_spill] sm:$0xff] %v7583_v61  ;;  %v2607_v14 = vld [vmem:[%s9936_s2 + $0x2e0] sm:$0xff]  ;;  %v2608_v42 = vld [vmem:[%s9936_s2 + $0x2e8] sm:$0xff]  ;;  %v7603_v46 = vcombine.low %v2595_v13, %v2599_v15  ;;  %v7607_v60 = vcombine.low %v2596_v41, %v2600_v43 }
  0xd7   :  { %10404 = vst [vmem:[#allocation117_spill] sm:$0xff] %v7585_v4  ;;  %10405 = vst [vmem:[#allocation118_spill] sm:$0xff] %v7588_v52  ;;  %v7609_v3 = vcombine.high %v2603_v12, %v2607_v14  ;;  %v7612_v51 = vcombine.high %v2604_v16, %v2608_v42  ;;  %v2611_v11 = vld [vmem:[%s9936_s2 + $0x300] sm:$0xff]  ;;  %v2612_v15 = vld [vmem:[%s9936_s2 + $0x308] sm:$0xff]  ;;  %v7630_v59 = vcombine.low %v2603_v12, %v2607_v14 }
  0xd8   :  { %3294 = vmatpush1.bf16.msra.mxu0 %v7483_v21  ;;  %3335 = vmatpush1.bf16.msra.mxu1 %v7487_v25  ;;  %10406 = vst [vmem:[#allocation119_spill] sm:$0xff] %v7603_v46  ;;  %10407 = vst [vmem:[#allocation120_spill] sm:$0xff] %v7607_v60  ;;  %v2615_v13 = vld [vmem:[%s9936_s2 + $0x320] sm:$0xff]  ;;  %v2616_v41 = vld [vmem:[%s9936_s2 + $0x328] sm:$0xff]  ;;  %v7634_v2 = vcombine.low %v2604_v16, %v2608_v42 }
  0xd9   :  { %3295 = vmatprep.subr.bf16.mxu0 %v7489_v8  ;;  %3336 = vmatprep.subr.bf16.mxu1 %v7492_v56  ;;  %10408 = vst [vmem:[#allocation121_spill] sm:$0xff] %v7609_v3  ;;  %10409 = vst [vmem:[#allocation122_spill] sm:$0xff] %v7612_v51  ;;  %v1268_v43 = vld [vmem:[%s9934_s0] sm:$0x3]  ;;  %v7636_v50 = vcombine.high %v2611_v11, %v2615_v13  ;;  %v7639_v10 = vcombine.high %v2612_v15, %v2616_v41  ;;  %v2620_v14 = vld [vmem:[%s9936_s2 + $0x348] sm:$0xff] }
  0xda   :  { %10410 = vst [vmem:[#allocation123_spill] sm:$0xff] %v7630_v59  ;;  %1329 = vperm.xlu0 %6115, %v1268_v43   ;;  %10411 = vst [vmem:[#allocation124_spill] sm:$0xff] %v7634_v2  ;;  %v2619_v58 = vld [vmem:[%s9936_s2 + $0x340] sm:$0xff]  ;;  %1742 = vperm.xlu1 %6117, %v1268_v43   ;;  %v2624_v16 = vld [vmem:[%s9936_s2 + $0x368] sm:$0xff]  ;;  %v7654_v42 = vcombine.low %v2611_v11, %v2615_v13  ;;  %v7659_v49 = vcombine.low %v2612_v15, %v2616_v41 }
  0xdb   :  { %10412 = vst [vmem:[#allocation125_spill] sm:$0xff] %v7636_v50  ;;  %10413 = vst [vmem:[#allocation126_spill] sm:$0xff] %v7639_v10  ;;  %v2623_v12 = vld [vmem:[%s9936_s2 + $0x360] sm:$0xff]  ;;  %v7664_v57 = vcombine.high %v2620_v14, %v2624_v16  ;;  %v2628_v15 = vld [vmem:[%s9936_s2 + $0x388] sm:$0xff] }
  0xdc   :  { %3296 = vmatpush1.bf16.msra.mxu0 %v7507_v24  ;;  %3337 = vmatpush1.bf16.msra.mxu1 %v7511_v0  ;;  %10414 = vst [vmem:[#allocation127_spill] sm:$0xff] %v7654_v42  ;;  %10415 = vst [vmem:[#allocation128_spill] sm:$0xff] %v7659_v49  ;;  %v7661_v9 = vcombine.high %v2619_v58, %v2623_v12  ;;  %v2627_v11 = vld [vmem:[%s9936_s2 + $0x380] sm:$0xff]  ;;  %v2632_v41 = vld [vmem:[%s9936_s2 + $0x3a8] sm:$0xff] }
  0xdd   :  { %3297 = vmatprep.subr.bf16.mxu0 %v7513_v7  ;;  %3338 = vmatprep.subr.bf16.mxu1 %v7516_v55  ;;  %10417 = vst [vmem:[#allocation130_spill] sm:$0xff] %v7664_v57  ;;  %v2631_v13 = vld [vmem:[%s9936_s2 + $0x3a0] sm:$0xff] }
  0xde   :  { %6116 = vset.pattern.permute.xlu0 %v9947_v1  ;;  %10416 = vst [vmem:[#allocation129_spill] sm:$0xff] %v7661_v9  ;;  %v9957_v1 = vmov 3  }
  0xdf   :  { %1539 = vperm.xlu0 %6116, %v1268_v43   ;;  %6118 = vset.pattern.permute.xlu1 %v9957_v1  ;;  %v7692_v1 = vcombine.high %v2628_v15, %v2632_v41 }
  0xe0   :  { %3298 = vmatpush1.bf16.msra.mxu0 %v7531_v39  ;;  %3339 = vmatpush1.bf16.msra.mxu1 %v7535_v63 }
  0xe1   :  { %3299 = vmatprep.subr.bf16.mxu0 %v7537_v6  ;;  %3340 = vmatprep.subr.bf16.mxu1 %v7540_v54  ;;  %10421 = vst [vmem:[#allocation134_spill] sm:$0xff] %v7692_v1 }
  0xe2   :  { %1945 = vperm.xlu1 %6118, %v1268_v43   ;;  %v2639_v43 = vld [vmem:[%s9936_s2 + $0x3e0] sm:$0xff] }
  0xe4   :  { %3300 = vmatpush1.bf16.msra.mxu0 %v7555_v47  ;;  %3341 = vmatpush1.bf16.msra.mxu1 %v7559_v62 }
  0xe5   :  { %3301 = vmatprep.subr.bf16.mxu0 %v7561_v5  ;;  %3342 = vmatprep.subr.bf16.mxu1 %v7564_v53 }
  0xe8   :  { %3302 = vmatpush1.bf16.msra.mxu0 %v7579_v37  ;;  %3343 = vmatpush1.bf16.msra.mxu1 %v7583_v61 }
  0xe9   :  { %3303 = vmatprep.subr.bf16.mxu0 %v7585_v4  ;;  %3344 = vmatprep.subr.bf16.mxu1 %v7588_v52 }
  0xec   :  { %3304 = vmatpush1.bf16.msra.mxu0 %v7603_v46  ;;  %3345 = vmatpush1.bf16.msra.mxu1 %v7607_v60 }
  0xed   :  { %3305 = vmatprep.subr.bf16.mxu0 %v7609_v3  ;;  %3346 = vmatprep.subr.bf16.mxu1 %v7612_v51 }
  0xf0   :  { %3306 = vmatpush1.bf16.msra.mxu0 %v7630_v59  ;;  %3347 = vmatpush1.bf16.msra.mxu1 %v7634_v2  ;;  %v7686_v2 = vcombine.high %v2627_v11, %v2631_v13  ;;  %v1269_v59 = vld [vmem:[%s9934_s0 + $0x2] sm:$0x3] }
  0xf1   :  { %3307 = vmatprep.subr.bf16.mxu0 %v7636_v50  ;;  %3348 = vmatprep.subr.bf16.mxu1 %v7639_v10  ;;  %v7680_v10 = vcombine.low %v2619_v58, %v2623_v12  ;;  %v7684_v50 = vcombine.low %v2620_v14, %v2624_v16  ;;  %v2635_v58 = vld [vmem:[%s9936_s2 + $0x3c0] sm:$0xff]  ;;  %v2636_v12 = vld [vmem:[%s9936_s2 + $0x3c8] sm:$0xff]  ;;  %v7707_v16 = vcombine.low %v2627_v11, %v2631_v13  ;;  %v2521_v11 = vld [vmem:[%s9936_s2 + $0x30] sm:$0xff] }
  0xf2   :  { %10420 = vst [vmem:[#allocation133_spill] sm:$0xff] %v7686_v2  ;;  %1543 = vperm.xlu0 %6116, %v1269_v59   ;;  %v2640_v14 = vld [vmem:[%s9936_s2 + $0x3e8] sm:$0xff]  ;;  %v2518_v13 = vld [vmem:[%s9936_s2 + $0x18] sm:$0xff] }
  0xf3   :  { %10418 = vst [vmem:[#allocation131_spill] sm:$0xff] %v7680_v10  ;;  %10419 = vst [vmem:[#allocation132_spill] sm:$0xff] %v7684_v50 }
  0xf4   :  { %3308 = vmatpush1.bf16.msra.mxu0 %v7654_v42  ;;  %3349 = vmatpush1.bf16.msra.mxu1 %v7659_v49  ;;  %10422 = vst [vmem:[#allocation135_spill] sm:$0xff] %v7707_v16  ;;  %v7714_v49 = vcombine.high %v2635_v58, %v2639_v43  ;;  %v7717_v42 = vcombine.high %v2636_v12, %v2640_v14 }
  0xf5   :  { %3309 = vmatprep.subr.bf16.mxu0 %v7661_v9  ;;  %3350 = vmatprep.subr.bf16.mxu1 %v7664_v57  ;;  %v10423_v57 = vmov 0   ;;  %v7712_v9 = vcombine.low %v2628_v15, %v2632_v41  ;;  %v2522_v15 = vld [vmem:[%s9936_s2 + $0x38] sm:$0xff]  ;;  %v10427_v41 = vmov 3  }
  0xf6   :  { %6119 = vset.pattern.permute.xlu1 %v10423_v57  ;;  %10425 = vst [vmem:[#allocation137_spill] sm:$0xff] %v7714_v49  ;;  %10426 = vst [vmem:[#allocation138_spill] sm:$0xff] %v7717_v42  ;;  %6121 = vset.pattern.permute.xlu0 %v10427_v41  ;;  %v7742_v51 = vcombine.high %v2518_v13, %v2522_v15  ;;  %v2525_v41 = vld [vmem:[%s9936_s2 + $0x50] sm:$0xff] }
  0xf7   :  { %10424 = vst [vmem:[#allocation136_spill] sm:$0xff] %v7712_v9  ;;  %1334 = vperm.xlu1 %6119, %v1269_v59   ;;  %1949 = vperm.xlu0 %6121, %v1269_v59  }
  0xf8   :  { %3310 = vmatpush1.bf16.msra.mxu0 %v7680_v10  ;;  %3351 = vmatpush1.bf16.msra.mxu1 %v7684_v50  ;;  %v2517_v10 = vld [vmem:[%s9936_s2 + $0x10] sm:$0xff]  ;;  %10431 = vst [vmem:[#allocation142_spill] sm:$0xff] %v7742_v51 }
  0xf9   :  { %3311 = vmatprep.subr.bf16.mxu0 %v7686_v2  ;;  %3352 = vmatprep.subr.bf16.mxu1 %v7692_v1  ;;  %v7733_v1 = vcombine.low %v2635_v58, %v2639_v43  ;;  %v7737_v2 = vcombine.low %v2636_v12, %v2640_v14  ;;  %v7739_v50 = vcombine.high %v2517_v10, %v2521_v11  ;;  %v2529_v58 = vld [vmem:[%s9936_s2 + $0x70] sm:$0xff]  ;;  %v10432_v43 = vmov 2   ;;  %v2526_v12 = vld [vmem:[%s9936_s2 + $0x58] sm:$0xff] }
  0xfa   :  { %v2530_v14 = vld [vmem:[%s9936_s2 + $0x78] sm:$0xff] }
  0xfb   :  { %10428 = vst [vmem:[#allocation139_spill] sm:$0xff] %v7733_v1  ;;  %10429 = vst [vmem:[#allocation140_spill] sm:$0xff] %v7737_v2  ;;  %6120 = vset.pattern.permute.xlu1 %v10432_v43  ;;  %6124 = vset.pattern.permute.xlu0 %v10432_v43  ;;  %v7790_v43 = vcombine.low %v2526_v12, %v2530_v14 }
  0xfc   :  { %3312 = vmatpush1.bf16.msra.mxu0 %v7707_v16  ;;  %3353 = vmatpush1.bf16.msra.mxu1 %v7712_v9  ;;  %10430 = vst [vmem:[#allocation141_spill] sm:$0xff] %v7739_v50  ;;  %v7765_v9 = vcombine.high %v2525_v41, %v2529_v58  ;;  %v7768_v16 = vcombine.high %v2526_v12, %v2530_v14  ;;  %v2546_v12 = vld [vmem:[%s9936_s2 + $0xf8] sm:$0xff] }
  0xfd   :  { %3313 = vmatprep.subr.bf16.mxu0 %v7714_v49  ;;  %3354 = vmatprep.subr.bf16.mxu1 %v7717_v42  ;;  %v7758_v42 = vcombine.low %v2517_v10, %v2521_v11  ;;  %v7763_v49 = vcombine.low %v2518_v13, %v2522_v15  ;;  %v2537_v10 = vld [vmem:[%s9936_s2 + $0xb0] sm:$0xff]  ;;  %v2534_v11 = vld [vmem:[%s9936_s2 + $0x98] sm:$0xff]  ;;  %v7786_v15 = vcombine.low %v2525_v41, %v2529_v58 }
  0xfe   :  { %1746 = vperm.xlu1 %6120, %v1269_v59   ;;  %10435 = vst [vmem:[#allocation145_spill] sm:$0xff] %v7765_v9  ;;  %10436 = vst [vmem:[#allocation146_spill] sm:$0xff] %v7768_v16  ;;  %v2533_v59 = vld [vmem:[%s9936_s2 + $0x90] sm:$0xff]  ;;  %v2538_v13 = vld [vmem:[%s9936_s2 + $0xb8] sm:$0xff] }
  0xff   :  { %10433 = vst [vmem:[#allocation143_spill] sm:$0xff] %v7758_v42  ;;  %10434 = vst [vmem:[#allocation144_spill] sm:$0xff] %v7763_v49  ;;  %v2545_v41 = vld [vmem:[%s9936_s2 + $0xf0] sm:$0xff]  ;;  %v2542_v58 = vld [vmem:[%s9936_s2 + $0xd8] sm:$0xff]  ;;  %v7812_v14 = vcombine.low %v2533_v59, %v2537_v10 }
 0x100   :  { %3314 = vmatpush1.bf16.msra.mxu0 %v7733_v1  ;;  %3355 = vmatpush1.bf16.msra.mxu1 %v7737_v2  ;;  %10437 = vst [vmem:[#allocation147_spill] sm:$0xff] %v7786_v15  ;;  %10438 = vst [vmem:[#allocation148_spill] sm:$0xff] %v7790_v43  ;;  %v2541_v2 = vld [vmem:[%s9936_s2 + $0xd0] sm:$0xff] }
 0x101   :  { %3365 = vmatprep.subr.bf16.mxu0 %v7739_v50  ;;  %3406 = vmatprep.subr.bf16.mxu1 %v7742_v51  ;;  %v7792_v51 = vcombine.high %v2533_v59, %v2537_v10  ;;  %v7795_v50 = vcombine.high %v2534_v11, %v2538_v13  ;;  %10441 = vst [vmem:[#allocation151_spill] sm:$0xff] %v7812_v14  ;;  %v2553_v59 = vld [vmem:[%s9936_s2 + $0x130] sm:$0xff]  ;;  %v2550_v10 = vld [vmem:[%s9936_s2 + $0x118] sm:$0xff] }
 0x102   :  { %6122 = vset.pattern.permute.xlu1 %v10423_v57 }
 0x103   :  { %3316 = vmatmul.mubr.bf16.vlgmr.msra.gmra.mrb[0].mxu0 %v10423_v57  ;;  %3357 = vmatmul.mubr.bf16.vlgmr.msra.gmra.mrb[0].mxu1 %v10423_v57  ;;  %10439 = vst [vmem:[#allocation149_spill] sm:$0xff] %v7792_v51  ;;  %10440 = vst [vmem:[#allocation150_spill] sm:$0xff] %v7795_v50 }
 0x104   :  { %3366 = vmatpush1.bf16.msra.mxu0 %v7758_v42  ;;  %3407 = vmatpush1.bf16.msra.mxu1 %v7763_v49  ;;  %v7821_v49 = vcombine.high %v2542_v58, %v2546_v12  ;;  %v2549_v42 = vld [vmem:[%s9936_s2 + $0x110] sm:$0xff] }
 0x105   :  { %3367 = vmatprep.subr.bf16.mxu0 %v7765_v9  ;;  %3408 = vmatprep.subr.bf16.mxu1 %v7768_v16  ;;  %v7816_v16 = vcombine.low %v2534_v11, %v2538_v13  ;;  %v7818_v9 = vcombine.high %v2541_v2, %v2545_v41  ;;  %v2554_v11 = vld [vmem:[%s9936_s2 + $0x138] sm:$0xff]  ;;  %v7836_v13 = vcombine.low %v2541_v2, %v2545_v41  ;;  %v2561_v2 = vld [vmem:[%s9936_s2 + $0x170] sm:$0xff] }
 0x106   :  { %3397 = vmatprep.mubr.bf16.mxu0 %v10423_v57  ;;  %3438 = vmatprep.mubr.bf16.mxu1 %v10423_v57  ;;  %10444 = vst [vmem:[#allocation154_spill] sm:$0xff] %v7821_v49  ;;  %v2558_v41 = vld [vmem:[%s9936_s2 + $0x158] sm:$0xff] }
 0x107   :  { %10442 = vst [vmem:[#allocation152_spill] sm:$0xff] %v7816_v16  ;;  %10443 = vst [vmem:[#allocation153_spill] sm:$0xff] %v7818_v9 }
 0x108   :  { %3368 = vmatpush1.bf16.msra.mxu0 %v7786_v15  ;;  %3409 = vmatpush1.bf16.msra.mxu1 %v7790_v43  ;;  %10445 = vst [vmem:[#allocation155_spill] sm:$0xff] %v7836_v13  ;;  %v7845_v43 = vcombine.high %v2550_v10, %v2554_v11  ;;  %v2557_v15 = vld [vmem:[%s9936_s2 + $0x150] sm:$0xff] }
 0x109   :  { %3369 = vmatprep.subr.bf16.mxu0 %v7792_v51  ;;  %3410 = vmatprep.subr.bf16.mxu1 %v7795_v50  ;;  %v7840_v50 = vcombine.low %v2542_v58, %v2546_v12  ;;  %v7842_v51 = vcombine.high %v2549_v42, %v2553_v59  ;;  %v2562_v58 = vld [vmem:[%s9936_s2 + $0x178] sm:$0xff]  ;;  %v7860_v12 = vcombine.low %v2549_v42, %v2553_v59  ;;  %v2569_v42 = vld [vmem:[%s9936_s2 + $0x1b0] sm:$0xff] }
 0x10a   :  { %10448 = vst [vmem:[#allocation158_spill] sm:$0xff] %v7845_v43  ;;  %v2566_v59 = vld [vmem:[%s9936_s2 + $0x198] sm:$0xff] }
 0x10b   :  { %10446 = vst [vmem:[#allocation156_spill] sm:$0xff] %v7840_v50  ;;  %10447 = vst [vmem:[#allocation157_spill] sm:$0xff] %v7842_v51 }
 0x10c   :  { %3370 = vmatpush1.bf16.msra.mxu0 %v7812_v14  ;;  %3411 = vmatpush1.bf16.msra.mxu1 %v7816_v16  ;;  %10449 = vst [vmem:[#allocation159_spill] sm:$0xff] %v7860_v12  ;;  %v7869_v16 = vcombine.high %v2558_v41, %v2562_v58  ;;  %v2565_v14 = vld [vmem:[%s9936_s2 + $0x190] sm:$0xff] }
 0x10d   :  { %3371 = vmatprep.subr.bf16.mxu0 %v7818_v9  ;;  %3412 = vmatprep.subr.bf16.mxu1 %v7821_v49  ;;  %v7864_v49 = vcombine.low %v2550_v10, %v2554_v11  ;;  %v7866_v9 = vcombine.high %v2557_v15, %v2561_v2  ;;  %v2570_v10 = vld [vmem:[%s9936_s2 + $0x1b8] sm:$0xff]  ;;  %v7884_v11 = vcombine.low %v2557_v15, %v2561_v2  ;;  %v2577_v15 = vld [vmem:[%s9936_s2 + $0x1f0] sm:$0xff] }
 0x10e   :  { %10452 = vst [vmem:[#allocation162_spill] sm:$0xff] %v7869_v16  ;;  %v2574_v2 = vld [vmem:[%s9936_s2 + $0x1d8] sm:$0xff] }
 0x10f   :  { %10450 = vst [vmem:[#allocation160_spill] sm:$0xff] %v7864_v49  ;;  %10451 = vst [vmem:[#allocation161_spill] sm:$0xff] %v7866_v9 }
 0x110   :  { %3372 = vmatpush1.bf16.msra.mxu0 %v7836_v13  ;;  %3413 = vmatpush1.bf16.msra.mxu1 %v7840_v50  ;;  %10453 = vst [vmem:[#allocation163_spill] sm:$0xff] %v7884_v11  ;;  %v7893_v50 = vcombine.high %v2566_v59, %v2570_v10  ;;  %v2573_v13 = vld [vmem:[%s9936_s2 + $0x1d0] sm:$0xff] }
 0x111   :  { %3373 = vmatprep.subr.bf16.mxu0 %v7842_v51  ;;  %3414 = vmatprep.subr.bf16.mxu1 %v7845_v43  ;;  %v7888_v43 = vcombine.low %v2558_v41, %v2562_v58  ;;  %v7890_v51 = vcombine.high %v2565_v14, %v2569_v42  ;;  %v2578_v41 = vld [vmem:[%s9936_s2 + $0x1f8] sm:$0xff]  ;;  %v7908_v58 = vcombine.low %v2565_v14, %v2569_v42  ;;  %v2585_v14 = vld [vmem:[%s9936_s2 + $0x230] sm:$0xff] }
 0x112   :  { %10456 = vst [vmem:[#allocation166_spill] sm:$0xff] %v7893_v50  ;;  %v2582_v42 = vld [vmem:[%s9936_s2 + $0x218] sm:$0xff] }
 0x113   :  { %10454 = vst [vmem:[#allocation164_spill] sm:$0xff] %v7888_v43  ;;  %10455 = vst [vmem:[#allocation165_spill] sm:$0xff] %v7890_v51 }
 0x114   :  { %3374 = vmatpush1.bf16.msra.mxu0 %v7860_v12  ;;  %3415 = vmatpush1.bf16.msra.mxu1 %v7864_v49  ;;  %10457 = vst [vmem:[#allocation167_spill] sm:$0xff] %v7908_v58  ;;  %v7917_v49 = vcombine.high %v2574_v2, %v2578_v41  ;;  %v2581_v12 = vld [vmem:[%s9936_s2 + $0x210] sm:$0xff] }
 0x115   :  { %3375 = vmatprep.subr.bf16.mxu0 %v7866_v9  ;;  %3416 = vmatprep.subr.bf16.mxu1 %v7869_v16  ;;  %v7912_v16 = vcombine.low %v2566_v59, %v2570_v10  ;;  %v7914_v9 = vcombine.high %v2573_v13, %v2577_v15  ;;  %v2586_v59 = vld [vmem:[%s9936_s2 + $0x238] sm:$0xff]  ;;  %v7932_v10 = vcombine.low %v2573_v13, %v2577_v15  ;;  %v2593_v13 = vld [vmem:[%s9936_s2 + $0x270] sm:$0xff] }
 0x116   :  { %10460 = vst [vmem:[#allocation170_spill] sm:$0xff] %v7917_v49  ;;  %v2590_v15 = vld [vmem:[%s9936_s2 + $0x258] sm:$0xff] }
 0x117   :  { %10458 = vst [vmem:[#allocation168_spill] sm:$0xff] %v7912_v16  ;;  %10459 = vst [vmem:[#allocation169_spill] sm:$0xff] %v7914_v9 }
 0x118   :  { %3376 = vmatpush1.bf16.msra.mxu0 %v7884_v11  ;;  %3417 = vmatpush1.bf16.msra.mxu1 %v7888_v43  ;;  %10461 = vst [vmem:[#allocation171_spill] sm:$0xff] %v7932_v10  ;;  %v7941_v43 = vcombine.high %v2582_v42, %v2586_v59  ;;  %v2589_v11 = vld [vmem:[%s9936_s2 + $0x250] sm:$0xff] }
 0x119   :  { %3377 = vmatprep.subr.bf16.mxu0 %v7890_v51  ;;  %3418 = vmatprep.subr.bf16.mxu1 %v7893_v50  ;;  %v7936_v50 = vcombine.low %v2574_v2, %v2578_v41  ;;  %v7938_v51 = vcombine.high %v2581_v12, %v2585_v14  ;;  %v2594_v2 = vld [vmem:[%s9936_s2 + $0x278] sm:$0xff]  ;;  %v7956_v41 = vcombine.low %v2581_v12, %v2585_v14  ;;  %v2601_v12 = vld [vmem:[%s9936_s2 + $0x2b0] sm:$0xff] }
 0x11a   :  { %10464 = vst [vmem:[#allocation174_spill] sm:$0xff] %v7941_v43  ;;  %v2598_v14 = vld [vmem:[%s9936_s2 + $0x298] sm:$0xff] }
 0x11b   :  { %10462 = vst [vmem:[#allocation172_spill] sm:$0xff] %v7936_v50  ;;  %10463 = vst [vmem:[#allocation173_spill] sm:$0xff] %v7938_v51 }
 0x11c   :  { %3378 = vmatpush1.bf16.msra.mxu0 %v7908_v58  ;;  %3419 = vmatpush1.bf16.msra.mxu1 %v7912_v16  ;;  %10465 = vst [vmem:[#allocation175_spill] sm:$0xff] %v7956_v41  ;;  %v7965_v16 = vcombine.high %v2590_v15, %v2594_v2  ;;  %v2597_v58 = vld [vmem:[%s9936_s2 + $0x290] sm:$0xff] }
 0x11d   :  { %3379 = vmatprep.subr.bf16.mxu0 %v7914_v9  ;;  %3420 = vmatprep.subr.bf16.mxu1 %v7917_v49  ;;  %v7960_v49 = vcombine.low %v2582_v42, %v2586_v59  ;;  %v7962_v9 = vcombine.high %v2589_v11, %v2593_v13  ;;  %v2602_v42 = vld [vmem:[%s9936_s2 + $0x2b8] sm:$0xff]  ;;  %v7980_v59 = vcombine.low %v2589_v11, %v2593_v13  ;;  %v2609_v11 = vld [vmem:[%s9936_s2 + $0x2f0] sm:$0xff] }
 0x11e   :  { %10468 = vst [vmem:[#allocation178_spill] sm:$0xff] %v7965_v16  ;;  %v2606_v13 = vld [vmem:[%s9936_s2 + $0x2d8] sm:$0xff] }
 0x11f   :  { %10466 = vst [vmem:[#allocation176_spill] sm:$0xff] %v7960_v49  ;;  %10467 = vst [vmem:[#allocation177_spill] sm:$0xff] %v7962_v9 }
 0x120   :  { %3380 = vmatpush1.bf16.msra.mxu0 %v7932_v10  ;;  %3421 = vmatpush1.bf16.msra.mxu1 %v7936_v50  ;;  %10469 = vst [vmem:[#allocation179_spill] sm:$0xff] %v7980_v59  ;;  %v7989_v50 = vcombine.high %v2598_v14, %v2602_v42  ;;  %v2605_v10 = vld [vmem:[%s9936_s2 + $0x2d0] sm:$0xff] }
 0x121   :  { %3381 = vmatprep.subr.bf16.mxu0 %v7938_v51  ;;  %3422 = vmatprep.subr.bf16.mxu1 %v7941_v43  ;;  %v7984_v43 = vcombine.low %v2590_v15, %v2594_v2  ;;  %v7986_v51 = vcombine.high %v2597_v58, %v2601_v12  ;;  %v2610_v15 = vld [vmem:[%s9936_s2 + $0x2f8] sm:$0xff]  ;;  %v8004_v2 = vcombine.low %v2597_v58, %v2601_v12  ;;  %v2617_v58 = vld [vmem:[%s9936_s2 + $0x330] sm:$0xff] }
 0x122   :  { %10472 = vst [vmem:[#allocation182_spill] sm:$0xff] %v7989_v50  ;;  %v2614_v12 = vld [vmem:[%s9936_s2 + $0x318] sm:$0xff] }
 0x123   :  { %10470 = vst [vmem:[#allocation180_spill] sm:$0xff] %v7984_v43  ;;  %10471 = vst [vmem:[#allocation181_spill] sm:$0xff] %v7986_v51 }
 0x124   :  { %3382 = vmatpush1.bf16.msra.mxu0 %v7956_v41  ;;  %3423 = vmatpush1.bf16.msra.mxu1 %v7960_v49  ;;  %10473 = vst [vmem:[#allocation183_spill] sm:$0xff] %v8004_v2  ;;  %v8013_v49 = vcombine.high %v2606_v13, %v2610_v15  ;;  %v2613_v41 = vld [vmem:[%s9936_s2 + $0x310] sm:$0xff] }
 0x125   :  { %3383 = vmatprep.subr.bf16.mxu0 %v7962_v9  ;;  %3424 = vmatprep.subr.bf16.mxu1 %v7965_v16  ;;  %v8008_v16 = vcombine.low %v2598_v14, %v2602_v42  ;;  %v8010_v9 = vcombine.high %v2605_v10, %v2609_v11  ;;  %v2618_v14 = vld [vmem:[%s9936_s2 + $0x338] sm:$0xff]  ;;  %v8028_v42 = vcombine.low %v2605_v10, %v2609_v11  ;;  %v2625_v10 = vld [vmem:[%s9936_s2 + $0x370] sm:$0xff] }
 0x126   :  { %10476 = vst [vmem:[#allocation186_spill] sm:$0xff] %v8013_v49  ;;  %v2622_v11 = vld [vmem:[%s9936_s2 + $0x358] sm:$0xff] }
 0x127   :  { %10474 = vst [vmem:[#allocation184_spill] sm:$0xff] %v8008_v16  ;;  %10475 = vst [vmem:[#allocation185_spill] sm:$0xff] %v8010_v9 }
 0x128   :  { %3384 = vmatpush1.bf16.msra.mxu0 %v7980_v59  ;;  %3425 = vmatpush1.bf16.msra.mxu1 %v7984_v43  ;;  %10477 = vst [vmem:[#allocation187_spill] sm:$0xff] %v8028_v42  ;;  %v8037_v43 = vcombine.high %v2614_v12, %v2618_v14  ;;  %v2621_v59 = vld [vmem:[%s9936_s2 + $0x350] sm:$0xff] }
 0x129   :  { %3385 = vmatprep.subr.bf16.mxu0 %v7986_v51  ;;  %3426 = vmatprep.subr.bf16.mxu1 %v7989_v50  ;;  %v8032_v50 = vcombine.low %v2606_v13, %v2610_v15  ;;  %v8034_v51 = vcombine.high %v2613_v41, %v2617_v58  ;;  %v2626_v13 = vld [vmem:[%s9936_s2 + $0x378] sm:$0xff]  ;;  %v8052_v15 = vcombine.low %v2613_v41, %v2617_v58  ;;  %v2633_v41 = vld [vmem:[%s9936_s2 + $0x3b0] sm:$0xff] }
 0x12a   :  { %10480 = vst [vmem:[#allocation190_spill] sm:$0xff] %v8037_v43  ;;  %v2630_v58 = vld [vmem:[%s9936_s2 + $0x398] sm:$0xff] }
 0x12b   :  { %10478 = vst [vmem:[#allocation188_spill] sm:$0xff] %v8032_v50  ;;  %10479 = vst [vmem:[#allocation189_spill] sm:$0xff] %v8034_v51 }
 0x12c   :  { %3386 = vmatpush1.bf16.msra.mxu0 %v8004_v2  ;;  %3427 = vmatpush1.bf16.msra.mxu1 %v8008_v16  ;;  %10481 = vst [vmem:[#allocation191_spill] sm:$0xff] %v8052_v15  ;;  %v8061_v16 = vcombine.high %v2622_v11, %v2626_v13  ;;  %v2629_v2 = vld [vmem:[%s9936_s2 + $0x390] sm:$0xff] }
 0x12d   :  { %3387 = vmatprep.subr.bf16.mxu0 %v8010_v9  ;;  %3428 = vmatprep.subr.bf16.mxu1 %v8013_v49  ;;  %v8056_v49 = vcombine.low %v2614_v12, %v2618_v14  ;;  %v8058_v9 = vcombine.high %v2621_v59, %v2625_v10  ;;  %v2634_v12 = vld [vmem:[%s9936_s2 + $0x3b8] sm:$0xff]  ;;  %v8076_v14 = vcombine.low %v2621_v59, %v2625_v10  ;;  %v2641_v59 = vld [vmem:[%s9936_s2 + $0x3f0] sm:$0xff] }
 0x12e   :  { %10484 = vst [vmem:[#allocation194_spill] sm:$0xff] %v8061_v16  ;;  %v2638_v10 = vld [vmem:[%s9936_s2 + $0x3d8] sm:$0xff] }
 0x12f   :  { %10482 = vst [vmem:[#allocation192_spill] sm:$0xff] %v8056_v49  ;;  %10483 = vst [vmem:[#allocation193_spill] sm:$0xff] %v8058_v9 }
 0x130   :  { %3388 = vmatpush1.bf16.msra.mxu0 %v8028_v42  ;;  %3429 = vmatpush1.bf16.msra.mxu1 %v8032_v50  ;;  %10485 = vst [vmem:[#allocation195_spill] sm:$0xff] %v8076_v14  ;;  %v8085_v50 = vcombine.high %v2630_v58, %v2634_v12  ;;  %v2637_v42 = vld [vmem:[%s9936_s2 + $0x3d0] sm:$0xff] }
 0x131   :  { %3389 = vmatprep.subr.bf16.mxu0 %v8034_v51  ;;  %3430 = vmatprep.subr.bf16.mxu1 %v8037_v43  ;;  %v8080_v43 = vcombine.low %v2622_v11, %v2626_v13  ;;  %v8082_v51 = vcombine.high %v2629_v2, %v2633_v41  ;;  %v2642_v11 = vld [vmem:[%s9936_s2 + $0x3f8] sm:$0xff]  ;;  %v8100_v13 = vcombine.low %v2629_v2, %v2633_v41 }
 0x132   :  { %10488 = vst [vmem:[#allocation198_spill] sm:$0xff] %v8085_v50  ;;  %v8116_v2 = vcombine.low %v2638_v10, %v2642_v11  ;;  %v10496_v41 = vld [vmem:[#allocation123_spill] sm:$0xff] }
 0x133   :  { %10486 = vst [vmem:[#allocation196_spill] sm:$0xff] %v8080_v43  ;;  %10487 = vst [vmem:[#allocation197_spill] sm:$0xff] %v8082_v51 }
 0x134   :  { %3390 = vmatpush1.bf16.msra.mxu0 %v8052_v15  ;;  %3431 = vmatpush1.bf16.msra.mxu1 %v8056_v49  ;;  %10489 = vst [vmem:[#allocation199_spill] sm:$0xff] %v8100_v13  ;;  %v8109_v49 = vcombine.high %v2638_v10, %v2642_v11  ;;  %v8112_v15 = vcombine.low %v2637_v42, %v2641_v59  ;;  %10494 = vst [vmem:[#allocation204_spill] sm:$0xff] %v8116_v2  ;;  %v10500_v10 = vld [vmem:[#allocation127_spill] sm:$0xff]  ;;  %v10501_v11 = vld [vmem:[#allocation128_spill] sm:$0xff] }
 0x135   :  { %3391 = vmatprep.subr.bf16.mxu0 %v8058_v9  ;;  %3432 = vmatprep.subr.bf16.mxu1 %v8061_v16  ;;  %v8104_v16 = vcombine.low %v2630_v58, %v2634_v12  ;;  %v8106_v9 = vcombine.high %v2637_v42, %v2641_v59  ;;  %v10495_v42 = vld [vmem:[#allocation122_spill] sm:$0xff]  ;;  %v10497_v58 = vld [vmem:[#allocation124_spill] sm:$0xff]  ;;  %v10498_v12 = vld [vmem:[#allocation125_spill] sm:$0xff] }
 0x136   :  { %10492 = vst [vmem:[#allocation202_spill] sm:$0xff] %v8109_v49  ;;  %10493 = vst [vmem:[#allocation203_spill] sm:$0xff] %v8112_v15  ;;  %v10499_v59 = vld [vmem:[#allocation126_spill] sm:$0xff] }
 0x137   :  { %10490 = vst [vmem:[#allocation200_spill] sm:$0xff] %v8104_v16  ;;  %10491 = vst [vmem:[#allocation201_spill] sm:$0xff] %v8106_v9 }
 0x138   :  { %3392 = vmatpush1.bf16.msra.mxu0 %v8076_v14  ;;  %3433 = vmatpush1.bf16.msra.mxu1 %v8080_v43 }
 0x139   :  { %3393 = vmatprep.subr.bf16.mxu0 %v8082_v51  ;;  %3434 = vmatprep.subr.bf16.mxu1 %v8085_v50 }
 0x13c   :  { %3394 = vmatpush1.bf16.msra.mxu0 %v8100_v13  ;;  %3435 = vmatpush1.bf16.msra.mxu1 %v8104_v16 }
 0x13d   :  { %3395 = vmatprep.subr.bf16.mxu0 %v8106_v9  ;;  %3436 = vmatprep.subr.bf16.mxu1 %v8109_v49 }
 0x140   :  { %3396 = vmatpush1.bf16.msra.mxu0 %v8112_v15  ;;  %3437 = vmatpush1.bf16.msra.mxu1 %v8116_v2 }
 0x141   :  { %3529 = vmatprep.subr.bf16.mxu0 %v7338_v32  ;;  %3570 = vmatprep.subr.bf16.mxu1 %v7353_v38 }
 0x143   :  { %3398 = vmatmul.mubr.bf16.vlgmr.msra.gmra.mrb[4].mxu0 %v10423_v57  ;;  %3439 = vmatmul.mubr.bf16.vlgmr.msra.gmra.mrb[4].mxu1 %v10423_v57  ;;  %v10502_v57 = vld [vmem:[#allocation129_spill] sm:$0xff] }
 0x144   :  { %3530 = vmatpush1.bf16.msra.mxu0 %v7346_v48  ;;  %3571 = vmatpush1.bf16.msra.mxu1 %v7355_v22 }
 0x145   :  { %3531 = vmatprep.subr.bf16.mxu0 %v7368_v30  ;;  %3572 = vmatprep.subr.bf16.mxu1 %v7370_v23 }
 0x148   :  { %3532 = vmatpush1.bf16.msra.mxu0 %v7383_v31  ;;  %3573 = vmatpush1.bf16.msra.mxu1 %v7390_v29 }
 0x149   :  { %3533 = vmatprep.subr.bf16.mxu0 %v7392_v36  ;;  %3574 = vmatprep.subr.bf16.mxu1 %v7395_v20 }
 0x14c   :  { %3534 = vmatpush1.bf16.msra.mxu0 %v7411_v28  ;;  %3575 = vmatpush1.bf16.msra.mxu1 %v7415_v35 }
 0x14d   :  { %3535 = vmatprep.subr.bf16.mxu0 %v7417_v19  ;;  %3576 = vmatprep.subr.bf16.mxu1 %v7420_v44 }
 0x150   :  { %3536 = vmatpush1.bf16.msra.mxu0 %v7435_v45  ;;  %3577 = vmatpush1.bf16.msra.mxu1 %v7439_v27 }
 0x151   :  { %3537 = vmatprep.subr.bf16.mxu0 %v7441_v34  ;;  %3578 = vmatprep.subr.bf16.mxu1 %v7444_v18 }
 0x154   :  { %3538 = vmatpush1.bf16.msra.mxu0 %v7459_v40  ;;  %3579 = vmatpush1.bf16.msra.mxu1 %v7463_v26  ;;  %v8300_v40 = vld [vmem:[%s9935_s1 + $0x3] ss:$4 sm:$0xff] }
 0x155   :  { %3539 = vmatprep.subr.bf16.mxu0 %v7465_v33  ;;  %3580 = vmatprep.subr.bf16.mxu1 %v7468_v17 }
 0x158   :  { %3540 = vmatpush1.bf16.msra.mxu0 %v7483_v21  ;;  %3581 = vmatpush1.bf16.msra.mxu1 %v7487_v25 }
 0x159   :  { %3541 = vmatprep.subr.bf16.mxu0 %v7489_v8  ;;  %3582 = vmatprep.subr.bf16.mxu1 %v7492_v56 }
 0x15c   :  { %3542 = vmatpush1.bf16.msra.mxu0 %v7507_v24  ;;  %3583 = vmatpush1.bf16.msra.mxu1 %v7511_v0 }
 0x15d   :  { %3543 = vmatprep.subr.bf16.mxu0 %v7513_v7  ;;  %3584 = vmatprep.subr.bf16.mxu1 %v7516_v55  ;;  %v8259_v55 = vld [vmem:[%s9935_s1 + $0x2] ss:$4 sm:$0xff] }
 0x160   :  { %3544 = vmatpush1.bf16.msra.mxu0 %v7531_v39  ;;  %3585 = vmatpush1.bf16.msra.mxu1 %v7535_v63 }
 0x161   :  { %3545 = vmatprep.subr.bf16.mxu0 %v7537_v6  ;;  %3586 = vmatprep.subr.bf16.mxu1 %v7540_v54 }
 0x164   :  { %3546 = vmatpush1.bf16.msra.mxu0 %v7555_v47  ;;  %3587 = vmatpush1.bf16.msra.mxu1 %v7559_v62 }
 0x165   :  { %3547 = vmatprep.subr.bf16.mxu0 %v7561_v5  ;;  %3588 = vmatprep.subr.bf16.mxu1 %v7564_v53 }
 0x168   :  { %3548 = vmatpush1.bf16.msra.mxu0 %v7579_v37  ;;  %3589 = vmatpush1.bf16.msra.mxu1 %v7583_v61 }
 0x169   :  { %3549 = vmatprep.subr.bf16.mxu0 %v7585_v4  ;;  %3590 = vmatprep.subr.bf16.mxu1 %v7588_v52 }
 0x16c   :  { %3550 = vmatpush1.bf16.msra.mxu0 %v7603_v46  ;;  %3591 = vmatpush1.bf16.msra.mxu1 %v7607_v60  ;;  %v10503_v46 = vld [vmem:[#allocation130_spill] sm:$0xff]  ;;  %v10504_v60 = vld [vmem:[#allocation131_spill] sm:$0xff] }
 0x16d   :  { %3551 = vmatprep.subr.bf16.mxu0 %v7609_v3  ;;  %3592 = vmatprep.subr.bf16.mxu1 %v10495_v42  ;;  %v10505_v3 = vld [vmem:[#allocation132_spill] sm:$0xff]  ;;  %v10506_v42 = vld [vmem:[#allocation133_spill] sm:$0xff] }
 0x170   :  { %3552 = vmatpush1.bf16.msra.mxu0 %v10496_v41  ;;  %3593 = vmatpush1.bf16.msra.mxu1 %v10497_v58  ;;  %v10507_v41 = vld [vmem:[#allocation134_spill] sm:$0xff]  ;;  %v10508_v58 = vld [vmem:[#allocation135_spill] sm:$0xff] }
 0x171   :  { %3553 = vmatprep.subr.bf16.mxu0 %v10498_v12  ;;  %3594 = vmatprep.subr.bf16.mxu1 %v10499_v59  ;;  %v10509_v12 = vld [vmem:[#allocation136_spill] sm:$0xff]  ;;  %v10510_v59 = vld [vmem:[#allocation137_spill] sm:$0xff] }
 0x174   :  { %3554 = vmatpush1.bf16.msra.mxu0 %v10500_v10  ;;  %3595 = vmatpush1.bf16.msra.mxu1 %v10501_v11  ;;  %v10511_v10 = vld [vmem:[#allocation138_spill] sm:$0xff]  ;;  %v1278_v11 = vlaneseq }
 0x175   :  { %3555 = vmatprep.subr.bf16.mxu0 %v10502_v57  ;;  %3596 = vmatprep.subr.bf16.mxu1 %v10503_v46  ;;  %v10512_v57 = vld [vmem:[#allocation140_spill] sm:$0xff]  ;;  %v10513_v46 = vld [vmem:[#allocation141_spill] sm:$0xff] }
 0x176   :  { %v1279_v52 = vshrl.u32 %v1278_v11, 7 }
 0x178   :  { %3556 = vmatpush1.bf16.msra.mxu0 %v10504_v60  ;;  %3597 = vmatpush1.bf16.msra.mxu1 %v10505_v3  ;;  %v10514_v60 = vld [vmem:[#allocation142_spill] sm:$0xff]  ;;  %v6242_v3 = vmov 1983009808   ;;  %v8201_v11 = vsub.s32 1, %v1279_v52 }
 0x179   :  { %3557 = vmatprep.subr.bf16.mxu0 %v10506_v42  ;;  %3598 = vmatprep.subr.bf16.mxu1 %v10507_v41  ;;  %v2212_v42 = vunpack.c.l.s4 %v6242_v3 }
 0x17a   :  { %10516 = vst [vmem:[#allocation206_spill] sm:$0xff] %v8201_v11  ;;  %v8283_v56 = vrot.slane %v8259_v55, %v8201_v11 }
 0x17b   :  { %v2213_v41 = vunpack.c.0.s8 %v2212_v42 }
 0x17c   :  { %3558 = vmatpush1.bf16.msra.mxu0 %v10508_v58  ;;  %3599 = vmatpush1.bf16.msra.mxu1 %v10509_v12  ;;  %10532 = vst [vmem:[#allocation222_spill] sm:$0xff] %v8283_v56 }
 0x17d   :  { %3559 = vmatprep.subr.bf16.mxu0 %v10510_v59  ;;  %3600 = vmatprep.subr.bf16.mxu1 %v10511_v10  ;;  %v8189_v4 = vsub.s32 %v2213_v41, %v1279_v52  ;;  %v8199_v41 = vsub.s32 0, %v1279_v52 }
 0x17f   :  { %10515 = vst [vmem:[#allocation205_spill] sm:$0xff] %v8199_v41  ;;  %v8279_v24 = vrot.slane %v8259_v55, %v8199_v41 }
 0x180   :  { %3560 = vmatpush1.bf16.msra.mxu0 %v7733_v1  ;;  %3601 = vmatpush1.bf16.msra.mxu1 %v10512_v57 }
 0x181   :  { %3611 = vmatprep.subr.bf16.mxu0 %v10513_v46  ;;  %3652 = vmatprep.subr.bf16.mxu1 %v10514_v60  ;;  %10531 = vst [vmem:[#allocation221_spill] sm:$0xff] %v8279_v24 }
 0x1d6   :  { %v3317_v58 = vpop.f32.mrb[0].mxu0  ;;  %v3358_v12 = vpop.f32.mrb[0].mxu1 }
 0x1d7   :  { %v3319_v59 = vpop.f32.mrb[1].mxu0  ;;  %v3360_v10 = vpop.f32.mrb[1].mxu1 }
 0x1d8   :  { %v3455_v61 = vcombine.low %v3317_v58, %v3319_v59  ;;  %v3321_v37 = vpop.f32.mrb[2].mxu0  ;;  %v3456_v1 = vcombine.low %v3358_v12, %v3360_v10  ;;  %v3362_v53 = vpop.f32.mrb[2].mxu1  ;;  %v8203_v58 = vsub.s32 2, %v1279_v52  ;;  %v8227_v59 = vld [vmem:[%s9937_s3] sm:$0xff] }
 0x1d9   :  { %v3322_v57 = vpop.f32.mrb[3].mxu0  ;;  %v3363_v60 = vpop.f32.mrb[3].mxu1  ;;  %v8205_v37 = vsub.s32 3, %v1279_v52  ;;  %v1326_v53 = vld [vmem:[%s9935_s1] ss:$4 sm:$0xff]  ;;  %v8234_v42 = vrot.slane %v8227_v59, %v8199_v41  ;;  %v8238_v5 = vrot.slane %v8227_v59, %v8201_v11 }
 0x1da   :  { %v8192_v46 = vrot.slane %v3455_v61, %v8189_v4  ;;  %v8195_v3 = vrot.slane %v3456_v1, %v8189_v4  ;;  %10517 = vst [vmem:[#allocation207_spill] sm:$0xff] %v8203_v58  ;;  %v8211_v57 = vrot.slane %v1326_v53, %v8199_v41  ;;  %v8214_v60 = vrot.slane %v1326_v53, %v8201_v11  ;;  %v8222_v12 = vpop.permute.xlu0 %1329  ;;  %v5887_v10 = vld [vmem:[%s9935_s1 + $0x1] ss:$4 sm:$0xff] }
 0x1db   :  { %10518 = vst [vmem:[#allocation208_spill] sm:$0xff] %v8205_v37  ;;  %v8217_v61 = vrot.slane %v1326_v53, %v8203_v58  ;;  %v8220_v1 = vrot.slane %v1326_v53, %v8205_v37  ;;  %10523 = vst [vmem:[#allocation213_spill] sm:$0xff] %v8234_v42  ;;  %v8242_v62 = vrot.slane %v8227_v59, %v8203_v58 }
 0x1dc   :  { %10519 = vst [vmem:[#allocation209_spill] sm:$0xff] %v8211_v57  ;;  %10520 = vst [vmem:[#allocation210_spill] sm:$0xff] %v8214_v60  ;;  %v8246_v47 = vrot.slane %v8227_v59, %v8205_v37  ;;  %v1408_v54 = vmul.f32 %v8211_v57, %v8222_v12  ;;  %v1409_v6 = vmul.f32 %v8214_v60, %v8222_v12 }
 0x1dd   :  { %10521 = vst [vmem:[#allocation211_spill] sm:$0xff] %v8217_v61  ;;  %10522 = vst [vmem:[#allocation212_spill] sm:$0xff] %v8220_v1  ;;  %v1410_v63 = vmul.f32 %v8217_v61, %v8222_v12  ;;  %v1411_v39 = vmul.f32 %v8220_v1, %v8222_v12  ;;  %v8262_v7 = vrot.slane %v5887_v10, %v8199_v41  ;;  %v8275_v1 = vpop.permute.xlu1 %1742 }
 0x1de   :  { %10524 = vst [vmem:[#allocation214_spill] sm:$0xff] %v8238_v5  ;;  %10525 = vst [vmem:[#allocation215_spill] sm:$0xff] %v8242_v62  ;;  %v8265_v0 = vrot.slane %v5887_v10, %v8201_v11  ;;  %v8268_v57 = vrot.slane %v5887_v10, %v8203_v58  ;;  %v8271_v60 = vrot.slane %v5887_v10, %v8205_v37  ;;  %v8273_v61 = vpop.permute.xlu0 %1539 }
 0x1df   :  { %10526 = vst [vmem:[#allocation216_spill] sm:$0xff] %v8246_v47  ;;  %10527 = vst [vmem:[#allocation217_spill] sm:$0xff] %v8262_v7  ;;  %v8287_v8 = vrot.slane %v8259_v55, %v8203_v58  ;;  %v8291_v25 = vrot.slane %v8259_v55, %v8205_v37  ;;  %v1472_v21 = vadd.f32 %v1408_v54, %v8234_v42 }
 0x1e0   :  { %10528 = vst [vmem:[#allocation218_spill] sm:$0xff] %v8265_v0  ;;  %10529 = vst [vmem:[#allocation219_spill] sm:$0xff] %v8268_v57  ;;  %v1473_v17 = vadd.f32 %v1409_v6, %v8238_v5  ;;  %v1474_v33 = vadd.f32 %v1410_v63, %v8242_v62  ;;  %v1475_v26 = vadd.f32 %v1411_v39, %v8246_v47  ;;  %v8310_v63 = vsub.s32 4, %v1279_v52 }
 0x1e1   :  { %10530 = vst [vmem:[#allocation220_spill] sm:$0xff] %v8271_v60  ;;  %10533 = vst [vmem:[#allocation223_spill] sm:$0xff] %v8287_v8  ;;  %v1611_v18 = vmul.f32 %v8262_v7, %v8273_v61  ;;  %v1612_v34 = vmul.f32 %v8265_v0, %v8273_v61  ;;  %v1613_v54 = vmul.f32 %v8268_v57, %v8273_v61  ;;  %v8312_v39 = vsub.s32 5, %v1279_v52  ;;  %v8342_v7 = vpop.permute.xlu1 %1945 }
 0x1e2   :  { %10534 = vst [vmem:[#allocation224_spill] sm:$0xff] %v8291_v25  ;;  %v1614_v6 = vmul.f32 %v8271_v60, %v8273_v61  ;;  %10535 = vst [vmem:[#allocation225_spill] sm:$0xff] %v8310_v63  ;;  %v8314_v47 = vsub.s32 6, %v1279_v52  ;;  %v8316_v62 = vsub.s32 7, %v1279_v52  ;;  %v8320_v5 = vrot.slane %v8300_v40, %v8199_v41 }
 0x1e3   :  { %10536 = vst [vmem:[#allocation226_spill] sm:$0xff] %v8312_v39  ;;  %v8324_v42 = vrot.slane %v8300_v40, %v8201_v11  ;;  %v8328_v57 = vrot.slane %v8300_v40, %v8203_v58  ;;  %v8332_v60 = vrot.slane %v8300_v40, %v8205_v37  ;;  %v1814_v52 = vmul.f32 %v8279_v24, %v8275_v1 }
 0x1e4   :  { %10537 = vst [vmem:[#allocation227_spill] sm:$0xff] %v8314_v47  ;;  %10538 = vst [vmem:[#allocation228_spill] sm:$0xff] %v8316_v62  ;;  %v1815_v0 = vmul.f32 %v8283_v56, %v8275_v1  ;;  %v1816_v41 = vmul.f32 %v8287_v8, %v8275_v1  ;;  %v1817_v11 = vmul.f32 %v8291_v25, %v8275_v1 }
 0x1e5   :  { %10539 = vst [vmem:[#allocation229_spill] sm:$0xff] %v8320_v5  ;;  %10540 = vst [vmem:[#allocation230_spill] sm:$0xff] %v8324_v42  ;;  %v1675_v58 = vadd.f32 %v1611_v18, %v1472_v21  ;;  %v1676_v27 = vadd.f32 %v1612_v34, %v1473_v17  ;;  %v1677_v45 = vadd.f32 %v1613_v54, %v1474_v33 }
 0x1e6   :  { %10541 = vst [vmem:[#allocation231_spill] sm:$0xff] %v8328_v57  ;;  %10542 = vst [vmem:[#allocation232_spill] sm:$0xff] %v8332_v60  ;;  %v1678_v44 = vadd.f32 %v1614_v6, %v1475_v26  ;;  %v8345_v37 = vrot.slane %v1326_v53, %v8310_v63  ;;  %v8348_v24 = vrot.slane %v1326_v53, %v8312_v39 }
 0x1e7   :  { %v8351_v56 = vrot.slane %v1326_v53, %v8314_v47  ;;  %v8354_v8 = vrot.slane %v1326_v53, %v8316_v62  ;;  %v2017_v25 = vmul.f32 %v8320_v5, %v8342_v7  ;;  %v2018_v17 = vmul.f32 %v8324_v42, %v8342_v7 }
 0x1e8   :  { %10543 = vst [vmem:[#allocation233_spill] sm:$0xff] %v8345_v37  ;;  %10544 = vst [vmem:[#allocation234_spill] sm:$0xff] %v8348_v24  ;;  %v2019_v18 = vmul.f32 %v8328_v57, %v8342_v7  ;;  %v2020_v26 = vmul.f32 %v8332_v60, %v8342_v7  ;;  %v1878_v33 = vadd.f32 %v1814_v52, %v1675_v58 }
 0x1e9   :  { %10545 = vst [vmem:[#allocation235_spill] sm:$0xff] %v8351_v56  ;;  %v1879_v34 = vadd.f32 %v1815_v0, %v1676_v27  ;;  %v1880_v21 = vadd.f32 %v1816_v41, %v1677_v45  ;;  %v1881_v54 = vadd.f32 %v1817_v11, %v1678_v44  ;;  %v8365_v6 = vrot.slane %v5887_v10, %v8310_v63 }
 0x1ea   :  { %v8368_v53 = vrot.slane %v5887_v10, %v8312_v39  ;;  %v8371_v5 = vrot.slane %v5887_v10, %v8314_v47  ;;  %v8374_v42 = vrot.slane %v5887_v10, %v8316_v62  ;;  %v1412_v57 = vmul.f32 %v8345_v37, %v8222_v12 }
 0x1eb   :  { %10546 = vst [vmem:[#allocation236_spill] sm:$0xff] %v8365_v6  ;;  %v1413_v0 = vmul.f32 %v8348_v24, %v8222_v12  ;;  %v1414_v27 = vmul.f32 %v8351_v56, %v8222_v12  ;;  %v1415_v44 = vmul.f32 %v8354_v8, %v8222_v12  ;;  %v2081_v45 = vadd.f32 %v2017_v25, %v1878_v33 }
 0x1ec   :  { %10547 = vst [vmem:[#allocation237_spill] sm:$0xff] %v8371_v5  ;;  %10548 = vst [vmem:[#allocation238_spill] sm:$0xff] %v8374_v42  ;;  %v2082_v41 = vadd.f32 %v2018_v17, %v1879_v34  ;;  %v2083_v11 = vadd.f32 %v2019_v18, %v1880_v21  ;;  %v2084_v58 = vadd.f32 %v2020_v26, %v1881_v54 }
 0x1ed   :  { %v8386_v10 = vrot.slane %v8227_v59, %v8310_v63  ;;  %v8390_v52 = vrot.slane %v8227_v59, %v8312_v39  ;;  %v8394_v24 = vrot.slane %v8227_v59, %v8314_v47  ;;  %v8398_v56 = vrot.slane %v8227_v59, %v8316_v62 }
 0x1ee   :  { %v1615_v25 = vmul.f32 %v8365_v6, %v8273_v61  ;;  %v1616_v12 = vmul.f32 %v8368_v53, %v8273_v61  ;;  %v1617_v17 = vmul.f32 %v8371_v5, %v8273_v61  ;;  %v1618_v18 = vmul.f32 %v8374_v42, %v8273_v61 }
 0x1ef   :  { %10549 = vst [vmem:[#allocation239_spill] sm:$0xff] %v8398_v56  ;;  %v2209_v26 = vcombine.low %v2081_v45, %v2082_v41  ;;  %v2210_v33 = vcombine.low %v2083_v11, %v2084_v58  ;;  %v1476_v34 = vadd.f32 %v1412_v57, %v8386_v10  ;;  %v1477_v21 = vadd.f32 %v1413_v0, %v8390_v52 }
 0x1f0   :  { %v1478_v59 = vadd.f32 %v1414_v27, %v8394_v24  ;;  %v1479_v54 = vadd.f32 %v1415_v44, %v8398_v56  ;;  %v8414_v6 = vrot.slane %v8259_v55, %v8310_v63  ;;  %v8418_v5 = vrot.slane %v8259_v55, %v8312_v39 }
 0x1f1   :  { %v8422_v61 = vrot.slane %v8259_v55, %v8314_v47  ;;  %v8426_v57 = vrot.slane %v8259_v55, %v8316_v62  ;;  %v2217_v0 = vrot.slane %v2209_v26, %v8189_v4  ;;  %v2224_v27 = vrot.slane %v2210_v33, %v8189_v4 }
 0x1f2   :  { %10550 = vst [vmem:[#allocation240_spill] sm:$0xff] %v8418_v5  ;;  %v1679_v44 = vadd.f32 %v1615_v25, %v1476_v34  ;;  %v1680_v45 = vadd.f32 %v1616_v12, %v1477_v21  ;;  %v1681_v41 = vadd.f32 %v1617_v17, %v1478_v59  ;;  %v1682_v11 = vadd.f32 %v1618_v18, %v1479_v54 }
 0x1f3   :  { %10551 = vst [vmem:[#allocation241_spill] sm:$0xff] %v8422_v61  ;;  %v1818_v58 = vmul.f32 %v8414_v6, %v8275_v1  ;;  %v1819_v56 = vmul.f32 %v8418_v5, %v8275_v1  ;;  %v1820_v42 = vmul.f32 %v8422_v61, %v8275_v1  ;;  %v1821_v55 = vmul.f32 %v8426_v57, %v8275_v1 }
 0x1f4   :  { %v8440_v26 = vrot.slane %v8300_v40, %v8310_v63  ;;  %v8444_v25 = vrot.slane %v8300_v40, %v8312_v39  ;;  %v8448_v12 = vrot.slane %v8300_v40, %v8314_v47  ;;  %v8452_v17 = vrot.slane %v8300_v40, %v8316_v62 }
 0x1f5   :  { %v2225_v18 = vcombine.low %v2217_v0, %v2224_v27  ;;  %v1882_v33 = vadd.f32 %v1818_v58, %v1679_v44  ;;  %v1883_v34 = vadd.f32 %v1819_v56, %v1680_v45  ;;  %v1884_v1 = vadd.f32 %v1820_v42, %v1681_v41 }
 0x1f6   :  { %10552 = vst [vmem:[#allocation242_spill] sm:$0xff] %v8444_v25  ;;  %10553 = vst [vmem:[#allocation243_spill] sm:$0xff] %v8448_v12  ;;  %v1885_v21 = vadd.f32 %v1821_v55, %v1682_v11  ;;  %v2021_v59 = vmul.f32 %v8440_v26, %v8342_v7  ;;  %v2022_v54 = vmul.f32 %v8444_v25, %v8342_v7 }
 0x1f7   :  { %10554 = vst [vmem:[#allocation244_spill] sm:$0xff] %v8452_v17  ;;  %v2023_v39 = vmul.f32 %v8448_v12, %v8342_v7  ;;  %v2024_v47 = vmul.f32 %v8452_v17, %v8342_v7  ;;  %v10555_v40 = vcombine.low %v8192_v46, %v8195_v3 }
 0x1f8   :  { %v2085_v27 = vadd.f32 %v2021_v59, %v1882_v33  ;;  %v2086_v56 = vadd.f32 %v2022_v54, %v1883_v34 }
 0x1f9   :  { %v3491_v0 = vadd.f32 %v10555_v40, %v2225_v18  ;;  %v2087_v42 = vadd.f32 %v2023_v39, %v1884_v1  ;;  %v2088_v44 = vadd.f32 %v2024_v47, %v1885_v21 }
 0x1fa   :  { %v2226_v41 = vcombine.low %v2085_v27, %v2086_v56 }
 0x1fb   :  { %v3493_v45 = vmul.f32 0.5, %v3491_v0  ;;  %v2227_v11 = vcombine.low %v2087_v42, %v2088_v44 }
 0x1fc   :  { %v2234_v7 = vrot.slane %v2226_v41, %v8189_v4 }
 0x1fd   :  { %6146 = vtanh.f32 %v3493_v45  ;;  %v2241_v17 = vrot.slane %v2227_v11, %v8189_v4 }
 0x1ff   :  { %v2242_v34 = vcombine.low %v2234_v7, %v2241_v17 }
 0x207   :  { %v6147_v59 = vpop.eup %6146 }
 0x216   :  { %v3399_v58 = vpop.f32.mrb[4].mxu0  ;;  %v3440_v55 = vpop.f32.mrb[4].mxu1 }
 0x217   :  { %v3401_v62 = vpop.f32.mrb[5].mxu0  ;;  %v3442_v12 = vpop.f32.mrb[5].mxu1 }
 0x218   :  { %v3472_v63 = vcombine.low %v3399_v58, %v3401_v62  ;;  %v3403_v25 = vpop.f32.mrb[6].mxu0  ;;  %v3473_v46 = vcombine.low %v3440_v55, %v3442_v12  ;;  %v3444_v3 = vpop.f32.mrb[6].mxu1  ;;  %v3497_v62 = vadd.f32 1.0, %v6147_v59  ;;  %v10565_v59 = vld [vmem:[#allocation152_spill] sm:$0xff] }
 0x219   :  { %v3404_v18 = vpop.f32.mrb[7].mxu0  ;;  %v3445_v47 = vpop.f32.mrb[7].mxu1  ;;  %v10557_v3 = vld [vmem:[#allocation144_spill] sm:$0xff] }
 0x21a   :  { %v3480_v39 = vrot.slane %v3472_v63, %v8189_v4  ;;  %v3487_v33 = vrot.slane %v3473_v46, %v8189_v4  ;;  %v3499_v25 = vmul.f32 0.5, %v3497_v62  ;;  %v10556_v46 = vld [vmem:[#allocation143_spill] sm:$0xff]  ;;  %v10558_v18 = vld [vmem:[#allocation145_spill] sm:$0xff]  ;;  %v10567_v62 = vld [vmem:[#allocation154_spill] sm:$0xff] }
 0x21b   :  { %v10560_v47 = vld [vmem:[#allocation147_spill] sm:$0xff] }
 0x21c   :  { %v3488_v1 = vcombine.low %v3480_v39, %v3487_v33  ;;  %v3506_v0 = vrot.slane %v3499_v25, 4  ;;  %v10559_v39 = vld [vmem:[#allocation146_spill] sm:$0xff]  ;;  %v10561_v33 = vld [vmem:[#allocation148_spill] sm:$0xff] }
 0x21e   :  { %v3492_v21 = vadd.f32 %v3488_v1, %v2242_v34  ;;  %v3508_v12 = vmul.f32 0.0, %v3506_v0  ;;  %v10562_v34 = vld [vmem:[#allocation149_spill] sm:$0xff]  ;;  %v10563_v1 = vld [vmem:[#allocation150_spill] sm:$0xff] }
 0x21f   :  { %v10570_v0 = vld [vmem:[#allocation157_spill] sm:$0xff] }
 0x220   :  { %v3502_v54 = vrot.slane %v3492_v21, 4  ;;  %v3494_v40 = vmul.f32 0.5, %v3492_v21  ;;  %v10564_v21 = vld [vmem:[#allocation151_spill] sm:$0xff] }
 0x222   :  { %6148 = vtanh.f32 %v3502_v54  ;;  %v10566_v54 = vld [vmem:[#allocation153_spill] sm:$0xff] }
 0x223   :  { %6150 = vtanh.f32 %v3494_v40  ;;  %v10569_v40 = vld [vmem:[#allocation156_spill] sm:$0xff] }
 0x22c   :  { %v6149_v27 = vpop.eup %6148 }
 0x22d   :  { %v3509_v56 = vmul.f32 %v6149_v27, %v3499_v25  ;;  %v6151_v63 = vpop.eup %6150  ;;  %v10568_v25 = vld [vmem:[#allocation155_spill] sm:$0xff]  ;;  %v10571_v27 = vld [vmem:[#allocation158_spill] sm:$0xff] }
 0x22e   :  { %v3498_v44 = vadd.f32 1.0, %v6151_v63  ;;  %v10574_v63 = vld [vmem:[#allocation161_spill] sm:$0xff] }
 0x22f   :  { %v8469_v42 = vadd.f32 %v3509_v56, %v3508_v12  ;;  %v10572_v12 = vld [vmem:[#allocation159_spill] sm:$0xff]  ;;  %v10573_v56 = vld [vmem:[#allocation160_spill] sm:$0xff] }
 0x230   :  { %v3500_v17 = vmul.f32 0.5, %v3498_v44  ;;  %v10575_v44 = vld [vmem:[#allocation162_spill] sm:$0xff] }
 0x231   :  { %6152 = vtanh.f32 %v8469_v42 }
 0x23b   :  { %v6153_v45 = vpop.eup %6152 }
 0x23c   :  { %v3512_v41 = vmul.f32 %v6153_v45, %v3500_v17  ;;  %v10576_v17 = vld [vmem:[#allocation163_spill] sm:$0xff]  ;;  %v10577_v45 = vld [vmem:[#allocation164_spill] sm:$0xff] }
 0x23e   :  { %v3523_v11 = vrot.slane %v3512_v41, %v8189_v4  ;;  %v10578_v41 = vld [vmem:[#allocation165_spill] sm:$0xff] }
 0x240   :  { %v3524_v58 = vcombine.high %v3523_v11, %v3523_v11  ;;  %v8473_v7 = vpack.c.bf16 %v3523_v11, %v3523_v11  ;;  %v10579_v11 = vld [vmem:[#allocation166_spill] sm:$0xff] }
 0x242   :  { %v3528_v55 = vpack.c.bf16 %v3524_v58, %v3524_v58  ;;  %v10580_v58 = vld [vmem:[#allocation167_spill] sm:$0xff] }
 0x244   :  { %3561 = vmatprep.mubr.bf16.mxu0 %v3528_v55  ;;  %3602 = vmatprep.mubr.bf16.mxu1 %v3528_v55 }
 0x245   :  { %3562 = vmatmul.mubr.bf16.vlgmr.msra.gmra.mrb[8].mxu0 %v8473_v7  ;;  %3603 = vmatmul.mubr.bf16.vlgmr.msra.gmra.mrb[8].mxu1 %v8473_v7 }
 0x246   :  { %3612 = vmatpush1.bf16.msra.mxu0 %v10556_v46  ;;  %3653 = vmatpush1.bf16.msra.mxu1 %v10557_v3 }
 0x247   :  { %3643 = vmatprep.mubr.bf16.mxu0 %v3528_v55  ;;  %3684 = vmatprep.mubr.bf16.mxu1 %v3528_v55  ;;  %v10581_v55 = vld [vmem:[#allocation168_spill] sm:$0xff] }
 0x248   :  { %3613 = vmatprep.subr.bf16.mxu0 %v10558_v18  ;;  %3654 = vmatprep.subr.bf16.mxu1 %v10559_v39 }
 0x24a   :  { %3614 = vmatpush1.bf16.msra.mxu0 %v10560_v47  ;;  %3655 = vmatpush1.bf16.msra.mxu1 %v10561_v33 }
 0x24b   :  { %3615 = vmatprep.subr.bf16.mxu0 %v10562_v34  ;;  %3656 = vmatprep.subr.bf16.mxu1 %v10563_v1 }
 0x24e   :  { %3616 = vmatpush1.bf16.msra.mxu0 %v10564_v21  ;;  %3657 = vmatpush1.bf16.msra.mxu1 %v10565_v59 }
 0x24f   :  { %3617 = vmatprep.subr.bf16.mxu0 %v10566_v54  ;;  %3658 = vmatprep.subr.bf16.mxu1 %v10567_v62 }
 0x252   :  { %3618 = vmatpush1.bf16.msra.mxu0 %v10568_v25  ;;  %3659 = vmatpush1.bf16.msra.mxu1 %v10569_v40 }
 0x253   :  { %3619 = vmatprep.subr.bf16.mxu0 %v10570_v0  ;;  %3660 = vmatprep.subr.bf16.mxu1 %v10571_v27  ;;  %v10582_v27 = vld [vmem:[#allocation169_spill] sm:$0xff] }
 0x256   :  { %3620 = vmatpush1.bf16.msra.mxu0 %v10572_v12  ;;  %3661 = vmatpush1.bf16.msra.mxu1 %v10573_v56  ;;  %v10583_v12 = vld [vmem:[#allocation170_spill] sm:$0xff]  ;;  %v10584_v56 = vld [vmem:[#allocation171_spill] sm:$0xff] }
 0x257   :  { %3621 = vmatprep.subr.bf16.mxu0 %v10574_v63  ;;  %3662 = vmatprep.subr.bf16.mxu1 %v10575_v44  ;;  %v10585_v63 = vld [vmem:[#allocation172_spill] sm:$0xff]  ;;  %v10586_v44 = vld [vmem:[#allocation173_spill] sm:$0xff] }
 0x25a   :  { %3622 = vmatpush1.bf16.msra.mxu0 %v10576_v17  ;;  %3663 = vmatpush1.bf16.msra.mxu1 %v10577_v45  ;;  %v10587_v17 = vld [vmem:[#allocation174_spill] sm:$0xff]  ;;  %v10588_v45 = vld [vmem:[#allocation175_spill] sm:$0xff] }
 0x25b   :  { %3623 = vmatprep.subr.bf16.mxu0 %v10578_v41  ;;  %3664 = vmatprep.subr.bf16.mxu1 %v10579_v11  ;;  %v10589_v41 = vld [vmem:[#allocation176_spill] sm:$0xff]  ;;  %v10590_v11 = vld [vmem:[#allocation177_spill] sm:$0xff] }
 0x25e   :  { %3624 = vmatpush1.bf16.msra.mxu0 %v10580_v58  ;;  %3665 = vmatpush1.bf16.msra.mxu1 %v10581_v55  ;;  %v10591_v58 = vld [vmem:[#allocation178_spill] sm:$0xff]  ;;  %v10592_v55 = vld [vmem:[#allocation179_spill] sm:$0xff] }
 0x25f   :  { %3625 = vmatprep.subr.bf16.mxu0 %v10582_v27  ;;  %3666 = vmatprep.subr.bf16.mxu1 %v10583_v12  ;;  %v10593_v27 = vld [vmem:[#allocation180_spill] sm:$0xff]  ;;  %v10594_v12 = vld [vmem:[#allocation181_spill] sm:$0xff] }
 0x262   :  { %3626 = vmatpush1.bf16.msra.mxu0 %v10584_v56  ;;  %3667 = vmatpush1.bf16.msra.mxu1 %v10585_v63  ;;  %v10595_v56 = vld [vmem:[#allocation182_spill] sm:$0xff]  ;;  %v10596_v63 = vld [vmem:[#allocation183_spill] sm:$0xff] }
 0x263   :  { %3627 = vmatprep.subr.bf16.mxu0 %v10586_v44  ;;  %3668 = vmatprep.subr.bf16.mxu1 %v10587_v17  ;;  %v10597_v44 = vld [vmem:[#allocation184_spill] sm:$0xff]  ;;  %v10598_v17 = vld [vmem:[#allocation185_spill] sm:$0xff] }
 0x266   :  { %3628 = vmatpush1.bf16.msra.mxu0 %v10588_v45  ;;  %3669 = vmatpush1.bf16.msra.mxu1 %v10589_v41  ;;  %v10599_v45 = vld [vmem:[#allocation186_spill] sm:$0xff]  ;;  %v10600_v41 = vld [vmem:[#allocation187_spill] sm:$0xff] }
 0x267   :  { %3629 = vmatprep.subr.bf16.mxu0 %v10590_v11  ;;  %3670 = vmatprep.subr.bf16.mxu1 %v10591_v58  ;;  %v10601_v11 = vld [vmem:[#allocation188_spill] sm:$0xff]  ;;  %v10602_v58 = vld [vmem:[#allocation189_spill] sm:$0xff] }
 0x26a   :  { %3630 = vmatpush1.bf16.msra.mxu0 %v10592_v55  ;;  %3671 = vmatpush1.bf16.msra.mxu1 %v10593_v27  ;;  %v10603_v55 = vld [vmem:[#allocation190_spill] sm:$0xff]  ;;  %v10604_v27 = vld [vmem:[#allocation191_spill] sm:$0xff] }
 0x26b   :  { %3631 = vmatprep.subr.bf16.mxu0 %v10594_v12  ;;  %3672 = vmatprep.subr.bf16.mxu1 %v10595_v56  ;;  %v10605_v12 = vld [vmem:[#allocation192_spill] sm:$0xff]  ;;  %v10606_v56 = vld [vmem:[#allocation193_spill] sm:$0xff] }
 0x26e   :  { %3632 = vmatpush1.bf16.msra.mxu0 %v10596_v63  ;;  %3673 = vmatpush1.bf16.msra.mxu1 %v10597_v44  ;;  %v10607_v63 = vld [vmem:[#allocation194_spill] sm:$0xff] }
 0x26f   :  { %3633 = vmatprep.subr.bf16.mxu0 %v10598_v17  ;;  %3674 = vmatprep.subr.bf16.mxu1 %v10599_v45  ;;  %v10677_v45 = vld [vmem:[#allocation229_spill] sm:$0xff] }
 0x272   :  { %3634 = vmatpush1.bf16.msra.mxu0 %v10600_v41  ;;  %3675 = vmatpush1.bf16.msra.mxu1 %v10601_v11 }
 0x273   :  { %3635 = vmatprep.subr.bf16.mxu0 %v10602_v58  ;;  %3676 = vmatprep.subr.bf16.mxu1 %v10603_v55 }
 0x276   :  { %3636 = vmatpush1.bf16.msra.mxu0 %v10604_v27  ;;  %3677 = vmatpush1.bf16.msra.mxu1 %v10605_v12  ;;  %v10673_v27 = vld [vmem:[#allocation221_spill] sm:$0xff] }
 0x277   :  { %3637 = vmatprep.subr.bf16.mxu0 %v10606_v56  ;;  %3678 = vmatprep.subr.bf16.mxu1 %v10607_v63  ;;  %v10671_v63 = vld [vmem:[#allocation215_spill] sm:$0xff]  ;;  %v10672_v56 = vld [vmem:[#allocation216_spill] sm:$0xff] }
 0x27a   :  { %3638 = vmatpush1.bf16.msra.mxu0 %v8076_v14  ;;  %3679 = vmatpush1.bf16.msra.mxu1 %v8080_v43  ;;  %v10670_v43 = vld [vmem:[#allocation220_spill] sm:$0xff] }
 0x27b   :  { %3639 = vmatprep.subr.bf16.mxu0 %v8082_v51  ;;  %3680 = vmatprep.subr.bf16.mxu1 %v8085_v50  ;;  %v10669_v51 = vld [vmem:[#allocation219_spill] sm:$0xff] }
 0x27e   :  { %3640 = vmatpush1.bf16.msra.mxu0 %v8100_v13  ;;  %3681 = vmatpush1.bf16.msra.mxu1 %v8104_v16  ;;  %v10667_v16 = vld [vmem:[#allocation213_spill] sm:$0xff]  ;;  %v10668_v13 = vld [vmem:[#allocation214_spill] sm:$0xff] }
 0x27f   :  { %3641 = vmatprep.subr.bf16.mxu0 %v8106_v9  ;;  %3682 = vmatprep.subr.bf16.mxu1 %v8109_v49  ;;  %v10662_v49 = vld [vmem:[#allocation210_spill] sm:$0xff] }
 0x282   :  { %3642 = vmatpush1.bf16.msra.mxu0 %v8112_v15  ;;  %3683 = vmatpush1.bf16.msra.mxu1 %v8116_v2 }
 0x283   :  { %3775 = vmatprep.subr.bf16.mxu0 %v7338_v32  ;;  %3816 = vmatprep.subr.bf16.mxu1 %v7353_v38 }
 0x285   :  { %3644 = vmatmul.mubr.bf16.vlgmr.msra.gmra.mrb[12].mxu0 %v8473_v7  ;;  %3685 = vmatmul.mubr.bf16.vlgmr.msra.gmra.mrb[12].mxu1 %v8473_v7  ;;  %v10608_v7 = vld [vmem:[#allocation90_spill] sm:$0xff] }
 0x286   :  { %3776 = vmatpush1.bf16.msra.mxu0 %v7346_v48  ;;  %3817 = vmatpush1.bf16.msra.mxu1 %v7355_v22  ;;  %v10609_v22 = vld [vmem:[#allocation91_spill] sm:$0xff] }
 0x287   :  { %3777 = vmatprep.subr.bf16.mxu0 %v7368_v30  ;;  %3818 = vmatprep.subr.bf16.mxu1 %v7370_v23  ;;  %v10610_v30 = vld [vmem:[#allocation92_spill] sm:$0xff]  ;;  %v10611_v23 = vld [vmem:[#allocation93_spill] sm:$0xff] }
 0x28a   :  { %3778 = vmatpush1.bf16.msra.mxu0 %v7383_v31  ;;  %3819 = vmatpush1.bf16.msra.mxu1 %v7390_v29  ;;  %v10612_v31 = vld [vmem:[#allocation94_spill] sm:$0xff]  ;;  %v10613_v29 = vld [vmem:[#allocation95_spill] sm:$0xff] }
 0x28b   :  { %3779 = vmatprep.subr.bf16.mxu0 %v7392_v36  ;;  %3820 = vmatprep.subr.bf16.mxu1 %v7395_v20  ;;  %v10614_v36 = vld [vmem:[#allocation96_spill] sm:$0xff]  ;;  %v10615_v20 = vld [vmem:[#allocation97_spill] sm:$0xff] }
 0x28e   :  { %3780 = vmatpush1.bf16.msra.mxu0 %v7411_v28  ;;  %3821 = vmatpush1.bf16.msra.mxu1 %v7415_v35  ;;  %v10616_v28 = vld [vmem:[#allocation98_spill] sm:$0xff]  ;;  %v10617_v35 = vld [vmem:[#allocation99_spill] sm:$0xff] }
 0x28f   :  { %3781 = vmatprep.subr.bf16.mxu0 %v7417_v19  ;;  %3822 = vmatprep.subr.bf16.mxu1 %v10608_v7  ;;  %v10618_v19 = vld [vmem:[#allocation100_spill] sm:$0xff]  ;;  %v10619_v7 = vld [vmem:[#allocation101_spill] sm:$0xff] }
 0x292   :  { %3782 = vmatpush1.bf16.msra.mxu0 %v10609_v22  ;;  %3823 = vmatpush1.bf16.msra.mxu1 %v10610_v30  ;;  %v10620_v22 = vld [vmem:[#allocation102_spill] sm:$0xff]  ;;  %v10621_v30 = vld [vmem:[#allocation103_spill] sm:$0xff] }
 0x293   :  { %3783 = vmatprep.subr.bf16.mxu0 %v10611_v23  ;;  %3824 = vmatprep.subr.bf16.mxu1 %v10612_v31  ;;  %v10622_v23 = vld [vmem:[#allocation104_spill] sm:$0xff]  ;;  %v10623_v31 = vld [vmem:[#allocation105_spill] sm:$0xff] }
 0x296   :  { %3784 = vmatpush1.bf16.msra.mxu0 %v10613_v29  ;;  %3825 = vmatpush1.bf16.msra.mxu1 %v10614_v36  ;;  %v10624_v29 = vld [vmem:[#allocation106_spill] sm:$0xff]  ;;  %v10625_v36 = vld [vmem:[#allocation107_spill] sm:$0xff] }
 0x297   :  { %3785 = vmatprep.subr.bf16.mxu0 %v10615_v20  ;;  %3826 = vmatprep.subr.bf16.mxu1 %v10616_v28  ;;  %v10626_v20 = vld [vmem:[#allocation108_spill] sm:$0xff]  ;;  %v10627_v28 = vld [vmem:[#allocation109_spill] sm:$0xff] }
 0x29a   :  { %3786 = vmatpush1.bf16.msra.mxu0 %v10617_v35  ;;  %3827 = vmatpush1.bf16.msra.mxu1 %v10618_v19  ;;  %v10628_v35 = vld [vmem:[#allocation110_spill] sm:$0xff]  ;;  %v10629_v19 = vld [vmem:[#allocation111_spill] sm:$0xff] }
 0x29b   :  { %3787 = vmatprep.subr.bf16.mxu0 %v10619_v7  ;;  %3828 = vmatprep.subr.bf16.mxu1 %v10620_v22  ;;  %v10630_v7 = vld [vmem:[#allocation112_spill] sm:$0xff]  ;;  %v10631_v22 = vld [vmem:[#allocation113_spill] sm:$0xff] }
 0x29e   :  { %3788 = vmatpush1.bf16.msra.mxu0 %v10621_v30  ;;  %3829 = vmatpush1.bf16.msra.mxu1 %v10622_v23  ;;  %v10632_v30 = vld [vmem:[#allocation114_spill] sm:$0xff]  ;;  %v10633_v23 = vld [vmem:[#allocation115_spill] sm:$0xff] }
 0x29f   :  { %3789 = vmatprep.subr.bf16.mxu0 %v10623_v31  ;;  %3830 = vmatprep.subr.bf16.mxu1 %v10624_v29  ;;  %v10634_v31 = vld [vmem:[#allocation116_spill] sm:$0xff]  ;;  %v10635_v29 = vld [vmem:[#allocation117_spill] sm:$0xff] }
 0x2a2   :  { %3790 = vmatpush1.bf16.msra.mxu0 %v10625_v36  ;;  %3831 = vmatpush1.bf16.msra.mxu1 %v10626_v20  ;;  %v10636_v36 = vld [vmem:[#allocation118_spill] sm:$0xff]  ;;  %v10637_v20 = vld [vmem:[#allocation119_spill] sm:$0xff] }
 0x2a3   :  { %3791 = vmatprep.subr.bf16.mxu0 %v10627_v28  ;;  %3832 = vmatprep.subr.bf16.mxu1 %v10628_v35  ;;  %v10638_v28 = vld [vmem:[#allocation120_spill] sm:$0xff]  ;;  %v10639_v35 = vld [vmem:[#allocation121_spill] sm:$0xff] }
 0x2a6   :  { %3792 = vmatpush1.bf16.msra.mxu0 %v10629_v19  ;;  %3833 = vmatpush1.bf16.msra.mxu1 %v10630_v7  ;;  %v10640_v19 = vld [vmem:[#allocation122_spill] sm:$0xff]  ;;  %v10641_v7 = vld [vmem:[#allocation123_spill] sm:$0xff] }
 0x2a7   :  { %3793 = vmatprep.subr.bf16.mxu0 %v10631_v22  ;;  %3834 = vmatprep.subr.bf16.mxu1 %v10632_v30  ;;  %v10642_v22 = vld [vmem:[#allocation124_spill] sm:$0xff]  ;;  %v10643_v30 = vld [vmem:[#allocation125_spill] sm:$0xff] }
 0x2aa   :  { %3794 = vmatpush1.bf16.msra.mxu0 %v10633_v23  ;;  %3835 = vmatpush1.bf16.msra.mxu1 %v10634_v31  ;;  %v10644_v23 = vld [vmem:[#allocation126_spill] sm:$0xff]  ;;  %v10645_v31 = vld [vmem:[#allocation127_spill] sm:$0xff] }
 0x2ab   :  { %3795 = vmatprep.subr.bf16.mxu0 %v10635_v29  ;;  %3836 = vmatprep.subr.bf16.mxu1 %v10636_v36  ;;  %v10646_v29 = vld [vmem:[#allocation128_spill] sm:$0xff]  ;;  %v10647_v36 = vld [vmem:[#allocation129_spill] sm:$0xff] }
 0x2ae   :  { %3796 = vmatpush1.bf16.msra.mxu0 %v10637_v20  ;;  %3837 = vmatpush1.bf16.msra.mxu1 %v10638_v28  ;;  %v10648_v20 = vld [vmem:[#allocation130_spill] sm:$0xff]  ;;  %v10649_v28 = vld [vmem:[#allocation131_spill] sm:$0xff] }
 0x2af   :  { %3797 = vmatprep.subr.bf16.mxu0 %v10639_v35  ;;  %3838 = vmatprep.subr.bf16.mxu1 %v10640_v19  ;;  %v10650_v35 = vld [vmem:[#allocation132_spill] sm:$0xff]  ;;  %v10651_v19 = vld [vmem:[#allocation133_spill] sm:$0xff] }
 0x2b2   :  { %3798 = vmatpush1.bf16.msra.mxu0 %v10641_v7  ;;  %3839 = vmatpush1.bf16.msra.mxu1 %v10642_v22  ;;  %v10652_v7 = vld [vmem:[#allocation134_spill] sm:$0xff]  ;;  %v10653_v22 = vld [vmem:[#allocation135_spill] sm:$0xff] }
 0x2b3   :  { %3799 = vmatprep.subr.bf16.mxu0 %v10643_v30  ;;  %3840 = vmatprep.subr.bf16.mxu1 %v10644_v23  ;;  %v10654_v30 = vld [vmem:[#allocation136_spill] sm:$0xff]  ;;  %v10655_v23 = vld [vmem:[#allocation137_spill] sm:$0xff] }
 0x2b6   :  { %3800 = vmatpush1.bf16.msra.mxu0 %v10645_v31  ;;  %3841 = vmatpush1.bf16.msra.mxu1 %v10646_v29  ;;  %v10656_v31 = vld [vmem:[#allocation138_spill] sm:$0xff]  ;;  %v10657_v29 = vld [vmem:[#allocation139_spill] sm:$0xff] }
 0x2b7   :  { %3801 = vmatprep.subr.bf16.mxu0 %v10647_v36  ;;  %3842 = vmatprep.subr.bf16.mxu1 %v10648_v20  ;;  %v10658_v36 = vld [vmem:[#allocation140_spill] sm:$0xff]  ;;  %v10659_v20 = vld [vmem:[#allocation141_spill] sm:$0xff] }
 0x2ba   :  { %3802 = vmatpush1.bf16.msra.mxu0 %v10649_v28  ;;  %3843 = vmatpush1.bf16.msra.mxu1 %v10650_v35  ;;  %v10660_v28 = vld [vmem:[#allocation142_spill] sm:$0xff] }
 0x2bb   :  { %3803 = vmatprep.subr.bf16.mxu0 %v10651_v19  ;;  %3844 = vmatprep.subr.bf16.mxu1 %v10652_v7 }
 0x2be   :  { %3804 = vmatpush1.bf16.msra.mxu0 %v10653_v22  ;;  %3845 = vmatpush1.bf16.msra.mxu1 %v10654_v30 }
 0x2bf   :  { %3805 = vmatprep.subr.bf16.mxu0 %v10655_v23  ;;  %3846 = vmatprep.subr.bf16.mxu1 %v10656_v31 }
 0x2c2   :  { %3806 = vmatpush1.bf16.msra.mxu0 %v10657_v29  ;;  %3847 = vmatpush1.bf16.msra.mxu1 %v10658_v36  ;;  %v10661_v36 = vld [vmem:[#allocation209_spill] sm:$0xff] }
 0x2c3   :  { %3857 = vmatprep.subr.bf16.mxu0 %v10659_v20  ;;  %3898 = vmatprep.subr.bf16.mxu1 %v10660_v28  ;;  %v1335_v28 = vpop.permute.xlu1 %1334 }
 0x2c4   :  { %v1416_v15 = vmul.f32 %v10661_v36, %v1335_v28  ;;  %v1417_v9 = vmul.f32 %v10662_v49, %v1335_v28 }
 0x2c6   :  { %v1481_v50 = vadd.f32 %v1417_v9, %v10668_v13  ;;  %v10676_v13 = vld [vmem:[#allocation224_spill] sm:$0xff] }
 0x2c7   :  { %v1747_v36 = vpop.permute.xlu1 %1746 }
 0x2c8   :  { %v1822_v55 = vmul.f32 %v10673_v27, %v1747_v36 }
 0x318   :  { %v3563_v35 = vpop.f32.mrb[8].mxu0  ;;  %v3604_v19 = vpop.f32.mrb[8].mxu1 }
 0x319   :  { %v3565_v48 = vpop.f32.mrb[9].mxu0  ;;  %v3606_v7 = vpop.f32.mrb[9].mxu1 }
 0x31a   :  { %v3701_v38 = vcombine.low %v3563_v35, %v3565_v48  ;;  %v3702_v22 = vcombine.low %v3604_v19, %v3606_v7  ;;  %v3567_v32 = vpop.f32.mrb[10].mxu0  ;;  %v3608_v30 = vpop.f32.mrb[10].mxu1  ;;  %v10663_v35 = vld [vmem:[#allocation211_spill] sm:$0xff] }
 0x31b   :  { %v3568_v2 = vpop.f32.mrb[11].mxu0  ;;  %v3609_v23 = vpop.f32.mrb[11].mxu1  ;;  %v1418_v19 = vmul.f32 %v10663_v35, %v1335_v28  ;;  %v10664_v32 = vld [vmem:[#allocation212_spill] sm:$0xff] }
 0x31c   :  { %v8608_v31 = vrot.slane %v3701_v38, %v8189_v4  ;;  %v8611_v29 = vrot.slane %v3702_v22, %v8189_v4  ;;  %v1419_v30 = vmul.f32 %v10664_v32, %v1335_v28  ;;  %v1544_v48 = vpop.permute.xlu0 %1543  ;;  %v10665_v23 = vld [vmem:[#allocation217_spill] sm:$0xff]  ;;  %v10666_v38 = vld [vmem:[#allocation218_spill] sm:$0xff]  ;;  %v1480_v22 = vadd.f32 %v1416_v15, %v10667_v16  ;;  %v10675_v16 = vld [vmem:[#allocation223_spill] sm:$0xff] }
 0x31d   :  { %v1619_v2 = vmul.f32 %v10665_v23, %v1544_v48  ;;  %v1620_v7 = vmul.f32 %v10666_v38, %v1544_v48  ;;  %v1621_v20 = vmul.f32 %v10669_v51, %v1544_v48  ;;  %v1622_v14 = vmul.f32 %v10670_v43, %v1544_v48  ;;  %v10674_v23 = vld [vmem:[#allocation222_spill] sm:$0xff] }
 0x31e   :  { %v1482_v49 = vadd.f32 %v1418_v19, %v10671_v63  ;;  %v1483_v35 = vadd.f32 %v1419_v30, %v10672_v56  ;;  %v1823_v58 = vmul.f32 %v10674_v23, %v1747_v36  ;;  %v1824_v9 = vmul.f32 %v10675_v16, %v1747_v36  ;;  %v10678_v19 = vld [vmem:[#allocation230_spill] sm:$0xff] }
 0x31f   :  { %v1683_v12 = vadd.f32 %v1619_v2, %v1480_v22  ;;  %v1684_v32 = vadd.f32 %v1620_v7, %v1481_v50  ;;  %v1825_v51 = vmul.f32 %v10676_v13, %v1747_v36  ;;  %v10679_v50 = vld [vmem:[#allocation231_spill] sm:$0xff]  ;;  %v1420_v23 = vmul.f32 %v8345_v37, %v1335_v28 }
 0x320   :  { %v1950_v38 = vpop.permute.xlu0 %1949  ;;  %v1685_v11 = vadd.f32 %v1621_v20, %v1482_v49  ;;  %v1686_v15 = vadd.f32 %v1622_v14, %v1483_v35  ;;  %v10680_v49 = vld [vmem:[#allocation234_spill] sm:$0xff]  ;;  %v10681_v14 = vld [vmem:[#allocation235_spill] sm:$0xff] }
 0x321   :  { %v1886_v41 = vadd.f32 %v1822_v55, %v1683_v12  ;;  %v1887_v43 = vadd.f32 %v1823_v58, %v1684_v32  ;;  %v2025_v17 = vmul.f32 %v10677_v45, %v1950_v38  ;;  %v2026_v63 = vmul.f32 %v10678_v19, %v1950_v38  ;;  %v10682_v32 = vld [vmem:[#allocation236_spill] sm:$0xff] }
 0x322   :  { %v1888_v30 = vadd.f32 %v1824_v9, %v1685_v11  ;;  %v1889_v2 = vadd.f32 %v1825_v51, %v1686_v15  ;;  %v2027_v7 = vmul.f32 %v10679_v50, %v1950_v38  ;;  %v2028_v22 = vmul.f32 %v8332_v60, %v1950_v38  ;;  %v10683_v15 = vld [vmem:[#allocation237_spill] sm:$0xff] }
 0x323   :  { %v1421_v20 = vmul.f32 %v10680_v49, %v1335_v28  ;;  %v1422_v35 = vmul.f32 %v10681_v14, %v1335_v28  ;;  %v2089_v16 = vadd.f32 %v2025_v17, %v1886_v41  ;;  %v2090_v13 = vadd.f32 %v2026_v63, %v1887_v43  ;;  %v10684_v17 = vld [vmem:[#allocation238_spill] sm:$0xff]  ;;  %v10685_v63 = vld [vmem:[#allocation239_spill] sm:$0xff] }
 0x324   :  { %v2091_v12 = vadd.f32 %v2027_v7, %v1888_v30  ;;  %v2092_v58 = vadd.f32 %v2028_v22, %v1889_v2  ;;  %v1423_v55 = vmul.f32 %v8354_v8, %v1335_v28  ;;  %v1623_v19 = vmul.f32 %v10682_v32, %v1544_v48  ;;  %v1270_v22 = vld [vmem:[%s9934_s0 + $0x4] sm:$0x3] }
 0x325   :  { %v1484_v51 = vadd.f32 %v1420_v23, %v8386_v10  ;;  %v1624_v11 = vmul.f32 %v8368_v53, %v1544_v48  ;;  %v1625_v9 = vmul.f32 %v10683_v15, %v1544_v48  ;;  %v1485_v37 = vadd.f32 %v1421_v20, %v8390_v52  ;;  %1339 = vperm.xlu1 %6122, %v1270_v22  }
 0x326   :  { %v1486_v49 = vadd.f32 %v1422_v35, %v8394_v24  ;;  %v2243_v60 = vcombine.low %v2089_v16, %v2090_v13  ;;  %v2244_v14 = vcombine.low %v2091_v12, %v2092_v58  ;;  %v1626_v43 = vmul.f32 %v10684_v17, %v1544_v48  ;;  %1750 = vperm.xlu0 %6124, %v1270_v22  }
 0x327   :  { %v1487_v41 = vadd.f32 %v1423_v55, %v10685_v63  ;;  %v1687_v30 = vadd.f32 %v1623_v19, %v1484_v51  ;;  %v1688_v28 = vadd.f32 %v1624_v11, %v1485_v37  ;;  %v1826_v7 = vmul.f32 %v8414_v6, %v1747_v36  ;;  %v10687_v51 = vld [vmem:[#allocation242_spill] sm:$0xff]  ;;  %v10688_v11 = vld [vmem:[#allocation243_spill] sm:$0xff] }
 0x328   :  { %v1689_v2 = vadd.f32 %v1625_v9, %v1486_v49  ;;  %v1827_v23 = vmul.f32 %v8418_v5, %v1747_v36  ;;  %v2251_v20 = vrot.slane %v2243_v60, %v8189_v4  ;;  %v2258_v16 = vrot.slane %v2244_v14, %v8189_v4 }
 0x329   :  { %v1828_v13 = vmul.f32 %v8422_v61, %v1747_v36  ;;  %v1690_v48 = vadd.f32 %v1626_v43, %v1487_v41  ;;  %v1829_v37 = vmul.f32 %v8426_v57, %v1747_v36  ;;  %v1890_v19 = vadd.f32 %v1826_v7, %v1687_v30  ;;  %v10689_v61 = vld [vmem:[#allocation244_spill] sm:$0xff] }
 0x32a   :  { %v1891_v49 = vadd.f32 %v1827_v23, %v1688_v28  ;;  %v2259_v35 = vcombine.low %v2251_v20, %v2258_v16  ;;  %v2029_v58 = vmul.f32 %v8440_v26, %v1950_v38  ;;  %v10686_v55 = vmov 1  }
 0x32b   :  { %v1892_v12 = vadd.f32 %v1828_v13, %v1689_v2  ;;  %6123 = vset.pattern.permute.xlu1 %v10686_v55  ;;  %6127 = vset.pattern.permute.xlu0 %v10686_v55  ;;  %v1893_v60 = vadd.f32 %v1829_v37, %v1690_v48  ;;  %v2030_v14 = vmul.f32 %v10687_v51, %v1950_v38  ;;  %v10691_v7 = vmov 3  }
 0x32c   :  { %v2031_v9 = vmul.f32 %v10688_v11, %v1950_v38  ;;  %v2032_v5 = vmul.f32 %v10689_v61, %v1950_v38  ;;  %1547 = vperm.xlu1 %6123, %v1270_v22   ;;  %v10690_v36 = vcombine.low %v8608_v31, %v8611_v29  ;;  %v2093_v41 = vadd.f32 %v2029_v58, %v1890_v19 }
 0x32d   :  { %v2094_v30 = vadd.f32 %v2030_v14, %v1891_v49  ;;  %v10692_v13 = vmov 0  }
 0x32e   :  { %v3737_v43 = vadd.f32 %v10690_v36, %v2259_v35  ;;  %v2095_v28 = vadd.f32 %v2031_v9, %v1892_v12  ;;  %v2096_v2 = vadd.f32 %v2032_v5, %v1893_v60 }
 0x32f   :  { %v2260_v20 = vcombine.low %v2093_v41, %v2094_v30 }
 0x330   :  { %6125 = vset.pattern.permute.xlu1 %v10691_v7  ;;  %v3739_v23 = vmul.f32 0.5, %v3737_v43  ;;  %v2261_v16 = vcombine.low %v2095_v28, %v2096_v2 }
 0x331   :  { %1953 = vperm.xlu1 %6125, %v1270_v22   ;;  %v2268_v29 = vrot.slane %v2260_v20, %v8189_v4 }
 0x332   :  { %6154 = vtanh.f32 %v3739_v23  ;;  %v2275_v31 = vrot.slane %v2261_v16, %v8189_v4 }
 0x334   :  { %v2276_v60 = vcombine.low %v2268_v29, %v2275_v31 }
 0x335   :  { %6126 = vset.pattern.permute.xlu1 %v10692_v13 }
 0x33c   :  { %v6155_v36 = vpop.eup %6154 }
 0x33d   :  { %v3743_v41 = vadd.f32 1.0, %v6155_v36  ;;  %v10701_v36 = vld [vmem:[#allocation166_spill] sm:$0xff] }
 0x33f   :  { %v3745_v30 = vmul.f32 0.5, %v3743_v41  ;;  %v10703_v41 = vld [vmem:[#allocation168_spill] sm:$0xff] }
 0x341   :  { %v3752_v2 = vrot.slane %v3745_v30, 4 }
 0x343   :  { %v3754_v23 = vmul.f32 %v3752_v2, %v8469_v42  ;;  %v10693_v42 = vld [vmem:[#allocation158_spill] sm:$0xff]  ;;  %v10706_v2 = vld [vmem:[#allocation171_spill] sm:$0xff] }
 0x358   :  { %v3645_v48 = vpop.f32.mrb[12].mxu0  ;;  %v3686_v38 = vpop.f32.mrb[12].mxu1 }
 0x359   :  { %v3647_v37 = vpop.f32.mrb[13].mxu0  ;;  %v3688_v55 = vpop.f32.mrb[13].mxu1 }
 0x35a   :  { %v3718_v61 = vcombine.low %v3645_v48, %v3647_v37  ;;  %v3719_v19 = vcombine.low %v3686_v38, %v3688_v55  ;;  %v3649_v5 = vpop.f32.mrb[14].mxu0  ;;  %v3690_v49 = vpop.f32.mrb[14].mxu1 }
 0x35b   :  { %v3650_v35 = vpop.f32.mrb[15].mxu0  ;;  %v3691_v12 = vpop.f32.mrb[15].mxu1 }
 0x35c   :  { %v3726_v22 = vrot.slane %v3718_v61, %v8189_v4  ;;  %v3733_v58 = vrot.slane %v3719_v19, %v8189_v4  ;;  %v10694_v35 = vld [vmem:[#allocation159_spill] sm:$0xff]  ;;  %v10695_v12 = vld [vmem:[#allocation160_spill] sm:$0xff] }
 0x35e   :  { %v3734_v14 = vcombine.low %v3726_v22, %v3733_v58  ;;  %v10696_v22 = vld [vmem:[#allocation161_spill] sm:$0xff]  ;;  %v10697_v58 = vld [vmem:[#allocation162_spill] sm:$0xff] }
 0x360   :  { %v3738_v9 = vadd.f32 %v3734_v14, %v2276_v60  ;;  %v10698_v60 = vld [vmem:[#allocation163_spill] sm:$0xff]  ;;  %v10699_v14 = vld [vmem:[#allocation164_spill] sm:$0xff] }
 0x362   :  { %v3748_v43 = vrot.slane %v3738_v9, 4  ;;  %v3740_v28 = vmul.f32 0.5, %v3738_v9  ;;  %v10700_v9 = vld [vmem:[#allocation165_spill] sm:$0xff] }
 0x364   :  { %6156 = vtanh.f32 %v3748_v43  ;;  %v10702_v43 = vld [vmem:[#allocation167_spill] sm:$0xff] }
 0x365   :  { %6158 = vtanh.f32 %v3740_v28  ;;  %v10705_v28 = vld [vmem:[#allocation170_spill] sm:$0xff] }
 0x36e   :  { %v6157_v55 = vpop.eup %6156 }
 0x36f   :  { %v3755_v20 = vmul.f32 %v6157_v55, %v3745_v30  ;;  %v6159_v61 = vpop.eup %6158  ;;  %v10704_v30 = vld [vmem:[#allocation169_spill] sm:$0xff]  ;;  %v10707_v55 = vld [vmem:[#allocation172_spill] sm:$0xff] }
 0x370   :  { %v3744_v48 = vadd.f32 1.0, %v6159_v61  ;;  %v10710_v61 = vld [vmem:[#allocation175_spill] sm:$0xff] }
 0x371   :  { %v8672_v16 = vadd.f32 %v3755_v20, %v3754_v23  ;;  %v10708_v23 = vld [vmem:[#allocation173_spill] sm:$0xff]  ;;  %v10709_v20 = vld [vmem:[#allocation174_spill] sm:$0xff] }
 0x372   :  { %v3746_v38 = vmul.f32 0.5, %v3744_v48  ;;  %v10711_v48 = vld [vmem:[#allocation176_spill] sm:$0xff] }
 0x373   :  { %6160 = vtanh.f32 %v8672_v16 }
 0x37d   :  { %v6161_v37 = vpop.eup %6160 }
 0x37e   :  { %v3758_v29 = vmul.f32 %v6161_v37, %v3746_v38  ;;  %v10712_v38 = vld [vmem:[#allocation177_spill] sm:$0xff]  ;;  %v10713_v37 = vld [vmem:[#allocation178_spill] sm:$0xff] }
 0x380   :  { %v3769_v31 = vrot.slane %v3758_v29, %v8189_v4  ;;  %v10714_v29 = vld [vmem:[#allocation179_spill] sm:$0xff] }
 0x382   :  { %v3770_v19 = vcombine.high %v3769_v31, %v3769_v31  ;;  %v8676_v49 = vpack.c.bf16 %v3769_v31, %v3769_v31  ;;  %v10715_v31 = vld [vmem:[#allocation180_spill] sm:$0xff] }
 0x384   :  { %v3774_v5 = vpack.c.bf16 %v3770_v19, %v3770_v19  ;;  %v10716_v19 = vld [vmem:[#allocation181_spill] sm:$0xff] }
 0x386   :  { %3807 = vmatprep.mubr.bf16.mxu0 %v3774_v5  ;;  %3848 = vmatprep.mubr.bf16.mxu1 %v3774_v5 }
 0x387   :  { %3808 = vmatmul.mubr.bf16.vlgmr.msra.gmra.mrb[16].mxu0 %v8676_v49  ;;  %3849 = vmatmul.mubr.bf16.vlgmr.msra.gmra.mrb[16].mxu1 %v8676_v49 }
 0x388   :  { %3858 = vmatpush1.bf16.msra.mxu0 %v10556_v46  ;;  %3899 = vmatpush1.bf16.msra.mxu1 %v10557_v3 }
 0x389   :  { %3889 = vmatprep.mubr.bf16.mxu0 %v3774_v5  ;;  %3930 = vmatprep.mubr.bf16.mxu1 %v3774_v5  ;;  %v10717_v5 = vld [vmem:[#allocation182_spill] sm:$0xff] }
 0x38a   :  { %3859 = vmatprep.subr.bf16.mxu0 %v10558_v18  ;;  %3900 = vmatprep.subr.bf16.mxu1 %v10559_v39 }
 0x38c   :  { %3860 = vmatpush1.bf16.msra.mxu0 %v10560_v47  ;;  %3901 = vmatpush1.bf16.msra.mxu1 %v10561_v33 }
 0x38d   :  { %3861 = vmatprep.subr.bf16.mxu0 %v10562_v34  ;;  %3902 = vmatprep.subr.bf16.mxu1 %v10563_v1 }
 0x390   :  { %3862 = vmatpush1.bf16.msra.mxu0 %v10564_v21  ;;  %3903 = vmatpush1.bf16.msra.mxu1 %v10565_v59 }
 0x391   :  { %3863 = vmatprep.subr.bf16.mxu0 %v10566_v54  ;;  %3904 = vmatprep.subr.bf16.mxu1 %v10567_v62  ;;  %v10818_v62 = vld [vmem:[#allocation224_spill] sm:$0xff] }
 0x394   :  { %3864 = vmatpush1.bf16.msra.mxu0 %v10568_v25  ;;  %3905 = vmatpush1.bf16.msra.mxu1 %v10569_v40  ;;  %v10816_v40 = vld [vmem:[#allocation222_spill] sm:$0xff]  ;;  %v10817_v25 = vld [vmem:[#allocation223_spill] sm:$0xff] }
 0x395   :  { %3865 = vmatprep.subr.bf16.mxu0 %v10570_v0  ;;  %3906 = vmatprep.subr.bf16.mxu1 %v10693_v42 }
 0x398   :  { %3866 = vmatpush1.bf16.msra.mxu0 %v10694_v35  ;;  %3907 = vmatpush1.bf16.msra.mxu1 %v10695_v12 }
 0x399   :  { %3867 = vmatprep.subr.bf16.mxu0 %v10696_v22  ;;  %3908 = vmatprep.subr.bf16.mxu1 %v10697_v58  ;;  %v10814_v58 = vld [vmem:[#allocation214_spill] sm:$0xff] }
 0x39c   :  { %3868 = vmatpush1.bf16.msra.mxu0 %v10698_v60  ;;  %3909 = vmatpush1.bf16.msra.mxu1 %v10699_v14  ;;  %v10813_v60 = vld [vmem:[#allocation213_spill] sm:$0xff] }
 0x39d   :  { %3869 = vmatprep.subr.bf16.mxu0 %v10700_v9  ;;  %3910 = vmatprep.subr.bf16.mxu1 %v10701_v36  ;;  %v10811_v36 = vld [vmem:[#allocation219_spill] sm:$0xff]  ;;  %v10812_v9 = vld [vmem:[#allocation220_spill] sm:$0xff] }
 0x3a0   :  { %3870 = vmatpush1.bf16.msra.mxu0 %v10702_v43  ;;  %3911 = vmatpush1.bf16.msra.mxu1 %v10703_v41  ;;  %v10806_v41 = vld [vmem:[#allocation210_spill] sm:$0xff] }
 0x3a1   :  { %3871 = vmatprep.subr.bf16.mxu0 %v10704_v30  ;;  %3912 = vmatprep.subr.bf16.mxu1 %v10705_v28 }
 0x3a4   :  { %3872 = vmatpush1.bf16.msra.mxu0 %v10706_v2  ;;  %3913 = vmatpush1.bf16.msra.mxu1 %v10707_v55  ;;  %v10718_v55 = vld [vmem:[#allocation183_spill] sm:$0xff] }
 0x3a5   :  { %3873 = vmatprep.subr.bf16.mxu0 %v10708_v23  ;;  %3914 = vmatprep.subr.bf16.mxu1 %v10709_v20  ;;  %v10719_v20 = vld [vmem:[#allocation185_spill] sm:$0xff] }
 0x3a8   :  { %3874 = vmatpush1.bf16.msra.mxu0 %v10710_v61  ;;  %3915 = vmatpush1.bf16.msra.mxu1 %v10711_v48  ;;  %v10720_v61 = vld [vmem:[#allocation186_spill] sm:$0xff]  ;;  %v10721_v48 = vld [vmem:[#allocation187_spill] sm:$0xff] }
 0x3a9   :  { %3875 = vmatprep.subr.bf16.mxu0 %v10712_v38  ;;  %3916 = vmatprep.subr.bf16.mxu1 %v10713_v37  ;;  %v10722_v38 = vld [vmem:[#allocation188_spill] sm:$0xff]  ;;  %v10723_v37 = vld [vmem:[#allocation189_spill] sm:$0xff] }
 0x3ac   :  { %3876 = vmatpush1.bf16.msra.mxu0 %v10714_v29  ;;  %3917 = vmatpush1.bf16.msra.mxu1 %v10715_v31  ;;  %v10724_v29 = vld [vmem:[#allocation190_spill] sm:$0xff]  ;;  %v10725_v31 = vld [vmem:[#allocation191_spill] sm:$0xff] }
 0x3ad   :  { %3877 = vmatprep.subr.bf16.mxu0 %v10716_v19  ;;  %3918 = vmatprep.subr.bf16.mxu1 %v10717_v5  ;;  %v10726_v19 = vld [vmem:[#allocation192_spill] sm:$0xff]  ;;  %v10727_v5 = vld [vmem:[#allocation193_spill] sm:$0xff] }
 0x3b0   :  { %3878 = vmatpush1.bf16.msra.mxu0 %v10718_v55  ;;  %3919 = vmatpush1.bf16.msra.mxu1 %v10597_v44  ;;  %v10728_v55 = vld [vmem:[#allocation194_spill] sm:$0xff]  ;;  %v10729_v44 = vld [vmem:[#allocation195_spill] sm:$0xff] }
 0x3b1   :  { %3879 = vmatprep.subr.bf16.mxu0 %v10719_v20  ;;  %3920 = vmatprep.subr.bf16.mxu1 %v10720_v61  ;;  %v10730_v20 = vld [vmem:[#allocation196_spill] sm:$0xff]  ;;  %v10731_v61 = vld [vmem:[#allocation197_spill] sm:$0xff] }
 0x3b4   :  { %3880 = vmatpush1.bf16.msra.mxu0 %v10721_v48  ;;  %3921 = vmatpush1.bf16.msra.mxu1 %v10722_v38  ;;  %v10732_v48 = vld [vmem:[#allocation198_spill] sm:$0xff]  ;;  %v10733_v38 = vld [vmem:[#allocation199_spill] sm:$0xff] }
 0x3b5   :  { %3881 = vmatprep.subr.bf16.mxu0 %v10723_v37  ;;  %3922 = vmatprep.subr.bf16.mxu1 %v10724_v29  ;;  %v10734_v37 = vld [vmem:[#allocation200_spill] sm:$0xff]  ;;  %v10735_v29 = vld [vmem:[#allocation201_spill] sm:$0xff] }
 0x3b8   :  { %3882 = vmatpush1.bf16.msra.mxu0 %v10725_v31  ;;  %3923 = vmatpush1.bf16.msra.mxu1 %v10726_v19  ;;  %v10736_v31 = vld [vmem:[#allocation202_spill] sm:$0xff]  ;;  %v10737_v19 = vld [vmem:[#allocation203_spill] sm:$0xff] }
 0x3b9   :  { %3883 = vmatprep.subr.bf16.mxu0 %v10727_v5  ;;  %3924 = vmatprep.subr.bf16.mxu1 %v10728_v55  ;;  %v10738_v5 = vld [vmem:[#allocation204_spill] sm:$0xff]  ;;  %v10739_v55 = vld [vmem:[#allocation77_spill] sm:$0xff] }
 0x3bc   :  { %3884 = vmatpush1.bf16.msra.mxu0 %v10729_v44  ;;  %3925 = vmatpush1.bf16.msra.mxu1 %v10730_v20  ;;  %v10740_v44 = vld [vmem:[#allocation79_spill] sm:$0xff] }
 0x3bd   :  { %3885 = vmatprep.subr.bf16.mxu0 %v10731_v61  ;;  %3926 = vmatprep.subr.bf16.mxu1 %v10732_v48  ;;  %v10741_v48 = vld [vmem:[#allocation78_spill] sm:$0xff]  ;;  %v10750_v61 = vld [vmem:[#allocation88_spill] sm:$0xff] }
 0x3c0   :  { %3886 = vmatpush1.bf16.msra.mxu0 %v10733_v38  ;;  %3927 = vmatpush1.bf16.msra.mxu1 %v10734_v37  ;;  %v10742_v38 = vld [vmem:[#allocation80_spill] sm:$0xff]  ;;  %v10743_v37 = vld [vmem:[#allocation81_spill] sm:$0xff] }
 0x3c1   :  { %3887 = vmatprep.subr.bf16.mxu0 %v10735_v29  ;;  %3928 = vmatprep.subr.bf16.mxu1 %v10736_v31  ;;  %v10744_v29 = vld [vmem:[#allocation82_spill] sm:$0xff]  ;;  %v10745_v31 = vld [vmem:[#allocation83_spill] sm:$0xff] }
 0x3c4   :  { %3888 = vmatpush1.bf16.msra.mxu0 %v10737_v19  ;;  %3929 = vmatpush1.bf16.msra.mxu1 %v10738_v5  ;;  %v10746_v19 = vld [vmem:[#allocation84_spill] sm:$0xff]  ;;  %v10747_v5 = vld [vmem:[#allocation85_spill] sm:$0xff] }
 0x3c5   :  { %4021 = vmatprep.subr.bf16.mxu0 %v10739_v55  ;;  %4062 = vmatprep.subr.bf16.mxu1 %v10740_v44  ;;  %v10748_v55 = vld [vmem:[#allocation86_spill] sm:$0xff]  ;;  %v10749_v44 = vld [vmem:[#allocation87_spill] sm:$0xff] }
 0x3c7   :  { %3890 = vmatmul.mubr.bf16.vlgmr.msra.gmra.mrb[20].mxu0 %v8676_v49  ;;  %3931 = vmatmul.mubr.bf16.vlgmr.msra.gmra.mrb[20].mxu1 %v8676_v49  ;;  %v10751_v49 = vld [vmem:[#allocation89_spill] sm:$0xff] }
 0x3c8   :  { %4022 = vmatpush1.bf16.msra.mxu0 %v10741_v48  ;;  %4063 = vmatpush1.bf16.msra.mxu1 %v10742_v38  ;;  %v10752_v48 = vld [vmem:[#allocation90_spill] sm:$0xff]  ;;  %v10753_v38 = vld [vmem:[#allocation91_spill] sm:$0xff] }
 0x3c9   :  { %4023 = vmatprep.subr.bf16.mxu0 %v10743_v37  ;;  %4064 = vmatprep.subr.bf16.mxu1 %v10744_v29  ;;  %v10754_v37 = vld [vmem:[#allocation92_spill] sm:$0xff]  ;;  %v10755_v29 = vld [vmem:[#allocation93_spill] sm:$0xff] }
 0x3cc   :  { %4024 = vmatpush1.bf16.msra.mxu0 %v10745_v31  ;;  %4065 = vmatpush1.bf16.msra.mxu1 %v10746_v19  ;;  %v10756_v31 = vld [vmem:[#allocation94_spill] sm:$0xff]  ;;  %v10757_v19 = vld [vmem:[#allocation95_spill] sm:$0xff] }
 0x3cd   :  { %4025 = vmatprep.subr.bf16.mxu0 %v10747_v5  ;;  %4066 = vmatprep.subr.bf16.mxu1 %v10748_v55  ;;  %v10758_v5 = vld [vmem:[#allocation96_spill] sm:$0xff]  ;;  %v10759_v55 = vld [vmem:[#allocation97_spill] sm:$0xff] }
 0x3d0   :  { %4026 = vmatpush1.bf16.msra.mxu0 %v10749_v44  ;;  %4067 = vmatpush1.bf16.msra.mxu1 %v10750_v61  ;;  %v10760_v44 = vld [vmem:[#allocation98_spill] sm:$0xff]  ;;  %v10761_v61 = vld [vmem:[#allocation99_spill] sm:$0xff] }
 0x3d1   :  { %4027 = vmatprep.subr.bf16.mxu0 %v10751_v49  ;;  %4068 = vmatprep.subr.bf16.mxu1 %v10752_v48  ;;  %v10762_v49 = vld [vmem:[#allocation100_spill] sm:$0xff]  ;;  %v10763_v48 = vld [vmem:[#allocation101_spill] sm:$0xff] }
 0x3d4   :  { %4028 = vmatpush1.bf16.msra.mxu0 %v10753_v38  ;;  %4069 = vmatpush1.bf16.msra.mxu1 %v10754_v37  ;;  %v10764_v38 = vld [vmem:[#allocation102_spill] sm:$0xff]  ;;  %v10765_v37 = vld [vmem:[#allocation103_spill] sm:$0xff] }
 0x3d5   :  { %4029 = vmatprep.subr.bf16.mxu0 %v10755_v29  ;;  %4070 = vmatprep.subr.bf16.mxu1 %v10756_v31  ;;  %v10766_v29 = vld [vmem:[#allocation104_spill] sm:$0xff]  ;;  %v10767_v31 = vld [vmem:[#allocation105_spill] sm:$0xff] }
 0x3d8   :  { %4030 = vmatpush1.bf16.msra.mxu0 %v10757_v19  ;;  %4071 = vmatpush1.bf16.msra.mxu1 %v10758_v5  ;;  %v10768_v19 = vld [vmem:[#allocation106_spill] sm:$0xff]  ;;  %v10769_v5 = vld [vmem:[#allocation107_spill] sm:$0xff] }
 0x3d9   :  { %4031 = vmatprep.subr.bf16.mxu0 %v10759_v55  ;;  %4072 = vmatprep.subr.bf16.mxu1 %v10760_v44  ;;  %v10770_v55 = vld [vmem:[#allocation108_spill] sm:$0xff]  ;;  %v10771_v44 = vld [vmem:[#allocation109_spill] sm:$0xff] }
 0x3dc   :  { %4032 = vmatpush1.bf16.msra.mxu0 %v10761_v61  ;;  %4073 = vmatpush1.bf16.msra.mxu1 %v10762_v49  ;;  %v10772_v61 = vld [vmem:[#allocation110_spill] sm:$0xff]  ;;  %v10773_v49 = vld [vmem:[#allocation111_spill] sm:$0xff] }
 0x3dd   :  { %4033 = vmatprep.subr.bf16.mxu0 %v10763_v48  ;;  %4074 = vmatprep.subr.bf16.mxu1 %v10764_v38  ;;  %v10774_v48 = vld [vmem:[#allocation112_spill] sm:$0xff]  ;;  %v10775_v38 = vld [vmem:[#allocation113_spill] sm:$0xff] }
 0x3e0   :  { %4034 = vmatpush1.bf16.msra.mxu0 %v10765_v37  ;;  %4075 = vmatpush1.bf16.msra.mxu1 %v10766_v29  ;;  %v10776_v37 = vld [vmem:[#allocation114_spill] sm:$0xff]  ;;  %v10777_v29 = vld [vmem:[#allocation115_spill] sm:$0xff] }
 0x3e1   :  { %4035 = vmatprep.subr.bf16.mxu0 %v10767_v31  ;;  %4076 = vmatprep.subr.bf16.mxu1 %v10768_v19  ;;  %v10778_v31 = vld [vmem:[#allocation116_spill] sm:$0xff]  ;;  %v10779_v19 = vld [vmem:[#allocation117_spill] sm:$0xff] }
 0x3e4   :  { %4036 = vmatpush1.bf16.msra.mxu0 %v10769_v5  ;;  %4077 = vmatpush1.bf16.msra.mxu1 %v10770_v55  ;;  %v10780_v5 = vld [vmem:[#allocation118_spill] sm:$0xff]  ;;  %v10781_v55 = vld [vmem:[#allocation119_spill] sm:$0xff] }
 0x3e5   :  { %4037 = vmatprep.subr.bf16.mxu0 %v10771_v44  ;;  %4078 = vmatprep.subr.bf16.mxu1 %v10772_v61  ;;  %v10782_v44 = vld [vmem:[#allocation120_spill] sm:$0xff]  ;;  %v10783_v61 = vld [vmem:[#allocation121_spill] sm:$0xff] }
 0x3e8   :  { %4038 = vmatpush1.bf16.msra.mxu0 %v10773_v49  ;;  %4079 = vmatpush1.bf16.msra.mxu1 %v10774_v48  ;;  %v10784_v49 = vld [vmem:[#allocation122_spill] sm:$0xff]  ;;  %v10785_v48 = vld [vmem:[#allocation123_spill] sm:$0xff] }
 0x3e9   :  { %4039 = vmatprep.subr.bf16.mxu0 %v10775_v38  ;;  %4080 = vmatprep.subr.bf16.mxu1 %v10776_v37  ;;  %v10786_v38 = vld [vmem:[#allocation124_spill] sm:$0xff]  ;;  %v10787_v37 = vld [vmem:[#allocation125_spill] sm:$0xff] }
 0x3ec   :  { %4040 = vmatpush1.bf16.msra.mxu0 %v10777_v29  ;;  %4081 = vmatpush1.bf16.msra.mxu1 %v10778_v31  ;;  %v10788_v29 = vld [vmem:[#allocation126_spill] sm:$0xff]  ;;  %v10789_v31 = vld [vmem:[#allocation127_spill] sm:$0xff] }
 0x3ed   :  { %4041 = vmatprep.subr.bf16.mxu0 %v10779_v19  ;;  %4082 = vmatprep.subr.bf16.mxu1 %v10780_v5  ;;  %v10790_v19 = vld [vmem:[#allocation128_spill] sm:$0xff]  ;;  %v10791_v5 = vld [vmem:[#allocation129_spill] sm:$0xff] }
 0x3f0   :  { %4042 = vmatpush1.bf16.msra.mxu0 %v10781_v55  ;;  %4083 = vmatpush1.bf16.msra.mxu1 %v10782_v44  ;;  %v10792_v55 = vld [vmem:[#allocation130_spill] sm:$0xff]  ;;  %v10793_v44 = vld [vmem:[#allocation131_spill] sm:$0xff] }
 0x3f1   :  { %4043 = vmatprep.subr.bf16.mxu0 %v10783_v61  ;;  %4084 = vmatprep.subr.bf16.mxu1 %v10784_v49  ;;  %v10794_v61 = vld [vmem:[#allocation132_spill] sm:$0xff]  ;;  %v10795_v49 = vld [vmem:[#allocation133_spill] sm:$0xff] }
 0x3f4   :  { %4044 = vmatpush1.bf16.msra.mxu0 %v10785_v48  ;;  %4085 = vmatpush1.bf16.msra.mxu1 %v10786_v38  ;;  %v10796_v48 = vld [vmem:[#allocation134_spill] sm:$0xff]  ;;  %v10797_v38 = vld [vmem:[#allocation135_spill] sm:$0xff] }
 0x3f5   :  { %4045 = vmatprep.subr.bf16.mxu0 %v10787_v37  ;;  %4086 = vmatprep.subr.bf16.mxu1 %v10788_v29  ;;  %v10798_v37 = vld [vmem:[#allocation136_spill] sm:$0xff]  ;;  %v10799_v29 = vld [vmem:[#allocation137_spill] sm:$0xff] }
 0x3f8   :  { %4046 = vmatpush1.bf16.msra.mxu0 %v10789_v31  ;;  %4087 = vmatpush1.bf16.msra.mxu1 %v10790_v19  ;;  %v10800_v31 = vld [vmem:[#allocation138_spill] sm:$0xff]  ;;  %v10801_v19 = vld [vmem:[#allocation139_spill] sm:$0xff] }
 0x3f9   :  { %4047 = vmatprep.subr.bf16.mxu0 %v10791_v5  ;;  %4088 = vmatprep.subr.bf16.mxu1 %v10792_v55  ;;  %v10802_v5 = vld [vmem:[#allocation140_spill] sm:$0xff]  ;;  %v10803_v55 = vld [vmem:[#allocation141_spill] sm:$0xff] }
 0x3fc   :  { %4048 = vmatpush1.bf16.msra.mxu0 %v10793_v44  ;;  %4089 = vmatpush1.bf16.msra.mxu1 %v10794_v61  ;;  %v10804_v44 = vld [vmem:[#allocation142_spill] sm:$0xff] }
 0x3fd   :  { %4049 = vmatprep.subr.bf16.mxu0 %v10795_v49  ;;  %4090 = vmatprep.subr.bf16.mxu1 %v10796_v48 }
 0x400   :  { %4050 = vmatpush1.bf16.msra.mxu0 %v10797_v38  ;;  %4091 = vmatpush1.bf16.msra.mxu1 %v10798_v37 }
 0x401   :  { %4051 = vmatprep.subr.bf16.mxu0 %v10799_v29  ;;  %4092 = vmatprep.subr.bf16.mxu1 %v10800_v31 }
 0x404   :  { %4052 = vmatpush1.bf16.msra.mxu0 %v10801_v19  ;;  %4093 = vmatpush1.bf16.msra.mxu1 %v10802_v5  ;;  %v10805_v5 = vld [vmem:[#allocation209_spill] sm:$0xff] }
 0x405   :  { %4103 = vmatprep.subr.bf16.mxu0 %v10803_v55  ;;  %4144 = vmatprep.subr.bf16.mxu1 %v10804_v44  ;;  %v1340_v44 = vpop.permute.xlu1 %1339 }
 0x406   :  { %v1424_v30 = vmul.f32 %v10805_v5, %v1340_v44  ;;  %v1425_v43 = vmul.f32 %v10806_v41, %v1340_v44  ;;  %v10815_v5 = vld [vmem:[#allocation215_spill] sm:$0xff] }
 0x408   :  { %v1488_v55 = vadd.f32 %v1424_v30, %v10813_v60  ;;  %v1489_v22 = vadd.f32 %v1425_v43, %v10814_v58  ;;  %v10819_v58 = vld [vmem:[#allocation230_spill] sm:$0xff]  ;;  %v10823_v60 = vld [vmem:[#allocation235_spill] sm:$0xff] }
 0x45a   :  { %v3809_v61 = vpop.f32.mrb[16].mxu0  ;;  %v3850_v49 = vpop.f32.mrb[16].mxu1 }
 0x45b   :  { %v3811_v20 = vpop.f32.mrb[17].mxu0  ;;  %v3852_v48 = vpop.f32.mrb[17].mxu1 }
 0x45c   :  { %v3947_v23 = vcombine.low %v3809_v61, %v3811_v20  ;;  %v3948_v38 = vcombine.low %v3850_v49, %v3852_v48  ;;  %v3813_v2 = vpop.f32.mrb[18].mxu0  ;;  %v3854_v37 = vpop.f32.mrb[18].mxu1  ;;  %v10807_v20 = vld [vmem:[#allocation211_spill] sm:$0xff] }
 0x45d   :  { %v3814_v28 = vpop.f32.mrb[19].mxu0  ;;  %v3855_v29 = vpop.f32.mrb[19].mxu1  ;;  %v1426_v61 = vmul.f32 %v10807_v20, %v1340_v44  ;;  %v10808_v2 = vld [vmem:[#allocation212_spill] sm:$0xff]  ;;  %v10809_v37 = vld [vmem:[#allocation217_spill] sm:$0xff] }
 0x45e   :  { %v8811_v31 = vrot.slane %v3947_v23, %v8189_v4  ;;  %v8814_v19 = vrot.slane %v3948_v38, %v8189_v4  ;;  %v1427_v48 = vmul.f32 %v10808_v2, %v1340_v44  ;;  %v1548_v28 = vpop.permute.xlu1 %1547  ;;  %v10810_v23 = vld [vmem:[#allocation218_spill] sm:$0xff]  ;;  %v1751_v20 = vpop.permute.xlu0 %1750 }
 0x45f   :  { %v1627_v29 = vmul.f32 %v10809_v37, %v1548_v28  ;;  %v1628_v49 = vmul.f32 %v10810_v23, %v1548_v28  ;;  %v1629_v38 = vmul.f32 %v10811_v36, %v1548_v28  ;;  %v1630_v14 = vmul.f32 %v10812_v9, %v1548_v28 }
 0x460   :  { %v1490_v12 = vadd.f32 %v1426_v61, %v10815_v5  ;;  %v1491_v41 = vadd.f32 %v1427_v48, %v10672_v56  ;;  %v1830_v23 = vmul.f32 %v10673_v27, %v1751_v20  ;;  %v1831_v36 = vmul.f32 %v10816_v40, %v1751_v20  ;;  %v10820_v56 = vld [vmem:[#allocation232_spill] sm:$0xff]  ;;  %v10821_v27 = vld [vmem:[#allocation233_spill] sm:$0xff]  ;;  %v10822_v5 = vld [vmem:[#allocation234_spill] sm:$0xff] }
 0x461   :  { %v1691_v35 = vadd.f32 %v1627_v29, %v1488_v55  ;;  %v1692_v2 = vadd.f32 %v1628_v49, %v1489_v22  ;;  %v1832_v9 = vmul.f32 %v10817_v25, %v1751_v20  ;;  %v1833_v30 = vmul.f32 %v10818_v62, %v1751_v20 }
 0x462   :  { %v1693_v42 = vadd.f32 %v1629_v38, %v1490_v12  ;;  %v1694_v0 = vadd.f32 %v1630_v14, %v1491_v41  ;;  %v1954_v37 = vpop.permute.xlu1 %1953  ;;  %v1428_v25 = vmul.f32 %v10821_v27, %v1340_v44  ;;  %v1429_v62 = vmul.f32 %v10822_v5, %v1340_v44 }
 0x463   :  { %v2033_v43 = vmul.f32 %v10677_v45, %v1954_v37  ;;  %v2034_v61 = vmul.f32 %v10819_v58, %v1954_v37  ;;  %v2035_v48 = vmul.f32 %v10679_v50, %v1954_v37  ;;  %v2036_v55 = vmul.f32 %v10820_v56, %v1954_v37 }
 0x464   :  { %v1894_v22 = vadd.f32 %v1830_v23, %v1691_v35  ;;  %v1895_v12 = vadd.f32 %v1831_v36, %v1692_v2  ;;  %v1896_v14 = vadd.f32 %v1832_v9, %v1693_v42  ;;  %v1897_v41 = vadd.f32 %v1833_v30, %v1694_v0 }
 0x465   :  { %v1430_v45 = vmul.f32 %v10823_v60, %v1340_v44  ;;  %v1431_v58 = vmul.f32 %v8354_v8, %v1340_v44  ;;  %v1631_v56 = vmul.f32 %v10682_v32, %v1548_v28  ;;  %v1632_v35 = vmul.f32 %v8368_v53, %v1548_v28 }
 0x466   :  { %v2097_v29 = vadd.f32 %v2033_v43, %v1894_v22  ;;  %v2098_v49 = vadd.f32 %v2034_v61, %v1895_v12  ;;  %v2099_v38 = vadd.f32 %v2035_v48, %v1896_v14  ;;  %v2100_v40 = vadd.f32 %v2036_v55, %v1897_v41  ;;  %v1271_v43 = vld [vmem:[%s9934_s0 + $0x6] sm:$0x3]  ;;  %v10826_v14 = vld [vmem:[#allocation244_spill] sm:$0xff] }
 0x467   :  { %v1633_v0 = vmul.f32 %v10683_v15, %v1548_v28  ;;  %v1492_v42 = vadd.f32 %v1428_v25, %v8386_v10  ;;  %v1634_v9 = vmul.f32 %v10684_v17, %v1548_v28  ;;  %v1493_v36 = vadd.f32 %v1429_v62, %v8390_v52  ;;  %1344 = vperm.xlu1 %6126, %v1271_v43   ;;  %v10824_v28 = vld [vmem:[#allocation240_spill] sm:$0xff]  ;;  %v10825_v55 = vld [vmem:[#allocation241_spill] sm:$0xff] }
 0x468   :  { %v2277_v54 = vcombine.low %v2097_v29, %v2098_v49  ;;  %v2278_v50 = vcombine.low %v2099_v38, %v2100_v40  ;;  %v1494_v2 = vadd.f32 %v1430_v45, %v8394_v24  ;;  %v1495_v23 = vadd.f32 %v1431_v58, %v10685_v63  ;;  %1551 = vperm.xlu0 %6127, %v1271_v43  }
 0x469   :  { %v1695_v30 = vadd.f32 %v1631_v56, %v1492_v42  ;;  %v1696_v61 = vadd.f32 %v1632_v35, %v1493_v36  ;;  %v1834_v62 = vmul.f32 %v8414_v6, %v1751_v20  ;;  %v1835_v45 = vmul.f32 %v10824_v28, %v1751_v20 }
 0x46a   :  { %v2285_v44 = vrot.slane %v2277_v54, %v8189_v4  ;;  %v2292_v40 = vrot.slane %v2278_v50, %v8189_v4  ;;  %v1697_v48 = vadd.f32 %v1633_v0, %v1494_v2  ;;  %v1698_v25 = vadd.f32 %v1634_v9, %v1495_v23 }
 0x46b   :  { %v1836_v58 = vmul.f32 %v10825_v55, %v1751_v20  ;;  %v1837_v54 = vmul.f32 %v8426_v57, %v1751_v20  ;;  %v2037_v56 = vmul.f32 %v8440_v26, %v1954_v37  ;;  %v2038_v50 = vmul.f32 %v10687_v51, %v1954_v37 }
 0x46c   :  { %v2293_v22 = vcombine.low %v2285_v44, %v2292_v40  ;;  %v2039_v12 = vmul.f32 %v10688_v11, %v1954_v37  ;;  %v2040_v41 = vmul.f32 %v10826_v14, %v1954_v37  ;;  %v10827_v29 = vmov 2   ;;  %6130 = vset.pattern.permute.xlu0 %v10692_v13 }
 0x46d   :  { %6128 = vset.pattern.permute.xlu1 %v10827_v29  ;;  %v1898_v49 = vadd.f32 %v1834_v62, %v1695_v30  ;;  %v1899_v38 = vadd.f32 %v1835_v45, %v1696_v61  ;;  %v1900_v35 = vadd.f32 %v1836_v58, %v1697_v48  ;;  %v1901_v0 = vadd.f32 %v1837_v54, %v1698_v25 }
 0x46e   :  { %1754 = vperm.xlu1 %6128, %v1271_v43   ;;  %v10828_v20 = vcombine.low %v8811_v31, %v8814_v19  ;;  %v10829_v30 = vmov 1  }
 0x46f   :  { %v2101_v9 = vadd.f32 %v2037_v56, %v1898_v49  ;;  %v2102_v36 = vadd.f32 %v2038_v50, %v1899_v38  ;;  %v2103_v2 = vadd.f32 %v2039_v12, %v1900_v35  ;;  %v2104_v23 = vadd.f32 %v2040_v41, %v1901_v0 }
 0x470   :  { %v3983_v42 = vadd.f32 %v10828_v20, %v2293_v22 }
 0x471   :  { %v2294_v44 = vcombine.low %v2101_v9, %v2102_v36  ;;  %v2295_v40 = vcombine.low %v2103_v2, %v2104_v23 }
 0x472   :  { %6129 = vset.pattern.permute.xlu1 %v10691_v7  ;;  %v3985_v37 = vmul.f32 0.5, %v3983_v42 }
 0x473   :  { %1957 = vperm.xlu1 %6129, %v1271_v43   ;;  %v2302_v31 = vrot.slane %v2294_v44, %v8189_v4  ;;  %v2309_v19 = vrot.slane %v2295_v40, %v8189_v4 }
 0x474   :  { %6162 = vtanh.f32 %v3985_v37 }
 0x475   :  { %v2310_v41 = vcombine.low %v2302_v31, %v2309_v19 }
 0x477   :  { %6131 = vset.pattern.permute.xlu1 %v10829_v30  ;;  %v10857_v30 = vld [vmem:[#allocation180_spill] sm:$0xff] }
 0x47e   :  { %v6163_v35 = vpop.eup %6162 }
 0x47f   :  { %v3989_v20 = vadd.f32 1.0, %v6163_v35  ;;  %v10840_v35 = vld [vmem:[#allocation163_spill] sm:$0xff] }
 0x481   :  { %v3991_v42 = vmul.f32 0.5, %v3989_v20  ;;  %v10842_v20 = vld [vmem:[#allocation165_spill] sm:$0xff] }
 0x483   :  { %v3998_v36 = vrot.slane %v3991_v42, 4 }
 0x485   :  { %v4000_v23 = vmul.f32 %v3998_v36, %v8672_v16  ;;  %v10830_v16 = vld [vmem:[#allocation153_spill] sm:$0xff]  ;;  %v10845_v36 = vld [vmem:[#allocation168_spill] sm:$0xff] }
 0x49a   :  { %v3891_v61 = vpop.f32.mrb[20].mxu0  ;;  %v3932_v48 = vpop.f32.mrb[20].mxu1 }
 0x49b   :  { %v3893_v25 = vpop.f32.mrb[21].mxu0  ;;  %v3934_v62 = vpop.f32.mrb[21].mxu1 }
 0x49c   :  { %v3964_v45 = vcombine.low %v3891_v61, %v3893_v25  ;;  %v3965_v58 = vcombine.low %v3932_v48, %v3934_v62  ;;  %v3895_v54 = vpop.f32.mrb[22].mxu0  ;;  %v3936_v22 = vpop.f32.mrb[22].mxu1 }
 0x49d   :  { %v3896_v56 = vpop.f32.mrb[23].mxu0  ;;  %v3937_v50 = vpop.f32.mrb[23].mxu1  ;;  %v10831_v54 = vld [vmem:[#allocation154_spill] sm:$0xff]  ;;  %v10832_v22 = vld [vmem:[#allocation155_spill] sm:$0xff] }
 0x49e   :  { %v3972_v43 = vrot.slane %v3964_v45, %v8189_v4  ;;  %v3979_v12 = vrot.slane %v3965_v58, %v8189_v4  ;;  %v10833_v56 = vld [vmem:[#allocation156_spill] sm:$0xff]  ;;  %v10834_v50 = vld [vmem:[#allocation157_spill] sm:$0xff] }
 0x4a0   :  { %v3980_v49 = vcombine.low %v3972_v43, %v3979_v12  ;;  %v10835_v43 = vld [vmem:[#allocation158_spill] sm:$0xff]  ;;  %v10836_v12 = vld [vmem:[#allocation159_spill] sm:$0xff] }
 0x4a2   :  { %v3984_v38 = vadd.f32 %v3980_v49, %v2310_v41  ;;  %v10837_v41 = vld [vmem:[#allocation160_spill] sm:$0xff]  ;;  %v10838_v49 = vld [vmem:[#allocation161_spill] sm:$0xff] }
 0x4a4   :  { %v3994_v0 = vrot.slane %v3984_v38, 4  ;;  %v3986_v9 = vmul.f32 0.5, %v3984_v38  ;;  %v10839_v38 = vld [vmem:[#allocation162_spill] sm:$0xff] }
 0x4a6   :  { %6164 = vtanh.f32 %v3994_v0  ;;  %v10841_v0 = vld [vmem:[#allocation164_spill] sm:$0xff] }
 0x4a7   :  { %6166 = vtanh.f32 %v3986_v9  ;;  %v10844_v9 = vld [vmem:[#allocation167_spill] sm:$0xff] }
 0x4b0   :  { %v6165_v2 = vpop.eup %6164 }
 0x4b1   :  { %v4001_v37 = vmul.f32 %v6165_v2, %v3991_v42  ;;  %v6167_v40 = vpop.eup %6166  ;;  %v10843_v42 = vld [vmem:[#allocation166_spill] sm:$0xff]  ;;  %v10846_v2 = vld [vmem:[#allocation169_spill] sm:$0xff] }
 0x4b2   :  { %v3990_v61 = vadd.f32 1.0, %v6167_v40  ;;  %v10849_v40 = vld [vmem:[#allocation172_spill] sm:$0xff] }
 0x4b3   :  { %v8875_v44 = vadd.f32 %v4001_v37, %v4000_v23  ;;  %v10847_v23 = vld [vmem:[#allocation170_spill] sm:$0xff]  ;;  %v10848_v37 = vld [vmem:[#allocation171_spill] sm:$0xff] }
 0x4b4   :  { %v3992_v48 = vmul.f32 0.5, %v3990_v61  ;;  %v10850_v61 = vld [vmem:[#allocation173_spill] sm:$0xff] }
 0x4b5   :  { %6168 = vtanh.f32 %v8875_v44 }
 0x4bf   :  { %v6169_v25 = vpop.eup %6168 }
 0x4c0   :  { %v4004_v62 = vmul.f32 %v6169_v25, %v3992_v48  ;;  %v10851_v48 = vld [vmem:[#allocation174_spill] sm:$0xff]  ;;  %v10852_v25 = vld [vmem:[#allocation175_spill] sm:$0xff] }
 0x4c2   :  { %v4015_v45 = vrot.slane %v4004_v62, %v8189_v4  ;;  %v10853_v62 = vld [vmem:[#allocation176_spill] sm:$0xff] }
 0x4c4   :  { %v4016_v31 = vcombine.high %v4015_v45, %v4015_v45  ;;  %v8879_v58 = vpack.c.bf16 %v4015_v45, %v4015_v45  ;;  %v10854_v45 = vld [vmem:[#allocation177_spill] sm:$0xff] }
 0x4c6   :  { %v4020_v19 = vpack.c.bf16 %v4016_v31, %v4016_v31  ;;  %v10855_v31 = vld [vmem:[#allocation178_spill] sm:$0xff] }
 0x4c8   :  { %4053 = vmatprep.mubr.bf16.mxu0 %v4020_v19  ;;  %4094 = vmatprep.mubr.bf16.mxu1 %v4020_v19 }
 0x4c9   :  { %4054 = vmatmul.mubr.bf16.vlgmr.msra.gmra.mrb[24].mxu0 %v8879_v58  ;;  %4095 = vmatmul.mubr.bf16.vlgmr.msra.gmra.mrb[24].mxu1 %v8879_v58 }
 0x4ca   :  { %4104 = vmatpush1.bf16.msra.mxu0 %v10556_v46  ;;  %4145 = vmatpush1.bf16.msra.mxu1 %v10557_v3 }
 0x4cb   :  { %4135 = vmatprep.mubr.bf16.mxu0 %v4020_v19  ;;  %4176 = vmatprep.mubr.bf16.mxu1 %v4020_v19  ;;  %v10856_v19 = vld [vmem:[#allocation179_spill] sm:$0xff] }
 0x4cc   :  { %4105 = vmatprep.subr.bf16.mxu0 %v10558_v18  ;;  %4146 = vmatprep.subr.bf16.mxu1 %v10559_v39 }
 0x4ce   :  { %4106 = vmatpush1.bf16.msra.mxu0 %v10560_v47  ;;  %4147 = vmatpush1.bf16.msra.mxu1 %v10561_v33 }
 0x4cf   :  { %4107 = vmatprep.subr.bf16.mxu0 %v10562_v34  ;;  %4148 = vmatprep.subr.bf16.mxu1 %v10563_v1 }
 0x4d2   :  { %4108 = vmatpush1.bf16.msra.mxu0 %v10564_v21  ;;  %4149 = vmatpush1.bf16.msra.mxu1 %v10565_v59 }
 0x4d3   :  { %4109 = vmatprep.subr.bf16.mxu0 %v10830_v16  ;;  %4150 = vmatprep.subr.bf16.mxu1 %v10831_v54 }
 0x4d6   :  { %4110 = vmatpush1.bf16.msra.mxu0 %v10832_v22  ;;  %4151 = vmatpush1.bf16.msra.mxu1 %v10833_v56  ;;  %v10959_v56 = vld [vmem:[#allocation216_spill] sm:$0xff] }
 0x4d7   :  { %4111 = vmatprep.subr.bf16.mxu0 %v10834_v50  ;;  %4152 = vmatprep.subr.bf16.mxu1 %v10835_v43  ;;  %v10957_v43 = vld [vmem:[#allocation214_spill] sm:$0xff]  ;;  %v10958_v50 = vld [vmem:[#allocation215_spill] sm:$0xff] }
 0x4da   :  { %4112 = vmatpush1.bf16.msra.mxu0 %v10836_v12  ;;  %4153 = vmatpush1.bf16.msra.mxu1 %v10837_v41 }
 0x4db   :  { %4113 = vmatprep.subr.bf16.mxu0 %v10838_v49  ;;  %4154 = vmatprep.subr.bf16.mxu1 %v10839_v38  ;;  %v10955_v49 = vld [vmem:[#allocation220_spill] sm:$0xff] }
 0x4de   :  { %4114 = vmatpush1.bf16.msra.mxu0 %v10840_v35  ;;  %4155 = vmatpush1.bf16.msra.mxu1 %v10841_v0 }
 0x4df   :  { %4115 = vmatprep.subr.bf16.mxu0 %v10842_v20  ;;  %4156 = vmatprep.subr.bf16.mxu1 %v10843_v42  ;;  %v10949_v20 = vld [vmem:[#allocation210_spill] sm:$0xff] }
 0x4e2   :  { %4116 = vmatpush1.bf16.msra.mxu0 %v10844_v9  ;;  %4157 = vmatpush1.bf16.msra.mxu1 %v10845_v36 }
 0x4e3   :  { %4117 = vmatprep.subr.bf16.mxu0 %v10846_v2  ;;  %4158 = vmatprep.subr.bf16.mxu1 %v10847_v23  ;;  %v10858_v23 = vld [vmem:[#allocation181_spill] sm:$0xff] }
 0x4e6   :  { %4118 = vmatpush1.bf16.msra.mxu0 %v10848_v37  ;;  %4159 = vmatpush1.bf16.msra.mxu1 %v10849_v40  ;;  %v10859_v37 = vld [vmem:[#allocation182_spill] sm:$0xff]  ;;  %v10860_v40 = vld [vmem:[#allocation183_spill] sm:$0xff] }
 0x4e7   :  { %4119 = vmatprep.subr.bf16.mxu0 %v10850_v61  ;;  %4160 = vmatprep.subr.bf16.mxu1 %v10851_v48  ;;  %v10861_v61 = vld [vmem:[#allocation184_spill] sm:$0xff]  ;;  %v10862_v48 = vld [vmem:[#allocation185_spill] sm:$0xff] }
 0x4ea   :  { %4120 = vmatpush1.bf16.msra.mxu0 %v10852_v25  ;;  %4161 = vmatpush1.bf16.msra.mxu1 %v10853_v62  ;;  %v10863_v25 = vld [vmem:[#allocation186_spill] sm:$0xff]  ;;  %v10864_v62 = vld [vmem:[#allocation187_spill] sm:$0xff] }
 0x4eb   :  { %4121 = vmatprep.subr.bf16.mxu0 %v10854_v45  ;;  %4162 = vmatprep.subr.bf16.mxu1 %v10855_v31  ;;  %v10865_v45 = vld [vmem:[#allocation188_spill] sm:$0xff]  ;;  %v10866_v31 = vld [vmem:[#allocation189_spill] sm:$0xff] }
 0x4ee   :  { %4122 = vmatpush1.bf16.msra.mxu0 %v10856_v19  ;;  %4163 = vmatpush1.bf16.msra.mxu1 %v10857_v30  ;;  %v10867_v19 = vld [vmem:[#allocation190_spill] sm:$0xff]  ;;  %v10868_v30 = vld [vmem:[#allocation191_spill] sm:$0xff] }
 0x4ef   :  { %4123 = vmatprep.subr.bf16.mxu0 %v10858_v23  ;;  %4164 = vmatprep.subr.bf16.mxu1 %v10859_v37  ;;  %v10869_v23 = vld [vmem:[#allocation192_spill] sm:$0xff]  ;;  %v10870_v37 = vld [vmem:[#allocation193_spill] sm:$0xff] }
 0x4f2   :  { %4124 = vmatpush1.bf16.msra.mxu0 %v10860_v40  ;;  %4165 = vmatpush1.bf16.msra.mxu1 %v10861_v61  ;;  %v10871_v40 = vld [vmem:[#allocation194_spill] sm:$0xff]  ;;  %v10872_v61 = vld [vmem:[#allocation195_spill] sm:$0xff] }
 0x4f3   :  { %4125 = vmatprep.subr.bf16.mxu0 %v10862_v48  ;;  %4166 = vmatprep.subr.bf16.mxu1 %v10863_v25  ;;  %v10873_v48 = vld [vmem:[#allocation196_spill] sm:$0xff]  ;;  %v10874_v25 = vld [vmem:[#allocation197_spill] sm:$0xff] }
 0x4f6   :  { %4126 = vmatpush1.bf16.msra.mxu0 %v10864_v62  ;;  %4167 = vmatpush1.bf16.msra.mxu1 %v10865_v45  ;;  %v10875_v62 = vld [vmem:[#allocation198_spill] sm:$0xff]  ;;  %v10876_v45 = vld [vmem:[#allocation199_spill] sm:$0xff] }
 0x4f7   :  { %4127 = vmatprep.subr.bf16.mxu0 %v10866_v31  ;;  %4168 = vmatprep.subr.bf16.mxu1 %v10867_v19  ;;  %v10877_v31 = vld [vmem:[#allocation200_spill] sm:$0xff]  ;;  %v10878_v19 = vld [vmem:[#allocation201_spill] sm:$0xff] }
 0x4fa   :  { %4128 = vmatpush1.bf16.msra.mxu0 %v10868_v30  ;;  %4169 = vmatpush1.bf16.msra.mxu1 %v10869_v23  ;;  %v10879_v30 = vld [vmem:[#allocation202_spill] sm:$0xff]  ;;  %v10880_v23 = vld [vmem:[#allocation203_spill] sm:$0xff] }
 0x4fb   :  { %4129 = vmatprep.subr.bf16.mxu0 %v10870_v37  ;;  %4170 = vmatprep.subr.bf16.mxu1 %v10871_v40  ;;  %v10881_v37 = vld [vmem:[#allocation204_spill] sm:$0xff]  ;;  %v10882_v40 = vld [vmem:[#allocation77_spill] sm:$0xff] }
 0x4fe   :  { %4130 = vmatpush1.bf16.msra.mxu0 %v10872_v61  ;;  %4171 = vmatpush1.bf16.msra.mxu1 %v10873_v48  ;;  %v10883_v61 = vld [vmem:[#allocation79_spill] sm:$0xff] }
 0x4ff   :  { %4131 = vmatprep.subr.bf16.mxu0 %v10874_v25  ;;  %4172 = vmatprep.subr.bf16.mxu1 %v10875_v62  ;;  %v10884_v62 = vld [vmem:[#allocation78_spill] sm:$0xff]  ;;  %v10893_v25 = vld [vmem:[#allocation88_spill] sm:$0xff] }
 0x502   :  { %4132 = vmatpush1.bf16.msra.mxu0 %v10876_v45  ;;  %4173 = vmatpush1.bf16.msra.mxu1 %v10877_v31  ;;  %v10885_v45 = vld [vmem:[#allocation80_spill] sm:$0xff]  ;;  %v10886_v31 = vld [vmem:[#allocation81_spill] sm:$0xff] }
 0x503   :  { %4133 = vmatprep.subr.bf16.mxu0 %v10878_v19  ;;  %4174 = vmatprep.subr.bf16.mxu1 %v10879_v30  ;;  %v10887_v19 = vld [vmem:[#allocation82_spill] sm:$0xff]  ;;  %v10888_v30 = vld [vmem:[#allocation83_spill] sm:$0xff] }
 0x506   :  { %4134 = vmatpush1.bf16.msra.mxu0 %v10880_v23  ;;  %4175 = vmatpush1.bf16.msra.mxu1 %v10881_v37  ;;  %v10889_v23 = vld [vmem:[#allocation84_spill] sm:$0xff]  ;;  %v10890_v37 = vld [vmem:[#allocation85_spill] sm:$0xff] }
 0x507   :  { %4267 = vmatprep.subr.bf16.mxu0 %v10882_v40  ;;  %4308 = vmatprep.subr.bf16.mxu1 %v10883_v61  ;;  %v10891_v40 = vld [vmem:[#allocation86_spill] sm:$0xff]  ;;  %v10892_v61 = vld [vmem:[#allocation87_spill] sm:$0xff] }
 0x509   :  { %4136 = vmatmul.mubr.bf16.vlgmr.msra.gmra.mrb[28].mxu0 %v8879_v58  ;;  %4177 = vmatmul.mubr.bf16.vlgmr.msra.gmra.mrb[28].mxu1 %v8879_v58  ;;  %v10894_v58 = vld [vmem:[#allocation89_spill] sm:$0xff] }
 0x50a   :  { %4268 = vmatpush1.bf16.msra.mxu0 %v10884_v62  ;;  %4309 = vmatpush1.bf16.msra.mxu1 %v10885_v45  ;;  %v10895_v62 = vld [vmem:[#allocation90_spill] sm:$0xff]  ;;  %v10896_v45 = vld [vmem:[#allocation91_spill] sm:$0xff] }
 0x50b   :  { %4269 = vmatprep.subr.bf16.mxu0 %v10886_v31  ;;  %4310 = vmatprep.subr.bf16.mxu1 %v10887_v19  ;;  %v10897_v31 = vld [vmem:[#allocation92_spill] sm:$0xff]  ;;  %v10898_v19 = vld [vmem:[#allocation93_spill] sm:$0xff] }
 0x50e   :  { %4270 = vmatpush1.bf16.msra.mxu0 %v10888_v30  ;;  %4311 = vmatpush1.bf16.msra.mxu1 %v10889_v23  ;;  %v10899_v30 = vld [vmem:[#allocation94_spill] sm:$0xff]  ;;  %v10900_v23 = vld [vmem:[#allocation95_spill] sm:$0xff] }
 0x50f   :  { %4271 = vmatprep.subr.bf16.mxu0 %v10890_v37  ;;  %4312 = vmatprep.subr.bf16.mxu1 %v10891_v40  ;;  %v10901_v37 = vld [vmem:[#allocation96_spill] sm:$0xff]  ;;  %v10902_v40 = vld [vmem:[#allocation97_spill] sm:$0xff] }
 0x512   :  { %4272 = vmatpush1.bf16.msra.mxu0 %v10892_v61  ;;  %4313 = vmatpush1.bf16.msra.mxu1 %v10893_v25  ;;  %v10903_v61 = vld [vmem:[#allocation98_spill] sm:$0xff]  ;;  %v10904_v25 = vld [vmem:[#allocation99_spill] sm:$0xff] }
 0x513   :  { %4273 = vmatprep.subr.bf16.mxu0 %v10894_v58  ;;  %4314 = vmatprep.subr.bf16.mxu1 %v10895_v62  ;;  %v10905_v58 = vld [vmem:[#allocation100_spill] sm:$0xff]  ;;  %v10906_v62 = vld [vmem:[#allocation101_spill] sm:$0xff] }
 0x516   :  { %4274 = vmatpush1.bf16.msra.mxu0 %v10896_v45  ;;  %4315 = vmatpush1.bf16.msra.mxu1 %v10897_v31  ;;  %v10907_v45 = vld [vmem:[#allocation102_spill] sm:$0xff]  ;;  %v10908_v31 = vld [vmem:[#allocation103_spill] sm:$0xff] }
 0x517   :  { %4275 = vmatprep.subr.bf16.mxu0 %v10898_v19  ;;  %4316 = vmatprep.subr.bf16.mxu1 %v10899_v30  ;;  %v10909_v19 = vld [vmem:[#allocation104_spill] sm:$0xff]  ;;  %v10910_v30 = vld [vmem:[#allocation105_spill] sm:$0xff] }
 0x51a   :  { %4276 = vmatpush1.bf16.msra.mxu0 %v10900_v23  ;;  %4317 = vmatpush1.bf16.msra.mxu1 %v10901_v37  ;;  %v10911_v23 = vld [vmem:[#allocation106_spill] sm:$0xff]  ;;  %v10912_v37 = vld [vmem:[#allocation107_spill] sm:$0xff] }
 0x51b   :  { %4277 = vmatprep.subr.bf16.mxu0 %v10902_v40  ;;  %4318 = vmatprep.subr.bf16.mxu1 %v10903_v61  ;;  %v10913_v40 = vld [vmem:[#allocation108_spill] sm:$0xff]  ;;  %v10914_v61 = vld [vmem:[#allocation109_spill] sm:$0xff] }
 0x51e   :  { %4278 = vmatpush1.bf16.msra.mxu0 %v10904_v25  ;;  %4319 = vmatpush1.bf16.msra.mxu1 %v10905_v58  ;;  %v10915_v25 = vld [vmem:[#allocation110_spill] sm:$0xff]  ;;  %v10916_v58 = vld [vmem:[#allocation111_spill] sm:$0xff] }
 0x51f   :  { %4279 = vmatprep.subr.bf16.mxu0 %v10906_v62  ;;  %4320 = vmatprep.subr.bf16.mxu1 %v10907_v45  ;;  %v10917_v62 = vld [vmem:[#allocation112_spill] sm:$0xff]  ;;  %v10918_v45 = vld [vmem:[#allocation113_spill] sm:$0xff] }
 0x522   :  { %4280 = vmatpush1.bf16.msra.mxu0 %v10908_v31  ;;  %4321 = vmatpush1.bf16.msra.mxu1 %v10909_v19  ;;  %v10919_v31 = vld [vmem:[#allocation114_spill] sm:$0xff]  ;;  %v10920_v19 = vld [vmem:[#allocation115_spill] sm:$0xff] }
 0x523   :  { %4281 = vmatprep.subr.bf16.mxu0 %v10910_v30  ;;  %4322 = vmatprep.subr.bf16.mxu1 %v10911_v23  ;;  %v10921_v30 = vld [vmem:[#allocation116_spill] sm:$0xff]  ;;  %v10922_v23 = vld [vmem:[#allocation117_spill] sm:$0xff] }
 0x526   :  { %4282 = vmatpush1.bf16.msra.mxu0 %v10912_v37  ;;  %4323 = vmatpush1.bf16.msra.mxu1 %v10913_v40  ;;  %v10923_v37 = vld [vmem:[#allocation118_spill] sm:$0xff]  ;;  %v10924_v40 = vld [vmem:[#allocation119_spill] sm:$0xff] }
 0x527   :  { %4283 = vmatprep.subr.bf16.mxu0 %v10914_v61  ;;  %4324 = vmatprep.subr.bf16.mxu1 %v10915_v25  ;;  %v10925_v61 = vld [vmem:[#allocation120_spill] sm:$0xff]  ;;  %v10926_v25 = vld [vmem:[#allocation121_spill] sm:$0xff] }
 0x52a   :  { %4284 = vmatpush1.bf16.msra.mxu0 %v10916_v58  ;;  %4325 = vmatpush1.bf16.msra.mxu1 %v10917_v62  ;;  %v10927_v58 = vld [vmem:[#allocation122_spill] sm:$0xff]  ;;  %v10928_v62 = vld [vmem:[#allocation123_spill] sm:$0xff] }
 0x52b   :  { %4285 = vmatprep.subr.bf16.mxu0 %v10918_v45  ;;  %4326 = vmatprep.subr.bf16.mxu1 %v10919_v31  ;;  %v10929_v45 = vld [vmem:[#allocation124_spill] sm:$0xff]  ;;  %v10930_v31 = vld [vmem:[#allocation125_spill] sm:$0xff] }
 0x52e   :  { %4286 = vmatpush1.bf16.msra.mxu0 %v10920_v19  ;;  %4327 = vmatpush1.bf16.msra.mxu1 %v10921_v30  ;;  %v10931_v19 = vld [vmem:[#allocation126_spill] sm:$0xff]  ;;  %v10932_v30 = vld [vmem:[#allocation127_spill] sm:$0xff] }
 0x52f   :  { %4287 = vmatprep.subr.bf16.mxu0 %v10922_v23  ;;  %4328 = vmatprep.subr.bf16.mxu1 %v10923_v37  ;;  %v10933_v23 = vld [vmem:[#allocation128_spill] sm:$0xff]  ;;  %v10934_v37 = vld [vmem:[#allocation129_spill] sm:$0xff] }
 0x532   :  { %4288 = vmatpush1.bf16.msra.mxu0 %v10924_v40  ;;  %4329 = vmatpush1.bf16.msra.mxu1 %v10925_v61  ;;  %v10935_v40 = vld [vmem:[#allocation130_spill] sm:$0xff]  ;;  %v10936_v61 = vld [vmem:[#allocation131_spill] sm:$0xff] }
 0x533   :  { %4289 = vmatprep.subr.bf16.mxu0 %v10926_v25  ;;  %4330 = vmatprep.subr.bf16.mxu1 %v10927_v58  ;;  %v10937_v25 = vld [vmem:[#allocation132_spill] sm:$0xff]  ;;  %v10938_v58 = vld [vmem:[#allocation133_spill] sm:$0xff] }
 0x536   :  { %4290 = vmatpush1.bf16.msra.mxu0 %v10928_v62  ;;  %4331 = vmatpush1.bf16.msra.mxu1 %v10929_v45  ;;  %v10939_v62 = vld [vmem:[#allocation134_spill] sm:$0xff]  ;;  %v10940_v45 = vld [vmem:[#allocation135_spill] sm:$0xff] }
 0x537   :  { %4291 = vmatprep.subr.bf16.mxu0 %v10930_v31  ;;  %4332 = vmatprep.subr.bf16.mxu1 %v10931_v19  ;;  %v10941_v31 = vld [vmem:[#allocation136_spill] sm:$0xff]  ;;  %v10942_v19 = vld [vmem:[#allocation137_spill] sm:$0xff] }
 0x53a   :  { %4292 = vmatpush1.bf16.msra.mxu0 %v10932_v30  ;;  %4333 = vmatpush1.bf16.msra.mxu1 %v10933_v23  ;;  %v10943_v30 = vld [vmem:[#allocation138_spill] sm:$0xff]  ;;  %v10944_v23 = vld [vmem:[#allocation139_spill] sm:$0xff] }
 0x53b   :  { %4293 = vmatprep.subr.bf16.mxu0 %v10934_v37  ;;  %4334 = vmatprep.subr.bf16.mxu1 %v10935_v40  ;;  %v10945_v37 = vld [vmem:[#allocation140_spill] sm:$0xff]  ;;  %v10946_v40 = vld [vmem:[#allocation141_spill] sm:$0xff] }
 0x53e   :  { %4294 = vmatpush1.bf16.msra.mxu0 %v10936_v61  ;;  %4335 = vmatpush1.bf16.msra.mxu1 %v10937_v25  ;;  %v10947_v61 = vld [vmem:[#allocation142_spill] sm:$0xff] }
 0x53f   :  { %4295 = vmatprep.subr.bf16.mxu0 %v10938_v58  ;;  %4336 = vmatprep.subr.bf16.mxu1 %v10939_v62 }
 0x542   :  { %4296 = vmatpush1.bf16.msra.mxu0 %v10940_v45  ;;  %4337 = vmatpush1.bf16.msra.mxu1 %v10941_v31 }
 0x543   :  { %4297 = vmatprep.subr.bf16.mxu0 %v10942_v19  ;;  %4338 = vmatprep.subr.bf16.mxu1 %v10943_v30 }
 0x546   :  { %4298 = vmatpush1.bf16.msra.mxu0 %v10944_v23  ;;  %4339 = vmatpush1.bf16.msra.mxu1 %v10945_v37  ;;  %v10948_v37 = vld [vmem:[#allocation209_spill] sm:$0xff] }
 0x547   :  { %4349 = vmatprep.subr.bf16.mxu0 %v10946_v40  ;;  %4390 = vmatprep.subr.bf16.mxu1 %v10947_v61  ;;  %v1345_v61 = vpop.permute.xlu1 %1344  ;;  %v10956_v40 = vld [vmem:[#allocation213_spill] sm:$0xff] }
 0x548   :  { %v1432_v42 = vmul.f32 %v10948_v37, %v1345_v61  ;;  %v1433_v0 = vmul.f32 %v10949_v20, %v1345_v61 }
 0x54a   :  { %v1496_v12 = vadd.f32 %v1432_v42, %v10956_v40  ;;  %v1497_v37 = vadd.f32 %v1433_v0, %v10957_v43  ;;  %v10964_v42 = vld [vmem:[#allocation229_spill] sm:$0xff]  ;;  %v10965_v0 = vld [vmem:[#allocation230_spill] sm:$0xff] }
 0x59c   :  { %v4055_v25 = vpop.f32.mrb[24].mxu0  ;;  %v4096_v58 = vpop.f32.mrb[24].mxu1 }
 0x59d   :  { %v4057_v48 = vpop.f32.mrb[25].mxu0  ;;  %v4098_v62 = vpop.f32.mrb[25].mxu1 }
 0x59e   :  { %v4193_v2 = vcombine.low %v4055_v25, %v4057_v48  ;;  %v4194_v45 = vcombine.low %v4096_v58, %v4098_v62  ;;  %v4059_v36 = vpop.f32.mrb[26].mxu0  ;;  %v4100_v31 = vpop.f32.mrb[26].mxu1  ;;  %v10950_v48 = vld [vmem:[#allocation211_spill] sm:$0xff]  ;;  %v10953_v58 = vld [vmem:[#allocation218_spill] sm:$0xff] }
 0x59f   :  { %v4060_v9 = vpop.f32.mrb[27].mxu0  ;;  %v4101_v19 = vpop.f32.mrb[27].mxu1  ;;  %v1434_v25 = vmul.f32 %v10950_v48, %v1345_v61  ;;  %v10951_v36 = vld [vmem:[#allocation212_spill] sm:$0xff] }
 0x5a0   :  { %v9014_v30 = vrot.slane %v4193_v2, %v8189_v4  ;;  %v9017_v23 = vrot.slane %v4194_v45, %v8189_v4  ;;  %v1435_v62 = vmul.f32 %v10951_v36, %v1345_v61  ;;  %v1552_v9 = vpop.permute.xlu0 %1551  ;;  %v1755_v31 = vpop.permute.xlu1 %1754  ;;  %v10952_v19 = vld [vmem:[#allocation217_spill] sm:$0xff]  ;;  %v10954_v45 = vld [vmem:[#allocation219_spill] sm:$0xff] }
 0x5a1   :  { %v1635_v2 = vmul.f32 %v10952_v19, %v1552_v9  ;;  %v1636_v35 = vmul.f32 %v10953_v58, %v1552_v9  ;;  %v1637_v38 = vmul.f32 %v10954_v45, %v1552_v9  ;;  %v1638_v41 = vmul.f32 %v10955_v49, %v1552_v9  ;;  %v10960_v19 = vld [vmem:[#allocation221_spill] sm:$0xff]  ;;  %v10961_v58 = vld [vmem:[#allocation222_spill] sm:$0xff]  ;;  %v10962_v45 = vld [vmem:[#allocation223_spill] sm:$0xff] }
 0x5a2   :  { %v1498_v20 = vadd.f32 %v1434_v25, %v10958_v50  ;;  %v1499_v48 = vadd.f32 %v1435_v62, %v10959_v56  ;;  %v1838_v21 = vmul.f32 %v10960_v19, %v1755_v31  ;;  %v1839_v1 = vmul.f32 %v10961_v58, %v1755_v31  ;;  %v10963_v49 = vld [vmem:[#allocation224_spill] sm:$0xff]  ;;  %v10966_v25 = vld [vmem:[#allocation231_spill] sm:$0xff] }
 0x5a3   :  { %v1699_v22 = vadd.f32 %v1635_v2, %v1496_v12  ;;  %v1700_v36 = vadd.f32 %v1636_v35, %v1497_v37  ;;  %v1840_v34 = vmul.f32 %v10962_v45, %v1755_v31  ;;  %v1841_v33 = vmul.f32 %v10963_v49, %v1755_v31  ;;  %v10967_v62 = vld [vmem:[#allocation232_spill] sm:$0xff] }
 0x5a4   :  { %v1701_v54 = vadd.f32 %v1637_v38, %v1498_v20  ;;  %v1702_v16 = vadd.f32 %v1638_v41, %v1499_v48  ;;  %v1958_v59 = vpop.permute.xlu1 %1957  ;;  %v1436_v45 = vmul.f32 %v10821_v27, %v1345_v61  ;;  %v1437_v49 = vmul.f32 %v10822_v5, %v1345_v61 }
 0x5a5   :  { %v2041_v40 = vmul.f32 %v10964_v42, %v1958_v59  ;;  %v2042_v43 = vmul.f32 %v10965_v0, %v1958_v59  ;;  %v2043_v50 = vmul.f32 %v10966_v25, %v1958_v59  ;;  %v2044_v12 = vmul.f32 %v10967_v62, %v1958_v59 }
 0x5a6   :  { %v1902_v35 = vadd.f32 %v1838_v21, %v1699_v22  ;;  %v1903_v38 = vadd.f32 %v1839_v1, %v1700_v36  ;;  %v1904_v41 = vadd.f32 %v1840_v34, %v1701_v54  ;;  %v1905_v20 = vadd.f32 %v1841_v33, %v1702_v16 }
 0x5a7   :  { %v1438_v42 = vmul.f32 %v10823_v60, %v1345_v61  ;;  %v1439_v0 = vmul.f32 %v8354_v8, %v1345_v61  ;;  %v1639_v62 = vmul.f32 %v10682_v32, %v1552_v9  ;;  %v1500_v1 = vadd.f32 %v1436_v45, %v8386_v10  ;;  %v1272_v61 = vld [vmem:[%s9934_s0 + $0x8] sm:$0x3] }
 0x5a8   :  { %v2105_v37 = vadd.f32 %v2041_v40, %v1902_v35  ;;  %v2106_v48 = vadd.f32 %v2042_v43, %v1903_v38  ;;  %v2107_v2 = vadd.f32 %v2043_v50, %v1904_v41  ;;  %v2108_v58 = vadd.f32 %v2044_v12, %v1905_v20  ;;  %1555 = vperm.xlu1 %6131, %v1272_v61  }
 0x5a9   :  { %v1640_v33 = vmul.f32 %v8368_v53, %v1552_v9  ;;  %v1641_v34 = vmul.f32 %v10683_v15, %v1552_v9  ;;  %v1501_v21 = vadd.f32 %v1437_v49, %v8390_v52  ;;  %v1502_v16 = vadd.f32 %v1438_v42, %v8394_v24  ;;  %1349 = vperm.xlu0 %6130, %v1272_v61  }
 0x5aa   :  { %v2311_v19 = vcombine.low %v2105_v37, %v2106_v48  ;;  %v2312_v25 = vcombine.low %v2107_v2, %v2108_v58  ;;  %v1642_v54 = vmul.f32 %v10684_v17, %v1552_v9  ;;  %v1503_v22 = vadd.f32 %v1439_v0, %v10685_v63 }
 0x5ab   :  { %v1703_v40 = vadd.f32 %v1639_v62, %v1500_v1  ;;  %v1704_v36 = vadd.f32 %v1640_v33, %v1501_v21  ;;  %v1705_v58 = vadd.f32 %v1641_v34, %v1502_v16  ;;  %v1842_v45 = vmul.f32 %v8414_v6, %v1755_v31 }
 0x5ac   :  { %v2319_v50 = vrot.slane %v2311_v19, %v8189_v4  ;;  %v2326_v43 = vrot.slane %v2312_v25, %v8189_v4  ;;  %v1706_v49 = vadd.f32 %v1642_v54, %v1503_v22  ;;  %v1843_v9 = vmul.f32 %v10824_v28, %v1755_v31  ;;  %6132 = vset.pattern.permute.xlu1 %v10827_v29 }
 0x5ad   :  { %v1844_v42 = vmul.f32 %v10825_v55, %v1755_v31  ;;  %v1845_v19 = vmul.f32 %v8426_v57, %v1755_v31  ;;  %v2045_v25 = vmul.f32 %v8440_v26, %v1958_v59  ;;  %v2046_v62 = vmul.f32 %v10687_v51, %v1958_v59  ;;  %6133 = vset.pattern.permute.xlu0 %v10691_v7 }
 0x5ae   :  { %v2327_v0 = vcombine.low %v2319_v50, %v2326_v43  ;;  %v1906_v12 = vadd.f32 %v1842_v45, %v1703_v40  ;;  %v2047_v35 = vmul.f32 %v10688_v11, %v1958_v59  ;;  %v2048_v38 = vmul.f32 %v10826_v14, %v1958_v59  ;;  %1758 = vperm.xlu1 %6132, %v1272_v61  }
 0x5af   :  { %v1907_v41 = vadd.f32 %v1843_v9, %v1704_v36  ;;  %v1908_v20 = vadd.f32 %v1844_v42, %v1705_v58  ;;  %v1909_v37 = vadd.f32 %v1845_v19, %v1706_v49  ;;  %1961 = vperm.xlu0 %6133, %v1272_v61   ;;  %v10968_v31 = vcombine.low %v9014_v30, %v9017_v23 }
 0x5b0   :  { %v2109_v2 = vadd.f32 %v2045_v25, %v1906_v12 }
 0x5b1   :  { %v4229_v48 = vadd.f32 %v10968_v31, %v2327_v0  ;;  %v2110_v1 = vadd.f32 %v2046_v62, %v1907_v41  ;;  %v2111_v33 = vadd.f32 %v2047_v35, %v1908_v20  ;;  %v2112_v34 = vadd.f32 %v2048_v38, %v1909_v37 }
 0x5b2   :  { %6134 = vset.pattern.permute.xlu1 %v10692_v13 }
 0x5b3   :  { %6136 = vset.pattern.permute.xlu0 %v10827_v29  ;;  %v4231_v59 = vmul.f32 0.5, %v4229_v48  ;;  %v2328_v21 = vcombine.low %v2109_v2, %v2110_v1  ;;  %v2329_v16 = vcombine.low %v2111_v33, %v2112_v34  ;;  %v11001_v29 = vld [vmem:[#allocation180_spill] sm:$0xff] }
 0x5b5   :  { %6170 = vtanh.f32 %v4231_v59  ;;  %v2336_v30 = vrot.slane %v2328_v21, %v8189_v4  ;;  %v2343_v23 = vrot.slane %v2329_v16, %v8189_v4 }
 0x5b7   :  { %v2344_v19 = vcombine.low %v2336_v30, %v2343_v23  ;;  %v10972_v30 = vld [vmem:[#allocation151_spill] sm:$0xff]  ;;  %v10973_v23 = vld [vmem:[#allocation152_spill] sm:$0xff] }
 0x5bf   :  { %v6171_v62 = vpop.eup %6170 }
 0x5c0   :  { %v4235_v35 = vadd.f32 1.0, %v6171_v62  ;;  %v10984_v62 = vld [vmem:[#allocation163_spill] sm:$0xff] }
 0x5c2   :  { %v4237_v38 = vmul.f32 0.5, %v4235_v35  ;;  %v10986_v35 = vld [vmem:[#allocation165_spill] sm:$0xff] }
 0x5c4   :  { %v4244_v20 = vrot.slane %v4237_v38, 4 }
 0x5c6   :  { %v4246_v31 = vmul.f32 %v4244_v20, %v8875_v44  ;;  %v10969_v44 = vld [vmem:[#allocation148_spill] sm:$0xff] }
 0x5c7   :  { %v10989_v20 = vld [vmem:[#allocation168_spill] sm:$0xff] }
 0x5dc   :  { %v4137_v54 = vpop.f32.mrb[28].mxu0  ;;  %v4178_v22 = vpop.f32.mrb[28].mxu1 }
 0x5dd   :  { %v4139_v50 = vpop.f32.mrb[29].mxu0  ;;  %v4180_v43 = vpop.f32.mrb[29].mxu1 }
 0x5de   :  { %v4210_v40 = vcombine.low %v4137_v54, %v4139_v50  ;;  %v4211_v61 = vcombine.low %v4178_v22, %v4180_v43  ;;  %v4141_v36 = vpop.f32.mrb[30].mxu0  ;;  %v4182_v58 = vpop.f32.mrb[30].mxu1  ;;  %v10970_v43 = vld [vmem:[#allocation149_spill] sm:$0xff] }
 0x5df   :  { %v4142_v45 = vpop.f32.mrb[31].mxu0  ;;  %v4183_v49 = vpop.f32.mrb[31].mxu1  ;;  %v10975_v36 = vld [vmem:[#allocation154_spill] sm:$0xff]  ;;  %v10976_v58 = vld [vmem:[#allocation155_spill] sm:$0xff] }
 0x5e0   :  { %v4218_v9 = vrot.slane %v4210_v40, %v8189_v4  ;;  %v4225_v42 = vrot.slane %v4211_v61, %v8189_v4  ;;  %v10971_v40 = vld [vmem:[#allocation150_spill] sm:$0xff]  ;;  %v10974_v61 = vld [vmem:[#allocation153_spill] sm:$0xff]  ;;  %v10977_v45 = vld [vmem:[#allocation156_spill] sm:$0xff] }
 0x5e1   :  { %v10978_v49 = vld [vmem:[#allocation157_spill] sm:$0xff] }
 0x5e2   :  { %v4226_v0 = vcombine.low %v4218_v9, %v4225_v42  ;;  %v10979_v9 = vld [vmem:[#allocation158_spill] sm:$0xff]  ;;  %v10980_v42 = vld [vmem:[#allocation159_spill] sm:$0xff] }
 0x5e4   :  { %v4230_v25 = vadd.f32 %v4226_v0, %v2344_v19  ;;  %v10981_v19 = vld [vmem:[#allocation160_spill] sm:$0xff]  ;;  %v10982_v0 = vld [vmem:[#allocation161_spill] sm:$0xff] }
 0x5e6   :  { %v4240_v12 = vrot.slane %v4230_v25, 4  ;;  %v4232_v41 = vmul.f32 0.5, %v4230_v25  ;;  %v10983_v25 = vld [vmem:[#allocation162_spill] sm:$0xff] }
 0x5e8   :  { %6172 = vtanh.f32 %v4240_v12  ;;  %v10985_v12 = vld [vmem:[#allocation164_spill] sm:$0xff] }
 0x5e9   :  { %6174 = vtanh.f32 %v4232_v41  ;;  %v10988_v41 = vld [vmem:[#allocation167_spill] sm:$0xff] }
 0x5f2   :  { %v6173_v37 = vpop.eup %6172 }
 0x5f3   :  { %v4247_v48 = vmul.f32 %v6173_v37, %v4237_v38  ;;  %v6175_v1 = vpop.eup %6174  ;;  %v10987_v38 = vld [vmem:[#allocation166_spill] sm:$0xff]  ;;  %v10990_v37 = vld [vmem:[#allocation169_spill] sm:$0xff] }
 0x5f4   :  { %v4236_v33 = vadd.f32 1.0, %v6175_v1  ;;  %v10993_v1 = vld [vmem:[#allocation172_spill] sm:$0xff] }
 0x5f5   :  { %v9078_v2 = vadd.f32 %v4247_v48, %v4246_v31  ;;  %v10991_v31 = vld [vmem:[#allocation170_spill] sm:$0xff]  ;;  %v10992_v48 = vld [vmem:[#allocation171_spill] sm:$0xff] }
 0x5f6   :  { %v4238_v34 = vmul.f32 0.5, %v4236_v33  ;;  %v10994_v33 = vld [vmem:[#allocation173_spill] sm:$0xff] }
 0x5f7   :  { %6176 = vtanh.f32 %v9078_v2 }
 0x601   :  { %v6177_v59 = vpop.eup %6176 }
 0x602   :  { %v4250_v21 = vmul.f32 %v6177_v59, %v4238_v34  ;;  %v10995_v34 = vld [vmem:[#allocation174_spill] sm:$0xff]  ;;  %v10996_v59 = vld [vmem:[#allocation175_spill] sm:$0xff] }
 0x604   :  { %v4261_v16 = vrot.slane %v4250_v21, %v8189_v4  ;;  %v10997_v21 = vld [vmem:[#allocation176_spill] sm:$0xff] }
 0x606   :  { %v4262_v54 = vcombine.high %v4261_v16, %v4261_v16  ;;  %v9082_v50 = vpack.c.bf16 %v4261_v16, %v4261_v16  ;;  %v10998_v16 = vld [vmem:[#allocation177_spill] sm:$0xff] }
 0x608   :  { %v4266_v22 = vpack.c.bf16 %v4262_v54, %v4262_v54  ;;  %v10999_v54 = vld [vmem:[#allocation178_spill] sm:$0xff] }
 0x60a   :  { %4299 = vmatprep.mubr.bf16.mxu0 %v4266_v22  ;;  %4340 = vmatprep.mubr.bf16.mxu1 %v4266_v22 }
 0x60b   :  { %4300 = vmatmul.mubr.bf16.vlgmr.msra.gmra.mrb[32].mxu0 %v9082_v50  ;;  %4341 = vmatmul.mubr.bf16.vlgmr.msra.gmra.mrb[32].mxu1 %v9082_v50 }
 0x60c   :  { %4350 = vmatpush1.bf16.msra.mxu0 %v10556_v46  ;;  %4391 = vmatpush1.bf16.msra.mxu1 %v10557_v3 }
 0x60d   :  { %4381 = vmatprep.mubr.bf16.mxu0 %v4266_v22  ;;  %4422 = vmatprep.mubr.bf16.mxu1 %v4266_v22  ;;  %v11000_v22 = vld [vmem:[#allocation179_spill] sm:$0xff] }
 0x60e   :  { %4351 = vmatprep.subr.bf16.mxu0 %v10558_v18  ;;  %4392 = vmatprep.subr.bf16.mxu1 %v10559_v39 }
 0x610   :  { %4352 = vmatpush1.bf16.msra.mxu0 %v10560_v47  ;;  %4393 = vmatpush1.bf16.msra.mxu1 %v10969_v44 }
 0x611   :  { %4353 = vmatprep.subr.bf16.mxu0 %v10970_v43  ;;  %4394 = vmatprep.subr.bf16.mxu1 %v10971_v40  ;;  %v11106_v40 = vld [vmem:[#allocation224_spill] sm:$0xff] }
 0x614   :  { %4354 = vmatpush1.bf16.msra.mxu0 %v10972_v30  ;;  %4395 = vmatpush1.bf16.msra.mxu1 %v10973_v23  ;;  %v11104_v23 = vld [vmem:[#allocation222_spill] sm:$0xff]  ;;  %v11105_v30 = vld [vmem:[#allocation223_spill] sm:$0xff] }
 0x615   :  { %4355 = vmatprep.subr.bf16.mxu0 %v10974_v61  ;;  %4396 = vmatprep.subr.bf16.mxu1 %v10975_v36  ;;  %v11103_v61 = vld [vmem:[#allocation221_spill] sm:$0xff] }
 0x618   :  { %4356 = vmatpush1.bf16.msra.mxu0 %v10976_v58  ;;  %4397 = vmatpush1.bf16.msra.mxu1 %v10977_v45 }
 0x619   :  { %4357 = vmatprep.subr.bf16.mxu0 %v10978_v49  ;;  %4398 = vmatprep.subr.bf16.mxu1 %v10979_v9  ;;  %v11102_v49 = vld [vmem:[#allocation215_spill] sm:$0xff] }
 0x61c   :  { %4358 = vmatpush1.bf16.msra.mxu0 %v10980_v42  ;;  %4399 = vmatpush1.bf16.msra.mxu1 %v10981_v19  ;;  %v11100_v19 = vld [vmem:[#allocation213_spill] sm:$0xff]  ;;  %v11101_v42 = vld [vmem:[#allocation214_spill] sm:$0xff] }
 0x61d   :  { %4359 = vmatprep.subr.bf16.mxu0 %v10982_v0  ;;  %4400 = vmatprep.subr.bf16.mxu1 %v10983_v25  ;;  %v11099_v25 = vld [vmem:[#allocation220_spill] sm:$0xff] }
 0x620   :  { %4360 = vmatpush1.bf16.msra.mxu0 %v10984_v62  ;;  %4401 = vmatpush1.bf16.msra.mxu1 %v10985_v12  ;;  %v11093_v12 = vld [vmem:[#allocation210_spill] sm:$0xff]  ;;  %v11098_v62 = vld [vmem:[#allocation219_spill] sm:$0xff] }
 0x621   :  { %4361 = vmatprep.subr.bf16.mxu0 %v10986_v35  ;;  %4402 = vmatprep.subr.bf16.mxu1 %v10987_v38  ;;  %v11092_v38 = vld [vmem:[#allocation209_spill] sm:$0xff] }
 0x624   :  { %4362 = vmatpush1.bf16.msra.mxu0 %v10988_v41  ;;  %4403 = vmatpush1.bf16.msra.mxu1 %v10989_v20 }
 0x625   :  { %4363 = vmatprep.subr.bf16.mxu0 %v10990_v37  ;;  %4404 = vmatprep.subr.bf16.mxu1 %v10991_v31  ;;  %v11002_v31 = vld [vmem:[#allocation181_spill] sm:$0xff] }
 0x628   :  { %4364 = vmatpush1.bf16.msra.mxu0 %v10992_v48  ;;  %4405 = vmatpush1.bf16.msra.mxu1 %v10993_v1  ;;  %v11003_v48 = vld [vmem:[#allocation182_spill] sm:$0xff]  ;;  %v11004_v1 = vld [vmem:[#allocation183_spill] sm:$0xff] }
 0x629   :  { %4365 = vmatprep.subr.bf16.mxu0 %v10994_v33  ;;  %4406 = vmatprep.subr.bf16.mxu1 %v10995_v34  ;;  %v11005_v33 = vld [vmem:[#allocation184_spill] sm:$0xff]  ;;  %v11006_v34 = vld [vmem:[#allocation185_spill] sm:$0xff] }
 0x62c   :  { %4366 = vmatpush1.bf16.msra.mxu0 %v10996_v59  ;;  %4407 = vmatpush1.bf16.msra.mxu1 %v10997_v21  ;;  %v11007_v59 = vld [vmem:[#allocation186_spill] sm:$0xff]  ;;  %v11008_v21 = vld [vmem:[#allocation187_spill] sm:$0xff] }
 0x62d   :  { %4367 = vmatprep.subr.bf16.mxu0 %v10998_v16  ;;  %4408 = vmatprep.subr.bf16.mxu1 %v10999_v54  ;;  %v11009_v16 = vld [vmem:[#allocation188_spill] sm:$0xff]  ;;  %v11010_v54 = vld [vmem:[#allocation189_spill] sm:$0xff] }
 0x630   :  { %4368 = vmatpush1.bf16.msra.mxu0 %v11000_v22  ;;  %4409 = vmatpush1.bf16.msra.mxu1 %v11001_v29  ;;  %v11011_v22 = vld [vmem:[#allocation190_spill] sm:$0xff]  ;;  %v11012_v29 = vld [vmem:[#allocation191_spill] sm:$0xff] }
 0x631   :  { %4369 = vmatprep.subr.bf16.mxu0 %v11002_v31  ;;  %4410 = vmatprep.subr.bf16.mxu1 %v11003_v48  ;;  %v11013_v31 = vld [vmem:[#allocation192_spill] sm:$0xff]  ;;  %v11014_v48 = vld [vmem:[#allocation193_spill] sm:$0xff] }
 0x634   :  { %4370 = vmatpush1.bf16.msra.mxu0 %v11004_v1  ;;  %4411 = vmatpush1.bf16.msra.mxu1 %v11005_v33  ;;  %v11015_v1 = vld [vmem:[#allocation194_spill] sm:$0xff]  ;;  %v11016_v33 = vld [vmem:[#allocation195_spill] sm:$0xff] }
 0x635   :  { %4371 = vmatprep.subr.bf16.mxu0 %v11006_v34  ;;  %4412 = vmatprep.subr.bf16.mxu1 %v11007_v59  ;;  %v11017_v34 = vld [vmem:[#allocation196_spill] sm:$0xff]  ;;  %v11018_v59 = vld [vmem:[#allocation197_spill] sm:$0xff] }
 0x638   :  { %4372 = vmatpush1.bf16.msra.mxu0 %v11008_v21  ;;  %4413 = vmatpush1.bf16.msra.mxu1 %v11009_v16  ;;  %v11019_v21 = vld [vmem:[#allocation198_spill] sm:$0xff]  ;;  %v11020_v16 = vld [vmem:[#allocation199_spill] sm:$0xff] }
 0x639   :  { %4373 = vmatprep.subr.bf16.mxu0 %v11010_v54  ;;  %4414 = vmatprep.subr.bf16.mxu1 %v11011_v22  ;;  %v11021_v54 = vld [vmem:[#allocation200_spill] sm:$0xff]  ;;  %v11022_v22 = vld [vmem:[#allocation201_spill] sm:$0xff] }
 0x63c   :  { %4374 = vmatpush1.bf16.msra.mxu0 %v11012_v29  ;;  %4415 = vmatpush1.bf16.msra.mxu1 %v11013_v31  ;;  %v11023_v29 = vld [vmem:[#allocation202_spill] sm:$0xff]  ;;  %v11024_v31 = vld [vmem:[#allocation203_spill] sm:$0xff] }
 0x63d   :  { %4375 = vmatprep.subr.bf16.mxu0 %v11014_v48  ;;  %4416 = vmatprep.subr.bf16.mxu1 %v11015_v1  ;;  %v11025_v48 = vld [vmem:[#allocation204_spill] sm:$0xff]  ;;  %v11026_v1 = vld [vmem:[#allocation77_spill] sm:$0xff] }
 0x640   :  { %4376 = vmatpush1.bf16.msra.mxu0 %v11016_v33  ;;  %4417 = vmatpush1.bf16.msra.mxu1 %v11017_v34  ;;  %v11027_v33 = vld [vmem:[#allocation79_spill] sm:$0xff] }
 0x641   :  { %4377 = vmatprep.subr.bf16.mxu0 %v11018_v59  ;;  %4418 = vmatprep.subr.bf16.mxu1 %v11019_v21  ;;  %v11028_v21 = vld [vmem:[#allocation78_spill] sm:$0xff]  ;;  %v11037_v59 = vld [vmem:[#allocation88_spill] sm:$0xff] }
 0x644   :  { %4378 = vmatpush1.bf16.msra.mxu0 %v11020_v16  ;;  %4419 = vmatpush1.bf16.msra.mxu1 %v11021_v54  ;;  %v11029_v16 = vld [vmem:[#allocation80_spill] sm:$0xff]  ;;  %v11030_v54 = vld [vmem:[#allocation81_spill] sm:$0xff] }
 0x645   :  { %4379 = vmatprep.subr.bf16.mxu0 %v11022_v22  ;;  %4420 = vmatprep.subr.bf16.mxu1 %v11023_v29  ;;  %v11031_v22 = vld [vmem:[#allocation82_spill] sm:$0xff]  ;;  %v11032_v29 = vld [vmem:[#allocation83_spill] sm:$0xff] }
 0x648   :  { %4380 = vmatpush1.bf16.msra.mxu0 %v11024_v31  ;;  %4421 = vmatpush1.bf16.msra.mxu1 %v11025_v48  ;;  %v11033_v31 = vld [vmem:[#allocation84_spill] sm:$0xff]  ;;  %v11034_v48 = vld [vmem:[#allocation85_spill] sm:$0xff] }
 0x649   :  { %4513 = vmatprep.subr.bf16.mxu0 %v11026_v1  ;;  %4554 = vmatprep.subr.bf16.mxu1 %v11027_v33  ;;  %v11035_v1 = vld [vmem:[#allocation86_spill] sm:$0xff]  ;;  %v11036_v33 = vld [vmem:[#allocation87_spill] sm:$0xff] }
 0x64b   :  { %4382 = vmatmul.mubr.bf16.vlgmr.msra.gmra.mrb[36].mxu0 %v9082_v50  ;;  %4423 = vmatmul.mubr.bf16.vlgmr.msra.gmra.mrb[36].mxu1 %v9082_v50  ;;  %v11038_v50 = vld [vmem:[#allocation89_spill] sm:$0xff] }
 0x64c   :  { %4514 = vmatpush1.bf16.msra.mxu0 %v11028_v21  ;;  %4555 = vmatpush1.bf16.msra.mxu1 %v11029_v16  ;;  %v11039_v21 = vld [vmem:[#allocation90_spill] sm:$0xff]  ;;  %v11040_v16 = vld [vmem:[#allocation91_spill] sm:$0xff] }
 0x64d   :  { %4515 = vmatprep.subr.bf16.mxu0 %v11030_v54  ;;  %4556 = vmatprep.subr.bf16.mxu1 %v11031_v22  ;;  %v11041_v54 = vld [vmem:[#allocation92_spill] sm:$0xff]  ;;  %v11042_v22 = vld [vmem:[#allocation93_spill] sm:$0xff] }
 0x650   :  { %4516 = vmatpush1.bf16.msra.mxu0 %v11032_v29  ;;  %4557 = vmatpush1.bf16.msra.mxu1 %v11033_v31  ;;  %v11043_v29 = vld [vmem:[#allocation94_spill] sm:$0xff]  ;;  %v11044_v31 = vld [vmem:[#allocation95_spill] sm:$0xff] }
 0x651   :  { %4517 = vmatprep.subr.bf16.mxu0 %v11034_v48  ;;  %4558 = vmatprep.subr.bf16.mxu1 %v11035_v1  ;;  %v11045_v48 = vld [vmem:[#allocation96_spill] sm:$0xff]  ;;  %v11046_v1 = vld [vmem:[#allocation97_spill] sm:$0xff] }
 0x654   :  { %4518 = vmatpush1.bf16.msra.mxu0 %v11036_v33  ;;  %4559 = vmatpush1.bf16.msra.mxu1 %v11037_v59  ;;  %v11047_v33 = vld [vmem:[#allocation98_spill] sm:$0xff]  ;;  %v11048_v59 = vld [vmem:[#allocation99_spill] sm:$0xff] }
 0x655   :  { %4519 = vmatprep.subr.bf16.mxu0 %v11038_v50  ;;  %4560 = vmatprep.subr.bf16.mxu1 %v11039_v21  ;;  %v11049_v50 = vld [vmem:[#allocation100_spill] sm:$0xff]  ;;  %v11050_v21 = vld [vmem:[#allocation101_spill] sm:$0xff] }
 0x658   :  { %4520 = vmatpush1.bf16.msra.mxu0 %v11040_v16  ;;  %4561 = vmatpush1.bf16.msra.mxu1 %v11041_v54  ;;  %v11051_v16 = vld [vmem:[#allocation102_spill] sm:$0xff]  ;;  %v11052_v54 = vld [vmem:[#allocation103_spill] sm:$0xff] }
 0x659   :  { %4521 = vmatprep.subr.bf16.mxu0 %v11042_v22  ;;  %4562 = vmatprep.subr.bf16.mxu1 %v11043_v29  ;;  %v11053_v22 = vld [vmem:[#allocation104_spill] sm:$0xff]  ;;  %v11054_v29 = vld [vmem:[#allocation105_spill] sm:$0xff] }
 0x65c   :  { %4522 = vmatpush1.bf16.msra.mxu0 %v11044_v31  ;;  %4563 = vmatpush1.bf16.msra.mxu1 %v11045_v48  ;;  %v11055_v31 = vld [vmem:[#allocation106_spill] sm:$0xff]  ;;  %v11056_v48 = vld [vmem:[#allocation107_spill] sm:$0xff] }
 0x65d   :  { %4523 = vmatprep.subr.bf16.mxu0 %v11046_v1  ;;  %4564 = vmatprep.subr.bf16.mxu1 %v11047_v33  ;;  %v11057_v1 = vld [vmem:[#allocation108_spill] sm:$0xff]  ;;  %v11058_v33 = vld [vmem:[#allocation109_spill] sm:$0xff] }
 0x660   :  { %4524 = vmatpush1.bf16.msra.mxu0 %v11048_v59  ;;  %4565 = vmatpush1.bf16.msra.mxu1 %v11049_v50  ;;  %v11059_v59 = vld [vmem:[#allocation110_spill] sm:$0xff]  ;;  %v11060_v50 = vld [vmem:[#allocation111_spill] sm:$0xff] }
 0x661   :  { %4525 = vmatprep.subr.bf16.mxu0 %v11050_v21  ;;  %4566 = vmatprep.subr.bf16.mxu1 %v11051_v16  ;;  %v11061_v21 = vld [vmem:[#allocation112_spill] sm:$0xff]  ;;  %v11062_v16 = vld [vmem:[#allocation113_spill] sm:$0xff] }
 0x664   :  { %4526 = vmatpush1.bf16.msra.mxu0 %v11052_v54  ;;  %4567 = vmatpush1.bf16.msra.mxu1 %v11053_v22  ;;  %v11063_v54 = vld [vmem:[#allocation114_spill] sm:$0xff]  ;;  %v11064_v22 = vld [vmem:[#allocation115_spill] sm:$0xff] }
 0x665   :  { %4527 = vmatprep.subr.bf16.mxu0 %v11054_v29  ;;  %4568 = vmatprep.subr.bf16.mxu1 %v11055_v31  ;;  %v11065_v29 = vld [vmem:[#allocation116_spill] sm:$0xff]  ;;  %v11066_v31 = vld [vmem:[#allocation117_spill] sm:$0xff] }
 0x668   :  { %4528 = vmatpush1.bf16.msra.mxu0 %v11056_v48  ;;  %4569 = vmatpush1.bf16.msra.mxu1 %v11057_v1  ;;  %v11067_v48 = vld [vmem:[#allocation118_spill] sm:$0xff]  ;;  %v11068_v1 = vld [vmem:[#allocation119_spill] sm:$0xff] }
 0x669   :  { %4529 = vmatprep.subr.bf16.mxu0 %v11058_v33  ;;  %4570 = vmatprep.subr.bf16.mxu1 %v11059_v59  ;;  %v11069_v33 = vld [vmem:[#allocation120_spill] sm:$0xff]  ;;  %v11070_v59 = vld [vmem:[#allocation121_spill] sm:$0xff] }
 0x66c   :  { %4530 = vmatpush1.bf16.msra.mxu0 %v11060_v50  ;;  %4571 = vmatpush1.bf16.msra.mxu1 %v11061_v21  ;;  %v11071_v50 = vld [vmem:[#allocation122_spill] sm:$0xff]  ;;  %v11072_v21 = vld [vmem:[#allocation123_spill] sm:$0xff] }
 0x66d   :  { %4531 = vmatprep.subr.bf16.mxu0 %v11062_v16  ;;  %4572 = vmatprep.subr.bf16.mxu1 %v11063_v54  ;;  %v11073_v16 = vld [vmem:[#allocation124_spill] sm:$0xff]  ;;  %v11074_v54 = vld [vmem:[#allocation125_spill] sm:$0xff] }
 0x670   :  { %4532 = vmatpush1.bf16.msra.mxu0 %v11064_v22  ;;  %4573 = vmatpush1.bf16.msra.mxu1 %v11065_v29  ;;  %v11075_v22 = vld [vmem:[#allocation126_spill] sm:$0xff]  ;;  %v11076_v29 = vld [vmem:[#allocation127_spill] sm:$0xff] }
 0x671   :  { %4533 = vmatprep.subr.bf16.mxu0 %v11066_v31  ;;  %4574 = vmatprep.subr.bf16.mxu1 %v11067_v48  ;;  %v11077_v31 = vld [vmem:[#allocation128_spill] sm:$0xff]  ;;  %v11078_v48 = vld [vmem:[#allocation129_spill] sm:$0xff] }
 0x674   :  { %4534 = vmatpush1.bf16.msra.mxu0 %v11068_v1  ;;  %4575 = vmatpush1.bf16.msra.mxu1 %v11069_v33  ;;  %v11079_v1 = vld [vmem:[#allocation130_spill] sm:$0xff]  ;;  %v11080_v33 = vld [vmem:[#allocation131_spill] sm:$0xff] }
 0x675   :  { %4535 = vmatprep.subr.bf16.mxu0 %v11070_v59  ;;  %4576 = vmatprep.subr.bf16.mxu1 %v11071_v50  ;;  %v11081_v59 = vld [vmem:[#allocation132_spill] sm:$0xff]  ;;  %v11082_v50 = vld [vmem:[#allocation133_spill] sm:$0xff] }
 0x678   :  { %4536 = vmatpush1.bf16.msra.mxu0 %v11072_v21  ;;  %4577 = vmatpush1.bf16.msra.mxu1 %v11073_v16  ;;  %v11083_v21 = vld [vmem:[#allocation134_spill] sm:$0xff]  ;;  %v11084_v16 = vld [vmem:[#allocation135_spill] sm:$0xff] }
 0x679   :  { %4537 = vmatprep.subr.bf16.mxu0 %v11074_v54  ;;  %4578 = vmatprep.subr.bf16.mxu1 %v11075_v22  ;;  %v11085_v54 = vld [vmem:[#allocation136_spill] sm:$0xff]  ;;  %v11086_v22 = vld [vmem:[#allocation137_spill] sm:$0xff] }
 0x67c   :  { %4538 = vmatpush1.bf16.msra.mxu0 %v11076_v29  ;;  %4579 = vmatpush1.bf16.msra.mxu1 %v11077_v31  ;;  %v11087_v29 = vld [vmem:[#allocation138_spill] sm:$0xff]  ;;  %v11088_v31 = vld [vmem:[#allocation139_spill] sm:$0xff] }
 0x67d   :  { %4539 = vmatprep.subr.bf16.mxu0 %v11078_v48  ;;  %4580 = vmatprep.subr.bf16.mxu1 %v11079_v1  ;;  %v11089_v48 = vld [vmem:[#allocation140_spill] sm:$0xff]  ;;  %v11090_v1 = vld [vmem:[#allocation141_spill] sm:$0xff] }
 0x680   :  { %4540 = vmatpush1.bf16.msra.mxu0 %v11080_v33  ;;  %4581 = vmatpush1.bf16.msra.mxu1 %v11081_v59  ;;  %v11091_v33 = vld [vmem:[#allocation142_spill] sm:$0xff] }
 0x681   :  { %4541 = vmatprep.subr.bf16.mxu0 %v11082_v50  ;;  %4582 = vmatprep.subr.bf16.mxu1 %v11083_v21 }
 0x684   :  { %4542 = vmatpush1.bf16.msra.mxu0 %v11084_v16  ;;  %4583 = vmatpush1.bf16.msra.mxu1 %v11085_v54 }
 0x685   :  { %4543 = vmatprep.subr.bf16.mxu0 %v11086_v22  ;;  %4584 = vmatprep.subr.bf16.mxu1 %v11087_v29 }
 0x688   :  { %4544 = vmatpush1.bf16.msra.mxu0 %v11088_v31  ;;  %4585 = vmatpush1.bf16.msra.mxu1 %v11089_v48  ;;  %v1556_v48 = vpop.permute.xlu1 %1555 }
 0x689   :  { %4595 = vmatprep.subr.bf16.mxu0 %v11090_v1  ;;  %4636 = vmatprep.subr.bf16.mxu1 %v11091_v33  ;;  %v1350_v33 = vpop.permute.xlu0 %1349  ;;  %v1646_v0 = vmul.f32 %v11099_v25, %v1556_v48 }
 0x68a   :  { %v1440_v35 = vmul.f32 %v11092_v38, %v1350_v33 }
 0x68c   :  { %v1504_v1 = vadd.f32 %v1440_v35, %v11100_v19  ;;  %v1759_v45 = vpop.permute.xlu1 %1758  ;;  %v11107_v19 = vld [vmem:[#allocation229_spill] sm:$0xff] }
 0x68d   :  { %v1848_v25 = vmul.f32 %v11105_v30, %v1759_v45  ;;  %v1849_v35 = vmul.f32 %v11106_v40, %v1759_v45  ;;  %v1444_v30 = vmul.f32 %v10821_v27, %v1350_v33  ;;  %v1445_v40 = vmul.f32 %v10822_v5, %v1350_v33 }
 0x6de   :  { %v4301_v59 = vpop.f32.mrb[32].mxu0  ;;  %v4342_v50 = vpop.f32.mrb[32].mxu1 }
 0x6df   :  { %v4303_v34 = vpop.f32.mrb[33].mxu0  ;;  %v4344_v21 = vpop.f32.mrb[33].mxu1 }
 0x6e0   :  { %v4439_v37 = vcombine.low %v4301_v59, %v4303_v34  ;;  %v4440_v16 = vcombine.low %v4342_v50, %v4344_v21  ;;  %v4305_v20 = vpop.f32.mrb[34].mxu0  ;;  %v4346_v54 = vpop.f32.mrb[34].mxu1  ;;  %v1441_v34 = vmul.f32 %v11093_v12, %v1350_v33  ;;  %v11094_v59 = vld [vmem:[#allocation211_spill] sm:$0xff]  ;;  %v11095_v21 = vld [vmem:[#allocation212_spill] sm:$0xff] }
 0x6e1   :  { %v4306_v41 = vpop.f32.mrb[35].mxu0  ;;  %v4347_v22 = vpop.f32.mrb[35].mxu1  ;;  %v1442_v20 = vmul.f32 %v11094_v59, %v1350_v33  ;;  %v11096_v54 = vld [vmem:[#allocation217_spill] sm:$0xff] }
 0x6e2   :  { %v9217_v29 = vrot.slane %v4439_v37, %v8189_v4  ;;  %v9220_v31 = vrot.slane %v4440_v16, %v8189_v4  ;;  %v1443_v41 = vmul.f32 %v11095_v21, %v1350_v33  ;;  %v1643_v22 = vmul.f32 %v11096_v54, %v1556_v48  ;;  %v11097_v37 = vld [vmem:[#allocation218_spill] sm:$0xff]  ;;  %v1962_v54 = vpop.permute.xlu0 %1961 }
 0x6e3   :  { %v1644_v50 = vmul.f32 %v11097_v37, %v1556_v48  ;;  %v1645_v16 = vmul.f32 %v11098_v62, %v1556_v48  ;;  %v1505_v9 = vadd.f32 %v1441_v34, %v11101_v42  ;;  %v1506_v38 = vadd.f32 %v1442_v20, %v11102_v49  ;;  %v11108_v42 = vld [vmem:[#allocation230_spill] sm:$0xff]  ;;  %v11109_v49 = vld [vmem:[#allocation231_spill] sm:$0xff] }
 0x6e4   :  { %v1507_v12 = vadd.f32 %v1443_v41, %v10959_v56  ;;  %v1707_v59 = vadd.f32 %v1643_v22, %v1504_v1  ;;  %v1846_v37 = vmul.f32 %v11103_v61, %v1759_v45  ;;  %v1847_v62 = vmul.f32 %v11104_v23, %v1759_v45  ;;  %v11110_v56 = vld [vmem:[#allocation232_spill] sm:$0xff] }
 0x6e5   :  { %v1708_v58 = vadd.f32 %v1644_v50, %v1505_v9  ;;  %v1709_v21 = vadd.f32 %v1645_v16, %v1506_v38  ;;  %v2049_v34 = vmul.f32 %v11107_v19, %v1962_v54  ;;  %v2050_v20 = vmul.f32 %v11108_v42, %v1962_v54 }
 0x6e6   :  { %v1710_v36 = vadd.f32 %v1646_v0, %v1507_v12  ;;  %v2051_v41 = vmul.f32 %v11109_v49, %v1962_v54  ;;  %v2052_v1 = vmul.f32 %v11110_v56, %v1962_v54  ;;  %v1910_v9 = vadd.f32 %v1846_v37, %v1707_v59 }
 0x6e7   :  { %v1911_v38 = vadd.f32 %v1847_v62, %v1708_v58  ;;  %v1912_v0 = vadd.f32 %v1848_v25, %v1709_v21  ;;  %v1446_v19 = vmul.f32 %v10823_v60, %v1350_v33  ;;  %v1447_v42 = vmul.f32 %v8354_v8, %v1350_v33 }
 0x6e8   :  { %v1913_v12 = vadd.f32 %v1849_v35, %v1710_v36  ;;  %v2113_v22 = vadd.f32 %v2049_v34, %v1910_v9  ;;  %v1647_v56 = vmul.f32 %v10682_v32, %v1556_v48  ;;  %v1648_v58 = vmul.f32 %v8368_v53, %v1556_v48  ;;  %v1273_v34 = vld [vmem:[%s9934_s0 + $0xa] sm:$0x3] }
 0x6e9   :  { %v2114_v50 = vadd.f32 %v2050_v20, %v1911_v38  ;;  %v2115_v16 = vadd.f32 %v2051_v41, %v1912_v0  ;;  %v1649_v36 = vmul.f32 %v10683_v15, %v1556_v48  ;;  %v1508_v25 = vadd.f32 %v1444_v30, %v8386_v10  ;;  %1354 = vperm.xlu1 %6134, %v1273_v34  }
 0x6ea   :  { %v2116_v23 = vadd.f32 %v2052_v1, %v1913_v12  ;;  %v1650_v62 = vmul.f32 %v10684_v17, %v1556_v48  ;;  %v1509_v59 = vadd.f32 %v1445_v40, %v8390_v52  ;;  %v1510_v21 = vadd.f32 %v1446_v19, %v8394_v24  ;;  %1762 = vperm.xlu0 %6136, %v1273_v34  }
 0x6eb   :  { %v2345_v61 = vcombine.low %v2113_v22, %v2114_v50  ;;  %v1511_v37 = vadd.f32 %v1447_v42, %v10685_v63  ;;  %v1711_v35 = vadd.f32 %v1647_v56, %v1508_v25  ;;  %v1850_v40 = vmul.f32 %v8414_v6, %v1759_v45 }
 0x6ec   :  { %v2346_v49 = vcombine.low %v2115_v16, %v2116_v23  ;;  %v1712_v20 = vadd.f32 %v1648_v58, %v1509_v59  ;;  %v1713_v41 = vadd.f32 %v1649_v36, %v1510_v21  ;;  %v1851_v19 = vmul.f32 %v10824_v28, %v1759_v45 }
 0x6ed   :  { %v2353_v33 = vrot.slane %v2345_v61, %v8189_v4  ;;  %v1714_v30 = vadd.f32 %v1650_v62, %v1511_v37  ;;  %v1852_v42 = vmul.f32 %v10825_v55, %v1759_v45  ;;  %v1853_v61 = vmul.f32 %v8426_v57, %v1759_v45 }
 0x6ee   :  { %v2360_v23 = vrot.slane %v2346_v49, %v8189_v4  ;;  %v2053_v56 = vmul.f32 %v8440_v26, %v1962_v54  ;;  %v2054_v49 = vmul.f32 %v10687_v51, %v1962_v54  ;;  %v2055_v1 = vmul.f32 %v10688_v11, %v1962_v54 }
 0x6ef   :  { %v2056_v9 = vmul.f32 %v10826_v14, %v1962_v54  ;;  %v11111_v38 = vmov 1   ;;  %v1914_v0 = vadd.f32 %v1850_v40, %v1711_v35  ;;  %v1915_v12 = vadd.f32 %v1851_v19, %v1712_v20 }
 0x6f0   :  { %v2361_v48 = vcombine.low %v2353_v33, %v2360_v23  ;;  %6135 = vset.pattern.permute.xlu1 %v11111_v38  ;;  %6139 = vset.pattern.permute.xlu0 %v11111_v38  ;;  %v1916_v22 = vadd.f32 %v1852_v42, %v1713_v41  ;;  %v1917_v50 = vadd.f32 %v1853_v61, %v1714_v30 }
 0x6f1   :  { %1559 = vperm.xlu1 %6135, %v1273_v34   ;;  %v11112_v45 = vcombine.low %v9217_v29, %v9220_v31  ;;  %v2117_v58 = vadd.f32 %v2053_v56, %v1914_v0  ;;  %v2118_v36 = vadd.f32 %v2054_v49, %v1915_v12 }
 0x6f2   :  { %v2119_v25 = vadd.f32 %v2055_v1, %v1916_v22  ;;  %v2120_v62 = vadd.f32 %v2056_v9, %v1917_v50 }
 0x6f3   :  { %v4475_v16 = vadd.f32 %v11112_v45, %v2361_v48  ;;  %v2362_v59 = vcombine.low %v2117_v58, %v2118_v36 }
 0x6f4   :  { %v2363_v21 = vcombine.low %v2119_v25, %v2120_v62 }
 0x6f5   :  { %6137 = vset.pattern.permute.xlu1 %v10691_v7  ;;  %v4477_v54 = vmul.f32 0.5, %v4475_v16  ;;  %v2370_v29 = vrot.slane %v2362_v59, %v8189_v4 }
 0x6f6   :  { %1965 = vperm.xlu1 %6137, %v1273_v34   ;;  %v2377_v31 = vrot.slane %v2363_v21, %v8189_v4 }
 0x6f7   :  { %6178 = vtanh.f32 %v4477_v54 }
 0x6f8   :  { %v2378_v48 = vcombine.low %v2370_v29, %v2377_v31  ;;  %v11115_v29 = vld [vmem:[#allocation152_spill] sm:$0xff]  ;;  %v11116_v31 = vld [vmem:[#allocation153_spill] sm:$0xff] }
 0x6fa   :  { %6138 = vset.pattern.permute.xlu1 %v10692_v13 }
 0x701   :  { %v6179_v1 = vpop.eup %6178 }
 0x702   :  { %v4481_v0 = vadd.f32 1.0, %v6179_v1  ;;  %v11127_v1 = vld [vmem:[#allocation164_spill] sm:$0xff] }
 0x704   :  { %v4483_v12 = vmul.f32 0.5, %v4481_v0  ;;  %v11129_v0 = vld [vmem:[#allocation166_spill] sm:$0xff] }
 0x706   :  { %v4490_v50 = vrot.slane %v4483_v12, 4 }
 0x708   :  { %v4492_v16 = vmul.f32 %v4490_v50, %v9078_v2  ;;  %v11113_v2 = vld [vmem:[#allocation150_spill] sm:$0xff]  ;;  %v11132_v50 = vld [vmem:[#allocation169_spill] sm:$0xff] }
 0x71e   :  { %v4383_v37 = vpop.f32.mrb[36].mxu0  ;;  %v4424_v33 = vpop.f32.mrb[36].mxu1 }
 0x71f   :  { %v4385_v23 = vpop.f32.mrb[37].mxu0  ;;  %v4426_v35 = vpop.f32.mrb[37].mxu1 }
 0x720   :  { %v4456_v20 = vcombine.low %v4383_v37, %v4385_v23  ;;  %v4457_v41 = vcombine.low %v4424_v33, %v4426_v35  ;;  %v4387_v30 = vpop.f32.mrb[38].mxu0  ;;  %v4428_v40 = vpop.f32.mrb[38].mxu1 }
 0x721   :  { %v4388_v19 = vpop.f32.mrb[39].mxu0  ;;  %v4429_v42 = vpop.f32.mrb[39].mxu1  ;;  %v11118_v30 = vld [vmem:[#allocation155_spill] sm:$0xff]  ;;  %v11119_v40 = vld [vmem:[#allocation156_spill] sm:$0xff] }
 0x722   :  { %v4464_v34 = vrot.slane %v4456_v20, %v8189_v4  ;;  %v4471_v61 = vrot.slane %v4457_v41, %v8189_v4  ;;  %v11114_v20 = vld [vmem:[#allocation151_spill] sm:$0xff]  ;;  %v11117_v41 = vld [vmem:[#allocation154_spill] sm:$0xff]  ;;  %v11120_v19 = vld [vmem:[#allocation157_spill] sm:$0xff] }
 0x723   :  { %v11121_v42 = vld [vmem:[#allocation158_spill] sm:$0xff] }
 0x724   :  { %v4472_v56 = vcombine.low %v4464_v34, %v4471_v61  ;;  %v11122_v34 = vld [vmem:[#allocation159_spill] sm:$0xff]  ;;  %v11123_v61 = vld [vmem:[#allocation160_spill] sm:$0xff] }
 0x726   :  { %v4476_v49 = vadd.f32 %v4472_v56, %v2378_v48  ;;  %v11124_v48 = vld [vmem:[#allocation161_spill] sm:$0xff]  ;;  %v11125_v56 = vld [vmem:[#allocation162_spill] sm:$0xff] }
 0x728   :  { %v4486_v9 = vrot.slane %v4476_v49, 4  ;;  %v4478_v22 = vmul.f32 0.5, %v4476_v49  ;;  %v11126_v49 = vld [vmem:[#allocation163_spill] sm:$0xff] }
 0x72a   :  { %6180 = vtanh.f32 %v4486_v9  ;;  %v11128_v9 = vld [vmem:[#allocation165_spill] sm:$0xff] }
 0x72b   :  { %6182 = vtanh.f32 %v4478_v22  ;;  %v11131_v22 = vld [vmem:[#allocation168_spill] sm:$0xff] }
 0x734   :  { %v6181_v45 = vpop.eup %6180 }
 0x735   :  { %v4493_v58 = vmul.f32 %v6181_v45, %v4483_v12  ;;  %v6183_v25 = vpop.eup %6182  ;;  %v11130_v12 = vld [vmem:[#allocation167_spill] sm:$0xff]  ;;  %v11133_v45 = vld [vmem:[#allocation170_spill] sm:$0xff] }
 0x736   :  { %v4482_v62 = vadd.f32 1.0, %v6183_v25  ;;  %v11136_v25 = vld [vmem:[#allocation173_spill] sm:$0xff] }
 0x737   :  { %v9281_v36 = vadd.f32 %v4493_v58, %v4492_v16  ;;  %v11134_v16 = vld [vmem:[#allocation171_spill] sm:$0xff]  ;;  %v11135_v58 = vld [vmem:[#allocation172_spill] sm:$0xff] }
 0x738   :  { %v4484_v54 = vmul.f32 0.5, %v4482_v62  ;;  %v11137_v62 = vld [vmem:[#allocation174_spill] sm:$0xff] }
 0x739   :  { %6184 = vtanh.f32 %v9281_v36 }
 0x743   :  { %v6185_v59 = vpop.eup %6184 }
 0x744   :  { %v4496_v21 = vmul.f32 %v6185_v59, %v4484_v54  ;;  %v11138_v54 = vld [vmem:[#allocation175_spill] sm:$0xff]  ;;  %v11139_v59 = vld [vmem:[#allocation176_spill] sm:$0xff] }
 0x746   :  { %v4507_v37 = vrot.slane %v4496_v21, %v8189_v4  ;;  %v11140_v21 = vld [vmem:[#allocation177_spill] sm:$0xff] }
 0x748   :  { %v4508_v33 = vcombine.high %v4507_v37, %v4507_v37  ;;  %v9285_v35 = vpack.c.bf16 %v4507_v37, %v4507_v37  ;;  %v11141_v37 = vld [vmem:[#allocation178_spill] sm:$0xff] }
 0x74a   :  { %v4512_v23 = vpack.c.bf16 %v4508_v33, %v4508_v33  ;;  %v11142_v33 = vld [vmem:[#allocation179_spill] sm:$0xff] }
 0x74c   :  { %4545 = vmatprep.mubr.bf16.mxu0 %v4512_v23  ;;  %4586 = vmatprep.mubr.bf16.mxu1 %v4512_v23 }
 0x74d   :  { %4546 = vmatmul.mubr.bf16.vlgmr.msra.gmra.mrb[40].mxu0 %v9285_v35  ;;  %4587 = vmatmul.mubr.bf16.vlgmr.msra.gmra.mrb[40].mxu1 %v9285_v35 }
 0x74e   :  { %4596 = vmatpush1.bf16.msra.mxu0 %v10556_v46  ;;  %4637 = vmatpush1.bf16.msra.mxu1 %v10557_v3 }
 0x74f   :  { %4627 = vmatprep.mubr.bf16.mxu0 %v4512_v23  ;;  %4668 = vmatprep.mubr.bf16.mxu1 %v4512_v23  ;;  %v11143_v23 = vld [vmem:[#allocation180_spill] sm:$0xff] }
 0x750   :  { %4597 = vmatprep.subr.bf16.mxu0 %v10558_v18  ;;  %4638 = vmatprep.subr.bf16.mxu1 %v10559_v39 }
 0x752   :  { %4598 = vmatpush1.bf16.msra.mxu0 %v10560_v47  ;;  %4639 = vmatpush1.bf16.msra.mxu1 %v10969_v44 }
 0x753   :  { %4599 = vmatprep.subr.bf16.mxu0 %v10970_v43  ;;  %4640 = vmatprep.subr.bf16.mxu1 %v11113_v2  ;;  %v11248_v2 = vld [vmem:[#allocation223_spill] sm:$0xff]  ;;  %v11249_v43 = vld [vmem:[#allocation224_spill] sm:$0xff] }
 0x756   :  { %4600 = vmatpush1.bf16.msra.mxu0 %v11114_v20  ;;  %4641 = vmatpush1.bf16.msra.mxu1 %v11115_v29  ;;  %v11246_v29 = vld [vmem:[#allocation221_spill] sm:$0xff]  ;;  %v11247_v20 = vld [vmem:[#allocation222_spill] sm:$0xff] }
 0x757   :  { %4601 = vmatprep.subr.bf16.mxu0 %v11116_v31  ;;  %4642 = vmatprep.subr.bf16.mxu1 %v11117_v41 }
 0x75a   :  { %4602 = vmatpush1.bf16.msra.mxu0 %v11118_v30  ;;  %4643 = vmatpush1.bf16.msra.mxu1 %v11119_v40 }
 0x75b   :  { %4603 = vmatprep.subr.bf16.mxu0 %v11120_v19  ;;  %4644 = vmatprep.subr.bf16.mxu1 %v11121_v42 }
 0x75e   :  { %4604 = vmatpush1.bf16.msra.mxu0 %v11122_v34  ;;  %4645 = vmatpush1.bf16.msra.mxu1 %v11123_v61  ;;  %v11242_v61 = vld [vmem:[#allocation213_spill] sm:$0xff]  ;;  %v11243_v34 = vld [vmem:[#allocation214_spill] sm:$0xff] }
 0x75f   :  { %4605 = vmatprep.subr.bf16.mxu0 %v11124_v48  ;;  %4646 = vmatprep.subr.bf16.mxu1 %v11125_v56  ;;  %v11241_v56 = vld [vmem:[#allocation220_spill] sm:$0xff] }
 0x762   :  { %4606 = vmatpush1.bf16.msra.mxu0 %v11126_v49  ;;  %4647 = vmatpush1.bf16.msra.mxu1 %v11127_v1  ;;  %v11240_v49 = vld [vmem:[#allocation219_spill] sm:$0xff] }
 0x763   :  { %4607 = vmatprep.subr.bf16.mxu0 %v11128_v9  ;;  %4648 = vmatprep.subr.bf16.mxu1 %v11129_v0  ;;  %v11235_v9 = vld [vmem:[#allocation210_spill] sm:$0xff] }
 0x766   :  { %4608 = vmatpush1.bf16.msra.mxu0 %v11130_v12  ;;  %4649 = vmatpush1.bf16.msra.mxu1 %v11131_v22 }
 0x767   :  { %4609 = vmatprep.subr.bf16.mxu0 %v11132_v50  ;;  %4650 = vmatprep.subr.bf16.mxu1 %v11133_v45  ;;  %v11144_v45 = vld [vmem:[#allocation181_spill] sm:$0xff] }
 0x76a   :  { %4610 = vmatpush1.bf16.msra.mxu0 %v11134_v16  ;;  %4651 = vmatpush1.bf16.msra.mxu1 %v11135_v58  ;;  %v11145_v16 = vld [vmem:[#allocation182_spill] sm:$0xff]  ;;  %v11146_v58 = vld [vmem:[#allocation183_spill] sm:$0xff] }
 0x76b   :  { %4611 = vmatprep.subr.bf16.mxu0 %v11136_v25  ;;  %4652 = vmatprep.subr.bf16.mxu1 %v11137_v62  ;;  %v11147_v25 = vld [vmem:[#allocation184_spill] sm:$0xff]  ;;  %v11148_v62 = vld [vmem:[#allocation185_spill] sm:$0xff] }
 0x76e   :  { %4612 = vmatpush1.bf16.msra.mxu0 %v11138_v54  ;;  %4653 = vmatpush1.bf16.msra.mxu1 %v11139_v59  ;;  %v11149_v54 = vld [vmem:[#allocation186_spill] sm:$0xff]  ;;  %v11150_v59 = vld [vmem:[#allocation187_spill] sm:$0xff] }
 0x76f   :  { %4613 = vmatprep.subr.bf16.mxu0 %v11140_v21  ;;  %4654 = vmatprep.subr.bf16.mxu1 %v11141_v37  ;;  %v11151_v21 = vld [vmem:[#allocation188_spill] sm:$0xff]  ;;  %v11152_v37 = vld [vmem:[#allocation189_spill] sm:$0xff] }
 0x772   :  { %4614 = vmatpush1.bf16.msra.mxu0 %v11142_v33  ;;  %4655 = vmatpush1.bf16.msra.mxu1 %v11143_v23  ;;  %v11153_v33 = vld [vmem:[#allocation190_spill] sm:$0xff]  ;;  %v11154_v23 = vld [vmem:[#allocation191_spill] sm:$0xff] }
 0x773   :  { %4615 = vmatprep.subr.bf16.mxu0 %v11144_v45  ;;  %4656 = vmatprep.subr.bf16.mxu1 %v11145_v16  ;;  %v11155_v45 = vld [vmem:[#allocation192_spill] sm:$0xff]  ;;  %v11156_v16 = vld [vmem:[#allocation193_spill] sm:$0xff] }
 0x776   :  { %4616 = vmatpush1.bf16.msra.mxu0 %v11146_v58  ;;  %4657 = vmatpush1.bf16.msra.mxu1 %v11147_v25  ;;  %v11157_v58 = vld [vmem:[#allocation194_spill] sm:$0xff]  ;;  %v11158_v25 = vld [vmem:[#allocation195_spill] sm:$0xff] }
 0x777   :  { %4617 = vmatprep.subr.bf16.mxu0 %v11148_v62  ;;  %4658 = vmatprep.subr.bf16.mxu1 %v11149_v54  ;;  %v11159_v62 = vld [vmem:[#allocation196_spill] sm:$0xff]  ;;  %v11160_v54 = vld [vmem:[#allocation197_spill] sm:$0xff] }
 0x77a   :  { %4618 = vmatpush1.bf16.msra.mxu0 %v11150_v59  ;;  %4659 = vmatpush1.bf16.msra.mxu1 %v11151_v21  ;;  %v11161_v59 = vld [vmem:[#allocation198_spill] sm:$0xff]  ;;  %v11162_v21 = vld [vmem:[#allocation199_spill] sm:$0xff] }
 0x77b   :  { %4619 = vmatprep.subr.bf16.mxu0 %v11152_v37  ;;  %4660 = vmatprep.subr.bf16.mxu1 %v11153_v33  ;;  %v11163_v37 = vld [vmem:[#allocation200_spill] sm:$0xff]  ;;  %v11164_v33 = vld [vmem:[#allocation201_spill] sm:$0xff] }
 0x77e   :  { %4620 = vmatpush1.bf16.msra.mxu0 %v11154_v23  ;;  %4661 = vmatpush1.bf16.msra.mxu1 %v11155_v45  ;;  %v11165_v23 = vld [vmem:[#allocation202_spill] sm:$0xff]  ;;  %v11166_v45 = vld [vmem:[#allocation203_spill] sm:$0xff] }
 0x77f   :  { %4621 = vmatprep.subr.bf16.mxu0 %v11156_v16  ;;  %4662 = vmatprep.subr.bf16.mxu1 %v11157_v58  ;;  %v11167_v16 = vld [vmem:[#allocation204_spill] sm:$0xff]  ;;  %v11168_v58 = vld [vmem:[#allocation77_spill] sm:$0xff] }
 0x782   :  { %4622 = vmatpush1.bf16.msra.mxu0 %v11158_v25  ;;  %4663 = vmatpush1.bf16.msra.mxu1 %v11159_v62  ;;  %v11169_v25 = vld [vmem:[#allocation79_spill] sm:$0xff] }
 0x783   :  { %4623 = vmatprep.subr.bf16.mxu0 %v11160_v54  ;;  %4664 = vmatprep.subr.bf16.mxu1 %v11161_v59  ;;  %v11170_v59 = vld [vmem:[#allocation78_spill] sm:$0xff]  ;;  %v11179_v54 = vld [vmem:[#allocation88_spill] sm:$0xff] }
 0x786   :  { %4624 = vmatpush1.bf16.msra.mxu0 %v11162_v21  ;;  %4665 = vmatpush1.bf16.msra.mxu1 %v11163_v37  ;;  %v11171_v21 = vld [vmem:[#allocation80_spill] sm:$0xff]  ;;  %v11172_v37 = vld [vmem:[#allocation81_spill] sm:$0xff] }
 0x787   :  { %4625 = vmatprep.subr.bf16.mxu0 %v11164_v33  ;;  %4666 = vmatprep.subr.bf16.mxu1 %v11165_v23  ;;  %v11173_v33 = vld [vmem:[#allocation82_spill] sm:$0xff]  ;;  %v11174_v23 = vld [vmem:[#allocation83_spill] sm:$0xff] }
 0x78a   :  { %4626 = vmatpush1.bf16.msra.mxu0 %v11166_v45  ;;  %4667 = vmatpush1.bf16.msra.mxu1 %v11167_v16  ;;  %v11175_v45 = vld [vmem:[#allocation84_spill] sm:$0xff]  ;;  %v11176_v16 = vld [vmem:[#allocation85_spill] sm:$0xff] }
 0x78b   :  { %4759 = vmatprep.subr.bf16.mxu0 %v11168_v58  ;;  %4800 = vmatprep.subr.bf16.mxu1 %v11169_v25  ;;  %v11177_v58 = vld [vmem:[#allocation86_spill] sm:$0xff]  ;;  %v11178_v25 = vld [vmem:[#allocation87_spill] sm:$0xff] }
 0x78d   :  { %4628 = vmatmul.mubr.bf16.vlgmr.msra.gmra.mrb[44].mxu0 %v9285_v35  ;;  %4669 = vmatmul.mubr.bf16.vlgmr.msra.gmra.mrb[44].mxu1 %v9285_v35  ;;  %v11180_v35 = vld [vmem:[#allocation89_spill] sm:$0xff] }
 0x78e   :  { %4760 = vmatpush1.bf16.msra.mxu0 %v11170_v59  ;;  %4801 = vmatpush1.bf16.msra.mxu1 %v11171_v21  ;;  %v11181_v59 = vld [vmem:[#allocation90_spill] sm:$0xff]  ;;  %v11182_v21 = vld [vmem:[#allocation91_spill] sm:$0xff] }
 0x78f   :  { %4761 = vmatprep.subr.bf16.mxu0 %v11172_v37  ;;  %4802 = vmatprep.subr.bf16.mxu1 %v11173_v33  ;;  %v11183_v37 = vld [vmem:[#allocation92_spill] sm:$0xff]  ;;  %v11184_v33 = vld [vmem:[#allocation93_spill] sm:$0xff] }
 0x792   :  { %4762 = vmatpush1.bf16.msra.mxu0 %v11174_v23  ;;  %4803 = vmatpush1.bf16.msra.mxu1 %v11175_v45  ;;  %v11185_v23 = vld [vmem:[#allocation94_spill] sm:$0xff]  ;;  %v11186_v45 = vld [vmem:[#allocation95_spill] sm:$0xff] }
 0x793   :  { %4763 = vmatprep.subr.bf16.mxu0 %v11176_v16  ;;  %4804 = vmatprep.subr.bf16.mxu1 %v11177_v58  ;;  %v11187_v16 = vld [vmem:[#allocation96_spill] sm:$0xff]  ;;  %v11188_v58 = vld [vmem:[#allocation97_spill] sm:$0xff] }
 0x796   :  { %4764 = vmatpush1.bf16.msra.mxu0 %v11178_v25  ;;  %4805 = vmatpush1.bf16.msra.mxu1 %v11179_v54  ;;  %v11189_v25 = vld [vmem:[#allocation98_spill] sm:$0xff]  ;;  %v11190_v54 = vld [vmem:[#allocation99_spill] sm:$0xff] }
 0x797   :  { %4765 = vmatprep.subr.bf16.mxu0 %v11180_v35  ;;  %4806 = vmatprep.subr.bf16.mxu1 %v11181_v59  ;;  %v11191_v35 = vld [vmem:[#allocation100_spill] sm:$0xff]  ;;  %v11192_v59 = vld [vmem:[#allocation101_spill] sm:$0xff] }
 0x79a   :  { %4766 = vmatpush1.bf16.msra.mxu0 %v11182_v21  ;;  %4807 = vmatpush1.bf16.msra.mxu1 %v11183_v37  ;;  %v11193_v21 = vld [vmem:[#allocation102_spill] sm:$0xff]  ;;  %v11194_v37 = vld [vmem:[#allocation103_spill] sm:$0xff] }
 0x79b   :  { %4767 = vmatprep.subr.bf16.mxu0 %v11184_v33  ;;  %4808 = vmatprep.subr.bf16.mxu1 %v11185_v23  ;;  %v11195_v33 = vld [vmem:[#allocation104_spill] sm:$0xff]  ;;  %v11196_v23 = vld [vmem:[#allocation105_spill] sm:$0xff] }
 0x79e   :  { %4768 = vmatpush1.bf16.msra.mxu0 %v11186_v45  ;;  %4809 = vmatpush1.bf16.msra.mxu1 %v11187_v16  ;;  %v11197_v45 = vld [vmem:[#allocation106_spill] sm:$0xff]  ;;  %v11198_v16 = vld [vmem:[#allocation107_spill] sm:$0xff] }
 0x79f   :  { %4769 = vmatprep.subr.bf16.mxu0 %v11188_v58  ;;  %4810 = vmatprep.subr.bf16.mxu1 %v11189_v25  ;;  %v11199_v58 = vld [vmem:[#allocation108_spill] sm:$0xff]  ;;  %v11200_v25 = vld [vmem:[#allocation109_spill] sm:$0xff] }
 0x7a2   :  { %4770 = vmatpush1.bf16.msra.mxu0 %v11190_v54  ;;  %4811 = vmatpush1.bf16.msra.mxu1 %v11191_v35  ;;  %v11201_v54 = vld [vmem:[#allocation110_spill] sm:$0xff]  ;;  %v11202_v35 = vld [vmem:[#allocation111_spill] sm:$0xff] }
 0x7a3   :  { %4771 = vmatprep.subr.bf16.mxu0 %v11192_v59  ;;  %4812 = vmatprep.subr.bf16.mxu1 %v11193_v21  ;;  %v11203_v59 = vld [vmem:[#allocation112_spill] sm:$0xff]  ;;  %v11204_v21 = vld [vmem:[#allocation113_spill] sm:$0xff] }
 0x7a6   :  { %4772 = vmatpush1.bf16.msra.mxu0 %v11194_v37  ;;  %4813 = vmatpush1.bf16.msra.mxu1 %v11195_v33  ;;  %v11205_v37 = vld [vmem:[#allocation114_spill] sm:$0xff]  ;;  %v11206_v33 = vld [vmem:[#allocation115_spill] sm:$0xff] }
 0x7a7   :  { %4773 = vmatprep.subr.bf16.mxu0 %v11196_v23  ;;  %4814 = vmatprep.subr.bf16.mxu1 %v11197_v45  ;;  %v11207_v23 = vld [vmem:[#allocation116_spill] sm:$0xff]  ;;  %v11208_v45 = vld [vmem:[#allocation117_spill] sm:$0xff] }
 0x7aa   :  { %4774 = vmatpush1.bf16.msra.mxu0 %v11198_v16  ;;  %4815 = vmatpush1.bf16.msra.mxu1 %v11199_v58  ;;  %v11209_v16 = vld [vmem:[#allocation118_spill] sm:$0xff]  ;;  %v11210_v58 = vld [vmem:[#allocation119_spill] sm:$0xff] }
 0x7ab   :  { %4775 = vmatprep.subr.bf16.mxu0 %v11200_v25  ;;  %4816 = vmatprep.subr.bf16.mxu1 %v11201_v54  ;;  %v11211_v25 = vld [vmem:[#allocation120_spill] sm:$0xff]  ;;  %v11212_v54 = vld [vmem:[#allocation121_spill] sm:$0xff] }
 0x7ae   :  { %4776 = vmatpush1.bf16.msra.mxu0 %v11202_v35  ;;  %4817 = vmatpush1.bf16.msra.mxu1 %v11203_v59  ;;  %v11213_v35 = vld [vmem:[#allocation122_spill] sm:$0xff]  ;;  %v11214_v59 = vld [vmem:[#allocation123_spill] sm:$0xff] }
 0x7af   :  { %4777 = vmatprep.subr.bf16.mxu0 %v11204_v21  ;;  %4818 = vmatprep.subr.bf16.mxu1 %v11205_v37  ;;  %v11215_v21 = vld [vmem:[#allocation124_spill] sm:$0xff]  ;;  %v11216_v37 = vld [vmem:[#allocation125_spill] sm:$0xff] }
 0x7b2   :  { %4778 = vmatpush1.bf16.msra.mxu0 %v11206_v33  ;;  %4819 = vmatpush1.bf16.msra.mxu1 %v11207_v23  ;;  %v11217_v33 = vld [vmem:[#allocation126_spill] sm:$0xff]  ;;  %v11218_v23 = vld [vmem:[#allocation127_spill] sm:$0xff] }
 0x7b3   :  { %4779 = vmatprep.subr.bf16.mxu0 %v11208_v45  ;;  %4820 = vmatprep.subr.bf16.mxu1 %v11209_v16  ;;  %v11219_v45 = vld [vmem:[#allocation128_spill] sm:$0xff]  ;;  %v11220_v16 = vld [vmem:[#allocation129_spill] sm:$0xff] }
 0x7b6   :  { %4780 = vmatpush1.bf16.msra.mxu0 %v11210_v58  ;;  %4821 = vmatpush1.bf16.msra.mxu1 %v11211_v25  ;;  %v11221_v58 = vld [vmem:[#allocation130_spill] sm:$0xff]  ;;  %v11222_v25 = vld [vmem:[#allocation131_spill] sm:$0xff] }
 0x7b7   :  { %4781 = vmatprep.subr.bf16.mxu0 %v11212_v54  ;;  %4822 = vmatprep.subr.bf16.mxu1 %v11213_v35  ;;  %v11223_v54 = vld [vmem:[#allocation132_spill] sm:$0xff]  ;;  %v11224_v35 = vld [vmem:[#allocation133_spill] sm:$0xff] }
 0x7ba   :  { %4782 = vmatpush1.bf16.msra.mxu0 %v11214_v59  ;;  %4823 = vmatpush1.bf16.msra.mxu1 %v11215_v21  ;;  %v11225_v59 = vld [vmem:[#allocation134_spill] sm:$0xff]  ;;  %v11226_v21 = vld [vmem:[#allocation135_spill] sm:$0xff] }
 0x7bb   :  { %4783 = vmatprep.subr.bf16.mxu0 %v11216_v37  ;;  %4824 = vmatprep.subr.bf16.mxu1 %v11217_v33  ;;  %v11227_v37 = vld [vmem:[#allocation136_spill] sm:$0xff]  ;;  %v11228_v33 = vld [vmem:[#allocation137_spill] sm:$0xff] }
 0x7be   :  { %4784 = vmatpush1.bf16.msra.mxu0 %v11218_v23  ;;  %4825 = vmatpush1.bf16.msra.mxu1 %v11219_v45  ;;  %v11229_v23 = vld [vmem:[#allocation138_spill] sm:$0xff]  ;;  %v11230_v45 = vld [vmem:[#allocation139_spill] sm:$0xff] }
 0x7bf   :  { %4785 = vmatprep.subr.bf16.mxu0 %v11220_v16  ;;  %4826 = vmatprep.subr.bf16.mxu1 %v11221_v58  ;;  %v11231_v16 = vld [vmem:[#allocation140_spill] sm:$0xff]  ;;  %v11232_v58 = vld [vmem:[#allocation141_spill] sm:$0xff] }
 0x7c2   :  { %4786 = vmatpush1.bf16.msra.mxu0 %v11222_v25  ;;  %4827 = vmatpush1.bf16.msra.mxu1 %v11223_v54  ;;  %v11233_v25 = vld [vmem:[#allocation142_spill] sm:$0xff] }
 0x7c3   :  { %4787 = vmatprep.subr.bf16.mxu0 %v11224_v35  ;;  %4828 = vmatprep.subr.bf16.mxu1 %v11225_v59 }
 0x7c6   :  { %4788 = vmatpush1.bf16.msra.mxu0 %v11226_v21  ;;  %4829 = vmatpush1.bf16.msra.mxu1 %v11227_v37 }
 0x7c7   :  { %4789 = vmatprep.subr.bf16.mxu0 %v11228_v33  ;;  %4830 = vmatprep.subr.bf16.mxu1 %v11229_v23 }
 0x7ca   :  { %4790 = vmatpush1.bf16.msra.mxu0 %v11230_v45  ;;  %4831 = vmatpush1.bf16.msra.mxu1 %v11231_v16  ;;  %v11234_v16 = vld [vmem:[#allocation209_spill] sm:$0xff] }
 0x7cb   :  { %4841 = vmatprep.subr.bf16.mxu0 %v11232_v58  ;;  %4882 = vmatprep.subr.bf16.mxu1 %v11233_v25  ;;  %v1355_v25 = vpop.permute.xlu1 %1354 }
 0x7cc   :  { %v1448_v0 = vmul.f32 %v11234_v16, %v1355_v25  ;;  %v1449_v1 = vmul.f32 %v11235_v9, %v1355_v25  ;;  %v11244_v16 = vld [vmem:[#allocation215_spill] sm:$0xff]  ;;  %v11245_v9 = vld [vmem:[#allocation216_spill] sm:$0xff] }
 0x7ce   :  { %v1512_v58 = vadd.f32 %v1448_v0, %v11242_v61  ;;  %v1513_v42 = vadd.f32 %v1449_v1, %v11243_v34  ;;  %v11250_v61 = vld [vmem:[#allocation229_spill] sm:$0xff]  ;;  %v11251_v34 = vld [vmem:[#allocation230_spill] sm:$0xff] }
 0x820   :  { %v4547_v54 = vpop.f32.mrb[40].mxu0  ;;  %v4588_v35 = vpop.f32.mrb[40].mxu1 }
 0x821   :  { %v4549_v62 = vpop.f32.mrb[41].mxu0  ;;  %v4590_v59 = vpop.f32.mrb[41].mxu1 }
 0x822   :  { %v4685_v50 = vcombine.low %v4547_v54, %v4549_v62  ;;  %v4686_v21 = vcombine.low %v4588_v35, %v4590_v59  ;;  %v4551_v22 = vpop.f32.mrb[42].mxu0  ;;  %v4592_v37 = vpop.f32.mrb[42].mxu1  ;;  %v11236_v62 = vld [vmem:[#allocation211_spill] sm:$0xff] }
 0x823   :  { %v4552_v12 = vpop.f32.mrb[43].mxu0  ;;  %v4593_v33 = vpop.f32.mrb[43].mxu1  ;;  %v1450_v54 = vmul.f32 %v11236_v62, %v1355_v25  ;;  %v11237_v22 = vld [vmem:[#allocation212_spill] sm:$0xff]  ;;  %v11238_v37 = vld [vmem:[#allocation217_spill] sm:$0xff] }
 0x824   :  { %v9420_v23 = vrot.slane %v4685_v50, %v8189_v4  ;;  %v9423_v45 = vrot.slane %v4686_v21, %v8189_v4  ;;  %v1451_v59 = vmul.f32 %v11237_v22, %v1355_v25  ;;  %v1560_v12 = vpop.permute.xlu1 %1559  ;;  %v11239_v50 = vld [vmem:[#allocation218_spill] sm:$0xff]  ;;  %v1763_v62 = vpop.permute.xlu0 %1762 }
 0x825   :  { %v1651_v33 = vmul.f32 %v11238_v37, %v1560_v12  ;;  %v1652_v35 = vmul.f32 %v11239_v50, %v1560_v12  ;;  %v1653_v21 = vmul.f32 %v11240_v49, %v1560_v12  ;;  %v1654_v48 = vmul.f32 %v11241_v56, %v1560_v12 }
 0x826   :  { %v1514_v19 = vadd.f32 %v1450_v54, %v11244_v16  ;;  %v1515_v40 = vadd.f32 %v1451_v59, %v11245_v9  ;;  %v1854_v50 = vmul.f32 %v11246_v29, %v1763_v62  ;;  %v1855_v49 = vmul.f32 %v11247_v20, %v1763_v62  ;;  %v11252_v16 = vld [vmem:[#allocation231_spill] sm:$0xff]  ;;  %v11253_v9 = vld [vmem:[#allocation232_spill] sm:$0xff] }
 0x827   :  { %v1715_v30 = vadd.f32 %v1651_v33, %v1512_v58  ;;  %v1716_v22 = vadd.f32 %v1652_v35, %v1513_v42  ;;  %v1856_v56 = vmul.f32 %v11248_v2, %v1763_v62  ;;  %v1857_v0 = vmul.f32 %v11249_v43, %v1763_v62 }
 0x828   :  { %v1717_v41 = vadd.f32 %v1653_v21, %v1514_v19  ;;  %v1718_v31 = vadd.f32 %v1654_v48, %v1515_v40  ;;  %v1966_v37 = vpop.permute.xlu1 %1965  ;;  %v1452_v2 = vmul.f32 %v10821_v27, %v1355_v25  ;;  %v1453_v43 = vmul.f32 %v10822_v5, %v1355_v25 }
 0x829   :  { %v2057_v1 = vmul.f32 %v11250_v61, %v1966_v37  ;;  %v2058_v54 = vmul.f32 %v11251_v34, %v1966_v37  ;;  %v2059_v59 = vmul.f32 %v11252_v16, %v1966_v37  ;;  %v2060_v58 = vmul.f32 %v11253_v9, %v1966_v37 }
 0x82a   :  { %v1918_v42 = vadd.f32 %v1854_v50, %v1715_v30  ;;  %v1919_v19 = vadd.f32 %v1855_v49, %v1716_v22  ;;  %v1920_v40 = vadd.f32 %v1856_v56, %v1717_v41  ;;  %v1921_v48 = vadd.f32 %v1857_v0, %v1718_v31 }
 0x82b   :  { %v1454_v61 = vmul.f32 %v10823_v60, %v1355_v25  ;;  %v1455_v34 = vmul.f32 %v8354_v8, %v1355_v25  ;;  %v1655_v9 = vmul.f32 %v10682_v32, %v1560_v12  ;;  %v1656_v30 = vmul.f32 %v8368_v53, %v1560_v12 }
 0x82c   :  { %v2121_v33 = vadd.f32 %v2057_v1, %v1918_v42  ;;  %v2122_v35 = vadd.f32 %v2058_v54, %v1919_v19  ;;  %v2123_v21 = vadd.f32 %v2059_v59, %v1920_v40  ;;  %v2124_v20 = vadd.f32 %v2060_v58, %v1921_v48  ;;  %v1274_v1 = vld [vmem:[%s9934_s0 + $0xc] sm:$0x3] }
 0x82d   :  { %v1657_v31 = vmul.f32 %v10683_v15, %v1560_v12  ;;  %v1516_v41 = vadd.f32 %v1452_v2, %v8386_v10  ;;  %v1658_v56 = vmul.f32 %v10684_v17, %v1560_v12  ;;  %v1517_v49 = vadd.f32 %v1453_v43, %v8390_v52  ;;  %1359 = vperm.xlu1 %6138, %v1274_v1  }
 0x82e   :  { %v2379_v29 = vcombine.low %v2121_v33, %v2122_v35  ;;  %v2380_v16 = vcombine.low %v2123_v21, %v2124_v20  ;;  %v1518_v22 = vadd.f32 %v1454_v61, %v8394_v24  ;;  %v1519_v50 = vadd.f32 %v1455_v34, %v10685_v63  ;;  %1563 = vperm.xlu0 %6139, %v1274_v1  }
 0x82f   :  { %v1719_v0 = vadd.f32 %v1655_v9, %v1516_v41  ;;  %v1720_v54 = vadd.f32 %v1656_v30, %v1517_v49  ;;  %v1858_v43 = vmul.f32 %v8414_v6, %v1763_v62  ;;  %v1859_v61 = vmul.f32 %v10824_v28, %v1763_v62 }
 0x830   :  { %v2387_v25 = vrot.slane %v2379_v29, %v8189_v4  ;;  %v2394_v20 = vrot.slane %v2380_v16, %v8189_v4  ;;  %v1721_v59 = vadd.f32 %v1657_v31, %v1518_v22  ;;  %v1722_v2 = vadd.f32 %v1658_v56, %v1519_v50 }
 0x831   :  { %v1860_v34 = vmul.f32 %v10825_v55, %v1763_v62  ;;  %v1861_v29 = vmul.f32 %v8426_v57, %v1763_v62  ;;  %v2061_v9 = vmul.f32 %v8440_v26, %v1966_v37  ;;  %v2062_v16 = vmul.f32 %v10687_v51, %v1966_v37 }
 0x832   :  { %v2395_v12 = vcombine.low %v2387_v25, %v2394_v20  ;;  %v2063_v58 = vmul.f32 %v10688_v11, %v1966_v37  ;;  %v2064_v42 = vmul.f32 %v10826_v14, %v1966_v37  ;;  %v11254_v19 = vmov 2   ;;  %6142 = vset.pattern.permute.xlu0 %v10692_v13 }
 0x833   :  { %6140 = vset.pattern.permute.xlu1 %v11254_v19  ;;  %v1922_v40 = vadd.f32 %v1858_v43, %v1719_v0  ;;  %v1923_v48 = vadd.f32 %v1859_v61, %v1720_v54  ;;  %v1924_v33 = vadd.f32 %v1860_v34, %v1721_v59  ;;  %v1925_v35 = vadd.f32 %v1861_v29, %v1722_v2 }
 0x834   :  { %1766 = vperm.xlu1 %6140, %v1274_v1   ;;  %v11255_v62 = vcombine.low %v9420_v23, %v9423_v45 }
 0x835   :  { %v2125_v30 = vadd.f32 %v2061_v9, %v1922_v40  ;;  %v2126_v31 = vadd.f32 %v2062_v16, %v1923_v48  ;;  %v2127_v41 = vadd.f32 %v2063_v58, %v1924_v33  ;;  %v2128_v56 = vadd.f32 %v2064_v42, %v1925_v35 }
 0x836   :  { %v4721_v21 = vadd.f32 %v11255_v62, %v2395_v12 }
 0x837   :  { %v2396_v49 = vcombine.low %v2125_v30, %v2126_v31  ;;  %v2397_v22 = vcombine.low %v2127_v41, %v2128_v56 }
 0x838   :  { %6141 = vset.pattern.permute.xlu1 %v10691_v7  ;;  %v4723_v37 = vmul.f32 0.5, %v4721_v21 }
 0x839   :  { %1969 = vperm.xlu1 %6141, %v1274_v1   ;;  %v2404_v45 = vrot.slane %v2396_v49, %v8189_v4  ;;  %v2411_v23 = vrot.slane %v2397_v22, %v8189_v4 }
 0x83a   :  { %6186 = vtanh.f32 %v4723_v37 }
 0x83b   :  { %v2412_v29 = vcombine.low %v2404_v45, %v2411_v23  ;;  %v11260_v45 = vld [vmem:[#allocation153_spill] sm:$0xff]  ;;  %v11261_v23 = vld [vmem:[#allocation154_spill] sm:$0xff] }
 0x83d   :  { %6143 = vset.pattern.permute.xlu1 %v11111_v38 }
 0x844   :  { %v6187_v9 = vpop.eup %6186 }
 0x845   :  { %v4727_v58 = vadd.f32 1.0, %v6187_v9  ;;  %v11272_v9 = vld [vmem:[#allocation165_spill] sm:$0xff] }
 0x847   :  { %v4729_v42 = vmul.f32 0.5, %v4727_v58  ;;  %v11274_v58 = vld [vmem:[#allocation167_spill] sm:$0xff] }
 0x849   :  { %v4736_v48 = vrot.slane %v4729_v42, 4 }
 0x84b   :  { %v4738_v35 = vmul.f32 %v4736_v48, %v9281_v36  ;;  %v11256_v36 = vld [vmem:[#allocation149_spill] sm:$0xff]  ;;  %v11277_v48 = vld [vmem:[#allocation170_spill] sm:$0xff] }
 0x860   :  { %v4629_v13 = vpop.f32.mrb[44].mxu0  ;;  %v4670_v50 = vpop.f32.mrb[44].mxu1 }
 0x861   :  { %v4631_v25 = vpop.f32.mrb[45].mxu0  ;;  %v4672_v20 = vpop.f32.mrb[45].mxu1 }
 0x862   :  { %v4702_v0 = vcombine.low %v4629_v13, %v4631_v25  ;;  %v4703_v54 = vcombine.low %v4670_v50, %v4672_v20  ;;  %v4633_v59 = vpop.f32.mrb[46].mxu0  ;;  %v4674_v2 = vpop.f32.mrb[46].mxu1  ;;  %v11257_v25 = vld [vmem:[#allocation150_spill] sm:$0xff]  ;;  %v11258_v20 = vld [vmem:[#allocation151_spill] sm:$0xff] }
 0x863   :  { %v4634_v43 = vpop.f32.mrb[47].mxu0  ;;  %v4675_v61 = vpop.f32.mrb[47].mxu1  ;;  %v11263_v59 = vld [vmem:[#allocation156_spill] sm:$0xff]  ;;  %v11264_v2 = vld [vmem:[#allocation157_spill] sm:$0xff] }
 0x864   :  { %v4710_v1 = vrot.slane %v4702_v0, %v8189_v4  ;;  %v4717_v34 = vrot.slane %v4703_v54, %v8189_v4  ;;  %v11259_v0 = vld [vmem:[#allocation152_spill] sm:$0xff]  ;;  %v11262_v54 = vld [vmem:[#allocation155_spill] sm:$0xff]  ;;  %v11265_v43 = vld [vmem:[#allocation158_spill] sm:$0xff] }
 0x865   :  { %v11266_v61 = vld [vmem:[#allocation159_spill] sm:$0xff] }
 0x866   :  { %v4718_v38 = vcombine.low %v4710_v1, %v4717_v34  ;;  %v11267_v1 = vld [vmem:[#allocation160_spill] sm:$0xff]  ;;  %v11268_v34 = vld [vmem:[#allocation161_spill] sm:$0xff] }
 0x868   :  { %v4722_v12 = vadd.f32 %v4718_v38, %v2412_v29  ;;  %v11269_v29 = vld [vmem:[#allocation162_spill] sm:$0xff]  ;;  %v11270_v38 = vld [vmem:[#allocation163_spill] sm:$0xff] }
 0x86a   :  { %v4732_v16 = vrot.slane %v4722_v12, 4  ;;  %v4724_v40 = vmul.f32 0.5, %v4722_v12  ;;  %v11271_v12 = vld [vmem:[#allocation164_spill] sm:$0xff] }
 0x86c   :  { %6188 = vtanh.f32 %v4732_v16  ;;  %v11273_v16 = vld [vmem:[#allocation166_spill] sm:$0xff] }
 0x86d   :  { %6190 = vtanh.f32 %v4724_v40  ;;  %v11276_v40 = vld [vmem:[#allocation169_spill] sm:$0xff] }
 0x876   :  { %v6189_v33 = vpop.eup %6188 }
 0x877   :  { %v4739_v62 = vmul.f32 %v6189_v33, %v4729_v42  ;;  %v6191_v30 = vpop.eup %6190  ;;  %v11275_v42 = vld [vmem:[#allocation168_spill] sm:$0xff]  ;;  %v11278_v33 = vld [vmem:[#allocation171_spill] sm:$0xff] }
 0x878   :  { %v4728_v31 = vadd.f32 1.0, %v6191_v30  ;;  %v11281_v30 = vld [vmem:[#allocation174_spill] sm:$0xff] }
 0x879   :  { %v9484_v21 = vadd.f32 %v4739_v62, %v4738_v35  ;;  %v11279_v35 = vld [vmem:[#allocation172_spill] sm:$0xff]  ;;  %v11280_v62 = vld [vmem:[#allocation173_spill] sm:$0xff] }
 0x87a   :  { %v4730_v41 = vmul.f32 0.5, %v4728_v31  ;;  %v11282_v31 = vld [vmem:[#allocation175_spill] sm:$0xff] }
 0x87b   :  { %6192 = vtanh.f32 %v9484_v21 }
 0x885   :  { %v6193_v56 = vpop.eup %6192 }
 0x886   :  { %v4742_v37 = vmul.f32 %v6193_v56, %v4730_v41  ;;  %v11283_v41 = vld [vmem:[#allocation176_spill] sm:$0xff]  ;;  %v11284_v56 = vld [vmem:[#allocation177_spill] sm:$0xff] }
 0x888   :  { %v4753_v49 = vrot.slane %v4742_v37, %v8189_v4  ;;  %v11285_v37 = vld [vmem:[#allocation178_spill] sm:$0xff] }
 0x88a   :  { %v4754_v22 = vcombine.high %v4753_v49, %v4753_v49  ;;  %v9488_v50 = vpack.c.bf16 %v4753_v49, %v4753_v49  ;;  %v11286_v49 = vld [vmem:[#allocation179_spill] sm:$0xff] }
 0x88c   :  { %v4758_v13 = vpack.c.bf16 %v4754_v22, %v4754_v22  ;;  %v11287_v22 = vld [vmem:[#allocation180_spill] sm:$0xff] }
 0x88e   :  { %4791 = vmatprep.mubr.bf16.mxu0 %v4758_v13  ;;  %4832 = vmatprep.mubr.bf16.mxu1 %v4758_v13 }
 0x88f   :  { %4792 = vmatmul.mubr.bf16.vlgmr.msra.gmra.mrb[48].mxu0 %v9488_v50  ;;  %4833 = vmatmul.mubr.bf16.vlgmr.msra.gmra.mrb[48].mxu1 %v9488_v50 }
 0x890   :  { %4842 = vmatpush1.bf16.msra.mxu0 %v10556_v46  ;;  %4883 = vmatpush1.bf16.msra.mxu1 %v10557_v3 }
 0x891   :  { %4873 = vmatprep.mubr.bf16.mxu0 %v4758_v13  ;;  %4914 = vmatprep.mubr.bf16.mxu1 %v4758_v13  ;;  %v11288_v13 = vld [vmem:[#allocation181_spill] sm:$0xff] }
 0x892   :  { %4843 = vmatprep.subr.bf16.mxu0 %v10558_v18  ;;  %4884 = vmatprep.subr.bf16.mxu1 %v10559_v39 }
 0x894   :  { %4844 = vmatpush1.bf16.msra.mxu0 %v10560_v47  ;;  %4885 = vmatpush1.bf16.msra.mxu1 %v10969_v44 }
 0x895   :  { %4845 = vmatprep.subr.bf16.mxu0 %v11256_v36  ;;  %4886 = vmatprep.subr.bf16.mxu1 %v11257_v25 }
 0x898   :  { %4846 = vmatpush1.bf16.msra.mxu0 %v11258_v20  ;;  %4887 = vmatpush1.bf16.msra.mxu1 %v11259_v0 }
 0x899   :  { %4847 = vmatprep.subr.bf16.mxu0 %v11260_v45  ;;  %4888 = vmatprep.subr.bf16.mxu1 %v11261_v23 }
 0x89c   :  { %4848 = vmatpush1.bf16.msra.mxu0 %v11262_v54  ;;  %4889 = vmatpush1.bf16.msra.mxu1 %v11263_v59 }
 0x89d   :  { %4849 = vmatprep.subr.bf16.mxu0 %v11264_v2  ;;  %4890 = vmatprep.subr.bf16.mxu1 %v11265_v43  ;;  %v11388_v43 = vld [vmem:[#allocation215_spill] sm:$0xff]  ;;  %v11389_v2 = vld [vmem:[#allocation216_spill] sm:$0xff] }
 0x8a0   :  { %4850 = vmatpush1.bf16.msra.mxu0 %v11266_v61  ;;  %4891 = vmatpush1.bf16.msra.mxu1 %v11267_v1  ;;  %v11387_v61 = vld [vmem:[#allocation214_spill] sm:$0xff] }
 0x8a1   :  { %4851 = vmatprep.subr.bf16.mxu0 %v11268_v34  ;;  %4892 = vmatprep.subr.bf16.mxu1 %v11269_v29  ;;  %v11385_v29 = vld [vmem:[#allocation220_spill] sm:$0xff] }
 0x8a4   :  { %4852 = vmatpush1.bf16.msra.mxu0 %v11270_v38  ;;  %4893 = vmatpush1.bf16.msra.mxu1 %v11271_v12 }
 0x8a5   :  { %4853 = vmatprep.subr.bf16.mxu0 %v11272_v9  ;;  %4894 = vmatprep.subr.bf16.mxu1 %v11273_v16  ;;  %v11379_v16 = vld [vmem:[#allocation210_spill] sm:$0xff] }
 0x8a8   :  { %4854 = vmatpush1.bf16.msra.mxu0 %v11274_v58  ;;  %4895 = vmatpush1.bf16.msra.mxu1 %v11275_v42 }
 0x8a9   :  { %4855 = vmatprep.subr.bf16.mxu0 %v11276_v40  ;;  %4896 = vmatprep.subr.bf16.mxu1 %v11277_v48 }
 0x8ac   :  { %4856 = vmatpush1.bf16.msra.mxu0 %v11278_v33  ;;  %4897 = vmatpush1.bf16.msra.mxu1 %v11279_v35  ;;  %v11289_v33 = vld [vmem:[#allocation182_spill] sm:$0xff]  ;;  %v11290_v35 = vld [vmem:[#allocation183_spill] sm:$0xff] }
 0x8ad   :  { %4857 = vmatprep.subr.bf16.mxu0 %v11280_v62  ;;  %4898 = vmatprep.subr.bf16.mxu1 %v11281_v30  ;;  %v11291_v62 = vld [vmem:[#allocation184_spill] sm:$0xff]  ;;  %v11292_v30 = vld [vmem:[#allocation185_spill] sm:$0xff] }
 0x8b0   :  { %4858 = vmatpush1.bf16.msra.mxu0 %v11282_v31  ;;  %4899 = vmatpush1.bf16.msra.mxu1 %v11283_v41  ;;  %v11293_v31 = vld [vmem:[#allocation186_spill] sm:$0xff]  ;;  %v11294_v41 = vld [vmem:[#allocation187_spill] sm:$0xff] }
 0x8b1   :  { %4859 = vmatprep.subr.bf16.mxu0 %v11284_v56  ;;  %4900 = vmatprep.subr.bf16.mxu1 %v11285_v37  ;;  %v11295_v56 = vld [vmem:[#allocation188_spill] sm:$0xff]  ;;  %v11296_v37 = vld [vmem:[#allocation189_spill] sm:$0xff] }
 0x8b4   :  { %4860 = vmatpush1.bf16.msra.mxu0 %v11286_v49  ;;  %4901 = vmatpush1.bf16.msra.mxu1 %v11287_v22  ;;  %v11297_v49 = vld [vmem:[#allocation190_spill] sm:$0xff]  ;;  %v11298_v22 = vld [vmem:[#allocation191_spill] sm:$0xff] }
 0x8b5   :  { %4861 = vmatprep.subr.bf16.mxu0 %v11288_v13  ;;  %4902 = vmatprep.subr.bf16.mxu1 %v11289_v33  ;;  %v11299_v13 = vld [vmem:[#allocation192_spill] sm:$0xff]  ;;  %v11300_v33 = vld [vmem:[#allocation193_spill] sm:$0xff] }
 0x8b8   :  { %4862 = vmatpush1.bf16.msra.mxu0 %v11290_v35  ;;  %4903 = vmatpush1.bf16.msra.mxu1 %v11291_v62  ;;  %v11301_v35 = vld [vmem:[#allocation194_spill] sm:$0xff]  ;;  %v11302_v62 = vld [vmem:[#allocation195_spill] sm:$0xff] }
 0x8b9   :  { %4863 = vmatprep.subr.bf16.mxu0 %v11292_v30  ;;  %4904 = vmatprep.subr.bf16.mxu1 %v11293_v31  ;;  %v11303_v30 = vld [vmem:[#allocation196_spill] sm:$0xff]  ;;  %v11304_v31 = vld [vmem:[#allocation197_spill] sm:$0xff] }
 0x8bc   :  { %4864 = vmatpush1.bf16.msra.mxu0 %v11294_v41  ;;  %4905 = vmatpush1.bf16.msra.mxu1 %v11295_v56  ;;  %v11305_v41 = vld [vmem:[#allocation198_spill] sm:$0xff]  ;;  %v11306_v56 = vld [vmem:[#allocation199_spill] sm:$0xff] }
 0x8bd   :  { %4865 = vmatprep.subr.bf16.mxu0 %v11296_v37  ;;  %4906 = vmatprep.subr.bf16.mxu1 %v11297_v49  ;;  %v11307_v37 = vld [vmem:[#allocation200_spill] sm:$0xff]  ;;  %v11308_v49 = vld [vmem:[#allocation201_spill] sm:$0xff] }
 0x8c0   :  { %4866 = vmatpush1.bf16.msra.mxu0 %v11298_v22  ;;  %4907 = vmatpush1.bf16.msra.mxu1 %v11299_v13  ;;  %v11309_v22 = vld [vmem:[#allocation202_spill] sm:$0xff]  ;;  %v11310_v13 = vld [vmem:[#allocation203_spill] sm:$0xff] }
 0x8c1   :  { %4867 = vmatprep.subr.bf16.mxu0 %v11300_v33  ;;  %4908 = vmatprep.subr.bf16.mxu1 %v11301_v35  ;;  %v11311_v33 = vld [vmem:[#allocation204_spill] sm:$0xff]  ;;  %v11312_v35 = vld [vmem:[#allocation77_spill] sm:$0xff] }
 0x8c4   :  { %4868 = vmatpush1.bf16.msra.mxu0 %v11302_v62  ;;  %4909 = vmatpush1.bf16.msra.mxu1 %v11303_v30  ;;  %v11313_v62 = vld [vmem:[#allocation79_spill] sm:$0xff] }
 0x8c5   :  { %4869 = vmatprep.subr.bf16.mxu0 %v11304_v31  ;;  %4910 = vmatprep.subr.bf16.mxu1 %v11305_v41  ;;  %v11314_v41 = vld [vmem:[#allocation78_spill] sm:$0xff]  ;;  %v11323_v31 = vld [vmem:[#allocation88_spill] sm:$0xff] }
 0x8c8   :  { %4870 = vmatpush1.bf16.msra.mxu0 %v11306_v56  ;;  %4911 = vmatpush1.bf16.msra.mxu1 %v11307_v37  ;;  %v11315_v56 = vld [vmem:[#allocation80_spill] sm:$0xff]  ;;  %v11316_v37 = vld [vmem:[#allocation81_spill] sm:$0xff] }
 0x8c9   :  { %4871 = vmatprep.subr.bf16.mxu0 %v11308_v49  ;;  %4912 = vmatprep.subr.bf16.mxu1 %v11309_v22  ;;  %v11317_v49 = vld [vmem:[#allocation82_spill] sm:$0xff]  ;;  %v11318_v22 = vld [vmem:[#allocation83_spill] sm:$0xff] }
 0x8cc   :  { %4872 = vmatpush1.bf16.msra.mxu0 %v11310_v13  ;;  %4913 = vmatpush1.bf16.msra.mxu1 %v11311_v33  ;;  %v11319_v13 = vld [vmem:[#allocation84_spill] sm:$0xff]  ;;  %v11320_v33 = vld [vmem:[#allocation85_spill] sm:$0xff] }
 0x8cd   :  { %5005 = vmatprep.subr.bf16.mxu0 %v11312_v35  ;;  %5046 = vmatprep.subr.bf16.mxu1 %v11313_v62  ;;  %v11321_v35 = vld [vmem:[#allocation86_spill] sm:$0xff]  ;;  %v11322_v62 = vld [vmem:[#allocation87_spill] sm:$0xff] }
 0x8cf   :  { %4874 = vmatmul.mubr.bf16.vlgmr.msra.gmra.mrb[52].mxu0 %v9488_v50  ;;  %4915 = vmatmul.mubr.bf16.vlgmr.msra.gmra.mrb[52].mxu1 %v9488_v50  ;;  %v11324_v50 = vld [vmem:[#allocation89_spill] sm:$0xff] }
 0x8d0   :  { %5006 = vmatpush1.bf16.msra.mxu0 %v11314_v41  ;;  %5047 = vmatpush1.bf16.msra.mxu1 %v11315_v56  ;;  %v11325_v41 = vld [vmem:[#allocation90_spill] sm:$0xff]  ;;  %v11326_v56 = vld [vmem:[#allocation91_spill] sm:$0xff] }
 0x8d1   :  { %5007 = vmatprep.subr.bf16.mxu0 %v11316_v37  ;;  %5048 = vmatprep.subr.bf16.mxu1 %v11317_v49  ;;  %v11327_v37 = vld [vmem:[#allocation92_spill] sm:$0xff]  ;;  %v11328_v49 = vld [vmem:[#allocation93_spill] sm:$0xff] }
 0x8d4   :  { %5008 = vmatpush1.bf16.msra.mxu0 %v11318_v22  ;;  %5049 = vmatpush1.bf16.msra.mxu1 %v11319_v13  ;;  %v11329_v22 = vld [vmem:[#allocation94_spill] sm:$0xff]  ;;  %v11330_v13 = vld [vmem:[#allocation95_spill] sm:$0xff] }
 0x8d5   :  { %5009 = vmatprep.subr.bf16.mxu0 %v11320_v33  ;;  %5050 = vmatprep.subr.bf16.mxu1 %v11321_v35  ;;  %v11331_v33 = vld [vmem:[#allocation96_spill] sm:$0xff]  ;;  %v11332_v35 = vld [vmem:[#allocation97_spill] sm:$0xff] }
 0x8d8   :  { %5010 = vmatpush1.bf16.msra.mxu0 %v11322_v62  ;;  %5051 = vmatpush1.bf16.msra.mxu1 %v11323_v31  ;;  %v11333_v62 = vld [vmem:[#allocation98_spill] sm:$0xff]  ;;  %v11334_v31 = vld [vmem:[#allocation99_spill] sm:$0xff] }
 0x8d9   :  { %5011 = vmatprep.subr.bf16.mxu0 %v11324_v50  ;;  %5052 = vmatprep.subr.bf16.mxu1 %v11325_v41  ;;  %v11335_v50 = vld [vmem:[#allocation100_spill] sm:$0xff]  ;;  %v11336_v41 = vld [vmem:[#allocation101_spill] sm:$0xff] }
 0x8dc   :  { %5012 = vmatpush1.bf16.msra.mxu0 %v11326_v56  ;;  %5053 = vmatpush1.bf16.msra.mxu1 %v11327_v37  ;;  %v11337_v56 = vld [vmem:[#allocation102_spill] sm:$0xff]  ;;  %v11338_v37 = vld [vmem:[#allocation103_spill] sm:$0xff] }
 0x8dd   :  { %5013 = vmatprep.subr.bf16.mxu0 %v11328_v49  ;;  %5054 = vmatprep.subr.bf16.mxu1 %v11329_v22  ;;  %v11339_v49 = vld [vmem:[#allocation104_spill] sm:$0xff]  ;;  %v11340_v22 = vld [vmem:[#allocation105_spill] sm:$0xff] }
 0x8e0   :  { %5014 = vmatpush1.bf16.msra.mxu0 %v11330_v13  ;;  %5055 = vmatpush1.bf16.msra.mxu1 %v11331_v33  ;;  %v11341_v13 = vld [vmem:[#allocation106_spill] sm:$0xff]  ;;  %v11342_v33 = vld [vmem:[#allocation107_spill] sm:$0xff] }
 0x8e1   :  { %5015 = vmatprep.subr.bf16.mxu0 %v11332_v35  ;;  %5056 = vmatprep.subr.bf16.mxu1 %v11333_v62  ;;  %v11343_v35 = vld [vmem:[#allocation108_spill] sm:$0xff]  ;;  %v11344_v62 = vld [vmem:[#allocation109_spill] sm:$0xff] }
 0x8e4   :  { %5016 = vmatpush1.bf16.msra.mxu0 %v11334_v31  ;;  %5057 = vmatpush1.bf16.msra.mxu1 %v11335_v50  ;;  %v11345_v31 = vld [vmem:[#allocation110_spill] sm:$0xff]  ;;  %v11346_v50 = vld [vmem:[#allocation111_spill] sm:$0xff] }
 0x8e5   :  { %5017 = vmatprep.subr.bf16.mxu0 %v11336_v41  ;;  %5058 = vmatprep.subr.bf16.mxu1 %v11337_v56  ;;  %v11347_v41 = vld [vmem:[#allocation112_spill] sm:$0xff]  ;;  %v11348_v56 = vld [vmem:[#allocation113_spill] sm:$0xff] }
 0x8e8   :  { %5018 = vmatpush1.bf16.msra.mxu0 %v11338_v37  ;;  %5059 = vmatpush1.bf16.msra.mxu1 %v11339_v49  ;;  %v11349_v37 = vld [vmem:[#allocation114_spill] sm:$0xff]  ;;  %v11350_v49 = vld [vmem:[#allocation115_spill] sm:$0xff] }
 0x8e9   :  { %5019 = vmatprep.subr.bf16.mxu0 %v11340_v22  ;;  %5060 = vmatprep.subr.bf16.mxu1 %v11341_v13  ;;  %v11351_v22 = vld [vmem:[#allocation116_spill] sm:$0xff]  ;;  %v11352_v13 = vld [vmem:[#allocation117_spill] sm:$0xff] }
 0x8ec   :  { %5020 = vmatpush1.bf16.msra.mxu0 %v11342_v33  ;;  %5061 = vmatpush1.bf16.msra.mxu1 %v11343_v35  ;;  %v11353_v33 = vld [vmem:[#allocation118_spill] sm:$0xff]  ;;  %v11354_v35 = vld [vmem:[#allocation119_spill] sm:$0xff] }
 0x8ed   :  { %5021 = vmatprep.subr.bf16.mxu0 %v11344_v62  ;;  %5062 = vmatprep.subr.bf16.mxu1 %v11345_v31  ;;  %v11355_v62 = vld [vmem:[#allocation120_spill] sm:$0xff]  ;;  %v11356_v31 = vld [vmem:[#allocation121_spill] sm:$0xff] }
 0x8f0   :  { %5022 = vmatpush1.bf16.msra.mxu0 %v11346_v50  ;;  %5063 = vmatpush1.bf16.msra.mxu1 %v11347_v41  ;;  %v11357_v50 = vld [vmem:[#allocation122_spill] sm:$0xff]  ;;  %v11358_v41 = vld [vmem:[#allocation123_spill] sm:$0xff] }
 0x8f1   :  { %5023 = vmatprep.subr.bf16.mxu0 %v11348_v56  ;;  %5064 = vmatprep.subr.bf16.mxu1 %v11349_v37  ;;  %v11359_v56 = vld [vmem:[#allocation124_spill] sm:$0xff]  ;;  %v11360_v37 = vld [vmem:[#allocation125_spill] sm:$0xff] }
 0x8f4   :  { %5024 = vmatpush1.bf16.msra.mxu0 %v11350_v49  ;;  %5065 = vmatpush1.bf16.msra.mxu1 %v11351_v22  ;;  %v11361_v49 = vld [vmem:[#allocation126_spill] sm:$0xff]  ;;  %v11362_v22 = vld [vmem:[#allocation127_spill] sm:$0xff] }
 0x8f5   :  { %5025 = vmatprep.subr.bf16.mxu0 %v11352_v13  ;;  %5066 = vmatprep.subr.bf16.mxu1 %v11353_v33  ;;  %v11363_v13 = vld [vmem:[#allocation128_spill] sm:$0xff]  ;;  %v11364_v33 = vld [vmem:[#allocation129_spill] sm:$0xff] }
 0x8f8   :  { %5026 = vmatpush1.bf16.msra.mxu0 %v11354_v35  ;;  %5067 = vmatpush1.bf16.msra.mxu1 %v11355_v62  ;;  %v11365_v35 = vld [vmem:[#allocation130_spill] sm:$0xff]  ;;  %v11366_v62 = vld [vmem:[#allocation131_spill] sm:$0xff] }
 0x8f9   :  { %5027 = vmatprep.subr.bf16.mxu0 %v11356_v31  ;;  %5068 = vmatprep.subr.bf16.mxu1 %v11357_v50  ;;  %v11367_v31 = vld [vmem:[#allocation132_spill] sm:$0xff]  ;;  %v11368_v50 = vld [vmem:[#allocation133_spill] sm:$0xff] }
 0x8fc   :  { %5028 = vmatpush1.bf16.msra.mxu0 %v11358_v41  ;;  %5069 = vmatpush1.bf16.msra.mxu1 %v11359_v56  ;;  %v11369_v41 = vld [vmem:[#allocation134_spill] sm:$0xff]  ;;  %v11370_v56 = vld [vmem:[#allocation135_spill] sm:$0xff] }
 0x8fd   :  { %5029 = vmatprep.subr.bf16.mxu0 %v11360_v37  ;;  %5070 = vmatprep.subr.bf16.mxu1 %v11361_v49  ;;  %v11371_v37 = vld [vmem:[#allocation136_spill] sm:$0xff]  ;;  %v11372_v49 = vld [vmem:[#allocation137_spill] sm:$0xff] }
 0x900   :  { %5030 = vmatpush1.bf16.msra.mxu0 %v11362_v22  ;;  %5071 = vmatpush1.bf16.msra.mxu1 %v11363_v13  ;;  %v11373_v22 = vld [vmem:[#allocation138_spill] sm:$0xff]  ;;  %v11374_v13 = vld [vmem:[#allocation139_spill] sm:$0xff] }
 0x901   :  { %5031 = vmatprep.subr.bf16.mxu0 %v11364_v33  ;;  %5072 = vmatprep.subr.bf16.mxu1 %v11365_v35  ;;  %v11375_v33 = vld [vmem:[#allocation140_spill] sm:$0xff]  ;;  %v11376_v35 = vld [vmem:[#allocation141_spill] sm:$0xff] }
 0x904   :  { %5032 = vmatpush1.bf16.msra.mxu0 %v11366_v62  ;;  %5073 = vmatpush1.bf16.msra.mxu1 %v11367_v31  ;;  %v11377_v62 = vld [vmem:[#allocation142_spill] sm:$0xff] }
 0x905   :  { %5033 = vmatprep.subr.bf16.mxu0 %v11368_v50  ;;  %5074 = vmatprep.subr.bf16.mxu1 %v11369_v41 }
 0x908   :  { %5034 = vmatpush1.bf16.msra.mxu0 %v11370_v56  ;;  %5075 = vmatpush1.bf16.msra.mxu1 %v11371_v37 }
 0x909   :  { %5035 = vmatprep.subr.bf16.mxu0 %v11372_v49  ;;  %5076 = vmatprep.subr.bf16.mxu1 %v11373_v22 }
 0x90c   :  { %5036 = vmatpush1.bf16.msra.mxu0 %v11374_v13  ;;  %5077 = vmatpush1.bf16.msra.mxu1 %v11375_v33  ;;  %v11386_v33 = vld [vmem:[#allocation213_spill] sm:$0xff] }
 0x90d   :  { %5087 = vmatprep.subr.bf16.mxu0 %v11376_v35  ;;  %5128 = vmatprep.subr.bf16.mxu1 %v11377_v62  ;;  %v1360_v35 = vpop.permute.xlu1 %1359  ;;  %v11378_v62 = vld [vmem:[#allocation209_spill] sm:$0xff] }
 0x90e   :  { %v1456_v58 = vmul.f32 %v11378_v62, %v1360_v35  ;;  %v1457_v9 = vmul.f32 %v11379_v16, %v1360_v35 }
 0x910   :  { %v1520_v1 = vadd.f32 %v1456_v58, %v11386_v33  ;;  %v1521_v62 = vadd.f32 %v1457_v9, %v11387_v61  ;;  %v11394_v58 = vld [vmem:[#allocation229_spill] sm:$0xff]  ;;  %v11395_v9 = vld [vmem:[#allocation230_spill] sm:$0xff] }
 0x962   :  { %v4793_v31 = vpop.f32.mrb[48].mxu0  ;;  %v4834_v50 = vpop.f32.mrb[48].mxu1 }
 0x963   :  { %v4795_v30 = vpop.f32.mrb[49].mxu0  ;;  %v4836_v41 = vpop.f32.mrb[49].mxu1 }
 0x964   :  { %v4931_v48 = vcombine.low %v4793_v31, %v4795_v30  ;;  %v4932_v56 = vcombine.low %v4834_v50, %v4836_v41  ;;  %v4797_v40 = vpop.f32.mrb[50].mxu0  ;;  %v4838_v37 = vpop.f32.mrb[50].mxu1  ;;  %v11380_v30 = vld [vmem:[#allocation211_spill] sm:$0xff] }
 0x965   :  { %v4798_v42 = vpop.f32.mrb[51].mxu0  ;;  %v4839_v49 = vpop.f32.mrb[51].mxu1  ;;  %v1458_v31 = vmul.f32 %v11380_v30, %v1360_v35  ;;  %v11381_v40 = vld [vmem:[#allocation212_spill] sm:$0xff]  ;;  %v11382_v37 = vld [vmem:[#allocation217_spill] sm:$0xff] }
 0x966   :  { %v9623_v22 = vrot.slane %v4931_v48, %v8189_v4  ;;  %v9626_v13 = vrot.slane %v4932_v56, %v8189_v4  ;;  %v1459_v50 = vmul.f32 %v11381_v40, %v1360_v35  ;;  %v1564_v42 = vpop.permute.xlu0 %1563  ;;  %v1767_v41 = vpop.permute.xlu1 %1766  ;;  %v11383_v49 = vld [vmem:[#allocation218_spill] sm:$0xff]  ;;  %v11384_v56 = vld [vmem:[#allocation219_spill] sm:$0xff] }
 0x967   :  { %v1659_v48 = vmul.f32 %v11382_v37, %v1564_v42  ;;  %v1660_v12 = vmul.f32 %v11383_v49, %v1564_v42  ;;  %v1661_v38 = vmul.f32 %v11384_v56, %v1564_v42  ;;  %v1662_v34 = vmul.f32 %v11385_v29, %v1564_v42  ;;  %v11390_v37 = vld [vmem:[#allocation221_spill] sm:$0xff]  ;;  %v11391_v49 = vld [vmem:[#allocation222_spill] sm:$0xff]  ;;  %v11392_v56 = vld [vmem:[#allocation223_spill] sm:$0xff] }
 0x968   :  { %v1522_v16 = vadd.f32 %v1458_v31, %v11388_v43  ;;  %v1523_v30 = vadd.f32 %v1459_v50, %v11389_v2  ;;  %v1862_v0 = vmul.f32 %v11390_v37, %v1767_v41  ;;  %v1863_v20 = vmul.f32 %v11391_v49, %v1767_v41  ;;  %v11393_v29 = vld [vmem:[#allocation224_spill] sm:$0xff]  ;;  %v11396_v31 = vld [vmem:[#allocation231_spill] sm:$0xff] }
 0x969   :  { %v1723_v59 = vadd.f32 %v1659_v48, %v1520_v1  ;;  %v1724_v40 = vadd.f32 %v1660_v12, %v1521_v62  ;;  %v1864_v25 = vmul.f32 %v11392_v56, %v1767_v41  ;;  %v1865_v36 = vmul.f32 %v11393_v29, %v1767_v41  ;;  %v11397_v50 = vld [vmem:[#allocation232_spill] sm:$0xff] }
 0x96a   :  { %v1725_v54 = vadd.f32 %v1661_v38, %v1522_v16  ;;  %v1726_v23 = vadd.f32 %v1662_v34, %v1523_v30  ;;  %v1970_v45 = vpop.permute.xlu1 %1969  ;;  %v1460_v56 = vmul.f32 %v10821_v27, %v1360_v35  ;;  %v1461_v29 = vmul.f32 %v10822_v5, %v1360_v35 }
 0x96b   :  { %v2065_v33 = vmul.f32 %v11394_v58, %v1970_v45  ;;  %v2066_v61 = vmul.f32 %v11395_v9, %v1970_v45  ;;  %v2067_v43 = vmul.f32 %v11396_v31, %v1970_v45  ;;  %v2068_v1 = vmul.f32 %v11397_v50, %v1970_v45 }
 0x96c   :  { %v1926_v12 = vadd.f32 %v1862_v0, %v1723_v59  ;;  %v1927_v38 = vadd.f32 %v1863_v20, %v1724_v40  ;;  %v1928_v34 = vadd.f32 %v1864_v25, %v1725_v54  ;;  %v1929_v16 = vadd.f32 %v1865_v36, %v1726_v23 }
 0x96d   :  { %v1462_v58 = vmul.f32 %v10823_v60, %v1360_v35  ;;  %v1463_v9 = vmul.f32 %v8354_v8, %v1360_v35  ;;  %v1663_v50 = vmul.f32 %v10682_v32, %v1564_v42  ;;  %v1524_v20 = vadd.f32 %v1460_v56, %v8386_v10  ;;  %v1275_v35 = vld [vmem:[%s9934_s0 + $0xe] sm:$0x3] }
 0x96e   :  { %v2129_v62 = vadd.f32 %v2065_v33, %v1926_v12  ;;  %v2130_v30 = vadd.f32 %v2066_v61, %v1927_v38  ;;  %v2131_v48 = vadd.f32 %v2067_v43, %v1928_v34  ;;  %v2132_v49 = vadd.f32 %v2068_v1, %v1929_v16  ;;  %1567 = vperm.xlu1 %6143, %v1275_v35  }
 0x96f   :  { %v1664_v36 = vmul.f32 %v8368_v53, %v1564_v42  ;;  %v1665_v25 = vmul.f32 %v10683_v15, %v1564_v42  ;;  %v1525_v0 = vadd.f32 %v1461_v29, %v8390_v52  ;;  %v1526_v23 = vadd.f32 %v1462_v58, %v8394_v24  ;;  %1364 = vperm.xlu0 %6142, %v1275_v35  }
 0x970   :  { %v2413_v37 = vcombine.low %v2129_v62, %v2130_v30  ;;  %v2414_v31 = vcombine.low %v2131_v48, %v2132_v49  ;;  %v1666_v54 = vmul.f32 %v10684_v17, %v1564_v42  ;;  %v1527_v59 = vadd.f32 %v1463_v9, %v10685_v63 }
 0x971   :  { %v1727_v33 = vadd.f32 %v1663_v50, %v1524_v20  ;;  %v1728_v40 = vadd.f32 %v1664_v36, %v1525_v0  ;;  %v1729_v49 = vadd.f32 %v1665_v25, %v1526_v23  ;;  %v1866_v56 = vmul.f32 %v8414_v6, %v1767_v41 }
 0x972   :  { %v2421_v43 = vrot.slane %v2413_v37, %v8189_v4  ;;  %v2428_v61 = vrot.slane %v2414_v31, %v8189_v4  ;;  %v1730_v29 = vadd.f32 %v1666_v54, %v1527_v59  ;;  %v1867_v42 = vmul.f32 %v10824_v28, %v1767_v41  ;;  %6144 = vset.pattern.permute.xlu1 %v11254_v19 }
 0x973   :  { %v1868_v58 = vmul.f32 %v10825_v55, %v1767_v41  ;;  %v1869_v37 = vmul.f32 %v8426_v57, %v1767_v41  ;;  %v2069_v31 = vmul.f32 %v8440_v26, %v1970_v45  ;;  %v2070_v50 = vmul.f32 %v10687_v51, %v1970_v45  ;;  %6145 = vset.pattern.permute.xlu0 %v10691_v7 }
 0x974   :  { %v2429_v9 = vcombine.low %v2421_v43, %v2428_v61  ;;  %v1930_v1 = vadd.f32 %v1866_v56, %v1727_v33  ;;  %v2071_v12 = vmul.f32 %v10688_v11, %v1970_v45  ;;  %v2072_v38 = vmul.f32 %v10826_v14, %v1970_v45  ;;  %1770 = vperm.xlu1 %6144, %v1275_v35  }
 0x975   :  { %v1931_v34 = vadd.f32 %v1867_v42, %v1728_v40  ;;  %v1932_v16 = vadd.f32 %v1868_v58, %v1729_v49  ;;  %v1933_v62 = vadd.f32 %v1869_v37, %v1730_v29  ;;  %1973 = vperm.xlu0 %6145, %v1275_v35   ;;  %v11398_v41 = vcombine.low %v9623_v22, %v9626_v13 }
 0x976   :  { %v2133_v48 = vadd.f32 %v2069_v31, %v1930_v1 }
 0x977   :  { %v4967_v30 = vadd.f32 %v11398_v41, %v2429_v9  ;;  %v2134_v20 = vadd.f32 %v2070_v50, %v1931_v34  ;;  %v2135_v36 = vadd.f32 %v2071_v12, %v1932_v16  ;;  %v2136_v25 = vadd.f32 %v2072_v38, %v1933_v62 }
 0x979   :  { %v4969_v0 = vmul.f32 0.5, %v4967_v30  ;;  %v2430_v23 = vcombine.low %v2133_v48, %v2134_v20  ;;  %v2431_v45 = vcombine.low %v2135_v36, %v2136_v25 }
 0x97b   :  { %6194 = vtanh.f32 %v4969_v0  ;;  %v2438_v61 = vrot.slane %v2430_v23, %v8189_v4  ;;  %v2445_v33 = vrot.slane %v2431_v45, %v8189_v4 }
 0x97d   :  { %v2446_v42 = vcombine.low %v2438_v61, %v2445_v33  ;;  %v11410_v61 = vld [vmem:[#allocation160_spill] sm:$0xff]  ;;  %v11411_v33 = vld [vmem:[#allocation161_spill] sm:$0xff] }
 0x985   :  { %v6195_v9 = vpop.eup %6194 }
 0x986   :  { %v4973_v50 = vadd.f32 1.0, %v6195_v9  ;;  %v11422_v9 = vld [vmem:[#allocation172_spill] sm:$0xff] }
 0x988   :  { %v4975_v1 = vmul.f32 0.5, %v4973_v50  ;;  %v11424_v50 = vld [vmem:[#allocation174_spill] sm:$0xff] }
 0x98a   :  { %v4982_v38 = vrot.slane %v4975_v1, 4 }
 0x98c   :  { %v4984_v16 = vmul.f32 %v4982_v38, %v9484_v21  ;;  %v11399_v21 = vld [vmem:[#allocation149_spill] sm:$0xff] }
 0x98d   :  { %v11427_v38 = vld [vmem:[#allocation177_spill] sm:$0xff] }
 0x9a2   :  { %v4875_v19 = vpop.f32.mrb[52].mxu0  ;;  %v4916_v54 = vpop.f32.mrb[52].mxu1 }
 0x9a3   :  { %v4877_v7 = vpop.f32.mrb[53].mxu0  ;;  %v4918_v59 = vpop.f32.mrb[53].mxu1 }
 0x9a4   :  { %v4948_v43 = vcombine.low %v4875_v19, %v4877_v7  ;;  %v4949_v35 = vcombine.low %v4916_v54, %v4918_v59  ;;  %v4879_v22 = vpop.f32.mrb[54].mxu0  ;;  %v4920_v13 = vpop.f32.mrb[54].mxu1  ;;  %v11400_v54 = vld [vmem:[#allocation150_spill] sm:$0xff]  ;;  %v11401_v7 = vld [vmem:[#allocation151_spill] sm:$0xff]  ;;  %v11402_v59 = vld [vmem:[#allocation152_spill] sm:$0xff] }
 0x9a5   :  { %v4880_v40 = vpop.f32.mrb[55].mxu0  ;;  %v4921_v49 = vpop.f32.mrb[55].mxu1  ;;  %v11413_v22 = vld [vmem:[#allocation163_spill] sm:$0xff]  ;;  %v11414_v13 = vld [vmem:[#allocation164_spill] sm:$0xff] }
 0x9a6   :  { %v4956_v56 = vrot.slane %v4948_v43, %v8189_v4  ;;  %v4963_v29 = vrot.slane %v4949_v35, %v8189_v4  ;;  %v11405_v43 = vld [vmem:[#allocation155_spill] sm:$0xff]  ;;  %v11412_v35 = vld [vmem:[#allocation162_spill] sm:$0xff]  ;;  %v11415_v40 = vld [vmem:[#allocation165_spill] sm:$0xff] }
 0x9a7   :  { %v11416_v49 = vld [vmem:[#allocation166_spill] sm:$0xff] }
 0x9a8   :  { %v4964_v58 = vcombine.low %v4956_v56, %v4963_v29  ;;  %v11417_v56 = vld [vmem:[#allocation167_spill] sm:$0xff]  ;;  %v11418_v29 = vld [vmem:[#allocation168_spill] sm:$0xff] }
 0x9aa   :  { %v4968_v37 = vadd.f32 %v4964_v58, %v2446_v42  ;;  %v11419_v42 = vld [vmem:[#allocation169_spill] sm:$0xff]  ;;  %v11420_v58 = vld [vmem:[#allocation170_spill] sm:$0xff] }
 0x9ac   :  { %v4978_v31 = vrot.slane %v4968_v37, 4  ;;  %v4970_v12 = vmul.f32 0.5, %v4968_v37  ;;  %v11421_v37 = vld [vmem:[#allocation171_spill] sm:$0xff] }
 0x9ae   :  { %6196 = vtanh.f32 %v4978_v31  ;;  %v11423_v31 = vld [vmem:[#allocation173_spill] sm:$0xff] }
 0x9af   :  { %6198 = vtanh.f32 %v4970_v12  ;;  %v11426_v12 = vld [vmem:[#allocation176_spill] sm:$0xff] }
 0x9b8   :  { %v6197_v34 = vpop.eup %6196 }
 0x9b9   :  { %v4985_v62 = vmul.f32 %v6197_v34, %v4975_v1  ;;  %v6199_v30 = vpop.eup %6198  ;;  %v11425_v1 = vld [vmem:[#allocation175_spill] sm:$0xff]  ;;  %v11428_v34 = vld [vmem:[#allocation178_spill] sm:$0xff] }
 0x9ba   :  { %v4974_v48 = vadd.f32 1.0, %v6199_v30  ;;  %v11431_v30 = vld [vmem:[#allocation181_spill] sm:$0xff] }
 0x9bb   :  { %v9685_v41 = vadd.f32 %v4985_v62, %v4984_v16  ;;  %v11429_v16 = vld [vmem:[#allocation179_spill] sm:$0xff]  ;;  %v11430_v62 = vld [vmem:[#allocation180_spill] sm:$0xff] }
 0x9bc   :  { %v4976_v20 = vmul.f32 0.5, %v4974_v48  ;;  %v11432_v48 = vld [vmem:[#allocation182_spill] sm:$0xff] }
 0x9bd   :  { %6200 = vtanh.f32 %v9685_v41 }
 0x9c7   :  { %v6201_v36 = vpop.eup %6200 }
 0x9c8   :  { %v4988_v25 = vmul.f32 %v6201_v36, %v4976_v20  ;;  %v11433_v20 = vld [vmem:[#allocation183_spill] sm:$0xff]  ;;  %v11434_v36 = vld [vmem:[#allocation184_spill] sm:$0xff] }
 0x9ca   :  { %v4999_v0 = vrot.slane %v4988_v25, %v8189_v4  ;;  %v11435_v25 = vld [vmem:[#allocation185_spill] sm:$0xff] }
 0x9cc   :  { %v5000_v23 = vcombine.high %v4999_v0, %v4999_v0  ;;  %v9689_v19 = vpack.c.bf16 %v4999_v0, %v4999_v0  ;;  %v11436_v0 = vld [vmem:[#allocation186_spill] sm:$0xff] }
 0x9ce   :  { %v5004_v45 = vpack.c.bf16 %v5000_v23, %v5000_v23  ;;  %v11437_v23 = vld [vmem:[#allocation187_spill] sm:$0xff] }
 0x9d0   :  { %5037 = vmatprep.mubr.bf16.mxu0 %v5004_v45  ;;  %5078 = vmatprep.mubr.bf16.mxu1 %v5004_v45 }
 0x9d1   :  { %5038 = vmatmul.mubr.bf16.vlgmr.msra.gmra.mrb[56].mxu0 %v9689_v19  ;;  %5079 = vmatmul.mubr.bf16.vlgmr.msra.gmra.mrb[56].mxu1 %v9689_v19 }
 0x9d2   :  { %5088 = vmatpush1.bf16.msra.mxu0 %v10556_v46  ;;  %5129 = vmatpush1.bf16.msra.mxu1 %v10557_v3  ;;  %v11403_v46 = vld [vmem:[#allocation153_spill] sm:$0xff]  ;;  %v11404_v3 = vld [vmem:[#allocation154_spill] sm:$0xff] }
 0x9d3   :  { %5119 = vmatprep.mubr.bf16.mxu0 %v5004_v45  ;;  %5160 = vmatprep.mubr.bf16.mxu1 %v5004_v45  ;;  %v11438_v45 = vld [vmem:[#allocation188_spill] sm:$0xff] }
 0x9d4   :  { %5089 = vmatprep.subr.bf16.mxu0 %v10558_v18  ;;  %5130 = vmatprep.subr.bf16.mxu1 %v10559_v39  ;;  %v11406_v18 = vld [vmem:[#allocation156_spill] sm:$0xff]  ;;  %v11407_v39 = vld [vmem:[#allocation157_spill] sm:$0xff] }
 0x9d6   :  { %5090 = vmatpush1.bf16.msra.mxu0 %v10560_v47  ;;  %5131 = vmatpush1.bf16.msra.mxu1 %v10969_v44  ;;  %v11408_v47 = vld [vmem:[#allocation158_spill] sm:$0xff]  ;;  %v11409_v44 = vld [vmem:[#allocation159_spill] sm:$0xff] }
 0x9d7   :  { %5091 = vmatprep.subr.bf16.mxu0 %v11399_v21  ;;  %5132 = vmatprep.subr.bf16.mxu1 %v11400_v54  ;;  %v11439_v21 = vld [vmem:[#allocation189_spill] sm:$0xff]  ;;  %v11440_v54 = vld [vmem:[#allocation190_spill] sm:$0xff] }
 0x9da   :  { %5092 = vmatpush1.bf16.msra.mxu0 %v11401_v7  ;;  %5133 = vmatpush1.bf16.msra.mxu1 %v11402_v59  ;;  %v11441_v7 = vld [vmem:[#allocation191_spill] sm:$0xff]  ;;  %v11442_v59 = vld [vmem:[#allocation192_spill] sm:$0xff] }
 0x9db   :  { %5093 = vmatprep.subr.bf16.mxu0 %v11403_v46  ;;  %5134 = vmatprep.subr.bf16.mxu1 %v11404_v3  ;;  %v11443_v46 = vld [vmem:[#allocation193_spill] sm:$0xff]  ;;  %v11444_v3 = vld [vmem:[#allocation194_spill] sm:$0xff] }
 0x9de   :  { %5094 = vmatpush1.bf16.msra.mxu0 %v11405_v43  ;;  %5135 = vmatpush1.bf16.msra.mxu1 %v11406_v18  ;;  %v11445_v43 = vld [vmem:[#allocation195_spill] sm:$0xff]  ;;  %v11446_v18 = vld [vmem:[#allocation196_spill] sm:$0xff] }
 0x9df   :  { %5095 = vmatprep.subr.bf16.mxu0 %v11407_v39  ;;  %5136 = vmatprep.subr.bf16.mxu1 %v11408_v47  ;;  %v11447_v39 = vld [vmem:[#allocation197_spill] sm:$0xff]  ;;  %v11448_v47 = vld [vmem:[#allocation198_spill] sm:$0xff] }
 0x9e2   :  { %5096 = vmatpush1.bf16.msra.mxu0 %v11409_v44  ;;  %5137 = vmatpush1.bf16.msra.mxu1 %v11410_v61  ;;  %v11449_v44 = vld [vmem:[#allocation199_spill] sm:$0xff]  ;;  %v11450_v61 = vld [vmem:[#allocation200_spill] sm:$0xff] }
 0x9e3   :  { %5097 = vmatprep.subr.bf16.mxu0 %v11411_v33  ;;  %5138 = vmatprep.subr.bf16.mxu1 %v11412_v35  ;;  %v11451_v33 = vld [vmem:[#allocation201_spill] sm:$0xff]  ;;  %v11452_v35 = vld [vmem:[#allocation202_spill] sm:$0xff] }
 0x9e6   :  { %5098 = vmatpush1.bf16.msra.mxu0 %v11413_v22  ;;  %5139 = vmatpush1.bf16.msra.mxu1 %v11414_v13  ;;  %v11453_v22 = vld [vmem:[#allocation203_spill] sm:$0xff]  ;;  %v11454_v13 = vld [vmem:[#allocation204_spill] sm:$0xff] }
 0x9e7   :  { %5099 = vmatprep.subr.bf16.mxu0 %v11415_v40  ;;  %5140 = vmatprep.subr.bf16.mxu1 %v11416_v49 }
 0x9ea   :  { %5100 = vmatpush1.bf16.msra.mxu0 %v11417_v56  ;;  %5141 = vmatpush1.bf16.msra.mxu1 %v11418_v29 }
 0x9eb   :  { %5101 = vmatprep.subr.bf16.mxu0 %v11419_v42  ;;  %5142 = vmatprep.subr.bf16.mxu1 %v11420_v58 }
 0x9ee   :  { %5102 = vmatpush1.bf16.msra.mxu0 %v11421_v37  ;;  %5143 = vmatpush1.bf16.msra.mxu1 %v11422_v9 }
 0x9ef   :  { %5103 = vmatprep.subr.bf16.mxu0 %v11423_v31  ;;  %5144 = vmatprep.subr.bf16.mxu1 %v11424_v50 }
 0x9f2   :  { %5104 = vmatpush1.bf16.msra.mxu0 %v11425_v1  ;;  %5145 = vmatpush1.bf16.msra.mxu1 %v11426_v12 }
 0x9f3   :  { %5105 = vmatprep.subr.bf16.mxu0 %v11427_v38  ;;  %5146 = vmatprep.subr.bf16.mxu1 %v11428_v34  ;;  %v1568_v34 = vpop.permute.xlu1 %1567 }
 0x9f6   :  { %5106 = vmatpush1.bf16.msra.mxu0 %v11429_v16  ;;  %5147 = vmatpush1.bf16.msra.mxu1 %v11430_v62  ;;  %v11455_v16 = vld [vmem:[#allocation209_spill] sm:$0xff] }
 0x9f7   :  { %5107 = vmatprep.subr.bf16.mxu0 %v11431_v30  ;;  %5148 = vmatprep.subr.bf16.mxu1 %v11432_v48  ;;  %v11456_v30 = vld [vmem:[#allocation210_spill] sm:$0xff] }
 0x9fa   :  { %5108 = vmatpush1.bf16.msra.mxu0 %v11433_v20  ;;  %5149 = vmatpush1.bf16.msra.mxu1 %v11434_v36  ;;  %v11457_v20 = vld [vmem:[#allocation211_spill] sm:$0xff] }
 0x9fb   :  { %5109 = vmatprep.subr.bf16.mxu0 %v11435_v25  ;;  %5150 = vmatprep.subr.bf16.mxu1 %v11436_v0  ;;  %v11458_v25 = vld [vmem:[#allocation212_spill] sm:$0xff] }
 0x9fe   :  { %5110 = vmatpush1.bf16.msra.mxu0 %v11437_v23  ;;  %5151 = vmatpush1.bf16.msra.mxu1 %v11438_v45  ;;  %v11459_v23 = vld [vmem:[#allocation217_spill] sm:$0xff] }
 0x9ff   :  { %5111 = vmatprep.subr.bf16.mxu0 %v11439_v21  ;;  %5152 = vmatprep.subr.bf16.mxu1 %v11440_v54  ;;  %v1667_v45 = vmul.f32 %v11459_v23, %v1568_v34  ;;  %v11460_v21 = vld [vmem:[#allocation218_spill] sm:$0xff] }
 0xa00   :  { %v1668_v54 = vmul.f32 %v11460_v21, %v1568_v34 }
 0xa02   :  { %5112 = vmatpush1.bf16.msra.mxu0 %v11441_v7  ;;  %5153 = vmatpush1.bf16.msra.mxu1 %v11442_v59  ;;  %v11461_v7 = vld [vmem:[#allocation219_spill] sm:$0xff] }
 0xa03   :  { %5113 = vmatprep.subr.bf16.mxu0 %v11443_v46  ;;  %5154 = vmatprep.subr.bf16.mxu1 %v11444_v3  ;;  %v1669_v59 = vmul.f32 %v11461_v7, %v1568_v34  ;;  %v11462_v46 = vld [vmem:[#allocation220_spill] sm:$0xff] }
 0xa04   :  { %v1670_v3 = vmul.f32 %v11462_v46, %v1568_v34 }
 0xa06   :  { %5114 = vmatpush1.bf16.msra.mxu0 %v11445_v43  ;;  %5155 = vmatpush1.bf16.msra.mxu1 %v11446_v18  ;;  %v1771_v43 = vpop.permute.xlu1 %1770  ;;  %v11463_v18 = vld [vmem:[#allocation213_spill] sm:$0xff] }
 0xa07   :  { %5115 = vmatprep.subr.bf16.mxu0 %v11447_v39  ;;  %5156 = vmatprep.subr.bf16.mxu1 %v11448_v47  ;;  %v11464_v47 = vld [vmem:[#allocation214_spill] sm:$0xff] }
 0xa0a   :  { %5116 = vmatpush1.bf16.msra.mxu0 %v11449_v44  ;;  %5157 = vmatpush1.bf16.msra.mxu1 %v11450_v61  ;;  %v11465_v61 = vld [vmem:[#allocation215_spill] sm:$0xff] }
 0xa0b   :  { %5117 = vmatprep.subr.bf16.mxu0 %v11451_v33  ;;  %5158 = vmatprep.subr.bf16.mxu1 %v11452_v35 }
 0xa0e   :  { %5118 = vmatpush1.bf16.msra.mxu0 %v11453_v22  ;;  %5159 = vmatpush1.bf16.msra.mxu1 %v11454_v13  ;;  %v11466_v22 = vld [vmem:[#allocation221_spill] sm:$0xff] }
 0xa0f   :  { %v1870_v13 = vmul.f32 %v11466_v22, %v1771_v43 }
 0xa11   :  { %5120 = vmatmul.mubr.bf16.vlgmr.msra.gmra.mrb[60].mxu0 %v9689_v19  ;;  %5161 = vmatmul.mubr.bf16.vlgmr.msra.gmra.mrb[60].mxu1 %v9689_v19  ;;  %v1365_v19 = vpop.permute.xlu0 %1364 }
 0xa12   :  { %v1464_v62 = vmul.f32 %v11455_v16, %v1365_v19  ;;  %v1465_v48 = vmul.f32 %v11456_v30, %v1365_v19  ;;  %v1466_v36 = vmul.f32 %v11457_v20, %v1365_v19  ;;  %v1467_v0 = vmul.f32 %v11458_v25, %v1365_v19 }
 0xa14   :  { %v1528_v39 = vadd.f32 %v1464_v62, %v11463_v18  ;;  %v1529_v44 = vadd.f32 %v1465_v48, %v11464_v47  ;;  %v1530_v33 = vadd.f32 %v1466_v36, %v11465_v61  ;;  %v1531_v35 = vadd.f32 %v1467_v0, %v11389_v2  ;;  %v11470_v62 = vld [vmem:[#allocation229_spill] sm:$0xff]  ;;  %v11471_v48 = vld [vmem:[#allocation230_spill] sm:$0xff]  ;;  %v11472_v36 = vld [vmem:[#allocation231_spill] sm:$0xff] }
 0xa15   :  { %v11473_v2 = vld [vmem:[#allocation232_spill] sm:$0xff] }
 0xa16   :  { %v1734_v16 = vadd.f32 %v1670_v3, %v1531_v35  ;;  %v1471_v3 = vmul.f32 %v8354_v8, %v1365_v19  ;;  %v1672_v35 = vmul.f32 %v8368_v53, %v1568_v34  ;;  %v1875_v53 = vmul.f32 %v10824_v28, %v1771_v43 }
 0xaa4   :  { %v5039_v40 = vpop.f32.mrb[56].mxu0  ;;  %v5080_v49 = vpop.f32.mrb[56].mxu1 }
 0xaa5   :  { %v5041_v56 = vpop.f32.mrb[57].mxu0  ;;  %v5082_v29 = vpop.f32.mrb[57].mxu1 }
 0xaa6   :  { %v5177_v42 = vcombine.low %v5039_v40, %v5041_v56  ;;  %v5178_v58 = vcombine.low %v5080_v49, %v5082_v29  ;;  %v5043_v37 = vpop.f32.mrb[58].mxu0  ;;  %v5084_v9 = vpop.f32.mrb[58].mxu1  ;;  %v11467_v40 = vld [vmem:[#allocation222_spill] sm:$0xff]  ;;  %v11468_v56 = vld [vmem:[#allocation223_spill] sm:$0xff] }
 0xaa7   :  { %v5044_v31 = vpop.f32.mrb[59].mxu0  ;;  %v5085_v50 = vpop.f32.mrb[59].mxu1  ;;  %v1871_v49 = vmul.f32 %v11467_v40, %v1771_v43  ;;  %v1872_v29 = vmul.f32 %v11468_v56, %v1771_v43  ;;  %v1731_v9 = vadd.f32 %v1667_v45, %v1528_v39  ;;  %v1468_v45 = vmul.f32 %v10821_v27, %v1365_v19 }
 0xaa8   :  { %v9758_v1 = vrot.slane %v5177_v42, %v8189_v4  ;;  %v9761_v12 = vrot.slane %v5178_v58, %v8189_v4  ;;  %v11469_v42 = vld [vmem:[#allocation224_spill] sm:$0xff]  ;;  %v1974_v37 = vpop.permute.xlu0 %1973  ;;  %v1732_v31 = vadd.f32 %v1668_v54, %v1529_v44  ;;  %v1733_v50 = vadd.f32 %v1669_v59, %v1530_v33 }
 0xaa9   :  { %v1873_v58 = vmul.f32 %v11469_v42, %v1771_v43  ;;  %v2073_v30 = vmul.f32 %v11470_v62, %v1974_v37  ;;  %v2074_v20 = vmul.f32 %v11471_v48, %v1974_v37  ;;  %v2075_v25 = vmul.f32 %v11472_v36, %v1974_v37 }
 0xaaa   :  { %v5193_v38 = vcombine.low %v9758_v1, %v9761_v12  ;;  %v2076_v0 = vmul.f32 %v11473_v2, %v1974_v37  ;;  %v1934_v23 = vadd.f32 %v1870_v13, %v1731_v9  ;;  %v1935_v21 = vadd.f32 %v1871_v49, %v1732_v31 }
 0xaab   :  { %v1936_v7 = vadd.f32 %v1872_v29, %v1733_v50  ;;  %v1937_v46 = vadd.f32 %v1873_v58, %v1734_v16  ;;  %v1469_v54 = vmul.f32 %v10822_v5, %v1365_v19  ;;  %v1470_v59 = vmul.f32 %v10823_v60, %v1365_v19 }
 0xaac   :  { %v2137_v18 = vadd.f32 %v2073_v30, %v1934_v23  ;;  %v2138_v47 = vadd.f32 %v2074_v20, %v1935_v21  ;;  %v1671_v33 = vmul.f32 %v10682_v32, %v1568_v34  ;;  %v1673_v13 = vmul.f32 %v10683_v15, %v1568_v34 }
 0xaad   :  { %v2139_v61 = vadd.f32 %v2075_v25, %v1936_v7  ;;  %v2140_v22 = vadd.f32 %v2076_v0, %v1937_v46  ;;  %v1674_v40 = vmul.f32 %v10684_v17, %v1568_v34  ;;  %v1532_v49 = vadd.f32 %v1468_v45, %v8386_v10 }
 0xaae   :  { %v2447_v39 = vcombine.low %v2137_v18, %v2138_v47  ;;  %v1533_v27 = vadd.f32 %v1469_v54, %v8390_v52  ;;  %v1534_v5 = vadd.f32 %v1470_v59, %v8394_v24  ;;  %v1535_v60 = vadd.f32 %v1471_v3, %v10685_v63 }
 0xaaf   :  { %v2448_v44 = vcombine.low %v2139_v61, %v2140_v22  ;;  %v1874_v32 = vmul.f32 %v8414_v6, %v1771_v43  ;;  %v1876_v15 = vmul.f32 %v10825_v55, %v1771_v43  ;;  %v1877_v17 = vmul.f32 %v8426_v57, %v1771_v43 }
 0xab0   :  { %v2455_v8 = vrot.slane %v2447_v39, %v8189_v4  ;;  %v1735_v34 = vadd.f32 %v1671_v33, %v1532_v49  ;;  %v1736_v10 = vadd.f32 %v1672_v35, %v1533_v27  ;;  %v1737_v56 = vadd.f32 %v1673_v13, %v1534_v5 }
 0xab1   :  { %v2462_v19 = vrot.slane %v2448_v44, %v8189_v4  ;;  %v1738_v52 = vadd.f32 %v1674_v40, %v1535_v60  ;;  %v2077_v24 = vmul.f32 %v8440_v26, %v1974_v37  ;;  %v2078_v63 = vmul.f32 %v10687_v51, %v1974_v37 }
 0xab2   :  { %v2079_v42 = vmul.f32 %v10688_v11, %v1974_v37  ;;  %v2080_v58 = vmul.f32 %v10826_v14, %v1974_v37  ;;  %v1938_v6 = vadd.f32 %v1874_v32, %v1735_v34  ;;  %v1939_v9 = vadd.f32 %v1875_v53, %v1736_v10 }
 0xab3   :  { %v2463_v29 = vcombine.low %v2455_v8, %v2462_v19  ;;  %v1940_v28 = vadd.f32 %v1876_v15, %v1737_v56  ;;  %v1941_v31 = vadd.f32 %v1877_v17, %v1738_v52 }
 0xab4   :  { %v2141_v55 = vadd.f32 %v2077_v24, %v1938_v6  ;;  %v2142_v43 = vadd.f32 %v2078_v63, %v1939_v9 }
 0xab5   :  { %v5213_v57 = vadd.f32 %v5193_v38, %v2463_v29  ;;  %v2143_v50 = vadd.f32 %v2079_v42, %v1940_v28  ;;  %v2144_v16 = vadd.f32 %v2080_v58, %v1941_v31 }
 0xab6   :  { %v2464_v26 = vcombine.low %v2141_v55, %v2142_v43 }
 0xab7   :  { %v5215_v62 = vmul.f32 0.5, %v5213_v57  ;;  %v2465_v30 = vcombine.low %v2143_v50, %v2144_v16 }
 0xab8   :  { %v2472_v20 = vrot.slane %v2464_v26, %v8189_v4 }
 0xab9   :  { %6202 = vtanh.f32 %v5215_v62  ;;  %v2479_v36 = vrot.slane %v2465_v30, %v8189_v4 }
 0xabb   :  { %v2480_v21 = vcombine.low %v2472_v20, %v2479_v36 }
 0xac3   :  { %v6203_v18 = vpop.eup %6202 }
 0xac4   :  { %v5219_v61 = vadd.f32 1.0, %v6203_v18 }
 0xac6   :  { %v5221_v22 = vmul.f32 0.5, %v5219_v61 }
 0xac8   :  { %v5228_v54 = vrot.slane %v5221_v22, 4 }
 0xaca   :  { %v5230_v3 = vmul.f32 %v5228_v54, %v9685_v41 }
 0xae4   :  { %v5121_v51 = vpop.f32.mrb[60].mxu0  ;;  %v5162_v11 = vpop.f32.mrb[60].mxu1 }
 0xae5   :  { %v5123_v48 = vpop.f32.mrb[61].mxu0  ;;  %v5164_v14 = vpop.f32.mrb[61].mxu1 }
 0xae6   :  { %v5194_v37 = vcombine.low %v5121_v51, %v5123_v48  ;;  %v5195_v25 = vcombine.low %v5162_v11, %v5164_v14  ;;  %v5125_v1 = vpop.f32.mrb[62].mxu0  ;;  %v5166_v12 = vpop.f32.mrb[62].mxu1 }
 0xae7   :  { %v5126_v38 = vpop.f32.mrb[63].mxu0  ;;  %v5167_v2 = vpop.f32.mrb[63].mxu1 }
 0xae8   :  { %v5202_v0 = vrot.slane %v5194_v37, %v8189_v4  ;;  %v5209_v23 = vrot.slane %v5195_v25, %v8189_v4 }
 0xaea   :  { %v5210_v7 = vcombine.low %v5202_v0, %v5209_v23 }
 0xaec   :  { %v5214_v46 = vadd.f32 %v5210_v7, %v2480_v21 }
 0xaee   :  { %v5224_v47 = vrot.slane %v5214_v46, 4  ;;  %v5216_v45 = vmul.f32 0.5, %v5214_v46 }
 0xaf0   :  { %6204 = vtanh.f32 %v5224_v47 }
 0xaf1   :  { %6206 = vtanh.f32 %v5216_v45 }
 0xafa   :  { %v6205_v59 = vpop.eup %6204 }
 0xafb   :  { %v5231_v39 = vmul.f32 %v6205_v59, %v5221_v22  ;;  %v6207_v33 = vpop.eup %6206 }
 0xafc   :  { %v5220_v35 = vadd.f32 1.0, %v6207_v33 }
 0xafd   :  { %v5232_v44 = vadd.f32 %v5231_v39, %v5230_v3 }
 0xafe   :  { %v5222_v13 = vmul.f32 0.5, %v5220_v35 }
 0xaff   :  { %6208 = vtanh.f32 %v5232_v44 }
 0xb09   :  { %v6209_v40 = vpop.eup %6208 }
 0xb0a   :  { %v5234_v49 = vmul.f32 %v6209_v40, %v5222_v13 }
 0xb0b   :  { %6232 = dma.done.wait [#allocation5], 16384 }
 0xb0c   :  { %6233 = vsyncadd [#allocation5], 4294950912 }
 0xb0d   :  { %6234 = dma.done.wait [#allocation5 + $0x1], 8192 }
 0xb0e   :  { %6235 = vsyncadd [#allocation5 + $0x1], 4294959104  ;;  %v9816_v27 = vrot.slane %v5234_v49, %v8189_v4  ;;  %v5257_v41 = vld [vmem:[#allocation3 + $0x8] sm:$0xff]  ;;  %v5259_v8 = vld [vmem:[#allocation3 + $0x18] sm:$0xff] }
 0xb0f   :  { %v5256_v19 = vld [vmem:[#allocation3] sm:$0xff]  ;;  %5426 = vmatprep.subr.bf16.mxu0 %v5257_v41  ;;  %5467 = vmatprep.subr.bf16.mxu1 %v5259_v8  ;;  %v5258_v32 = vld [vmem:[#allocation3 + $0x10] sm:$0xff]  ;;  %v5265_v53 = vld [vmem:[#allocation3 + $0x48] sm:$0xff] }
 0xb10   :  { %v5251_v5 = vcombine.high %v9816_v27, %v9816_v27  ;;  %v5267_v15 = vld [vmem:[#allocation3 + $0x58] sm:$0xff]  ;;  %5427 = vmatpush1.bf16.msra.mxu0 %v5256_v19  ;;  %5468 = vmatpush1.bf16.msra.mxu1 %v5258_v32  ;;  %v5264_v4 = vld [vmem:[#allocation3 + $0x40] sm:$0xff]  ;;  %v5266_v17 = vld [vmem:[#allocation3 + $0x50] sm:$0xff] }
 0xb11   :  { %5428 = vmatprep.subr.bf16.mxu0 %v5265_v53  ;;  %5469 = vmatprep.subr.bf16.mxu1 %v5267_v15  ;;  %v5273_v34 = vld [vmem:[#allocation3 + $0x88] sm:$0xff]  ;;  %v5275_v10 = vld [vmem:[#allocation3 + $0x98] sm:$0xff]  ;;  %v5272_v56 = vld [vmem:[#allocation3 + $0x80] sm:$0xff]  ;;  %v9826_v53 = vpack.c.bf16 %v9816_v27, %v9816_v27 }
 0xb12   :  { %v9820_v60 = vpack.c.bf16 %v5251_v5, %v5251_v5  ;;  %v5274_v52 = vld [vmem:[#allocation3 + $0x90] sm:$0xff]  ;;  %v5281_v29 = vld [vmem:[#allocation3 + $0xc8] sm:$0xff]  ;;  %v5283_v24 = vld [vmem:[#allocation3 + $0xd8] sm:$0xff] }
 0xb13   :  { %v5280_v63 = vld [vmem:[#allocation3 + $0xc0] sm:$0xff]  ;;  %v5282_v42 = vld [vmem:[#allocation3 + $0xd0] sm:$0xff]  ;;  %v5289_v58 = vld [vmem:[#allocation3 + $0x108] sm:$0xff] }
 0xb14   :  { %5458 = vmatprep.mubr.bf16.mxu0 %v9820_v60  ;;  %5499 = vmatprep.mubr.bf16.mxu1 %v9820_v60  ;;  %v5291_v6 = vld [vmem:[#allocation3 + $0x118] sm:$0xff]  ;;  %v5288_v9 = vld [vmem:[#allocation3 + $0x100] sm:$0xff]  ;;  %v5290_v28 = vld [vmem:[#allocation3 + $0x110] sm:$0xff] }
 0xb15   :  { %5429 = vmatpush1.bf16.msra.mxu0 %v5264_v4  ;;  %5470 = vmatpush1.bf16.msra.mxu1 %v5266_v17  ;;  %v5297_v31 = vld [vmem:[#allocation3 + $0x148] sm:$0xff]  ;;  %v5299_v57 = vld [vmem:[#allocation3 + $0x158] sm:$0xff]  ;;  %v5296_v55 = vld [vmem:[#allocation3 + $0x140] sm:$0xff] }
 0xb16   :  { %5430 = vmatprep.subr.bf16.mxu0 %v5273_v34  ;;  %5471 = vmatprep.subr.bf16.mxu1 %v5275_v10  ;;  %v5298_v43 = vld [vmem:[#allocation3 + $0x150] sm:$0xff]  ;;  %v5305_v50 = vld [vmem:[#allocation3 + $0x188] sm:$0xff]  ;;  %v5307_v16 = vld [vmem:[#allocation3 + $0x198] sm:$0xff] }
 0xb17   :  { %v5304_v62 = vld [vmem:[#allocation3 + $0x180] sm:$0xff]  ;;  %v5306_v26 = vld [vmem:[#allocation3 + $0x190] sm:$0xff]  ;;  %v5313_v30 = vld [vmem:[#allocation3 + $0x1c8] sm:$0xff] }
 0xb18   :  { %v5315_v51 = vld [vmem:[#allocation3 + $0x1d8] sm:$0xff]  ;;  %v5312_v11 = vld [vmem:[#allocation3 + $0x1c0] sm:$0xff]  ;;  %v5314_v48 = vld [vmem:[#allocation3 + $0x1d0] sm:$0xff] }
 0xb19   :  { %5431 = vmatpush1.bf16.msra.mxu0 %v5272_v56  ;;  %5472 = vmatpush1.bf16.msra.mxu1 %v5274_v52  ;;  %v5321_v14 = vld [vmem:[#allocation3 + $0x208] sm:$0xff]  ;;  %v5323_v37 = vld [vmem:[#allocation3 + $0x218] sm:$0xff]  ;;  %v5320_v20 = vld [vmem:[#allocation3 + $0x200] sm:$0xff] }
 0xb1a   :  { %5432 = vmatprep.subr.bf16.mxu0 %v5281_v29  ;;  %5473 = vmatprep.subr.bf16.mxu1 %v5283_v24  ;;  %v5322_v36 = vld [vmem:[#allocation3 + $0x210] sm:$0xff]  ;;  %v5329_v25 = vld [vmem:[#allocation3 + $0x248] sm:$0xff]  ;;  %v5331_v1 = vld [vmem:[#allocation3 + $0x258] sm:$0xff] }
 0xb1b   :  { %v5328_v12 = vld [vmem:[#allocation3 + $0x240] sm:$0xff]  ;;  %v5330_v38 = vld [vmem:[#allocation3 + $0x250] sm:$0xff]  ;;  %v5337_v2 = vld [vmem:[#allocation3 + $0x288] sm:$0xff] }
 0xb1c   :  { %v5339_v0 = vld [vmem:[#allocation3 + $0x298] sm:$0xff]  ;;  %v5336_v23 = vld [vmem:[#allocation3 + $0x280] sm:$0xff]  ;;  %v5338_v21 = vld [vmem:[#allocation3 + $0x290] sm:$0xff] }
 0xb1d   :  { %5433 = vmatpush1.bf16.msra.mxu0 %v5280_v63  ;;  %5474 = vmatpush1.bf16.msra.mxu1 %v5282_v42  ;;  %v5345_v7 = vld [vmem:[#allocation3 + $0x2c8] sm:$0xff]  ;;  %v5347_v46 = vld [vmem:[#allocation3 + $0x2d8] sm:$0xff]  ;;  %v5344_v18 = vld [vmem:[#allocation3 + $0x2c0] sm:$0xff] }
 0xb1e   :  { %5434 = vmatprep.subr.bf16.mxu0 %v5289_v58  ;;  %5475 = vmatprep.subr.bf16.mxu1 %v5291_v6  ;;  %v5346_v47 = vld [vmem:[#allocation3 + $0x2d0] sm:$0xff]  ;;  %v5353_v61 = vld [vmem:[#allocation3 + $0x308] sm:$0xff]  ;;  %v5355_v22 = vld [vmem:[#allocation3 + $0x318] sm:$0xff] }
 0xb1f   :  { %v5352_v45 = vld [vmem:[#allocation3 + $0x300] sm:$0xff]  ;;  %v5354_v54 = vld [vmem:[#allocation3 + $0x310] sm:$0xff]  ;;  %v5361_v59 = vld [vmem:[#allocation3 + $0x348] sm:$0xff] }
 0xb20   :  { %v5363_v3 = vld [vmem:[#allocation3 + $0x358] sm:$0xff]  ;;  %v5360_v39 = vld [vmem:[#allocation3 + $0x340] sm:$0xff]  ;;  %v5362_v44 = vld [vmem:[#allocation3 + $0x350] sm:$0xff] }
 0xb21   :  { %5435 = vmatpush1.bf16.msra.mxu0 %v5288_v9  ;;  %5476 = vmatpush1.bf16.msra.mxu1 %v5290_v28  ;;  %v5369_v33 = vld [vmem:[#allocation3 + $0x388] sm:$0xff]  ;;  %v5371_v35 = vld [vmem:[#allocation3 + $0x398] sm:$0xff]  ;;  %v5368_v13 = vld [vmem:[#allocation3 + $0x380] sm:$0xff] }
 0xb22   :  { %5436 = vmatprep.subr.bf16.mxu0 %v5297_v31  ;;  %5477 = vmatprep.subr.bf16.mxu1 %v5299_v57  ;;  %v5370_v40 = vld [vmem:[#allocation3 + $0x390] sm:$0xff]  ;;  %v5377_v49 = vld [vmem:[#allocation3 + $0x3c8] sm:$0xff]  ;;  %v5379_v5 = vld [vmem:[#allocation3 + $0x3d8] sm:$0xff] }
 0xb23   :  { %v5376_v41 = vld [vmem:[#allocation3 + $0x3c0] sm:$0xff]  ;;  %v5378_v8 = vld [vmem:[#allocation3 + $0x3d0] sm:$0xff]  ;;  %v5261_v19 = vld [vmem:[#allocation3 + $0x28] sm:$0xff] }
 0xb24   :  { %v5263_v32 = vld [vmem:[#allocation3 + $0x38] sm:$0xff]  ;;  %v5260_v15 = vld [vmem:[#allocation3 + $0x20] sm:$0xff]  ;;  %v5262_v4 = vld [vmem:[#allocation3 + $0x30] sm:$0xff] }
 0xb25   :  { %5437 = vmatpush1.bf16.msra.mxu0 %v5296_v55  ;;  %5478 = vmatpush1.bf16.msra.mxu1 %v5298_v43  ;;  %v5269_v17 = vld [vmem:[#allocation3 + $0x68] sm:$0xff]  ;;  %v5271_v34 = vld [vmem:[#allocation3 + $0x78] sm:$0xff]  ;;  %v5268_v10 = vld [vmem:[#allocation3 + $0x60] sm:$0xff] }
 0xb26   :  { %5438 = vmatprep.subr.bf16.mxu0 %v5305_v50  ;;  %5479 = vmatprep.subr.bf16.mxu1 %v5307_v16  ;;  %v5270_v56 = vld [vmem:[#allocation3 + $0x70] sm:$0xff]  ;;  %v5277_v27 = vld [vmem:[#allocation3 + $0xa8] sm:$0xff]  ;;  %v5279_v52 = vld [vmem:[#allocation3 + $0xb8] sm:$0xff] }
 0xb27   :  { %v5276_v29 = vld [vmem:[#allocation3 + $0xa0] sm:$0xff]  ;;  %v5278_v24 = vld [vmem:[#allocation3 + $0xb0] sm:$0xff]  ;;  %v5285_v63 = vld [vmem:[#allocation3 + $0xe8] sm:$0xff] }
 0xb28   :  { %v5287_v42 = vld [vmem:[#allocation3 + $0xf8] sm:$0xff]  ;;  %v5284_v58 = vld [vmem:[#allocation3 + $0xe0] sm:$0xff]  ;;  %v5286_v6 = vld [vmem:[#allocation3 + $0xf0] sm:$0xff] }
 0xb29   :  { %5439 = vmatpush1.bf16.msra.mxu0 %v5304_v62  ;;  %5480 = vmatpush1.bf16.msra.mxu1 %v5306_v26  ;;  %v5293_v9 = vld [vmem:[#allocation3 + $0x128] sm:$0xff]  ;;  %v5295_v28 = vld [vmem:[#allocation3 + $0x138] sm:$0xff]  ;;  %v5294_v31 = vld [vmem:[#allocation3 + $0x130] sm:$0xff] }
 0xb2a   :  { %5440 = vmatprep.subr.bf16.mxu0 %v5313_v30  ;;  %5481 = vmatprep.subr.bf16.mxu1 %v5315_v51  ;;  %v5301_v57 = vld [vmem:[#allocation3 + $0x168] sm:$0xff]  ;;  %v5303_v55 = vld [vmem:[#allocation3 + $0x178] sm:$0xff]  ;;  %v5300_v43 = vld [vmem:[#allocation3 + $0x160] sm:$0xff] }
 0xb2b   :  { %v5302_v50 = vld [vmem:[#allocation3 + $0x170] sm:$0xff]  ;;  %v5309_v16 = vld [vmem:[#allocation3 + $0x1a8] sm:$0xff]  ;;  %v5311_v62 = vld [vmem:[#allocation3 + $0x1b8] sm:$0xff] }
 0xb2c   :  { %v5308_v26 = vld [vmem:[#allocation3 + $0x1a0] sm:$0xff]  ;;  %v5310_v30 = vld [vmem:[#allocation3 + $0x1b0] sm:$0xff]  ;;  %v5317_v51 = vld [vmem:[#allocation3 + $0x1e8] sm:$0xff] }
 0xb2d   :  { %5441 = vmatpush1.bf16.msra.mxu0 %v5312_v11  ;;  %5482 = vmatpush1.bf16.msra.mxu1 %v5314_v48  ;;  %v5319_v11 = vld [vmem:[#allocation3 + $0x1f8] sm:$0xff]  ;;  %v5316_v48 = vld [vmem:[#allocation3 + $0x1e0] sm:$0xff] }
 0xb2e   :  { %5442 = vmatprep.subr.bf16.mxu0 %v5321_v14  ;;  %5483 = vmatprep.subr.bf16.mxu1 %v5323_v37  ;;  %v5318_v14 = vld [vmem:[#allocation3 + $0x1f0] sm:$0xff]  ;;  %v5325_v37 = vld [vmem:[#allocation3 + $0x228] sm:$0xff] }
 0xb31   :  { %5443 = vmatpush1.bf16.msra.mxu0 %v5320_v20  ;;  %5484 = vmatpush1.bf16.msra.mxu1 %v5322_v36  ;;  %v5327_v20 = vld [vmem:[#allocation3 + $0x238] sm:$0xff]  ;;  %v5324_v36 = vld [vmem:[#allocation3 + $0x220] sm:$0xff] }
 0xb32   :  { %5444 = vmatprep.subr.bf16.mxu0 %v5329_v25  ;;  %5485 = vmatprep.subr.bf16.mxu1 %v5331_v1  ;;  %v5326_v25 = vld [vmem:[#allocation3 + $0x230] sm:$0xff]  ;;  %v5333_v1 = vld [vmem:[#allocation3 + $0x268] sm:$0xff] }
 0xb35   :  { %5445 = vmatpush1.bf16.msra.mxu0 %v5328_v12  ;;  %5486 = vmatpush1.bf16.msra.mxu1 %v5330_v38  ;;  %v5335_v12 = vld [vmem:[#allocation3 + $0x278] sm:$0xff]  ;;  %v5332_v38 = vld [vmem:[#allocation3 + $0x260] sm:$0xff] }
 0xb36   :  { %5446 = vmatprep.subr.bf16.mxu0 %v5337_v2  ;;  %5487 = vmatprep.subr.bf16.mxu1 %v5339_v0  ;;  %v5334_v2 = vld [vmem:[#allocation3 + $0x270] sm:$0xff]  ;;  %v5341_v0 = vld [vmem:[#allocation3 + $0x2a8] sm:$0xff] }
 0xb39   :  { %5447 = vmatpush1.bf16.msra.mxu0 %v5336_v23  ;;  %5488 = vmatpush1.bf16.msra.mxu1 %v5338_v21  ;;  %v5343_v23 = vld [vmem:[#allocation3 + $0x2b8] sm:$0xff]  ;;  %v5340_v21 = vld [vmem:[#allocation3 + $0x2a0] sm:$0xff] }
 0xb3a   :  { %5448 = vmatprep.subr.bf16.mxu0 %v5345_v7  ;;  %5489 = vmatprep.subr.bf16.mxu1 %v5347_v46  ;;  %v5342_v7 = vld [vmem:[#allocation3 + $0x2b0] sm:$0xff]  ;;  %v5349_v46 = vld [vmem:[#allocation3 + $0x2e8] sm:$0xff] }
 0xb3d   :  { %5449 = vmatpush1.bf16.msra.mxu0 %v5344_v18  ;;  %5490 = vmatpush1.bf16.msra.mxu1 %v5346_v47  ;;  %v5351_v18 = vld [vmem:[#allocation3 + $0x2f8] sm:$0xff]  ;;  %v5348_v47 = vld [vmem:[#allocation3 + $0x2e0] sm:$0xff] }
 0xb3e   :  { %5450 = vmatprep.subr.bf16.mxu0 %v5353_v61  ;;  %5491 = vmatprep.subr.bf16.mxu1 %v5355_v22  ;;  %v5350_v61 = vld [vmem:[#allocation3 + $0x2f0] sm:$0xff]  ;;  %v5357_v22 = vld [vmem:[#allocation3 + $0x328] sm:$0xff] }
 0xb41   :  { %5451 = vmatpush1.bf16.msra.mxu0 %v5352_v45  ;;  %5492 = vmatpush1.bf16.msra.mxu1 %v5354_v54  ;;  %v5359_v45 = vld [vmem:[#allocation3 + $0x338] sm:$0xff]  ;;  %v5356_v54 = vld [vmem:[#allocation3 + $0x320] sm:$0xff] }
 0xb42   :  { %5452 = vmatprep.subr.bf16.mxu0 %v5361_v59  ;;  %5493 = vmatprep.subr.bf16.mxu1 %v5363_v3  ;;  %v5358_v59 = vld [vmem:[#allocation3 + $0x330] sm:$0xff]  ;;  %v5365_v3 = vld [vmem:[#allocation3 + $0x368] sm:$0xff] }
 0xb45   :  { %5453 = vmatpush1.bf16.msra.mxu0 %v5360_v39  ;;  %5494 = vmatpush1.bf16.msra.mxu1 %v5362_v44  ;;  %v5367_v39 = vld [vmem:[#allocation3 + $0x378] sm:$0xff]  ;;  %v5364_v44 = vld [vmem:[#allocation3 + $0x360] sm:$0xff] }
 0xb46   :  { %5454 = vmatprep.subr.bf16.mxu0 %v5369_v33  ;;  %5495 = vmatprep.subr.bf16.mxu1 %v5371_v35  ;;  %v5366_v33 = vld [vmem:[#allocation3 + $0x370] sm:$0xff]  ;;  %v5373_v35 = vld [vmem:[#allocation3 + $0x3a8] sm:$0xff] }
 0xb49   :  { %5455 = vmatpush1.bf16.msra.mxu0 %v5368_v13  ;;  %5496 = vmatpush1.bf16.msra.mxu1 %v5370_v40  ;;  %v5375_v13 = vld [vmem:[#allocation3 + $0x3b8] sm:$0xff]  ;;  %v5372_v40 = vld [vmem:[#allocation3 + $0x3a0] sm:$0xff] }
 0xb4a   :  { %5456 = vmatprep.subr.bf16.mxu0 %v5377_v49  ;;  %5497 = vmatprep.subr.bf16.mxu1 %v5379_v5  ;;  %v5374_v49 = vld [vmem:[#allocation3 + $0x3b0] sm:$0xff]  ;;  %v5381_v5 = vld [vmem:[#allocation3 + $0x3e8] sm:$0xff] }
 0xb4d   :  { %5457 = vmatpush1.bf16.msra.mxu0 %v5376_v41  ;;  %5498 = vmatpush1.bf16.msra.mxu1 %v5378_v8  ;;  %v5383_v41 = vld [vmem:[#allocation3 + $0x3f8] sm:$0xff]  ;;  %v5380_v8 = vld [vmem:[#allocation3 + $0x3e0] sm:$0xff] }
 0xb4e   :  { %5508 = vmatprep.subr.bf16.mxu0 %v5261_v19  ;;  %5549 = vmatprep.subr.bf16.mxu1 %v5263_v32  ;;  %v5382_v19 = vld [vmem:[#allocation3 + $0x3f0] sm:$0xff]  ;;  %v11474_v32 = vld [vmem:[#allocation21_spill] sm:$0xff] }
 0xb50   :  { %5459 = vmatmul.mubr.bf16.vlgmr.msra.gmra.mrb[64].mxu0 %v9826_v53  ;;  %5500 = vmatmul.mubr.bf16.vlgmr.msra.gmra.mrb[64].mxu1 %v9826_v53 }
 0xb51   :  { %5509 = vmatpush1.bf16.msra.mxu0 %v5260_v15  ;;  %5550 = vmatpush1.bf16.msra.mxu1 %v5262_v4  ;;  %v11475_v15 = vld [vmem:[#allocation37_spill] sm:$0xff] }
 0xb52   :  { %5510 = vmatprep.subr.bf16.mxu0 %v5269_v17  ;;  %5551 = vmatprep.subr.bf16.mxu1 %v5271_v34  ;;  %v11476_v4 = vld [vmem:[#allocation13_spill] sm:$0xff]  ;;  %v11478_v34 = vld [vmem:[#allocation22_spill] sm:$0xff] }
 0xb53   :  { %5540 = vmatprep.mubr.bf16.mxu0 %v9820_v60  ;;  %5581 = vmatprep.mubr.bf16.mxu1 %v9820_v60  ;;  %v5292_v60 = vld [vmem:[#allocation3 + $0x120] sm:$0xff] }
 0xb54   :  { %v11477_v17 = vld [vmem:[#allocation29_spill] sm:$0xff] }
 0xb55   :  { %5511 = vmatpush1.bf16.msra.mxu0 %v5268_v10  ;;  %5552 = vmatpush1.bf16.msra.mxu1 %v5270_v56  ;;  %v11479_v10 = vld [vmem:[#allocation38_spill] sm:$0xff] }
 0xb56   :  { %5512 = vmatprep.subr.bf16.mxu0 %v5277_v27  ;;  %5553 = vmatprep.subr.bf16.mxu1 %v5279_v52  ;;  %v11480_v56 = vld [vmem:[#allocation14_spill] sm:$0xff]  ;;  %v11482_v52 = vld [vmem:[#allocation23_spill] sm:$0xff] }
 0xb57   :  { %v11481_v27 = vld [vmem:[#allocation30_spill] sm:$0xff] }
 0xb59   :  { %5513 = vmatpush1.bf16.msra.mxu0 %v5276_v29  ;;  %5554 = vmatpush1.bf16.msra.mxu1 %v5278_v24  ;;  %v11483_v29 = vld [vmem:[#allocation39_spill] sm:$0xff] }
 0xb5a   :  { %5514 = vmatprep.subr.bf16.mxu0 %v5285_v63  ;;  %5555 = vmatprep.subr.bf16.mxu1 %v5287_v42  ;;  %v11484_v24 = vld [vmem:[#allocation15_spill] sm:$0xff]  ;;  %v11487_v42 = vld [vmem:[#allocation40_spill] sm:$0xff] }
 0xb5b   :  { %v11485_v63 = vld [vmem:[#allocation31_spill] sm:$0xff] }
 0xb5d   :  { %5515 = vmatpush1.bf16.msra.mxu0 %v5284_v58  ;;  %5556 = vmatpush1.bf16.msra.mxu1 %v5286_v6  ;;  %v11488_v58 = vld [vmem:[#allocation16_spill] sm:$0xff] }
 0xb5e   :  { %5516 = vmatprep.subr.bf16.mxu0 %v5293_v9  ;;  %5557 = vmatprep.subr.bf16.mxu1 %v5295_v28  ;;  %v11489_v6 = vld [vmem:[#allocation32_spill] sm:$0xff]  ;;  %v11490_v9 = vld [vmem:[#allocation25_spill] sm:$0xff] }
 0xb5f   :  { %v11491_v28 = vld [vmem:[#allocation41_spill] sm:$0xff] }
 0xb61   :  { %5517 = vmatpush1.bf16.msra.mxu0 %v5292_v60  ;;  %5558 = vmatpush1.bf16.msra.mxu1 %v5294_v31  ;;  %v11492_v60 = vld [vmem:[#allocation17_spill] sm:$0xff] }
 0xb62   :  { %5518 = vmatprep.subr.bf16.mxu0 %v5301_v57  ;;  %5559 = vmatprep.subr.bf16.mxu1 %v5303_v55  ;;  %v11493_v31 = vld [vmem:[#allocation33_spill] sm:$0xff]  ;;  %v11494_v57 = vld [vmem:[#allocation26_spill] sm:$0xff] }
 0xb63   :  { %v11495_v55 = vld [vmem:[#allocation42_spill] sm:$0xff] }
 0xb65   :  { %5519 = vmatpush1.bf16.msra.mxu0 %v5300_v43  ;;  %5560 = vmatpush1.bf16.msra.mxu1 %v5302_v50  ;;  %v11496_v43 = vld [vmem:[#allocation18_spill] sm:$0xff] }
 0xb66   :  { %5520 = vmatprep.subr.bf16.mxu0 %v5309_v16  ;;  %5561 = vmatprep.subr.bf16.mxu1 %v5311_v62  ;;  %v11497_v50 = vld [vmem:[#allocation34_spill] sm:$0xff]  ;;  %v11498_v16 = vld [vmem:[#allocation27_spill] sm:$0xff] }
 0xb67   :  { %v11499_v62 = vld [vmem:[#allocation43_spill] sm:$0xff] }
 0xb69   :  { %5521 = vmatpush1.bf16.msra.mxu0 %v5308_v26  ;;  %5562 = vmatpush1.bf16.msra.mxu1 %v5310_v30  ;;  %v11500_v26 = vld [vmem:[#allocation19_spill] sm:$0xff] }
 0xb6a   :  { %5522 = vmatprep.subr.bf16.mxu0 %v5317_v51  ;;  %5563 = vmatprep.subr.bf16.mxu1 %v5319_v11  ;;  %v11501_v30 = vld [vmem:[#allocation35_spill] sm:$0xff]  ;;  %v11502_v51 = vld [vmem:[#allocation28_spill] sm:$0xff] }
 0xb6b   :  { %v11503_v11 = vld [vmem:[#allocation44_spill] sm:$0xff] }
 0xb6d   :  { %5523 = vmatpush1.bf16.msra.mxu0 %v5316_v48  ;;  %5564 = vmatpush1.bf16.msra.mxu1 %v5318_v14  ;;  %v11504_v48 = vld [vmem:[#allocation20_spill] sm:$0xff] }
 0xb6e   :  { %5524 = vmatprep.subr.bf16.mxu0 %v5325_v37  ;;  %5565 = vmatprep.subr.bf16.mxu1 %v5327_v20  ;;  %v11505_v14 = vld [vmem:[#allocation36_spill] sm:$0xff]  ;;  %v11506_v37 = vld [vmem:[#allocation53_spill] sm:$0xff] }
 0xb6f   :  { %v11507_v20 = vld [vmem:[#allocation69_spill] sm:$0xff] }
 0xb71   :  { %5525 = vmatpush1.bf16.msra.mxu0 %v5324_v36  ;;  %5566 = vmatpush1.bf16.msra.mxu1 %v5326_v25  ;;  %v9871_v36 = vld [vmem:[%s9939_s5] sm:$0xff] }
 0xb72   :  { %5526 = vmatprep.subr.bf16.mxu0 %v5333_v1  ;;  %5567 = vmatprep.subr.bf16.mxu1 %v5335_v12  ;;  %v11508_v25 = vld [vmem:[#allocation205_spill] sm:$0xff]  ;;  %v11509_v12 = vld [vmem:[#allocation207_spill] sm:$0xff] }
 0xb73   :  { %v5389_v1 = vrot.slane %v9871_v36, %v11508_v25 }
 0xb75   :  { %5527 = vmatpush1.bf16.msra.mxu0 %v5332_v38  ;;  %5568 = vmatpush1.bf16.msra.mxu1 %v5334_v2  ;;  %v5397_v38 = vrot.slane %v9871_v36, %v11509_v12  ;;  %v11510_v2 = vld [vmem:[#allocation206_spill] sm:$0xff] }
 0xb76   :  { %5528 = vmatprep.subr.bf16.mxu0 %v5341_v0  ;;  %5569 = vmatprep.subr.bf16.mxu1 %v5343_v23  ;;  %v5393_v0 = vrot.slane %v9871_v36, %v11510_v2  ;;  %v11511_v23 = vld [vmem:[#allocation208_spill] sm:$0xff] }
 0xb79   :  { %5529 = vmatpush1.bf16.msra.mxu0 %v5340_v21  ;;  %5570 = vmatpush1.bf16.msra.mxu1 %v5342_v7  ;;  %v5401_v21 = vrot.slane %v9871_v36, %v11511_v23 }
 0xb7a   :  { %5530 = vmatprep.subr.bf16.mxu0 %v5349_v46  ;;  %5571 = vmatprep.subr.bf16.mxu1 %v5351_v18 }
 0xb7d   :  { %5531 = vmatpush1.bf16.msra.mxu0 %v5348_v47  ;;  %5572 = vmatpush1.bf16.msra.mxu1 %v5350_v61 }
 0xb7e   :  { %5532 = vmatprep.subr.bf16.mxu0 %v5357_v22  ;;  %5573 = vmatprep.subr.bf16.mxu1 %v5359_v45 }
 0xb81   :  { %5533 = vmatpush1.bf16.msra.mxu0 %v5356_v54  ;;  %5574 = vmatpush1.bf16.msra.mxu1 %v5358_v59 }
 0xb82   :  { %5534 = vmatprep.subr.bf16.mxu0 %v5365_v3  ;;  %5575 = vmatprep.subr.bf16.mxu1 %v5367_v39 }
 0xb85   :  { %5535 = vmatpush1.bf16.msra.mxu0 %v5364_v44  ;;  %5576 = vmatpush1.bf16.msra.mxu1 %v5366_v33 }
 0xb86   :  { %5536 = vmatprep.subr.bf16.mxu0 %v5373_v35  ;;  %5577 = vmatprep.subr.bf16.mxu1 %v5375_v13 }
 0xb89   :  { %5537 = vmatpush1.bf16.msra.mxu0 %v5372_v40  ;;  %5578 = vmatpush1.bf16.msra.mxu1 %v5374_v49 }
 0xb8a   :  { %5538 = vmatprep.subr.bf16.mxu0 %v5381_v5  ;;  %5579 = vmatprep.subr.bf16.mxu1 %v5383_v41 }
 0xb8d   :  { %5539 = vmatpush1.bf16.msra.mxu0 %v5380_v8  ;;  %5580 = vmatpush1.bf16.msra.mxu1 %v5382_v19  ;;  %v11512_v19 = vld [vmem:[#allocation45_spill] sm:$0xff] }
 0xb8e   :  { %6021 = vmatprep.subr.bf16.mxu0 %v11474_v32  ;;  %6043 = vmatprep.subr.bf16.mxu1 %v11475_v15  ;;  %v11513_v32 = vld [vmem:[#allocation61_spill] sm:$0xff]  ;;  %v11514_v15 = vld [vmem:[#allocation54_spill] sm:$0xff] }
 0xb90   :  { %5541 = vmatmul.mubr.bf16.vlgmr.msra.gmra.mrb[68].mxu0 %v9826_v53  ;;  %5582 = vmatmul.mubr.bf16.vlgmr.msra.gmra.mrb[68].mxu1 %v9826_v53  ;;  %v11486_v53 = vld [vmem:[#allocation24_spill] sm:$0xff] }
 0xb91   :  { %6022 = vmatpush3.bf16.msra.mxu0 %v11476_v4  ;;  %6044 = vmatpush3.bf16.msra.mxu1 %v11477_v17  ;;  %v11515_v4 = vld [vmem:[#allocation70_spill] sm:$0xff] }
 0xb92   :  { %6023 = vmatprep.subr.bf16.mxu0 %v11478_v34  ;;  %6045 = vmatprep.subr.bf16.mxu1 %v11479_v10  ;;  %v11516_v17 = vld [vmem:[#allocation46_spill] sm:$0xff]  ;;  %v11518_v10 = vld [vmem:[#allocation55_spill] sm:$0xff] }
 0xb93   :  { %v11517_v34 = vld [vmem:[#allocation62_spill] sm:$0xff] }
 0xb95   :  { %6024 = vmatpush3.bf16.msra.mxu0 %v11480_v56  ;;  %6046 = vmatpush3.bf16.msra.mxu1 %v11481_v27  ;;  %v11519_v56 = vld [vmem:[#allocation71_spill] sm:$0xff] }
 0xb96   :  { %6025 = vmatprep.subr.bf16.mxu0 %v11482_v52  ;;  %6047 = vmatprep.subr.bf16.mxu1 %v11483_v29  ;;  %v11520_v27 = vld [vmem:[#allocation47_spill] sm:$0xff]  ;;  %v11522_v29 = vld [vmem:[#allocation56_spill] sm:$0xff] }
 0xb97   :  { %v11521_v52 = vld [vmem:[#allocation63_spill] sm:$0xff] }
 0xb99   :  { %6026 = vmatpush3.bf16.msra.mxu0 %v11484_v24  ;;  %6048 = vmatpush3.bf16.msra.mxu1 %v11485_v63  ;;  %v11523_v24 = vld [vmem:[#allocation72_spill] sm:$0xff] }
 0xb9a   :  { %6027 = vmatprep.subr.bf16.mxu0 %v11486_v53  ;;  %6049 = vmatprep.subr.bf16.mxu1 %v11487_v42  ;;  %v11524_v63 = vld [vmem:[#allocation48_spill] sm:$0xff]  ;;  %v11526_v42 = vld [vmem:[#allocation57_spill] sm:$0xff] }
 0xb9b   :  { %v11525_v53 = vld [vmem:[#allocation64_spill] sm:$0xff] }
 0xb9d   :  { %6028 = vmatpush3.bf16.msra.mxu0 %v11488_v58  ;;  %6050 = vmatpush3.bf16.msra.mxu1 %v11489_v6  ;;  %v11527_v58 = vld [vmem:[#allocation73_spill] sm:$0xff] }
 0xb9e   :  { %6029 = vmatprep.subr.bf16.mxu0 %v11490_v9  ;;  %6051 = vmatprep.subr.bf16.mxu1 %v11491_v28  ;;  %v11528_v6 = vld [vmem:[#allocation49_spill] sm:$0xff]  ;;  %v11530_v28 = vld [vmem:[#allocation58_spill] sm:$0xff] }
 0xb9f   :  { %v11529_v9 = vld [vmem:[#allocation65_spill] sm:$0xff] }
 0xba1   :  { %6030 = vmatpush3.bf16.msra.mxu0 %v11492_v60  ;;  %6052 = vmatpush3.bf16.msra.mxu1 %v11493_v31  ;;  %v11531_v60 = vld [vmem:[#allocation74_spill] sm:$0xff] }
 0xba2   :  { %6031 = vmatprep.subr.bf16.mxu0 %v11494_v57  ;;  %6053 = vmatprep.subr.bf16.mxu1 %v11495_v55  ;;  %v11532_v31 = vld [vmem:[#allocation50_spill] sm:$0xff]  ;;  %v11534_v55 = vld [vmem:[#allocation59_spill] sm:$0xff] }
 0xba3   :  { %v11533_v57 = vld [vmem:[#allocation66_spill] sm:$0xff] }
 0xba5   :  { %6032 = vmatpush3.bf16.msra.mxu0 %v11496_v43  ;;  %6054 = vmatpush3.bf16.msra.mxu1 %v11497_v50  ;;  %v11535_v43 = vld [vmem:[#allocation75_spill] sm:$0xff] }
 0xba6   :  { %6033 = vmatprep.subr.bf16.mxu0 %v11498_v16  ;;  %6055 = vmatprep.subr.bf16.mxu1 %v11499_v62  ;;  %v11536_v50 = vld [vmem:[#allocation51_spill] sm:$0xff]  ;;  %v11538_v62 = vld [vmem:[#allocation60_spill] sm:$0xff] }
 0xba7   :  { %v11537_v16 = vld [vmem:[#allocation67_spill] sm:$0xff] }
 0xba9   :  { %6034 = vmatpush3.bf16.msra.mxu0 %v11500_v26  ;;  %6056 = vmatpush3.bf16.msra.mxu1 %v11501_v30  ;;  %v11539_v26 = vld [vmem:[#allocation76_spill] sm:$0xff] }
 0xbaa   :  { %6035 = vmatprep.subr.bf16.mxu0 %v11502_v51  ;;  %6057 = vmatprep.subr.bf16.mxu1 %v11503_v11  ;;  %v11540_v30 = vld [vmem:[#allocation52_spill] sm:$0xff]  ;;  %v11542_v11 = vld [vmem:[#allocation225_spill] sm:$0xff] }
 0xbab   :  { %v11541_v51 = vld [vmem:[#allocation68_spill] sm:$0xff] }
 0xbad   :  { %6036 = vmatpush3.bf16.msra.mxu0 %v11504_v48  ;;  %6058 = vmatpush3.bf16.msra.mxu1 %v11505_v14  ;;  %v5405_v48 = vrot.slane %v9871_v36, %v11542_v11  ;;  %v11543_v14 = vld [vmem:[#allocation227_spill] sm:$0xff] }
 0xbae   :  { %6065 = vmatprep.subr.bf16.mxu0 %v11506_v37  ;;  %6087 = vmatprep.subr.bf16.mxu1 %v11507_v20  ;;  %v5413_v37 = vrot.slane %v9871_v36, %v11543_v14  ;;  %v11544_v20 = vld [vmem:[#allocation226_spill] sm:$0xff] }
 0xbaf   :  { %v5409_v25 = vrot.slane %v9871_v36, %v11544_v20 }
 0xc23   :  { %v5460_v7 = vpop.f32.mrb[64].mxu0  ;;  %v5501_v46 = vpop.f32.mrb[64].mxu1 }
 0xc24   :  { %v5461_v18 = vadd.f32 %v5460_v7, %v5389_v1  ;;  %v5502_v47 = vadd.f32 %v5501_v46, %v5397_v38  ;;  %v5462_v61 = vpop.f32.mrb[65].mxu0  ;;  %v5503_v22 = vpop.f32.mrb[65].mxu1  ;;  %v11545_v1 = vld [vmem:[#allocation228_spill] sm:$0xff] }
 0xc25   :  { %v5463_v45 = vadd.f32 %v5462_v61, %v5393_v0  ;;  %v5504_v54 = vadd.f32 %v5503_v22, %v5401_v21  ;;  %v5464_v59 = vpop.f32.mrb[66].mxu0  ;;  %v5505_v3 = vpop.f32.mrb[66].mxu1  ;;  %v5417_v12 = vrot.slane %v9871_v36, %v11545_v1 }
 0xc26   :  { %v5590_v39 = vmax.f32 %v5461_v18, 0.0  ;;  %v5592_v44 = vmax.f32 %v5502_v47, 0.0  ;;  %v5465_v33 = vpop.f32.mrb[67].mxu0  ;;  %v5506_v35 = vpop.f32.mrb[67].mxu1 }
 0xc27   :  { %v5591_v13 = vmax.f32 %v5463_v45, 0.0  ;;  %v5593_v40 = vmax.f32 %v5504_v54, 0.0 }
 0xc28   :  { %v5598_v49 = vpack.c.bf16 %v5590_v39, %v5590_v39  ;;  %v5600_v5 = vpack.c.bf16 %v5592_v44, %v5592_v44 }
 0xc29   :  { %v5599_v41 = vpack.c.bf16 %v5591_v13, %v5591_v13  ;;  %v5601_v8 = vpack.c.bf16 %v5593_v40, %v5593_v40 }
 0xc2b   :  { %5709 = vmatprep.mubr.bf16.mxu0 %v5599_v41  ;;  %5749 = vmatprep.mubr.bf16.mxu1 %v5601_v8 }
 0xc2c   :  { %5710 = vmatmul.mubr.bf16.vlgmr.msra.gmra.mrb[72].mxu0 %v5598_v49  ;;  %5750 = vmatmul.mubr.bf16.vlgmr.msra.gmra.mrb[72].mxu1 %v5600_v5  ;;  %v6018_v49 = vld [vmem:[%s9941_s7] ss:$0 sm:$0xff]  ;;  %s6243_s7 = smov [#allocation6]  }
 0xc2d   :  { %6066 = vmatpush3.bf16.msra.mxu0 %v11512_v19  ;;  %6088 = vmatpush3.bf16.msra.mxu1 %v11513_v32  ;;  %s5844_s9 = sshll.u32 %s6243_s7, 4  ;;  %s5845_s9 = int_to_ptr.vmem [resolvable:$true] %s5844_s9 }
 0xc2e   :  { %6067 = vmatprep.subr.bf16.mxu0 %v11514_v15  ;;  %6089 = vmatprep.subr.bf16.mxu1 %v11515_v4  ;;  %s6210_s4 = scalar_lea.vmem %s5845_s9, 32  ;;  %p6215_p1 = scmp.lt.s32.totalorder %s5845_s9, %s5845_s9 }
 0xc2f   :  { %p6211_p0 = scmp.ne.s32.totalorder %s5845_s9, %s6210_s4  ;;  %p6216_p2 = scmp.lt.s32.totalorder %s6210_s4, %s6210_s4 }
 0xc31   :  { %6068 = vmatpush3.bf16.msra.mxu0 %v11516_v17  ;;  %6090 = vmatpush3.bf16.msra.mxu1 %v11517_v34  ;;  %p6217_p3 = por %p6216_p2, %p6215_p1 }
 0xc32   :  { %6069 = vmatprep.subr.bf16.mxu0 %v11518_v10  ;;  %6091 = vmatprep.subr.bf16.mxu1 %v11519_v56 }
 0xc33   :  { %p6218_p4 = pnand %p6217_p3, %p6211_p0 }
 0xc35   :  { %6070 = vmatpush3.bf16.msra.mxu0 %v11520_v27  ;;  %6092 = vmatpush3.bf16.msra.mxu1 %v11521_v52 }
 0xc36   :  { %6071 = vmatprep.subr.bf16.mxu0 %v11522_v29  ;;  %6093 = vmatprep.subr.bf16.mxu1 %v11523_v24 }
 0xc39   :  { %6072 = vmatpush3.bf16.msra.mxu0 %v11524_v63  ;;  %6094 = vmatpush3.bf16.msra.mxu1 %v11525_v53 }
 0xc3a   :  { %6073 = vmatprep.subr.bf16.mxu0 %v11526_v42  ;;  %6095 = vmatprep.subr.bf16.mxu1 %v11527_v58 }
 0xc3d   :  { %6074 = vmatpush3.bf16.msra.mxu0 %v11528_v6  ;;  %6096 = vmatpush3.bf16.msra.mxu1 %v11529_v9 }
 0xc3e   :  { %6075 = vmatprep.subr.bf16.mxu0 %v11530_v28  ;;  %6097 = vmatprep.subr.bf16.mxu1 %v11531_v60 }
 0xc41   :  { %6076 = vmatpush3.bf16.msra.mxu0 %v11532_v31  ;;  %6098 = vmatpush3.bf16.msra.mxu1 %v11533_v57 }
 0xc42   :  { %6077 = vmatprep.subr.bf16.mxu0 %v11534_v55  ;;  %6099 = vmatprep.subr.bf16.mxu1 %v11535_v43 }
 0xc45   :  { %6078 = vmatpush3.bf16.msra.mxu0 %v11536_v50  ;;  %6100 = vmatpush3.bf16.msra.mxu1 %v11537_v16 }
 0xc46   :  { %6079 = vmatprep.subr.bf16.mxu0 %v11538_v62  ;;  %6101 = vmatprep.subr.bf16.mxu1 %v11539_v26 }
 0xc49   :  { %6080 = vmatpush3.bf16.msra.mxu0 %v11540_v30  ;;  %6102 = vmatpush3.bf16.msra.mxu1 %v11541_v51 }
 0xc63   :  { %v5542_v38 = vpop.f32.mrb[68].mxu0  ;;  %v5583_v2 = vpop.f32.mrb[68].mxu1 }
 0xc64   :  { %v5543_v0 = vadd.f32 %v5542_v38, %v5405_v48  ;;  %v5584_v23 = vadd.f32 %v5583_v2, %v5413_v37  ;;  %v5544_v21 = vpop.f32.mrb[69].mxu0  ;;  %v5585_v7 = vpop.f32.mrb[69].mxu1 }
 0xc65   :  { %v5545_v46 = vadd.f32 %v5544_v21, %v5409_v25  ;;  %v5586_v18 = vadd.f32 %v5585_v7, %v5417_v12  ;;  %v5546_v47 = vpop.f32.mrb[70].mxu0  ;;  %v5587_v61 = vpop.f32.mrb[70].mxu1 }
 0xc66   :  { %v5594_v22 = vmax.f32 %v5543_v0, 0.0  ;;  %v5596_v45 = vmax.f32 %v5584_v23, 0.0  ;;  %v5547_v54 = vpop.f32.mrb[71].mxu0  ;;  %v5588_v59 = vpop.f32.mrb[71].mxu1 }
 0xc67   :  { %v5595_v3 = vmax.f32 %v5545_v46, 0.0  ;;  %v5597_v39 = vmax.f32 %v5586_v18, 0.0 }
 0xc68   :  { %v5604_v44 = vpack.c.bf16 %v5596_v45, %v5596_v45  ;;  %v5602_v36 = vpack.c.bf16 %v5594_v22, %v5594_v22 }
 0xc69   :  { %v5603_v33 = vpack.c.bf16 %v5595_v3, %v5595_v3  ;;  %v5605_v35 = vpack.c.bf16 %v5597_v39, %v5597_v39 }
 0xc6b   :  { %5789 = vmatprep.mubr.bf16.mxu0 %v5603_v33  ;;  %5829 = vmatprep.mubr.bf16.mxu1 %v5605_v35 }
 0xc6c   :  { %5790 = vmatmul.mubr.bf16.vlgmr.msra.gmra.mrb[76].mxu0 %v5602_v36  ;;  %5830 = vmatmul.mubr.bf16.vlgmr.msra.gmra.mrb[76].mxu1 %v5604_v44 }
 0xcff   :  { %v6037_v13 = vpop.f32.mrb[72].mxu0  ;;  %v6059_v40 = vpop.f32.mrb[72].mxu1 }
 0xd00   :  { %v6038_v5 = vpop.f32.mrb[73].mxu0  ;;  %v6060_v41 = vpop.f32.mrb[73].mxu1 }
 0xd01   :  { %v6039_v8 = vadd.f32 %v6038_v5, %v6037_v13  ;;  %v6061_v19 = vadd.f32 %v6060_v41, %v6059_v40  ;;  %v6040_v32 = vpop.f32.mrb[74].mxu0  ;;  %v6062_v15 = vpop.f32.mrb[74].mxu1 }
 0xd02   :  { %v6041_v4 = vpop.f32.mrb[75].mxu0  ;;  %v6063_v17 = vpop.f32.mrb[75].mxu1 }
 0xd03   :  { %v5712_v34 = vadd.f32 %v6039_v8, %v6018_v49 }
 0xd05   :  { %v5752_v10 = vadd.f32 %v6061_v19, %v5712_v34 }
 0xd3f   :  { %v6081_v56 = vpop.f32.mrb[76].mxu0  ;;  %v6103_v27 = vpop.f32.mrb[76].mxu1 }
 0xd40   :  { %v6082_v52 = vpop.f32.mrb[77].mxu0  ;;  %v6104_v29 = vpop.f32.mrb[77].mxu1 }
 0xd41   :  { %v6083_v24 = vadd.f32 %v6082_v52, %v6081_v56  ;;  %v6105_v63 = vadd.f32 %v6104_v29, %v6103_v27  ;;  %v6084_v53 = vpop.f32.mrb[78].mxu0  ;;  %v6106_v42 = vpop.f32.mrb[78].mxu1 }
 0xd42   :  { %v6085_v58 = vpop.f32.mrb[79].mxu0  ;;  %v6107_v6 = vpop.f32.mrb[79].mxu1 }
 0xd43   :  { %v5792_v9 = vadd.f32 %v6083_v24, %v5752_v10 }
 0xd45   :  { %v5832_v28 = vadd.f32 %v6105_v63, %v5792_v9 }
 0xd47   :  { %5837 = vst [vmem:[#allocation6] sm:$0x3] %v5832_v28 }
 0xd48   :  { %6221 = shalt.err (!%p6218_p4)
}
 0xd49   :  { %s6222_s11 = scalar_lea.hbm %s9942_s8, 32 }
 0xd4a   :  { %p6223_p5 = scmp.ne.s32.totalorder %s9942_s8, %s6222_s11  ;;  %p6226_p6 = scmp.lt.u32.totalorder %s6222_s11, %s9942_s8 }
 0xd4c   :  { %p6228_p7 = pnand %p6226_p6, %p6223_p5 }
 0xd4e   :  { %6231 = shalt.err (!%p6228_p7)
}
 0xd4f   :  { %5847 = dma.vmem_to_hbm [thread:$0]  %s5845_s9, 32, %s9942_s8, [#allocation7]  }
 0xd50   :  { %6236 = dma.done.wait [#allocation7], 32  }
 0xd51   :  { %6237 = vsyncadd [#allocation7], 4294967264 }
 0xd52   :  { %5851 = vsyncpa [#allocation7], 1 }
 0xd53   :  { %5852 = vsyncmov [#allocation5] }
 0xd56   :  { %s5853_s17 = vpop.sfrf %5852 }
 0xd57   :  { %p6019_p8 = scmp.ne.s32.totalorder %s5853_s17, 0 }
 0xd59   :  { %5857 = shalt.err (%p6019_p8)  }
 0xd5a   :  { %5859 = vsyncmov [#allocation5 + $0x1] }
 0xd5d   :  { %s5860_s18 = vpop.sfrf %5859 }
 0xd5e   :  { %p6020_p9 = scmp.ne.s32.totalorder %s5860_s18, 0 }
 0xd60   :  { %5864 = shalt.err (%p6020_p9)  }

</bundles_post_ra>
